<compile_context>
chip_gen: v5e
topology: v5e:2x2
jax: 0.10.0
libtpu: 0.0.40
codegen_flags: <defaults>
</compile_context>

<pallas_src>
import functools

import jax
import jax.numpy as jnp
from jax.experimental import pallas as pl
from jax.experimental.pallas import tpu as pltpu


_COL0 = 8  # sublane-aligned start column of the real image inside the padded slab


# ----------------------------------------------------------------------------
# Fused kernel: four 3x3 same-convs (im2col matmul each) for one batch element
# ----------------------------------------------------------------------------
def _fused_autoencoder_kernel(x_ref, w1_ref, b1_ref, w2_ref, b2_ref,
                              w3_ref, b3_ref, w4_ref, b4_ref,
                              o_ref, xpad_ref, *, H, W, C):
    """x_ref: (1,H,W,C) channel-padded input; w*: (9*C, Cout) im2col weights
    (row = (kh*3+kw)*C + cin); b*: (1, Cout); o_ref: (1, H*W, COUT_PAD);
    xpad_ref: (H+2, WPAD, C) VMEM slab, real columns at [_COL0, _COL0+W)."""
    HW = H * W

    def store_interior(val_hwc):
        # aligned store: row offset 1 (untiled dim), column offset 8 (8-aligned)
        xpad_ref[pl.ds(1, H), pl.ds(_COL0, W), :] = val_hwc

    def conv3x3(w_ref, b_ref, square):
        xp = xpad_ref[...]                                     # (H+2, WPAD, C)
        cols = [
            xp[kh:kh + H, _COL0 - 1 + kw:_COL0 - 1 + kw + W, :].reshape(HW, C)
            for kh in range(3) for kw in range(3)
        ]
        patches = jnp.concatenate(cols, axis=1)                # (HW, 9*C)
        y = jnp.dot(patches, w_ref[...], preferred_element_type=jnp.float32)
        y = y + b_ref[0]
        if square:
            y = y * y
        return y                                               # (HW, Cout)

    # Zero the slab every grid step: provides the zero conv border (and keeps
    # each core self-contained under "parallel" grid semantics).
    xpad_ref[...] = jnp.zeros_like(xpad_ref)
    store_interior(x_ref[0])

    y = conv3x3(w1_ref, b1_ref, square=True)       # enc1 + Square
    store_interior(y.reshape(H, W, C))
    y = conv3x3(w2_ref, b2_ref, square=False)      # enc2 (mask folded in w2/b2)
    store_interior(y.reshape(H, W, C))
    y = conv3x3(w3_ref, b3_ref, square=True)       # dec1 (convT) + Square
    store_interior(y.reshape(H, W, C))
    y = conv3x3(w4_ref, b4_ref, square=False)      # dec2 (convT), Cout padded
    o_ref[0] = y


# ----------------------------------------------------------------------------
# Weight transforms: PyTorch layouts -> im2col layout (9*C_pad, Cout)
# ----------------------------------------------------------------------------
def _conv_w_to_im2col(w_oihw, cin_pad):
    """nn.Conv2d weight (Cout, Cin, 3, 3) -> (9*cin_pad, Cout); zero rows for
    cin >= Cin so every layer uses the same padded channel width."""
    cout, cin = w_oihw.shape[0], w_oihw.shape[1]
    w = jnp.transpose(w_oihw, (2, 3, 1, 0)).astype(jnp.float32)  # (3,3,Cin,Cout)
    w = jnp.pad(w, ((0, 0), (0, 0), (0, cin_pad - cin), (0, 0)))
    return w.reshape(9 * cin_pad, cout)


def _convT_w_to_im2col(w_iohw, cin_pad):
    """nn.ConvTranspose2d weight (Cin, Cout, 3, 3), stride=1, pad=1 ->
    equivalent conv taps: swap in/out channels and flip the 3x3 kernel."""
    w_eq = jnp.transpose(w_iohw[:, :, ::-1, ::-1], (1, 0, 2, 3))  # -> OIHW
    return _conv_w_to_im2col(w_eq, cin_pad)


# ----------------------------------------------------------------------------
# Forward pass (NCHW in / NCHW out, matching the PyTorch module)
# ----------------------------------------------------------------------------
@functools.partial(jax.jit, static_argnames=("selected_neurons_layer2",))
def autoencoder_cifar10_forward(x_nchw, params, selected_neurons_layer2):
    N, cin, H, W = x_nchw.shape
    hidden = params["enc1_w"].shape[0]
    cout = params["dec2_w"].shape[1]
    cout_pad = 128                      # lane-dense output width
    wpad = ((_COL0 + W + 1) + 7) // 8 * 8

    sel = jnp.asarray(tuple(selected_neurons_layer2), jnp.int32)
    mask = jnp.zeros((hidden,), jnp.float32).at[sel].set(1.0)

    # im2col weights / biases; fold the static channel mask into enc2.
    w1 = _conv_w_to_im2col(params["enc1_w"], hidden)
    b1 = params["enc1_b"].reshape(1, hidden).astype(jnp.float32)
    w2 = _conv_w_to_im2col(params["enc2_w"], hidden) * mask[None, :]
    b2 = (params["enc2_b"].astype(jnp.float32) * mask).reshape(1, hidden)
    w3 = _convT_w_to_im2col(params["dec1_w"], hidden)
    b3 = params["dec1_b"].reshape(1, hidden).astype(jnp.float32)
    w4 = _convT_w_to_im2col(params["dec2_w"], hidden)
    w4 = jnp.pad(w4, ((0, 0), (0, cout_pad - cout)))
    b4 = jnp.pad(params["dec2_b"].astype(jnp.float32),
                 (0, cout_pad - cout)).reshape(1, cout_pad)

    # NCHW -> NHWC; pad channels to `hidden` so the kernel uses one lane width.
    x = jnp.transpose(x_nchw, (0, 2, 3, 1)).astype(jnp.float32)
    x = jnp.pad(x, ((0, 0), (0, 0), (0, 0), (0, hidden - cin)))

    kernel = functools.partial(_fused_autoencoder_kernel, H=H, W=W, C=hidden)
    flops = 2 * N * H * W * 9 * hidden * (3 * hidden + cout_pad)
    bytes_accessed = 4 * (x.size + w1.size + w2.size + w3.size + w4.size
                          + b1.size + b2.size + b3.size + b4.size
                          + N * H * W * cout_pad)

    out = pl.pallas_call(
        kernel,
        out_shape=jax.ShapeDtypeStruct((N, H * W, cout_pad), jnp.float32),
        grid_spec=pltpu.PrefetchScalarGridSpec(
            num_scalar_prefetch=0,
            grid=(N,),
            in_specs=[
                pl.BlockSpec((1, H, W, hidden), lambda n: (n, 0, 0, 0)),
                pl.BlockSpec((9 * hidden, hidden), lambda n: (0, 0)),    # w1
                pl.BlockSpec((1, hidden), lambda n: (0, 0)),             # b1
                pl.BlockSpec((9 * hidden, hidden), lambda n: (0, 0)),    # w2
                pl.BlockSpec((1, hidden), lambda n: (0, 0)),             # b2
                pl.BlockSpec((9 * hidden, hidden), lambda n: (0, 0)),    # w3
                pl.BlockSpec((1, hidden), lambda n: (0, 0)),             # b3
                pl.BlockSpec((9 * hidden, cout_pad), lambda n: (0, 0)),  # w4
                pl.BlockSpec((1, cout_pad), lambda n: (0, 0)),           # b4
            ],
            out_specs=pl.BlockSpec((1, H * W, cout_pad), lambda n: (n, 0, 0)),
            scratch_shapes=[pltpu.VMEM((H + 2, wpad, hidden), jnp.float32)],
        ),
        compiler_params=pltpu.CompilerParams(dimension_semantics=("parallel",)),
        cost_estimate=pl.CostEstimate(flops=flops, transcendentals=0,
                                      bytes_accessed=bytes_accessed),
    )(x, w1, b1, w2, b2, w3, b3, w4, b4)

    y = out[:, :, :cout].reshape(N, H, W, cout)
    return jnp.transpose(y, (0, 3, 1, 2))          # NHWC -> NCHW


# ----------------------------------------------------------------------------
# Deterministic parameter construction (PyTorch-default-style init)
# ----------------------------------------------------------------------------
def make_params(key, hidden=64, in_ch=3):
    def uinit(k, shape, fan_in):
        bound = 1.0 / jnp.sqrt(jnp.float32(fan_in))
        return jax.random.uniform(k, shape, jnp.float32, -bound, bound)

    ks = jax.random.split(key, 8)
    return {
        # encoder: Conv2d(3->64), Conv2d(64->64)   (OIHW)
        "enc1_w": uinit(ks[0], (hidden, in_ch, 3, 3), in_ch * 9),
        "enc1_b": uinit(ks[1], (hidden,), in_ch * 9),
        "enc2_w": uinit(ks[2], (hidden, hidden, 3, 3), hidden * 9),
        "enc2_b": uinit(ks[3], (hidden,), hidden * 9),
        # decoder: ConvTranspose2d(64->64), ConvTranspose2d(64->3)  (IOHW)
        "dec1_w": uinit(ks[4], (hidden, hidden, 3, 3), hidden * 9),
        "dec1_b": uinit(ks[5], (hidden,), hidden * 9),
        "dec2_w": uinit(ks[6], (hidden, in_ch, 3, 3), hidden * 9),
        "dec2_b": uinit(ks[7], (in_ch,), hidden * 9),
    }


# ----------------------------------------------------------------------------
# Pure-JAX reference (lax.conv) for a correctness sanity check
# ----------------------------------------------------------------------------
def _ref_forward(x_nchw, params, selected_neurons_layer2):
    hidden = params["enc1_w"].shape[0]
    mask = jnp.zeros((hidden,), jnp.float32)
    mask = mask.at[jnp.asarray(tuple(selected_neurons_layer2), jnp.int32)].set(1.0)

    def conv(x, w_oihw, b):
        y = jax.lax.conv_general_dilated(
            x, w_oihw, (1, 1), ((1, 1), (1, 1)),
            dimension_numbers=("NCHW", "OIHW", "NCHW"))
        return y + b[None, :, None, None]

    def convT_as_conv(x, w_iohw, b):
        w_eq = jnp.transpose(w_iohw[:, :, ::-1, ::-1], (1, 0, 2, 3))  # -> OIHW
        return conv(x, w_eq, b)

    h = conv(x_nchw, params["enc1_w"], params["enc1_b"]) ** 2
    h = conv(h, params["enc2_w"], params["enc2_b"])
    h = h * mask[None, :, None, None]
    h = convT_as_conv(h, params["dec1_w"], params["dec1_b"]) ** 2
    h = convT_as_conv(h, params["dec2_w"], params["dec2_b"])
    return h


if __name__ == "__main__":
    key = jax.random.PRNGKey(0)
    k_x, k_p = jax.random.split(key)

    # Small CIFAR-like input: batch=2, 3 channels, 16x16 spatial (NCHW).
    x = jax.random.normal(k_x, (2, 3, 16, 16), jnp.float32)
    params = make_params(k_p, hidden=64, in_ch=3)

    # Deterministic stand-in for load_selected_neurons(...)[2]: keep even chans.
    selected_neurons_layer2 = tuple(range(0, 64, 2))

    out = autoencoder_cifar10_forward(x, params, selected_neurons_layer2)
    out = jax.block_until_ready(out)
    assert out.shape == (2, 3, 16, 16) and out.dtype == jnp.float32

    ref = jax.block_until_ready(_ref_forward(x, params, selected_neurons_layer2))
    assert jnp.allclose(out, ref, rtol=2e-3, atol=2e-4), "mismatch vs lax.conv reference"

    print("KERNEL_OK")
</pallas_src>

<mosaic_0001>
module attributes {stable_mosaic.version = 11 : i64} {
  func.func @_fused_autoencoder_kernel(%arg0: i32, %arg1: memref<1x16x16x64xf32, #tpu.memory_space<vmem>>, %arg2: memref<576x64xf32, #tpu.memory_space<vmem>>, %arg3: memref<1x64xf32, #tpu.memory_space<vmem>>, %arg4: memref<576x64xf32, #tpu.memory_space<vmem>>, %arg5: memref<1x64xf32, #tpu.memory_space<vmem>>, %arg6: memref<576x64xf32, #tpu.memory_space<vmem>>, %arg7: memref<1x64xf32, #tpu.memory_space<vmem>>, %arg8: memref<576x128xf32, #tpu.memory_space<vmem>>, %arg9: memref<1x128xf32, #tpu.memory_space<vmem>>, %arg10: memref<1x256x128xf32, #tpu.memory_space<vmem>>, %arg11: memref<18x32x64xf32, #tpu.memory_space<vmem>>) attributes {dimension_semantics = [#tpu.dimension_semantics<parallel>], iteration_bounds = array<i64: 2>, scalar_prefetch = 0 : i64, scratch_operands = 1 : i64, tpu.core_type = #tpu.core_type<tc>, window_params = [{transform_indices = @transform_0, window_bounds = array<i64: 1, 16, 16, 64>}, {pipeline_mode = #tpu.pipeline_mode<synchronous>, transform_indices = @transform_1, window_bounds = array<i64: 576, 64>}, {pipeline_mode = #tpu.pipeline_mode<synchronous>, transform_indices = @transform_2, window_bounds = array<i64: 1, 64>}, {pipeline_mode = #tpu.pipeline_mode<synchronous>, transform_indices = @transform_3, window_bounds = array<i64: 576, 64>}, {pipeline_mode = #tpu.pipeline_mode<synchronous>, transform_indices = @transform_4, window_bounds = array<i64: 1, 64>}, {pipeline_mode = #tpu.pipeline_mode<synchronous>, transform_indices = @transform_5, window_bounds = array<i64: 576, 64>}, {pipeline_mode = #tpu.pipeline_mode<synchronous>, transform_indices = @transform_6, window_bounds = array<i64: 1, 64>}, {pipeline_mode = #tpu.pipeline_mode<synchronous>, transform_indices = @transform_7, window_bounds = array<i64: 576, 128>}, {pipeline_mode = #tpu.pipeline_mode<synchronous>, transform_indices = @transform_8, window_bounds = array<i64: 1, 128>}, {transform_indices = @transform_9, window_bounds = array<i64: 1, 256, 128>}]} {
    %cst = arith.constant 0.000000e+00 : f32
    %0 = vector.broadcast %cst : f32 to vector<18x32x64xf32>
    %c0 = arith.constant 0 : index
    %c0_0 = arith.constant 0 : index
    %c0_1 = arith.constant 0 : index
    %1 = vector.load %arg11[%c0, %c0_0, %c0_1] : memref<18x32x64xf32, #tpu.memory_space<vmem>>, vector<18x32x64xf32>
    tpu.vector_store %arg11[%c0, %c0_0, %c0_1], %0 {strides = array<i32>} : memref<18x32x64xf32, #tpu.memory_space<vmem>>, vector<18x32x64xf32>,
    %c0_2 = arith.constant 0 : index
    %c0_3 = arith.constant 0 : index
    %c0_4 = arith.constant 0 : index
    %c0_5 = arith.constant 0 : index
    %2 = vector.load %arg1[%c0_2, %c0_3, %c0_4, %c0_5] : memref<1x16x16x64xf32, #tpu.memory_space<vmem>>, vector<1x16x16x64xf32>
    %3 = vector.shape_cast %2 : vector<1x16x16x64xf32> to vector<16x16x64xf32>
    %c1 = arith.constant 1 : index
    %c8 = arith.constant 8 : index
    %c0_6 = arith.constant 0 : index
    %4 = vector.load %arg11[%c1, %c8, %c0_6] : memref<18x32x64xf32, #tpu.memory_space<vmem>>, vector<16x16x64xf32>
    tpu.vector_store %arg11[%c1, %c8, %c0_6], %3 {strides = array<i32>} : memref<18x32x64xf32, #tpu.memory_space<vmem>>, vector<16x16x64xf32>,
    %c0_7 = arith.constant 0 : index
    %c0_8 = arith.constant 0 : index
    %c0_9 = arith.constant 0 : index
    %5 = vector.load %arg11[%c0_7, %c0_8, %c0_9] : memref<18x32x64xf32, #tpu.memory_space<vmem>>, vector<18x32x64xf32>
    %6 = vector.extract_strided_slice %5 {offsets = [0, 7, 0], sizes = [16, 16, 64], strides = [1, 1, 1]} : vector<18x32x64xf32> to vector<16x16x64xf32>
    %7 = vector.shape_cast %6 : vector<16x16x64xf32> to vector<256x64xf32>
    %8 = vector.extract_strided_slice %5 {offsets = [0, 8, 0], sizes = [16, 16, 64], strides = [1, 1, 1]} : vector<18x32x64xf32> to vector<16x16x64xf32>
    %9 = vector.shape_cast %8 : vector<16x16x64xf32> to vector<256x64xf32>
    %10 = vector.extract_strided_slice %5 {offsets = [0, 9, 0], sizes = [16, 16, 64], strides = [1, 1, 1]} : vector<18x32x64xf32> to vector<16x16x64xf32>
    %11 = vector.shape_cast %10 : vector<16x16x64xf32> to vector<256x64xf32>
    %12 = vector.extract_strided_slice %5 {offsets = [1, 7, 0], sizes = [16, 16, 64], strides = [1, 1, 1]} : vector<18x32x64xf32> to vector<16x16x64xf32>
    %13 = vector.shape_cast %12 : vector<16x16x64xf32> to vector<256x64xf32>
    %14 = vector.extract_strided_slice %5 {offsets = [1, 8, 0], sizes = [16, 16, 64], strides = [1, 1, 1]} : vector<18x32x64xf32> to vector<16x16x64xf32>
    %15 = vector.shape_cast %14 : vector<16x16x64xf32> to vector<256x64xf32>
    %16 = vector.extract_strided_slice %5 {offsets = [1, 9, 0], sizes = [16, 16, 64], strides = [1, 1, 1]} : vector<18x32x64xf32> to vector<16x16x64xf32>
    %17 = vector.shape_cast %16 : vector<16x16x64xf32> to vector<256x64xf32>
    %18 = vector.extract_strided_slice %5 {offsets = [2, 7, 0], sizes = [16, 16, 64], strides = [1, 1, 1]} : vector<18x32x64xf32> to vector<16x16x64xf32>
    %19 = vector.shape_cast %18 : vector<16x16x64xf32> to vector<256x64xf32>
    %20 = vector.extract_strided_slice %5 {offsets = [2, 8, 0], sizes = [16, 16, 64], strides = [1, 1, 1]} : vector<18x32x64xf32> to vector<16x16x64xf32>
    %21 = vector.shape_cast %20 : vector<16x16x64xf32> to vector<256x64xf32>
    %22 = vector.extract_strided_slice %5 {offsets = [2, 9, 0], sizes = [16, 16, 64], strides = [1, 1, 1]} : vector<18x32x64xf32> to vector<16x16x64xf32>
    %23 = vector.shape_cast %22 : vector<16x16x64xf32> to vector<256x64xf32>
    %24 = tpu.concatenate %7, %9, %11, %13, %15, %17, %19, %21, %23 in 1 : vector<256x64xf32>, vector<256x64xf32>, vector<256x64xf32>, vector<256x64xf32>, vector<256x64xf32>, vector<256x64xf32>, vector<256x64xf32>, vector<256x64xf32>, vector<256x64xf32> -> vector<256x576xf32>
    %c0_10 = arith.constant 0 : index
    %c0_11 = arith.constant 0 : index
    %25 = vector.load %arg2[%c0_10, %c0_11] : memref<576x64xf32, #tpu.memory_space<vmem>>, vector<576x64xf32>
    %cst_12 = arith.constant dense<0.000000e+00> : vector<256x64xf32>
    %26 = tpu.matmul %24, %25, %cst_12 {dimension_numbers = #tpu.dot_dimension_numbers<[1], [0], [0], [1], [0, 0, 1, 1], [], []>} : vector<256x576xf32>, vector<576x64xf32>, vector<256x64xf32> -> vector<256x64xf32>
    %c0_13 = arith.constant 0 : index
    %c0_14 = arith.constant 0 : index
    %27 = vector.load %arg3[%c0_13, %c0_14] : memref<1x64xf32, #tpu.memory_space<vmem>>, vector<1x64xf32>
    %28 = vector.shape_cast %27 : vector<1x64xf32> to vector<64xf32>
    %29 = vector.shape_cast %28 : vector<64xf32> to vector<1x64xf32>
    %30 = vector.broadcast %29 : vector<1x64xf32> to vector<256x64xf32>
    %31 = arith.addf %26, %30 : vector<256x64xf32>
    %32 = arith.mulf %31, %31 : vector<256x64xf32>
    %33 = vector.shape_cast %32 : vector<256x64xf32> to vector<16x16x64xf32>
    %c1_15 = arith.constant 1 : index
    %c8_16 = arith.constant 8 : index
    %c0_17 = arith.constant 0 : index
    %34 = vector.load %arg11[%c1_15, %c8_16, %c0_17] : memref<18x32x64xf32, #tpu.memory_space<vmem>>, vector<16x16x64xf32>
    tpu.vector_store %arg11[%c1_15, %c8_16, %c0_17], %33 {strides = array<i32>} : memref<18x32x64xf32, #tpu.memory_space<vmem>>, vector<16x16x64xf32>,
    %c0_18 = arith.constant 0 : index
    %c0_19 = arith.constant 0 : index
    %c0_20 = arith.constant 0 : index
    %35 = vector.load %arg11[%c0_18, %c0_19, %c0_20] : memref<18x32x64xf32, #tpu.memory_space<vmem>>, vector<18x32x64xf32>
    %36 = vector.extract_strided_slice %35 {offsets = [0, 7, 0], sizes = [16, 16, 64], strides = [1, 1, 1]} : vector<18x32x64xf32> to vector<16x16x64xf32>
    %37 = vector.shape_cast %36 : vector<16x16x64xf32> to vector<256x64xf32>
    %38 = vector.extract_strided_slice %35 {offsets = [0, 8, 0], sizes = [16, 16, 64], strides = [1, 1, 1]} : vector<18x32x64xf32> to vector<16x16x64xf32>
    %39 = vector.shape_cast %38 : vector<16x16x64xf32> to vector<256x64xf32>
    %40 = vector.extract_strided_slice %35 {offsets = [0, 9, 0], sizes = [16, 16, 64], strides = [1, 1, 1]} : vector<18x32x64xf32> to vector<16x16x64xf32>
    %41 = vector.shape_cast %40 : vector<16x16x64xf32> to vector<256x64xf32>
    %42 = vector.extract_strided_slice %35 {offsets = [1, 7, 0], sizes = [16, 16, 64], strides = [1, 1, 1]} : vector<18x32x64xf32> to vector<16x16x64xf32>
    %43 = vector.shape_cast %42 : vector<16x16x64xf32> to vector<256x64xf32>
    %44 = vector.extract_strided_slice %35 {offsets = [1, 8, 0], sizes = [16, 16, 64], strides = [1, 1, 1]} : vector<18x32x64xf32> to vector<16x16x64xf32>
    %45 = vector.shape_cast %44 : vector<16x16x64xf32> to vector<256x64xf32>
    %46 = vector.extract_strided_slice %35 {offsets = [1, 9, 0], sizes = [16, 16, 64], strides = [1, 1, 1]} : vector<18x32x64xf32> to vector<16x16x64xf32>
    %47 = vector.shape_cast %46 : vector<16x16x64xf32> to vector<256x64xf32>
    %48 = vector.extract_strided_slice %35 {offsets = [2, 7, 0], sizes = [16, 16, 64], strides = [1, 1, 1]} : vector<18x32x64xf32> to vector<16x16x64xf32>
    %49 = vector.shape_cast %48 : vector<16x16x64xf32> to vector<256x64xf32>
    %50 = vector.extract_strided_slice %35 {offsets = [2, 8, 0], sizes = [16, 16, 64], strides = [1, 1, 1]} : vector<18x32x64xf32> to vector<16x16x64xf32>
    %51 = vector.shape_cast %50 : vector<16x16x64xf32> to vector<256x64xf32>
    %52 = vector.extract_strided_slice %35 {offsets = [2, 9, 0], sizes = [16, 16, 64], strides = [1, 1, 1]} : vector<18x32x64xf32> to vector<16x16x64xf32>
    %53 = vector.shape_cast %52 : vector<16x16x64xf32> to vector<256x64xf32>
    %54 = tpu.concatenate %37, %39, %41, %43, %45, %47, %49, %51, %53 in 1 : vector<256x64xf32>, vector<256x64xf32>, vector<256x64xf32>, vector<256x64xf32>, vector<256x64xf32>, vector<256x64xf32>, vector<256x64xf32>, vector<256x64xf32>, vector<256x64xf32> -> vector<256x576xf32>
    %c0_21 = arith.constant 0 : index
    %c0_22 = arith.constant 0 : index
    %55 = vector.load %arg4[%c0_21, %c0_22] : memref<576x64xf32, #tpu.memory_space<vmem>>, vector<576x64xf32>
    %cst_23 = arith.constant dense<0.000000e+00> : vector<256x64xf32>
    %56 = tpu.matmul %54, %55, %cst_23 {dimension_numbers = #tpu.dot_dimension_numbers<[1], [0], [0], [1], [0, 0, 1, 1], [], []>} : vector<256x576xf32>, vector<576x64xf32>, vector<256x64xf32> -> vector<256x64xf32>
    %c0_24 = arith.constant 0 : index
    %c0_25 = arith.constant 0 : index
    %57 = vector.load %arg5[%c0_24, %c0_25] : memref<1x64xf32, #tpu.memory_space<vmem>>, vector<1x64xf32>
    %58 = vector.shape_cast %57 : vector<1x64xf32> to vector<64xf32>
    %59 = vector.shape_cast %58 : vector<64xf32> to vector<1x64xf32>
    %60 = vector.broadcast %59 : vector<1x64xf32> to vector<256x64xf32>
    %61 = arith.addf %56, %60 : vector<256x64xf32>
    %62 = vector.shape_cast %61 : vector<256x64xf32> to vector<16x16x64xf32>
    %c1_26 = arith.constant 1 : index
    %c8_27 = arith.constant 8 : index
    %c0_28 = arith.constant 0 : index
    %63 = vector.load %arg11[%c1_26, %c8_27, %c0_28] : memref<18x32x64xf32, #tpu.memory_space<vmem>>, vector<16x16x64xf32>
    tpu.vector_store %arg11[%c1_26, %c8_27, %c0_28], %62 {strides = array<i32>} : memref<18x32x64xf32, #tpu.memory_space<vmem>>, vector<16x16x64xf32>,
    %c0_29 = arith.constant 0 : index
    %c0_30 = arith.constant 0 : index
    %c0_31 = arith.constant 0 : index
    %64 = vector.load %arg11[%c0_29, %c0_30, %c0_31] : memref<18x32x64xf32, #tpu.memory_space<vmem>>, vector<18x32x64xf32>
    %65 = vector.extract_strided_slice %64 {offsets = [0, 7, 0], sizes = [16, 16, 64], strides = [1, 1, 1]} : vector<18x32x64xf32> to vector<16x16x64xf32>
    %66 = vector.shape_cast %65 : vector<16x16x64xf32> to vector<256x64xf32>
    %67 = vector.extract_strided_slice %64 {offsets = [0, 8, 0], sizes = [16, 16, 64], strides = [1, 1, 1]} : vector<18x32x64xf32> to vector<16x16x64xf32>
    %68 = vector.shape_cast %67 : vector<16x16x64xf32> to vector<256x64xf32>
    %69 = vector.extract_strided_slice %64 {offsets = [0, 9, 0], sizes = [16, 16, 64], strides = [1, 1, 1]} : vector<18x32x64xf32> to vector<16x16x64xf32>
    %70 = vector.shape_cast %69 : vector<16x16x64xf32> to vector<256x64xf32>
    %71 = vector.extract_strided_slice %64 {offsets = [1, 7, 0], sizes = [16, 16, 64], strides = [1, 1, 1]} : vector<18x32x64xf32> to vector<16x16x64xf32>
    %72 = vector.shape_cast %71 : vector<16x16x64xf32> to vector<256x64xf32>
    %73 = vector.extract_strided_slice %64 {offsets = [1, 8, 0], sizes = [16, 16, 64], strides = [1, 1, 1]} : vector<18x32x64xf32> to vector<16x16x64xf32>
    %74 = vector.shape_cast %73 : vector<16x16x64xf32> to vector<256x64xf32>
    %75 = vector.extract_strided_slice %64 {offsets = [1, 9, 0], sizes = [16, 16, 64], strides = [1, 1, 1]} : vector<18x32x64xf32> to vector<16x16x64xf32>
    %76 = vector.shape_cast %75 : vector<16x16x64xf32> to vector<256x64xf32>
    %77 = vector.extract_strided_slice %64 {offsets = [2, 7, 0], sizes = [16, 16, 64], strides = [1, 1, 1]} : vector<18x32x64xf32> to vector<16x16x64xf32>
    %78 = vector.shape_cast %77 : vector<16x16x64xf32> to vector<256x64xf32>
    %79 = vector.extract_strided_slice %64 {offsets = [2, 8, 0], sizes = [16, 16, 64], strides = [1, 1, 1]} : vector<18x32x64xf32> to vector<16x16x64xf32>
    %80 = vector.shape_cast %79 : vector<16x16x64xf32> to vector<256x64xf32>
    %81 = vector.extract_strided_slice %64 {offsets = [2, 9, 0], sizes = [16, 16, 64], strides = [1, 1, 1]} : vector<18x32x64xf32> to vector<16x16x64xf32>
    %82 = vector.shape_cast %81 : vector<16x16x64xf32> to vector<256x64xf32>
    %83 = tpu.concatenate %66, %68, %70, %72, %74, %76, %78, %80, %82 in 1 : vector<256x64xf32>, vector<256x64xf32>, vector<256x64xf32>, vector<256x64xf32>, vector<256x64xf32>, vector<256x64xf32>, vector<256x64xf32>, vector<256x64xf32>, vector<256x64xf32> -> vector<256x576xf32>
    %c0_32 = arith.constant 0 : index
    %c0_33 = arith.constant 0 : index
    %84 = vector.load %arg6[%c0_32, %c0_33] : memref<576x64xf32, #tpu.memory_space<vmem>>, vector<576x64xf32>
    %cst_34 = arith.constant dense<0.000000e+00> : vector<256x64xf32>
    %85 = tpu.matmul %83, %84, %cst_34 {dimension_numbers = #tpu.dot_dimension_numbers<[1], [0], [0], [1], [0, 0, 1, 1], [], []>} : vector<256x576xf32>, vector<576x64xf32>, vector<256x64xf32> -> vector<256x64xf32>
    %c0_35 = arith.constant 0 : index
    %c0_36 = arith.constant 0 : index
    %86 = vector.load %arg7[%c0_35, %c0_36] : memref<1x64xf32, #tpu.memory_space<vmem>>, vector<1x64xf32>
    %87 = vector.shape_cast %86 : vector<1x64xf32> to vector<64xf32>
    %88 = vector.shape_cast %87 : vector<64xf32> to vector<1x64xf32>
    %89 = vector.broadcast %88 : vector<1x64xf32> to vector<256x64xf32>
    %90 = arith.addf %85, %89 : vector<256x64xf32>
    %91 = arith.mulf %90, %90 : vector<256x64xf32>
    %92 = vector.shape_cast %91 : vector<256x64xf32> to vector<16x16x64xf32>
    %c1_37 = arith.constant 1 : index
    %c8_38 = arith.constant 8 : index
    %c0_39 = arith.constant 0 : index
    %93 = vector.load %arg11[%c1_37, %c8_38, %c0_39] : memref<18x32x64xf32, #tpu.memory_space<vmem>>, vector<16x16x64xf32>
    tpu.vector_store %arg11[%c1_37, %c8_38, %c0_39], %92 {strides = array<i32>} : memref<18x32x64xf32, #tpu.memory_space<vmem>>, vector<16x16x64xf32>,
    %c0_40 = arith.constant 0 : index
    %c0_41 = arith.constant 0 : index
    %c0_42 = arith.constant 0 : index
    %94 = vector.load %arg11[%c0_40, %c0_41, %c0_42] : memref<18x32x64xf32, #tpu.memory_space<vmem>>, vector<18x32x64xf32>
    %95 = vector.extract_strided_slice %94 {offsets = [0, 7, 0], sizes = [16, 16, 64], strides = [1, 1, 1]} : vector<18x32x64xf32> to vector<16x16x64xf32>
    %96 = vector.shape_cast %95 : vector<16x16x64xf32> to vector<256x64xf32>
    %97 = vector.extract_strided_slice %94 {offsets = [0, 8, 0], sizes = [16, 16, 64], strides = [1, 1, 1]} : vector<18x32x64xf32> to vector<16x16x64xf32>
    %98 = vector.shape_cast %97 : vector<16x16x64xf32> to vector<256x64xf32>
    %99 = vector.extract_strided_slice %94 {offsets = [0, 9, 0], sizes = [16, 16, 64], strides = [1, 1, 1]} : vector<18x32x64xf32> to vector<16x16x64xf32>
    %100 = vector.shape_cast %99 : vector<16x16x64xf32> to vector<256x64xf32>
    %101 = vector.extract_strided_slice %94 {offsets = [1, 7, 0], sizes = [16, 16, 64], strides = [1, 1, 1]} : vector<18x32x64xf32> to vector<16x16x64xf32>
    %102 = vector.shape_cast %101 : vector<16x16x64xf32> to vector<256x64xf32>
    %103 = vector.extract_strided_slice %94 {offsets = [1, 8, 0], sizes = [16, 16, 64], strides = [1, 1, 1]} : vector<18x32x64xf32> to vector<16x16x64xf32>
    %104 = vector.shape_cast %103 : vector<16x16x64xf32> to vector<256x64xf32>
    %105 = vector.extract_strided_slice %94 {offsets = [1, 9, 0], sizes = [16, 16, 64], strides = [1, 1, 1]} : vector<18x32x64xf32> to vector<16x16x64xf32>
    %106 = vector.shape_cast %105 : vector<16x16x64xf32> to vector<256x64xf32>
    %107 = vector.extract_strided_slice %94 {offsets = [2, 7, 0], sizes = [16, 16, 64], strides = [1, 1, 1]} : vector<18x32x64xf32> to vector<16x16x64xf32>
    %108 = vector.shape_cast %107 : vector<16x16x64xf32> to vector<256x64xf32>
    %109 = vector.extract_strided_slice %94 {offsets = [2, 8, 0], sizes = [16, 16, 64], strides = [1, 1, 1]} : vector<18x32x64xf32> to vector<16x16x64xf32>
    %110 = vector.shape_cast %109 : vector<16x16x64xf32> to vector<256x64xf32>
    %111 = vector.extract_strided_slice %94 {offsets = [2, 9, 0], sizes = [16, 16, 64], strides = [1, 1, 1]} : vector<18x32x64xf32> to vector<16x16x64xf32>
    %112 = vector.shape_cast %111 : vector<16x16x64xf32> to vector<256x64xf32>
    %113 = tpu.concatenate %96, %98, %100, %102, %104, %106, %108, %110, %112 in 1 : vector<256x64xf32>, vector<256x64xf32>, vector<256x64xf32>, vector<256x64xf32>, vector<256x64xf32>, vector<256x64xf32>, vector<256x64xf32>, vector<256x64xf32>, vector<256x64xf32> -> vector<256x576xf32>
    %c0_43 = arith.constant 0 : index
    %c0_44 = arith.constant 0 : index
    %114 = vector.load %arg8[%c0_43, %c0_44] : memref<576x128xf32, #tpu.memory_space<vmem>>, vector<576x128xf32>
    %cst_45 = arith.constant dense<0.000000e+00> : vector<256x128xf32>
    %115 = tpu.matmul %113, %114, %cst_45 {dimension_numbers = #tpu.dot_dimension_numbers<[1], [0], [0], [1], [0, 0, 1, 1], [], []>} : vector<256x576xf32>, vector<576x128xf32>, vector<256x128xf32> -> vector<256x128xf32>
    %c0_46 = arith.constant 0 : index
    %c0_47 = arith.constant 0 : index
    %116 = vector.load %arg9[%c0_46, %c0_47] : memref<1x128xf32, #tpu.memory_space<vmem>>, vector<1x128xf32>
    %117 = vector.shape_cast %116 : vector<1x128xf32> to vector<128xf32>
    %118 = vector.shape_cast %117 : vector<128xf32> to vector<1x128xf32>
    %119 = vector.broadcast %118 : vector<1x128xf32> to vector<256x128xf32>
    %120 = arith.addf %115, %119 : vector<256x128xf32>
    %c0_48 = arith.constant 0 : index
    %c0_49 = arith.constant 0 : index
    %c0_50 = arith.constant 0 : index
    %121 = vector.load %arg10[%c0_48, %c0_49, %c0_50] : memref<1x256x128xf32, #tpu.memory_space<vmem>>, vector<1x256x128xf32>
    %122 = vector.shape_cast %121 : vector<1x256x128xf32> to vector<256x128xf32>
    %123 = vector.shape_cast %120 : vector<256x128xf32> to vector<1x256x128xf32>
    tpu.vector_store %arg10[%c0_48, %c0_49, %c0_50], %123 {strides = array<i32>} : memref<1x256x128xf32, #tpu.memory_space<vmem>>, vector<1x256x128xf32>,
    return
  }
  func.func @transform_0(%arg0: i32) -> (i32, i32, i32, i32) {
    %c0_i32 = arith.constant 0 : i32
    %c0_i32_0 = arith.constant 0 : i32
    %c0_i32_1 = arith.constant 0 : i32
    %c0_i32_2 = arith.constant 0 : i32
    return %arg0, %c0_i32, %c0_i32_0, %c0_i32_1 : i32, i32, i32, i32
  }
  func.func @transform_1(%arg0: i32) -> (i32, i32) {
    %c0_i32 = arith.constant 0 : i32
    %c0_i32_0 = arith.constant 0 : i32
    %c0_i32_1 = arith.constant 0 : i32
    return %c0_i32, %c0_i32_0 : i32, i32
  }
  func.func @transform_2(%arg0: i32) -> (i32, i32) {
    %c0_i32 = arith.constant 0 : i32
    %c0_i32_0 = arith.constant 0 : i32
    %c0_i32_1 = arith.constant 0 : i32
    return %c0_i32, %c0_i32_0 : i32, i32
  }
  func.func @transform_3(%arg0: i32) -> (i32, i32) {
    %c0_i32 = arith.constant 0 : i32
    %c0_i32_0 = arith.constant 0 : i32
    %c0_i32_1 = arith.constant 0 : i32
    return %c0_i32, %c0_i32_0 : i32, i32
  }
  func.func @transform_4(%arg0: i32) -> (i32, i32) {
    %c0_i32 = arith.constant 0 : i32
    %c0_i32_0 = arith.constant 0 : i32
    %c0_i32_1 = arith.constant 0 : i32
    return %c0_i32, %c0_i32_0 : i32, i32
  }
  func.func @transform_5(%arg0: i32) -> (i32, i32) {
    %c0_i32 = arith.constant 0 : i32
    %c0_i32_0 = arith.constant 0 : i32
    %c0_i32_1 = arith.constant 0 : i32
    return %c0_i32, %c0_i32_0 : i32, i32
  }
  func.func @transform_6(%arg0: i32) -> (i32, i32) {
    %c0_i32 = arith.constant 0 : i32
    %c0_i32_0 = arith.constant 0 : i32
    %c0_i32_1 = arith.constant 0 : i32
    return %c0_i32, %c0_i32_0 : i32, i32
  }
  func.func @transform_7(%arg0: i32) -> (i32, i32) {
    %c0_i32 = arith.constant 0 : i32
    %c0_i32_0 = arith.constant 0 : i32
    %c0_i32_1 = arith.constant 0 : i32
    return %c0_i32, %c0_i32_0 : i32, i32
  }
  func.func @transform_8(%arg0: i32) -> (i32, i32) {
    %c0_i32 = arith.constant 0 : i32
    %c0_i32_0 = arith.constant 0 : i32
    %c0_i32_1 = arith.constant 0 : i32
    return %c0_i32, %c0_i32_0 : i32, i32
  }
  func.func @transform_9(%arg0: i32) -> (i32, i32, i32) {
    %c0_i32 = arith.constant 0 : i32
    %c0_i32_0 = arith.constant 0 : i32
    %c0_i32_1 = arith.constant 0 : i32
    return %arg0, %c0_i32, %c0_i32_0 : i32, i32, i32
  }
}

</mosaic_0001>

<bundles_post_ra>
// kernel: autoencoder_cifar10_forward.1
= control target key start
LH: loop header
LB: loop body
LE: loop exit
PB: predicated region body
PF: predicated region fallthrough
CT: control target
= control target key end

     0   :  { %s7784_s30 = smov 0   ;;  %s13305_s0 = inlined_call_operand.vmem [shape: f32[2,16,16,64], index: 0, kind: input, shape index: {}]   ;;  %s13306_s1 = inlined_call_operand.vmem [shape: f32[576,64], index: 1, kind: input, shape index: {}]   ;;  %s13307_s2 = inlined_call_operand.vmem [shape: f32[1,64], index: 2, kind: input, shape index: {}]   ;;  %s13308_s3 = inlined_call_operand.vmem [shape: f32[576,64], index: 3, kind: input, shape index: {}]   ;;  %s13309_s4 = inlined_call_operand.vmem [shape: f32[1,64], index: 4, kind: input, shape index: {}]   ;;  %s13310_s5 = inlined_call_operand.vmem [shape: f32[576,64], index: 5, kind: input, shape index: {}]   ;;  %s13311_s6 = inlined_call_operand.vmem [shape: f32[1,64], index: 6, kind: input, shape index: {}]   ;;  %s13312_s7 = inlined_call_operand.vmem [shape: f32[576,128], index: 7, kind: input, shape index: {}]   ;;  %s13313_s8 = inlined_call_operand.vmem [shape: f32[1,128], index: 8, kind: input, shape index: {}]   ;;  %s13314_s9 = inlined_call_operand.vmem [shape: f32[2,256,128], index: 9, kind: output, shape index: {}]  }
   0x1 LB: > { %s6708_s10 = sadd.s32 4294967295, %s7730_s30   ;;  %p6712_p0 = scmp.ge.s32.totalorder %s7730_s30, 1  ;;  %s7730_s30 = sphi %s7784_s30, %s19_s30  }
   0x2   : > { %p287_p1 = scmp.lt.s32.totalorder %s7730_s30, 3 }
   0x4   : > { %p288_p2 = pnand %p6712_p0, %p287_p1 }
   0x6   : > { %291 = sbr.rel (%p288_p2) target bundleno = 2604 (0xa2c), region = 56 }
   0xb   : > { %vm333_vm0 = vcmask 523264   ;;  %v7732_v0 = vmov 0.0   ;;  %s7733_s11 = smov 64   ;;  %p323_p3 = scmp.lt.s32.totalorder %s6708_s10, 1  ;;  %vm591_vm1 = vcmask 1040384   ;;  %v1280_v58 = vld [vmem:[%s13306_s1 + $0x78] sm:$0xff] }
   0xc   : > { %335 = vst.msk [vmem:[#allocation2 + $0x8] sm:$0xff] %vm333_vm0, %v7732_v0  ;;  %1405 = vmatpush.msra.mxu0 %v1280_v58  ;;  %v1272_v58 = vld [vmem:[%s13306_s1 + $0x38] sm:$0xff]  ;;  %vm720_vm2 = vcmask 1046528  }
   0xd   : > { %334 = vst.msk [vmem:[#allocation2] sm:$0xff] %vm333_vm0, %v7732_v0  ;;  %s13570_s10 = smov (!%p323_p3, %s6708_s10), 1 }
   0xe   : > { %336 = vst.msk [vmem:[#allocation2 + $0x10] sm:$0xff] %vm333_vm0, %v7732_v0  ;;  %s6847_s12 = sshll.u32 %s13570_s10, 8 }
   0xf   : > { %337 = vst.msk [vmem:[#allocation2 + $0x18] sm:$0xff] %vm333_vm0, %v7732_v0  ;;  %s7946_s15 = scalar_lea.vmem %s13305_s0, %s6847_s12  ;;  %s13052_s25 = scalar_lea.vmem %s13314_s9, %s6847_s12 }
  0x10   : > { %338 = vst.msk [vmem:[#allocation2 + $0x20] sm:$0xff] %vm333_vm0, %v7732_v0  ;;  %v408_v3 = vld [vmem:[%s7946_s15 + $0x10] sm:$0xff]  ;;  %v406_v4 = vld [vmem:[%s7946_s15] sm:$0xff]  ;;  %v409_v5 = vld [vmem:[%s7946_s15 + $0x18] sm:$0xff] }
  0x11   : > { %339 = vst.msk [vmem:[#allocation2 + $0x28] sm:$0xff] %vm333_vm0, %v7732_v0  ;;  %v407_v6 = vld [vmem:[%s7946_s15 + $0x8] sm:$0xff]  ;;  %v410_v7 = vld [vmem:[%s7946_s15 + $0x20] sm:$0xff]  ;;  %v412_v8 = vld [vmem:[%s7946_s15 + $0x30] sm:$0xff] }
  0x12   : > { %340 = vst.msk [vmem:[#allocation2 + $0x30] sm:$0xff] %vm333_vm0, %v7732_v0  ;;  %v411_v9 = vld [vmem:[%s7946_s15 + $0x28] sm:$0xff]  ;;  %v413_v10 = vld [vmem:[%s7946_s15 + $0x38] sm:$0xff]  ;;  %v414_v12 = vld [vmem:[%s7946_s15 + $0x40] sm:$0xff] }
  0x13   : > { %v7806_v1 = vld [vmem:[#allocation2 + $0x8] sm:$0xff]  ;;  %341 = vst.msk [vmem:[#allocation2 + $0x38] sm:$0xff] %vm333_vm0, %v7732_v0  ;;  %v416_v14 = vld [vmem:[%s7946_s15 + $0x50] sm:$0xff]  ;;  %v418_v16 = vld [vmem:[%s7946_s15 + $0x60] sm:$0xff] }
  0x14   : > { %865 = vrot.lane.b32.xlu0 %v7806_v1, %s7733_s11  ;;  %342 = vst.msk [vmem:[#allocation2 + $0x40] sm:$0xff] %vm333_vm0, %v7732_v0  ;;  %v415_v11 = vld [vmem:[%s7946_s15 + $0x48] sm:$0xff]  ;;  %v417_v17 = vld [vmem:[%s7946_s15 + $0x58] sm:$0xff]  ;;  %v420_v21 = vld [vmem:[%s7946_s15 + $0x70] sm:$0xff] }
  0x15   : > { %343 = vst.msk [vmem:[#allocation2 + $0x48] sm:$0xff] %vm333_vm0, %v7732_v0  ;;  %v7896_v2 = vld [vmem:[#allocation2 + $0x10] sm:$0xff]  ;;  %v419_v18 = vld [vmem:[%s7946_s15 + $0x68] sm:$0xff]  ;;  %v421_v20 = vld [vmem:[%s7946_s15 + $0x78] sm:$0xff] }
  0x16   : > { %344 = vst.msk [vmem:[#allocation2 + $0x50] sm:$0xff] %vm333_vm0, %v7732_v0  ;;  %v422_v23 = vld [vmem:[%s7946_s15 + $0x80] sm:$0xff]  ;;  %v424_v25 = vld [vmem:[%s7946_s15 + $0x90] sm:$0xff]  ;;  %v423_v26 = vld [vmem:[%s7946_s15 + $0x88] sm:$0xff] }
  0x17   : > { %345 = vst.msk [vmem:[#allocation2 + $0x58] sm:$0xff] %vm333_vm0, %v7732_v0  ;;  %v425_v27 = vld [vmem:[%s7946_s15 + $0x98] sm:$0xff]  ;;  %v426_v31 = vld [vmem:[%s7946_s15 + $0xa0] sm:$0xff]  ;;  %v428_v36 = vld [vmem:[%s7946_s15 + $0xb0] sm:$0xff] }
  0x18   : > { %346 = vst.msk [vmem:[#allocation2 + $0x60] sm:$0xff] %vm333_vm0, %v7732_v0  ;;  %v429_v35 = vld [vmem:[%s7946_s15 + $0xb8] sm:$0xff]  ;;  %v432_v40 = vld [vmem:[%s7946_s15 + $0xd0] sm:$0xff]  ;;  %v431_v41 = vld [vmem:[%s7946_s15 + $0xc8] sm:$0xff] }
  0x19   : > { %347 = vst.msk [vmem:[#allocation2 + $0x68] sm:$0xff] %vm333_vm0, %v7732_v0  ;;  %v475_v44 = vld [vmem:[#allocation2 + $0x20] sm:$0xff]  ;;  %v435_v52 = vld [vmem:[%s7946_s15 + $0xe8] sm:$0xff] }
  0x1a   : > { %348 = vst.msk [vmem:[#allocation2 + $0x70] sm:$0xff] %vm333_vm0, %v7732_v0  ;;  %v597_v47 = vrot.slane %v475_v44, 7  ;;  %v434_v54 = vld [vmem:[%s7946_s15 + $0xe0] sm:$0xff] }
  0x1b   : > { %349 = vst.msk [vmem:[#allocation2 + $0x78] sm:$0xff] %vm333_vm0, %v7732_v0  ;;  %v479_v59 = vld [vmem:[#allocation2 + $0x40] sm:$0xff] }
  0x1c   : > { %350 = vst.msk [vmem:[#allocation2 + $0x80] sm:$0xff] %vm333_vm0, %v7732_v0  ;;  %867 = vrot.lane.b32.xlu0 %v7896_v2, %s7733_s11 }
  0x1d   : > { %351 = vst.msk [vmem:[#allocation2 + $0x88] sm:$0xff] %vm333_vm0, %v7732_v0 }
  0x1e   : > { %352 = vst.msk [vmem:[#allocation2 + $0x90] sm:$0xff] %vm333_vm0, %v7732_v0 }
  0x1f   : > { %353 = vst.msk [vmem:[#allocation2 + $0x98] sm:$0xff] %vm333_vm0, %v7732_v0  ;;  %v483_v51 = vld [vmem:[#allocation2 + $0x60] sm:$0xff] }
  0x20   : > { %354 = vst.msk [vmem:[#allocation2 + $0xa0] sm:$0xff] %vm333_vm0, %v7732_v0  ;;  %v607_v57 = vrot.slane %v483_v51, 7 }
  0x21   : > { %355 = vst.msk [vmem:[#allocation2 + $0xa8] sm:$0xff] %vm333_vm0, %v7732_v0 }
  0x22   : > { %356 = vst.msk [vmem:[#allocation2 + $0xb0] sm:$0xff] %vm333_vm0, %v7732_v0 }
  0x23   : > { %357 = vst.msk [vmem:[#allocation2 + $0xb8] sm:$0xff] %vm333_vm0, %v7732_v0 }
  0x24   : > { %358 = vst.msk [vmem:[#allocation2 + $0xc0] sm:$0xff] %vm333_vm0, %v7732_v0 }
  0x25   : > { %359 = vst.msk [vmem:[#allocation2 + $0xc8] sm:$0xff] %vm333_vm0, %v7732_v0 }
  0x26   : > { %360 = vst.msk [vmem:[#allocation2 + $0xd0] sm:$0xff] %vm333_vm0, %v7732_v0 }
  0x27   : > { %361 = vst.msk [vmem:[#allocation2 + $0xd8] sm:$0xff] %vm333_vm0, %v7732_v0  ;;  %v491_v51 = vld [vmem:[#allocation2 + $0xa0] sm:$0xff] }
  0x28   : > { %362 = vst.msk [vmem:[#allocation2 + $0xe0] sm:$0xff] %vm333_vm0, %v7732_v0 }
  0x29   : > { %363 = vst.msk [vmem:[#allocation2 + $0xe8] sm:$0xff] %vm333_vm0, %v7732_v0 }
  0x2a   : > { %364 = vst.msk [vmem:[#allocation2 + $0xf0] sm:$0xff] %vm333_vm0, %v7732_v0 }
  0x2b   : > { %365 = vst.msk [vmem:[#allocation2 + $0xf8] sm:$0xff] %vm333_vm0, %v7732_v0 }
  0x2c   : > { %366 = vst.msk [vmem:[#allocation2 + $0x100] sm:$0xff] %vm333_vm0, %v7732_v0 }
  0x2d   : > { %367 = vst.msk [vmem:[#allocation2 + $0x108] sm:$0xff] %vm333_vm0, %v7732_v0 }
  0x2e   : > { %368 = vst.msk [vmem:[#allocation2 + $0x110] sm:$0xff] %vm333_vm0, %v7732_v0 }
  0x2f   : > { %369 = vst.msk [vmem:[#allocation2 + $0x118] sm:$0xff] %vm333_vm0, %v7732_v0 }
  0x30   : > { %370 = vst.msk [vmem:[#allocation2 + $0x120] sm:$0xff] %vm333_vm0, %v7732_v0 }
  0x31   : > { %371 = vst.msk [vmem:[#allocation2 + $0x128] sm:$0xff] %vm333_vm0, %v7732_v0 }
  0x32   : > { %372 = vst.msk [vmem:[#allocation2 + $0x130] sm:$0xff] %vm333_vm0, %v7732_v0 }
  0x33   : > { %373 = vst.msk [vmem:[#allocation2 + $0x138] sm:$0xff] %vm333_vm0, %v7732_v0 }
  0x34   : > { %374 = vst.msk [vmem:[#allocation2 + $0x140] sm:$0xff] %vm333_vm0, %v7732_v0 }
  0x35   : > { %375 = vst.msk [vmem:[#allocation2 + $0x148] sm:$0xff] %vm333_vm0, %v7732_v0 }
  0x36   : > { %376 = vst.msk [vmem:[#allocation2 + $0x150] sm:$0xff] %vm333_vm0, %v7732_v0 }
  0x37   : > { %377 = vst.msk [vmem:[#allocation2 + $0x158] sm:$0xff] %vm333_vm0, %v7732_v0 }
  0x38   : > { %378 = vst.msk [vmem:[#allocation2 + $0x160] sm:$0xff] %vm333_vm0, %v7732_v0 }
  0x39   : > { %379 = vst.msk [vmem:[#allocation2 + $0x168] sm:$0xff] %vm333_vm0, %v7732_v0 }
  0x3a   : > { %380 = vst.msk [vmem:[#allocation2 + $0x170] sm:$0xff] %vm333_vm0, %v7732_v0 }
  0x3b   : > { %381 = vst.msk [vmem:[#allocation2 + $0x178] sm:$0xff] %vm333_vm0, %v7732_v0 }
  0x3c   : > { %382 = vst.msk [vmem:[#allocation2 + $0x180] sm:$0xff] %vm333_vm0, %v7732_v0 }
  0x3d   : > { %383 = vst.msk [vmem:[#allocation2 + $0x188] sm:$0xff] %vm333_vm0, %v7732_v0 }
  0x3e   : > { %384 = vst.msk [vmem:[#allocation2 + $0x190] sm:$0xff] %vm333_vm0, %v7732_v0 }
  0x3f   : > { %385 = vst.msk [vmem:[#allocation2 + $0x198] sm:$0xff] %vm333_vm0, %v7732_v0 }
  0x40   : > { %386 = vst.msk [vmem:[#allocation2 + $0x1a0] sm:$0xff] %vm333_vm0, %v7732_v0 }
  0x41   : > { %387 = vst.msk [vmem:[#allocation2 + $0x1a8] sm:$0xff] %vm333_vm0, %v7732_v0 }
  0x42   : > { %388 = vst.msk [vmem:[#allocation2 + $0x1b0] sm:$0xff] %vm333_vm0, %v7732_v0 }
  0x43   : > { %389 = vst.msk [vmem:[#allocation2 + $0x1b8] sm:$0xff] %vm333_vm0, %v7732_v0 }
  0x44   : > { %390 = vst.msk [vmem:[#allocation2 + $0x1c0] sm:$0xff] %vm333_vm0, %v7732_v0 }
  0x45   : > { %391 = vst.msk [vmem:[#allocation2 + $0x1c8] sm:$0xff] %vm333_vm0, %v7732_v0 }
  0x46   : > { %392 = vst.msk [vmem:[#allocation2 + $0x1d0] sm:$0xff] %vm333_vm0, %v7732_v0 }
  0x47   : > { %393 = vst.msk [vmem:[#allocation2 + $0x1d8] sm:$0xff] %vm333_vm0, %v7732_v0 }
  0x48   : > { %394 = vst.msk [vmem:[#allocation2 + $0x1e0] sm:$0xff] %vm333_vm0, %v7732_v0 }
  0x49   : > { %395 = vst.msk [vmem:[#allocation2 + $0x1e8] sm:$0xff] %vm333_vm0, %v7732_v0 }
  0x4a   : > { %396 = vst.msk [vmem:[#allocation2 + $0x1f0] sm:$0xff] %vm333_vm0, %v7732_v0 }
  0x4b   : > { %397 = vst.msk [vmem:[#allocation2 + $0x1f8] sm:$0xff] %vm333_vm0, %v7732_v0 }
  0x4c   : > { %398 = vst.msk [vmem:[#allocation2 + $0x200] sm:$0xff] %vm333_vm0, %v7732_v0 }
  0x4d   : > { %399 = vst.msk [vmem:[#allocation2 + $0x208] sm:$0xff] %vm333_vm0, %v7732_v0 }
  0x4e   : > { %400 = vst.msk [vmem:[#allocation2 + $0x210] sm:$0xff] %vm333_vm0, %v7732_v0 }
  0x4f   : > { %401 = vst.msk [vmem:[#allocation2 + $0x218] sm:$0xff] %vm333_vm0, %v7732_v0 }
  0x50   : > { %402 = vst.msk [vmem:[#allocation2 + $0x220] sm:$0xff] %vm333_vm0, %v7732_v0 }
  0x51   : > { %403 = vst.msk [vmem:[#allocation2 + $0x228] sm:$0xff] %vm333_vm0, %v7732_v0 }
  0x52   : > { %404 = vst.msk [vmem:[#allocation2 + $0x230] sm:$0xff] %vm333_vm0, %v7732_v0 }
  0x53   : > { %405 = vst.msk [vmem:[#allocation2 + $0x238] sm:$0xff] %vm333_vm0, %v7732_v0 }
  0x54   : > { %441 = vst.msk [vmem:[#allocation2 + $0x48] sm:$0xff] %vm333_vm0, %v408_v3  ;;  %v602_v3 = vrot.slane %v479_v59, 7  ;;  %v487_v59 = vld [vmem:[#allocation2 + $0x80] sm:$0xff] }
  0x55   : > { %439 = vst.msk [vmem:[#allocation2 + $0x28] sm:$0xff] %vm333_vm0, %v406_v4 }
  0x56   : > { %442 = vst.msk [vmem:[#allocation2 + $0x50] sm:$0xff] %vm333_vm0, %v409_v5 }
  0x57   : > { %440 = vst.msk [vmem:[#allocation2 + $0x30] sm:$0xff] %vm333_vm0, %v407_v6  ;;  %v427_v6 = vld [vmem:[%s7946_s15 + $0xa8] sm:$0xff] }
  0x58   : > { %443 = vst.msk [vmem:[#allocation2 + $0x68] sm:$0xff] %vm333_vm0, %v410_v7 }
  0x59   : > { %445 = vst.msk [vmem:[#allocation2 + $0x88] sm:$0xff] %vm333_vm0, %v412_v8 }
  0x5a   : > { %444 = vst.msk [vmem:[#allocation2 + $0x70] sm:$0xff] %vm333_vm0, %v411_v9  ;;  %v1279_v9 = vld [vmem:[%s13306_s1 + $0x70] sm:$0xff] }
  0x5b   : > { %v7975_v13 = vld [vmem:[#allocation2 + $0x48] sm:$0xff]  ;;  %446 = vst.msk [vmem:[#allocation2 + $0x90] sm:$0xff] %vm333_vm0, %v413_v10  ;;  %1406 = vmatpush.msra.mxu0 %v1279_v9  ;;  %v433_v9 = vld [vmem:[%s7946_s15 + $0xd8] sm:$0xff] }
  0x5c   : > { %873 = vrot.lane.b32.xlu2 %v7975_v13, %s7733_s11  ;;  %v7981_v15 = vld [vmem:[#allocation2 + $0x28] sm:$0xff]  ;;  %448 = vst.msk [vmem:[#allocation2 + $0xb0] sm:$0xff] %vm333_vm0, %v415_v11  ;;  %v603_v4 = vrot.slane %v7975_v13, 7 }
  0x5d   : > { %869 = vrot.lane.b32.xlu1 %v7981_v15, %s7733_s11  ;;  %447 = vst.msk [vmem:[#allocation2 + $0xa8] sm:$0xff] %vm333_vm0, %v414_v12  ;;  %v7999_v22 = vld [vmem:[#allocation2 + $0x50] sm:$0xff]  ;;  %v598_v45 = vrot.slane %v7981_v15, 7  ;;  %v1278_v10 = vld [vmem:[%s13306_s1 + $0x68] sm:$0xff] }
  0x5e   : > { %449 = vst.msk [vmem:[#allocation2 + $0xc8] sm:$0xff] %vm333_vm0, %v416_v14  ;;  %v8003_v24 = vld [vmem:[#allocation2 + $0x30] sm:$0xff]  ;;  %v8127_v12 = vsel %vm591_vm1, %v602_v3, %v603_v4  ;;  %v1277_v14 = vld [vmem:[%s13306_s1 + $0x60] sm:$0xff]  ;;  %1407 = vmatpush.msra.mxu0 %v1278_v10  ;;  %v612_v3 = vrot.slane %v487_v59, 7  ;;  %v1266_v59 = vld [vmem:[%s13306_s1 + $0x8] sm:$0xff] }
  0x5f   : > { %v7991_v19 = vld [vmem:[#allocation2 + $0x68] sm:$0xff]  ;;  %451 = vst.msk [vmem:[#allocation2 + $0xe8] sm:$0xff] %vm333_vm0, %v418_v16  ;;  %v600_v43 = vrot.slane %v8003_v24, 7  ;;  %v8091_v56 = vsel %vm591_vm1, %v597_v47, %v598_v45 }
  0x60   : > { %877 = vrot.lane.b32.xlu0 %v7991_v19, %s7733_s11  ;;  %450 = vst.msk [vmem:[#allocation2 + $0xd0] sm:$0xff] %vm333_vm0, %v417_v17  ;;  %v8022_v29 = vld [vmem:[#allocation2 + $0x88] sm:$0xff]  ;;  %v608_v60 = vrot.slane %v7991_v19, 7  ;;  %1408 = vmatpush.msra.mxu0 %v1277_v14 }
  0x61   : > { %452 = vst.msk [vmem:[#allocation2 + $0xf0] sm:$0xff] %vm333_vm0, %v419_v18  ;;  %v8024_v30 = vld [vmem:[#allocation2 + $0x70] sm:$0xff]  ;;  %v8075_v49 = vsel %vm591_vm1, %v598_v45, %v600_v43  ;;  %v613_v7 = vrot.slane %v8022_v29, 7  ;;  %v1274_v47 = vld [vmem:[%s13306_s1 + $0x48] sm:$0xff] }
  0x62   : > { %454 = vst.msk [vmem:[#allocation2 + $0x110] sm:$0xff] %vm333_vm0, %v421_v20  ;;  %v8015_v28 = vld [vmem:[#allocation2 + $0x90] sm:$0xff]  ;;  %v8104_v63 = vsel %vm591_vm1, %v607_v57, %v608_v60  ;;  %v1276_v20 = vld [vmem:[%s13306_s1 + $0x58] sm:$0xff] }
  0x63   : > { %453 = vst.msk [vmem:[#allocation2 + $0x108] sm:$0xff] %vm333_vm0, %v420_v21  ;;  %v8036_v33 = vld [vmem:[#allocation2 + $0xb0] sm:$0xff]  ;;  %v615_v8 = vrot.slane %v8015_v28, 7  ;;  %v610_v21 = vrot.slane %v8024_v30, 7  ;;  %1409 = vmatpush.msra.mxu0 %v1276_v20  ;;  %v478_v20 = vld [vmem:[#allocation2 + $0x38] sm:$0xff] }
  0x64   : > { %875 = vrot.lane.b32.xlu2 %v7999_v22, %s7733_s11  ;;  %455 = vst.msk [vmem:[#allocation2 + $0x128] sm:$0xff] %vm333_vm0, %v422_v23  ;;  %v8038_v34 = vld [vmem:[#allocation2 + $0xa8] sm:$0xff]  ;;  %v495_v23 = vld [vmem:[#allocation2 + $0xc0] sm:$0xff] }
  0x65   : > { %871 = vrot.lane.b32.xlu1 %v8003_v24, %s7733_s11  ;;  %456 = vst.msk [vmem:[#allocation2 + $0x130] sm:$0xff] %vm333_vm0, %v423_v26  ;;  %v8032_v32 = vld [vmem:[#allocation2 + $0xc8] sm:$0xff]  ;;  %v8138_v18 = vsel %vm591_vm1, %v613_v7, %v615_v8  ;;  %v1275_v26 = vld [vmem:[%s13306_s1 + $0x50] sm:$0xff]  ;;  %v8164_v45 = vsel %vm591_vm1, %v608_v60, %v610_v21  ;;  %v617_v60 = vrot.slane %v491_v51, 7  ;;  %v8195_v8 = vsel %vm591_vm1, %v612_v3, %v613_v7  ;;  %v1269_v21 = vld [vmem:[%s13306_s1 + $0x20] sm:$0xff] }
  0x66   : > { %457 = vst.msk [vmem:[#allocation2 + $0x148] sm:$0xff] %vm333_vm0, %v424_v25  ;;  %v8052_v38 = vld [vmem:[#allocation2 + $0xe8] sm:$0xff]  ;;  %v605_v25 = vrot.slane %v7999_v22, 7  ;;  %1410 = vmatpush.msra.mxu0 %v1275_v26  ;;  %v1268_v26 = vld [vmem:[%s13306_s1 + $0x18] sm:$0xff]  ;;  %v1265_v3 = vld [vmem:[%s13306_s1] sm:$0xff] }
  0x67   : > { %458 = vst.msk [vmem:[#allocation2 + $0x150] sm:$0xff] %vm333_vm0, %v425_v27  ;;  %v8054_v39 = vld [vmem:[#allocation2 + $0xd0] sm:$0xff]  ;;  %v1270_v7 = vld [vmem:[%s13306_s1 + $0x28] sm:$0xff] }
  0x68   : > { %883 = vrot.lane.b32.xlu0 %v8015_v28, %s7733_s11  ;;  %459 = vst.msk [vmem:[#allocation2 + $0x168] sm:$0xff] %vm333_vm0, %v426_v31  ;;  %v8047_v37 = vld [vmem:[#allocation2 + $0xf0] sm:$0xff]  ;;  %1411 = vmatpush.msra.mxu0 %v1274_v47 }
  0x69   : > { %462 = vst.msk [vmem:[#allocation2 + $0x190] sm:$0xff] %vm333_vm0, %v429_v35  ;;  %v8070_v46 = vld [vmem:[#allocation2 + $0x110] sm:$0xff]  ;;  %v8153_v35 = vsel %vm591_vm1, %v603_v4, %v605_v25  ;;  %v729_v25 = vrot.slane %v478_v20, 1 }
  0x6a   : > { %461 = vst.msk [vmem:[#allocation2 + $0x188] sm:$0xff] %vm333_vm0, %v428_v36  ;;  %v8077_v50 = vld [vmem:[#allocation2 + $0x108] sm:$0xff]  ;;  %v430_v36 = vld [vmem:[%s7946_s15 + $0xc0] sm:$0xff]  ;;  %v1271_v4 = vld [vmem:[%s13306_s1 + $0x30] sm:$0xff] }
  0x6b   : > { %465 = vst.msk [vmem:[#allocation2 + $0x1c8] sm:$0xff] %vm333_vm0, %v432_v40  ;;  %v8063_v42 = vld [vmem:[#allocation2 + $0x128] sm:$0xff]  ;;  %v622_v40 = vrot.slane %v495_v23, 7  ;;  %v1327_v20 = vld [vmem:[%s13306_s1 + $0x1f0] sm:$0xff] }
  0x6c   : > { %881 = vrot.lane.b32.xlu2 %v8022_v29, %s7733_s11  ;;  %464 = vst.msk [vmem:[#allocation2 + $0x1b0] sm:$0xff] %vm333_vm0, %v431_v41  ;;  %v8106_v0 = vld [vmem:[#allocation2 + $0x130] sm:$0xff]  ;;  %v623_v41 = vrot.slane %v8032_v32, 7 }
  0x6d   : > { %879 = vrot.lane.b32.xlu1 %v8024_v30, %s7733_s11  ;;  %468 = vst.msk [vmem:[#allocation2 + $0x1f0] sm:$0xff] %vm333_vm0, %v435_v52  ;;  %v8088_v55 = vld [vmem:[#allocation2 + $0x148] sm:$0xff]  ;;  %v1273_v52 = vld [vmem:[%s13306_s1 + $0x40] sm:$0xff] }
  0x6e   : > { %v8072_v48 = vld [vmem:[#allocation2 + $0x150] sm:$0xff]  ;;  %467 = vst.msk [vmem:[#allocation2 + $0x1e8] sm:$0xff] %vm333_vm0, %v434_v54  ;;  %v6859_v61 = vpack.i.bf16 %v8091_v56, %v8088_v55  ;;  %v8181_v57 = vsel %vm591_vm1, %v622_v40, %v623_v41  ;;  %1412 = vmatpush.msra.mxu0 %v1273_v52  ;;  %v620_v40 = vrot.slane %v8036_v33, 7  ;;  %v593_v52 = vrot.slane %v7806_v1, 7 }
  0x6f   : > { %v6864_v53 = vpack.i.bf16 %v8075_v49, %v8072_v48  ;;  %460 = vst.msk [vmem:[#allocation2 + $0x170] sm:$0xff] %vm333_vm0, %v427_v6  ;;  %v8124_v11 = vld [vmem:[#allocation2 + $0x168] sm:$0xff] }
  0x70   : > { %889 = vrot.lane.b32.xlu0 %v8032_v32, %s7733_s11  ;;  %v6869_v16 = vpack.i.bf16 %v8127_v12, %v8124_v11  ;;  %463 = vst.msk [vmem:[#allocation2 + $0x1a8] sm:$0xff] %vm333_vm0, %v430_v36  ;;  %v8161_v44 = vld [vmem:[#allocation2 + $0x190] sm:$0xff]  ;;  %1413 = vmatpush.msra.mxu0 %v1272_v58  ;;  %v727_v36 = vrot.slane %v8003_v24, 1 }
  0x71   : > { %v8101_v62 = vld [vmem:[#allocation2 + $0x188] sm:$0xff]  ;;  %466 = vst.msk [vmem:[#allocation2 + $0x1d0] sm:$0xff] %vm333_vm0, %v433_v9 }
  0x72   : > { %v6879_v5 = vpack.i.bf16 %v8104_v63, %v8101_v62  ;;  %v8202_v14 = vld [vmem:[#allocation2 + $0x1c8] sm:$0xff]  ;;  %1414 = vmatpush.msra.mxu0 %v1271_v4  ;;  %v471_v4 = vld [vmem:[#allocation2] sm:$0xff] }
  0x73   : > { %v8135_v17 = vld [vmem:[#allocation2 + $0x1b0] sm:$0xff]  ;;  %v592_v9 = vrot.slane %v471_v4, 7  ;;  %v1325_v4 = vld [vmem:[%s13306_s1 + $0x1e0] sm:$0xff] }
  0x74   : > { %887 = vrot.lane.b32.xlu2 %v8036_v33, %s7733_s11  ;;  %v6894_v27 = vpack.i.bf16 %v8138_v18, %v8135_v17  ;;  %1415 = vmatpush.msra.mxu0 %v1270_v7  ;;  %v1295_v7 = vld [vmem:[%s13306_s1 + $0xf0] sm:$0xff] }
  0x75   : > { %885 = vrot.lane.b32.xlu1 %v8038_v34, %s7733_s11  ;;  %v8176_v54 = vld [vmem:[#allocation2 + $0x1e8] sm:$0xff] }
  0x76   : > { %v8150_v31 = vld [vmem:[#allocation2 + $0x170] sm:$0xff]  ;;  %1416 = vmatpush.msra.mxu0 %v1269_v21 }
  0x77   : > { %v6874_v43 = vpack.i.bf16 %v8153_v35, %v8150_v31  ;;  %v8192_v6 = vld [vmem:[#allocation2 + $0x1a8] sm:$0xff] }
  0x78   : > { %895 = vrot.lane.b32.xlu0 %v8047_v37, %s7733_s11  ;;  %v6889_v10 = vpack.i.bf16 %v8195_v8, %v8192_v6  ;;  %1417 = vmatpush.msra.mxu0 %v1268_v26  ;;  %v8226_v47 = vld [vmem:[#allocation2 + $0x1d0] sm:$0xff]  ;;  %v594_v26 = vsel %vm591_vm1, %v592_v9, %v593_v52 }
  0x7c   : > { %893 = vrot.lane.b32.xlu2 %v8052_v38, %s7733_s11 }
  0x7d   : > { %891 = vrot.lane.b32.xlu1 %v8054_v39, %s7733_s11 }
  0x80   : > { %901 = vrot.lane.b32.xlu0 %v8063_v42, %s7733_s11 }
  0x84   : > { %899 = vrot.lane.b32.xlu2 %v8070_v46, %s7733_s11 }
  0x85   : > { %897 = vrot.lane.b32.xlu1 %v8077_v50, %s7733_s11 }
  0x88   : > { %6865 = vrot.lane.b32.xlu0 %v6864_v53, %s7733_s11  ;;  %v6884_v53 = vpack.i.bf16 %v8164_v45, %v8161_v44 }
  0x8c   : > { %6860 = vrot.lane.b32.xlu2 %v6859_v61, %s7733_s11  ;;  %v618_v61 = vrot.slane %v8038_v34, 7 }
  0x8d   : > { %903 = vrot.lane.b32.xlu1 %v8106_v0, %s7733_s11 }
  0x8e   : > { %v8229_v51 = vsel %vm591_vm1, %v618_v61, %v620_v40  ;;  %v628_v40 = vrot.slane %v8052_v38, 7 }
  0x8f   : > { %v6904_v24 = vpack.i.bf16 %v8229_v51, %v8226_v47 }
  0x90   : > { %6880 = vrot.lane.b32.xlu0 %v6879_v5, %s7733_s11  ;;  %v6909_v5 = vpack.i.bf16 %v8181_v57, %v8176_v54 }
  0x94   : > { %6875 = vrot.lane.b32.xlu2 %v6874_v43, %s7733_s11  ;;  %v1267_v43 = vld [vmem:[%s13306_s1 + $0x10] sm:$0xff] }
  0x95   : > { %6870 = vrot.lane.b32.xlu1 %v6869_v16, %s7733_s11  ;;  %v8205_v16 = vsel %vm591_vm1, %v617_v60, %v618_v61  ;;  %1418 = vmatpush.msra.mxu0 %v1267_v43  ;;  %v866_v60 = vpop.permute.xlu0 %865  ;;  %v1328_v61 = vld [vmem:[%s13306_s1 + $0x1f8] sm:$0xff] }
  0x96   : > { %v6899_v23 = vpack.i.bf16 %v8205_v16, %v8202_v14  ;;  %1744 = vmatpush.msra.mxu3 %v1328_v61  ;;  %v1165_v43 = vsel %vm333_vm0, %v594_v26, %v866_v60  ;;  %v1294_v60 = vld [vmem:[%s13306_s1 + $0xe8] sm:$0xff]  ;;  %v482_v26 = vld [vmem:[#allocation2 + $0x58] sm:$0xff] }
  0x97   : > { %1419 = vmatpush.msra.mxu0 %v1266_v59 }
  0x98   : > { %6895 = vrot.lane.b32.xlu0 %v6894_v27, %s7733_s11  ;;  %v726_v27 = vrot.slane %v7981_v15, 1  ;;  %v8233_v15 = vsel %vm720_vm2, %v727_v36, %v729_v25  ;;  %1745 = vmatpush.msra.mxu3 %v1327_v20  ;;  %v1326_v25 = vld [vmem:[%s13306_s1 + $0x1e8] sm:$0xff]  ;;  %v736_v20 = vrot.slane %v7991_v19, 1  ;;  %v1291_v19 = vld [vmem:[%s13306_s1 + $0xd0] sm:$0xff] }
  0x99   : > { %1420 = vmatpush.msra.mxu0 %v1265_v3 }
  0x9a   : > { %v8241_v58 = vsel %vm720_vm2, %v726_v27, %v727_v36  ;;  %v595_v27 = vrot.slane %v7896_v2, 7  ;;  %v499_v36 = vld [vmem:[#allocation2 + $0xe0] sm:$0xff]  ;;  %1421 = vmatmul.f32.vlgmr.msra.gmra.mxu0 %v1165_v43  ;;  %1746 = vmatpush.msra.mxu3 %v1326_v25  ;;  %v1323_v25 = vld [vmem:[%s13306_s1 + $0x1d0] sm:$0xff] }
  0x9b   : > { %v627_v61 = vrot.slane %v499_v36, 7  ;;  %v1322_v36 = vld [vmem:[%s13306_s1 + $0x1c8] sm:$0xff] }
  0x9c   : > { %6890 = vrot.lane.b32.xlu2 %v6889_v10, %s7733_s11  ;;  %v1336_v10 = vld [vmem:[%s13306_s1 + $0x238] sm:$0xff]  ;;  %v596_v9 = vsel %vm591_vm1, %v593_v52, %v595_v27  ;;  %1747 = vmatpush.msra.mxu3 %v1325_v4  ;;  %v732_v27 = vrot.slane %v7999_v22, 1  ;;  %v734_v22 = vrot.slane %v482_v26, 1  ;;  %v1289_v4 = vld [vmem:[%s13306_s1 + $0xc0] sm:$0xff]  ;;  %v13315_v26 = vrot.slane %v8063_v42, 7 }
  0x9d   : > { %6885 = vrot.lane.b32.xlu1 %v6884_v53, %s7733_s11  ;;  %v8238_v53 = vld [vmem:[#allocation2 + $0x1f0] sm:$0xff]  ;;  %1865 = vmatpush.msrb.mxu0 %v1336_v10  ;;  %v1324_v10 = vld [vmem:[%s13306_s1 + $0x1d8] sm:$0xff] }
  0x9e   : > { %v6914_v21 = vpack.i.bf16 %v8238_v53, %v8241_v58  ;;  %v1292_v52 = vld [vmem:[%s13306_s1 + $0xd8] sm:$0xff]  ;;  %1748 = vmatpush.msra.mxu3 %v1324_v10  ;;  %v1319_v10 = vld [vmem:[%s13306_s1 + $0x1b0] sm:$0xff] }
  0xa0   : > { %6910 = vrot.lane.b32.xlu0 %v6909_v5, %s7733_s11  ;;  %v1296_v5 = vld [vmem:[%s13306_s1 + $0xf8] sm:$0xff]  ;;  %1749 = vmatpush.msra.mxu3 %v1323_v25 }
  0xa1   : > { %1518 = vmatpush.msra.mxu1 %v1296_v5  ;;  %v1293_v5 = vld [vmem:[%s13306_s1 + $0xe0] sm:$0xff] }
  0xa2   : > { %1750 = vmatpush.msra.mxu3 %v1322_v36  ;;  %v635_v36 = vrot.slane %v8070_v46, 7 }
  0xa3   : > { %1519 = vmatpush.msra.mxu1 %v1295_v7  ;;  %v13316_v7 = vrot.slane %v8024_v30, 1 }
  0xa4   : > { %6905 = vrot.lane.b32.xlu2 %v6904_v24, %s7733_s11  ;;  %v625_v24 = vrot.slane %v8054_v39, 7 }
  0xa5   : > { %6900 = vrot.lane.b32.xlu1 %v6899_v23, %s7733_s11  ;;  %v630_v23 = vrot.slane %v8047_v37, 7  ;;  %1520 = vmatpush.msra.mxu1 %v1294_v60  ;;  %v8329_v43 = vsel %vm720_vm2, %v736_v20, %v13316_v7  ;;  %v1321_v60 = vld [vmem:[%s13306_s1 + $0x1c0] sm:$0xff]  ;;  %v1287_v20 = vld [vmem:[%s13306_s1 + $0xb0] sm:$0xff] }
  0xa6   : > { %v8285_v3 = vsel %vm591_vm1, %v623_v41, %v625_v24  ;;  %v868_v41 = vpop.permute.xlu0 %867  ;;  %1751 = vmatpush.msra.mxu3 %v1321_v60  ;;  %v1285_v60 = vld [vmem:[%s13306_s1 + $0xa0] sm:$0xff] }
  0xa7   : > { %v8280_v59 = vsel %vm591_vm1, %v628_v40, %v630_v23  ;;  %v8311_v23 = vsel %vm591_vm1, %v627_v61, %v628_v40  ;;  %1521 = vmatpush.msra.mxu1 %v1293_v5  ;;  %v731_v40 = vrot.slane %v7975_v13, 1  ;;  %v1290_v13 = vld [vmem:[%s13306_s1 + $0xc8] sm:$0xff]  ;;  %v1320_v5 = vld [vmem:[%s13306_s1 + $0x1b8] sm:$0xff] }
  0xa8   : > { %1059 = vrot.lane.b32.xlu0 %v8233_v15, %s7733_s11  ;;  %1752 = vmatpush.msra.mxu3 %v1320_v5  ;;  %v1284_v5 = vld [vmem:[%s13306_s1 + $0x98] sm:$0xff] }
  0xa9   : > { %1522 = vmatpush.msra.mxu1 %v1292_v52  ;;  %v8334_v61 = vsel %vm720_vm2, %v731_v40, %v732_v27  ;;  %v1318_v52 = vld [vmem:[%s13306_s1 + $0x1a8] sm:$0xff] }
  0xaa   : > { %13368 = vst [vmem:[#allocation3_spill] sm:$0xff] %v8334_v61  ;;  %1753 = vmatpush.msra.mxu3 %v1319_v10  ;;  %v1315_v10 = vld [vmem:[%s13306_s1 + $0x190] sm:$0xff] }
  0xab   : > { %1523 = vmatpush.msra.mxu1 %v1291_v19 }
  0xac   : > { %983 = vrot.lane.b32.xlu2 %v8285_v3, %s7733_s11  ;;  %1754 = vmatpush.msra.mxu3 %v1318_v52  ;;  %v1283_v52 = vld [vmem:[%s13306_s1 + $0x90] sm:$0xff] }
  0xad   : > { %6915 = vrot.lane.b32.xlu1 %v6914_v21, %s7733_s11  ;;  %v1166_v21 = vsel %vm333_vm0, %v596_v9, %v868_v41  ;;  %1524 = vmatpush.msra.mxu1 %v1290_v13  ;;  %v1288_v9 = vld [vmem:[%s13306_s1 + $0xb8] sm:$0xff]  ;;  %v8356_v41 = vsel %vm720_vm2, %v732_v27, %v734_v22  ;;  %v633_v27 = vrot.slane %v8077_v50, 7  ;;  %v1286_v22 = vld [vmem:[%s13306_s1 + $0xa8] sm:$0xff]  ;;  %v1317_v13 = vld [vmem:[%s13306_s1 + $0x1a0] sm:$0xff] }
  0xae   : > { %1424 = vmatmul.f32.gmra.mxu0 %v1166_v21  ;;  %v507_v21 = vld [vmem:[#allocation2 + $0x120] sm:$0xff]  ;;  %1755 = vmatpush.msra.mxu3 %v1317_v13  ;;  %v742_v13 = vrot.slane %v8015_v28, 1 }
  0xaf   : > { %1525 = vmatpush.msra.mxu1 %v1289_v4  ;;  %v637_v25 = vrot.slane %v507_v21, 7  ;;  %v1316_v4 = vld [vmem:[%s13306_s1 + $0x198] sm:$0xff]  ;;  %v13317_v21 = vrot.slane %v7896_v2, 1 }
  0xb0   : > { %987 = vrot.lane.b32.xlu0 %v8280_v59, %s7733_s11  ;;  %1756 = vmatpush.msra.mxu3 %v1316_v4  ;;  %v741_v4 = vrot.slane %v8022_v29, 1 }
  0xb1   : > { %1526 = vmatpush.msra.mxu1 %v1288_v9  ;;  %v8375_v40 = vsel %vm591_vm1, %v637_v25, %v13315_v26  ;;  %v8395_v9 = vsel %vm591_vm1, %v633_v27, %v635_v36  ;;  %v490_v25 = vld [vmem:[#allocation2 + $0x98] sm:$0xff]  ;;  %v1314_v36 = vld [vmem:[%s13306_s1 + $0x188] sm:$0xff] }
  0xb2   : > { %1757 = vmatpush.msra.mxu3 %v1315_v10  ;;  %v1313_v10 = vld [vmem:[%s13306_s1 + $0x180] sm:$0xff] }
  0xb3   : > { %1527 = vmatpush.msra.mxu1 %v1287_v20  ;;  %v721_v20 = vrot.slane %v7806_v1, 1 }
  0xb4   : > { %1061 = vrot.lane.b32.xlu2 %v8334_v61, %s7733_s11  ;;  %1758 = vmatpush.msra.mxu3 %v1314_v36 }
  0xb5   : > { %985 = vrot.lane.b32.xlu1 %v8311_v23, %s7733_s11  ;;  %1528 = vmatpush.msra.mxu1 %v1286_v22  ;;  %v503_v22 = vld [vmem:[#allocation2 + $0x100] sm:$0xff] }
  0xb6   : > { %v8331_v24 = vpop.permute.xlu2 %873  ;;  %v632_v26 = vrot.slane %v503_v22, 7  ;;  %1759 = vmatpush.msra.mxu3 %v1313_v10 }
  0xb7   : > { %1529 = vmatpush.msra.mxu1 %v1285_v60  ;;  %v744_v60 = vrot.slane %v490_v25, 1  ;;  %v1169_v29 = vsel %vm333_vm0, %v8127_v12, %v8331_v24  ;;  %v1335_v12 = vld [vmem:[%s13306_s1 + $0x230] sm:$0xff]  ;;  %v511_v24 = vld [vmem:[#allocation2 + $0x140] sm:$0xff]  ;;  %v486_v25 = vld [vmem:[#allocation2 + $0x78] sm:$0xff] }
  0xb8   : > { %1065 = vrot.lane.b32.xlu0 %v8329_v43, %s7733_s11  ;;  %v8418_v28 = vsel %vm591_vm1, %v632_v26, %v633_v27  ;;  %v1281_v26 = vld [vmem:[%s13306_s1 + $0x80] sm:$0xff]  ;;  %v8437_v27 = vsel %vm720_vm2, %v721_v20, %v13317_v21  ;;  %1760 = vmatmul.f32.vlgmr.msra.gmra.mxu3 %v1169_v29  ;;  %v739_v22 = vrot.slane %v486_v25, 1  ;;  %v642_v36 = vrot.slane %v511_v24, 7 }
  0xb9   : > { %1530 = vmatpush.msra.mxu1 %v1284_v5  ;;  %v8415_v7 = vsel %vm720_vm2, %v742_v13, %v744_v60  ;;  %v1282_v5 = vld [vmem:[%s13306_s1 + $0x88] sm:$0xff]  ;;  %1866 = vmatpush.msrb.mxu0 %v1335_v12  ;;  %v643_v60 = vrot.slane %v8088_v55, 7  ;;  %v645_v25 = vrot.slane %v8072_v48, 7 }
  0xbb   : > { %1531 = vmatpush.msra.mxu1 %v1283_v52  ;;  %v8442_v52 = vsel %vm720_vm2, %v741_v4, %v742_v13  ;;  %v13369_v13 = vrot.slane %v8024_v30, 1  ;;  %v8464_v24 = vsel %vm591_vm1, %v642_v36, %v643_v60  ;;  %v494_v30 = vld [vmem:[#allocation2 + $0xb8] sm:$0xff] }
  0xbc   : > { %989 = vrot.lane.b32.xlu2 %v8418_v28, %s7733_s11 }
  0xbd   : > { %1063 = vrot.lane.b32.xlu1 %v8356_v41, %s7733_s11  ;;  %1532 = vmatpush.msra.mxu1 %v1282_v5  ;;  %v8455_v4 = vsel %vm720_vm2, %v13369_v13, %v739_v22  ;;  %v747_v13 = vrot.slane %v8036_v33, 1  ;;  %v751_v33 = vrot.slane %v8032_v32, 1 }
  0xbe   : > { %v876_v19 = vpop.permute.xlu2 %875 }
  0xbf   : > { %1533 = vmatpush.msra.mxu1 %v1281_v26  ;;  %v1170_v10 = vsel %vm333_vm0, %v8153_v35, %v876_v19  ;;  %v749_v35 = vrot.slane %v494_v30, 1  ;;  %v8473_v19 = vsel %vm591_vm1, %v643_v60, %v645_v25  ;;  %v13318_v60 = vrot.slane %v8054_v39, 1 }
  0xc0   : > { %993 = vrot.lane.b32.xlu0 %v8375_v40, %s7733_s11  ;;  %1763 = vmatmul.f32.gmra.mxu3 %v1170_v10  ;;  %v640_v30 = vrot.slane %v8106_v0, 7 }
  0xc1   : > { %v8484_v21 = vsel %vm720_vm2, %v747_v13, %v749_v35  ;;  %v1312_v35 = vld [vmem:[%s13306_s1 + $0x178] sm:$0xff] }
  0xc2   : > { %13370 = vst [vmem:[#allocation4_spill] sm:$0xff] %v8484_v21  ;;  %1631 = vmatpush.msra.mxu2 %v1312_v35 }
  0xc4   : > { %1067 = vrot.lane.b32.xlu2 %v8455_v4, %s7733_s11 }
  0xc5   : > { %991 = vrot.lane.b32.xlu1 %v8395_v9, %s7733_s11 }
  0xc6   : > { %v8411_v1 = vpop.permute.xlu2 %881 }
  0xc8   : > { %1071 = vrot.lane.b32.xlu0 %v8415_v7, %s7733_s11 }
  0xcd   : > { %1069 = vrot.lane.b32.xlu1 %v8442_v52, %s7733_s11 }
  0xce   : > { %v8449_v20 = vpop.permute.xlu2 %887 }
  0xcf   : > { %v870_v5 = vpop.permute.xlu1 %869 }
  0xd0   : > { %v1167_v26 = vsel %vm333_vm0, %v8091_v56, %v870_v5  ;;  %999 = vrot.lane.b32.xlu0 %v8473_v19, %s7733_s11 }
  0xd1   : > { %1427 = vmatmul.f32.gmra.mxu0 %v1167_v26 }
  0xd2   : > { %v878_v12 = vpop.permute.xlu0 %877 }
  0xd3   : > { %v8479_v36 = vsel %vm333_vm0, %v8104_v63, %v878_v12  ;;  %v13372_v12 = vrot.slane %v8063_v42, 7 }
  0xd4   : > { %1766 = vmatmul.f32.gmra.mxu3 %v8479_v36 }
  0xd5   : > { %997 = vrot.lane.b32.xlu1 %v8464_v24, %s7733_s11  ;;  %v8502_v25 = vsel %vm591_vm1, %v13372_v12, %v640_v30  ;;  %v648_v30 = vrot.slane %v8124_v11, 7  ;;  %v650_v12 = vrot.slane %v8150_v31, 7  ;;  %v8543_v11 = vsel %vm333_vm0, %v8195_v8, %v8411_v1  ;;  %v1308_v8 = vld [vmem:[%s13306_s1 + $0x158] sm:$0xff]  ;;  %v519_v1 = vld [vmem:[#allocation2 + $0x180] sm:$0xff] }
  0xd6   : > { %v8469_v22 = vpop.permute.xlu2 %893  ;;  %995 = vrot.lane.b32.xlu2 %v8502_v25, %s7733_s11 }
  0xd7   : > { %v872_v56 = vpop.permute.xlu1 %871 }
  0xd8   : > { %v1168_v5 = vsel %vm333_vm0, %v8075_v49, %v872_v56  ;;  %v8497_v49 = vsel %vm720_vm2, %v751_v33, %v13318_v60  ;;  %v1311_v56 = vld [vmem:[%s13306_s1 + $0x170] sm:$0xff]  ;;  %v746_v60 = vrot.slane %v8038_v34, 1  ;;  %v1310_v34 = vld [vmem:[%s13306_s1 + $0x168] sm:$0xff] }
  0xd9   : > { %1430 = vmatmul.f32.gmra.mxu0 %v1168_v5  ;;  %13371 = vst [vmem:[#allocation5_spill] sm:$0xff] %v8497_v49  ;;  %1077 = vrot.lane.b32.xlu0 %v8497_v49, %s7733_s11 }
  0xda   : > { %v884_v26 = vpop.permute.xlu0 %883  ;;  %1632 = vmatpush.msra.mxu2 %v1311_v56 }
  0xdc   : > { %1633 = vmatpush.msra.mxu2 %v1310_v34  ;;  %v756_v34 = vrot.slane %v8052_v38, 1  ;;  %v8584_v38 = vsel %vm333_vm0, %v8138_v18, %v884_v26  ;;  %v515_v18 = vld [vmem:[#allocation2 + $0x160] sm:$0xff]  ;;  %v1303_v26 = vld [vmem:[%s13306_s1 + $0x130] sm:$0xff] }
  0xdd   : > { %1075 = vrot.lane.b32.xlu1 %v8484_v21, %s7733_s11  ;;  %v8527_v21 = vsel %vm591_vm1, %v648_v30, %v650_v12  ;;  %v1307_v12 = vld [vmem:[%s13306_s1 + $0x150] sm:$0xff] }
  0xde   : > { %v8492_v63 = vpop.permute.xlu2 %899  ;;  %13373 = vst [vmem:[#allocation6_spill] sm:$0xff] %v8527_v21 }
  0xdf   : > { %v880_v32 = vpop.permute.xlu1 %879 }
  0xe0   : > { %v8516_v5 = vsel %vm333_vm0, %v8164_v45, %v880_v32  ;;  %v8530_v45 = vsel %vm720_vm2, %v746_v60, %v747_v13  ;;  %v1309_v13 = vld [vmem:[%s13306_s1 + $0x160] sm:$0xff]  ;;  %v1334_v60 = vld [vmem:[%s13306_s1 + $0x228] sm:$0xff] }
  0xe1   : > { %1433 = vmatmul.f32.gmra.mxu0 %v1169_v29  ;;  %1769 = vmatmul.f32.gmra.mxu3 %v8516_v5 }
  0xe2   : > { %v8518_v33 = vpop.permute.xlu0 %889  ;;  %1073 = vrot.lane.b32.xlu2 %v8530_v45, %s7733_s11  ;;  %1634 = vmatpush.msra.mxu2 %v1309_v13 }
  0xe3   : > { %1867 = vmatpush.msrb.mxu0 %v1334_v60 }
  0xe4   : > { %1635 = vmatpush.msra.mxu2 %v1308_v8  ;;  %v1305_v8 = vld [vmem:[%s13306_s1 + $0x140] sm:$0xff] }
  0xe5   : > { %1003 = vrot.lane.b32.xlu1 %v8527_v21, %s7733_s11 }
  0xe6   : > { %v8524_v49 = vpop.permute.xlu2 %6860  ;;  %1636 = vmatpush.msra.mxu2 %v1307_v12  ;;  %v1304_v12 = vld [vmem:[%s13306_s1 + $0x138] sm:$0xff] }
  0xe7   : > { %v886_v29 = vpop.permute.xlu1 %885  ;;  %v6863_v32 = vunpack.i.h.bf16 %v8524_v49 }
  0xe9   : > { %v1197_v35 = vsel %vm333_vm0, %v8437_v27, %v6863_v32  ;;  %1436 = vmatmul.f32.gmra.mxu0 %v1170_v10  ;;  %1772 = vmatmul.f32.gmra.mxu3 %v8543_v11  ;;  %v757_v27 = vrot.slane %v8047_v37, 1  ;;  %v652_v10 = vrot.slane %v519_v1, 7  ;;  %v13323_v32 = vrot.slane %v8101_v62, 7  ;;  %v1306_v37 = vld [vmem:[%s13306_s1 + $0x148] sm:$0xff] }
  0xea   : > { %1534 = vmatmul.f32.vlgmr.msra.gmra.mxu1 %v1197_v35  ;;  %v8553_v56 = vpop.permute.xlu0 %895  ;;  %1637 = vmatpush.msra.mxu2 %v1306_v37 }
  0xeb   : > { %v8566_v35 = vsel %vm720_vm2, %v756_v34, %v757_v27  ;;  %v8571_v13 = vsel %vm591_vm1, %v652_v10, %v13323_v32  ;;  %v474_v34 = vld [vmem:[#allocation2 + $0x18] sm:$0xff] }
  0xec   : > { %13374 = vst [vmem:[#allocation7_spill] sm:$0xff] %v8566_v35  ;;  %1005 = vrot.lane.b32.xlu0 %v8571_v13, %s7733_s11  ;;  %1638 = vmatpush.msra.mxu2 %v1305_v8  ;;  %v502_v10 = vld [vmem:[#allocation2 + $0xf8] sm:$0xff]  ;;  %v1302_v8 = vld [vmem:[%s13306_s1 + $0x128] sm:$0xff] }
  0xed   : > { %13375 = vst [vmem:[#allocation8_spill] sm:$0xff] %v8571_v13  ;;  %1081 = vrot.lane.b32.xlu1 %v8566_v35, %s7733_s11  ;;  %v759_v32 = vrot.slane %v502_v10, 1  ;;  %v647_v35 = vrot.slane %v515_v18, 7  ;;  %v658_v10 = vrot.slane %v8192_v6, 7  ;;  %v1299_v18 = vld [vmem:[%s13306_s1 + $0x110] sm:$0xff] }
  0xee   : > { %1639 = vmatpush.msra.mxu2 %v1304_v12 }
  0xef   : > { %v8573_v60 = vpop.permute.xlu1 %891  ;;  %v8600_v37 = vsel %vm720_vm2, %v757_v27, %v759_v32  ;;  %v8603_v13 = vsel %vm591_vm1, %v647_v35, %v648_v30  ;;  %v8616_v27 = vsel %vm333_vm0, %v8205_v16, %v886_v29  ;;  %v1301_v30 = vld [vmem:[%s13306_s1 + $0x120] sm:$0xff]  ;;  %v13377_v35 = vrot.slane %v7896_v2, 1  ;;  %v1300_v16 = vld [vmem:[%s13306_s1 + $0x118] sm:$0xff] }
  0xf0   : > { %13376 = vst [vmem:[#allocation9_spill] sm:$0xff] %v8600_v37  ;;  %1640 = vmatpush.msra.mxu2 %v1303_v26  ;;  %1001 = vrot.lane.b32.xlu2 %v8603_v13, %s7733_s11 }
  0xf1   : > { %1439 = vmatmul.f32.gmra.mxu0 %v8479_v36  ;;  %1775 = vmatmul.f32.gmra.mxu3 %v8584_v38  ;;  %v724_v36 = vrot.slane %v474_v34, 1  ;;  %v523_v34 = vld [vmem:[#allocation2 + $0x1a0] sm:$0xff] }
  0xf2   : > { %v8590_v1 = vpop.permute.xlu0 %901  ;;  %1641 = vmatpush.msra.mxu2 %v1302_v8  ;;  %v657_v2 = vrot.slane %v523_v34, 7  ;;  %v762_v34 = vrot.slane %v8070_v46, 1  ;;  %v1177_v46 = vsel %vm333_vm0, %v8181_v57, %v8518_v33  ;;  %v13331_v57 = vrot.slane %v8106_v0, 1 }
  0xf3   : > { %v725_v12 = vsel %vm720_vm2, %v13377_v35, %v724_v36  ;;  %v13378_v35 = vrot.slane %v8054_v39, 1  ;;  %v1176_v39 = vsel %vm333_vm0, %v8229_v51, %v8449_v20  ;;  %v655_v33 = vrot.slane %v8161_v44, 7 }
  0xf4   : > { %1083 = vrot.lane.b32.xlu0 %v8600_v37, %s7733_s11  ;;  %1642 = vmatpush.msra.mxu2 %v1301_v30  ;;  %v8638_v8 = vsel %vm591_vm1, %v657_v2, %v658_v10  ;;  %v8663_v2 = vpop.permute.xlu2 %6875 }
  0xf5   : > { %1009 = vrot.lane.b32.xlu1 %v8638_v8, %s7733_s11 }
  0xf6   : > { %1643 = vmatpush.msra.mxu2 %v1300_v16  ;;  %v1297_v16 = vld [vmem:[%s13306_s1 + $0x100] sm:$0xff] }
  0xf7   : > { %v8605_v21 = vpop.permute.xlu1 %897 }
  0xf8   : > { %1644 = vmatpush.msra.mxu2 %v1299_v18 }
  0xf9   : > { %1442 = vmatmul.f32.gmra.mxu0 %v8516_v5  ;;  %1778 = vmatmul.f32.gmra.mxu3 %v8616_v27  ;;  %v498_v5 = vld [vmem:[#allocation2 + $0xd8] sm:$0xff] }
  0xfa   : > { %v8622_v32 = vpop.permute.xlu0 %6865  ;;  %v754_v26 = vrot.slane %v498_v5, 1  ;;  %v660_v5 = vrot.slane %v8135_v17, 7 }
  0xfb   : > { %v6868_v29 = vunpack.i.h.bf16 %v8622_v32 }
  0xfc   : > { %v8643_v30 = vsel %vm720_vm2, %v13378_v35, %v754_v26  ;;  %v8666_v26 = vsel %vm591_vm1, %v658_v10, %v660_v5  ;;  %v766_v35 = vrot.slane %v8063_v42, 1  ;;  %v8705_v42 = vpop.permute.xlu2 %6890  ;;  %v1178_v5 = vsel %vm333_vm0, %v8285_v3, %v8573_v60 }
  0xfd   : > { %v1198_v36 = vsel %vm333_vm0, %v725_v12, %v6868_v29  ;;  %v1298_v12 = vld [vmem:[%s13306_s1 + $0x108] sm:$0xff]  ;;  %1079 = vrot.lane.b32.xlu2 %v8643_v30, %s7733_s11  ;;  %v506_v29 = vld [vmem:[#allocation2 + $0x118] sm:$0xff]  ;;  %1011 = vrot.lane.b32.xlu0 %v8666_v26, %s7733_s11 }
  0xfe   : > { %1537 = vmatmul.f32.gmra.mxu1 %v1198_v36  ;;  %1645 = vmatpush.msra.mxu2 %v1298_v12  ;;  %v764_v18 = vrot.slane %v506_v29, 1  ;;  %v1333_v36 = vld [vmem:[%s13306_s1 + $0x220] sm:$0xff]  ;;  %v6878_v12 = vunpack.i.h.bf16 %v8663_v2 }
  0xff   : > { %v8645_v37 = vpop.permute.xlu1 %903  ;;  %1868 = vmatpush.msrb.mxu0 %v1333_v36 }
 0x100   : > { %1646 = vmatpush.msra.mxu2 %v1297_v16  ;;  %v8669_v51 = vsel %vm720_vm2, %v762_v34, %v764_v18  ;;  %v1200_v18 = vsel %vm333_vm0, %v8233_v15, %v6878_v12  ;;  %v531_v12 = vld [vmem:[#allocation2 + $0x1e0] sm:$0xff] }
 0x101   : > { %1445 = vmatmul.f32.gmra.mxu0 %v8543_v11  ;;  %1781 = vmatmul.f32.gmra.mxu3 %v1176_v39 }
 0x102   : > { %v8675_v11 = vpop.permute.xlu0 %6880  ;;  %1087 = vrot.lane.b32.xlu1 %v8669_v51, %s7733_s11 }
 0x103   : > { %v6883_v36 = vunpack.i.h.bf16 %v8675_v11 }
 0x107   : > { %v8673_v20 = vpop.permute.xlu1 %6870 }
 0x108   : > { %v6873_v17 = vunpack.i.h.bf16 %v8673_v20 }
 0x109   : > { %1448 = vmatmul.f32.gmra.mxu0 %v8584_v38  ;;  %1784 = vmatmul.f32.gmra.mxu3 %v1177_v46  ;;  %v8696_v38 = vsel %vm720_vm2, %v766_v35, %v13331_v57  ;;  %v665_v35 = vrot.slane %v8226_v47, 7  ;;  %v8742_v47 = vpop.permute.xlu2 %6905 }
 0x10a   : > { %v1199_v10 = vsel %vm333_vm0, %v8241_v58, %v6873_v17  ;;  %v13379_v58 = vrot.slane %v8101_v62, 7  ;;  %1089 = vrot.lane.b32.xlu0 %v8696_v38, %s7733_s11  ;;  %v8716_v17 = vpop.permute.xlu0 %6895 }
 0x10b   : > { %1540 = vmatmul.f32.gmra.mxu1 %v1199_v10  ;;  %v663_v10 = vrot.slane %v8202_v14, 7  ;;  %v8738_v14 = vsel %vm333_vm0, %v8311_v23, %v8469_v22  ;;  %v667_v23 = vrot.slane %v531_v12, 7  ;;  %v13330_v22 = vrot.slane %v8176_v54, 7 }
 0x10c   : > { %v8701_v16 = vsel %vm591_vm1, %v13379_v58, %v655_v33  ;;  %v761_v33 = vrot.slane %v8077_v50, 1  ;;  %v1201_v50 = vsel %vm333_vm0, %v8334_v61, %v6883_v36  ;;  %v436_v61 = vld [vmem:[%s7946_s15 + $0xf0] sm:$0xff] }
 0x10d   : > { %1007 = vrot.lane.b32.xlu2 %v8701_v16, %s7733_s11  ;;  %v8724_v58 = vsel %vm591_vm1, %v663_v10, %v665_v35  ;;  %469 = vst.msk [vmem:[#allocation2 + $0x208] sm:$0xff] %vm333_vm0, %v436_v61 }
 0x10e   : > { %v8727_v3 = vsel %vm720_vm2, %v761_v33, %v762_v34  ;;  %1015 = vrot.lane.b32.xlu1 %v8724_v58, %s7733_s11  ;;  %v772_v34 = vrot.slane %v8072_v48, 1  ;;  %v8768_v48 = vsel %vm333_vm0, %v8280_v59, %v8553_v56  ;;  %v6893_v59 = vunpack.i.h.bf16 %v8705_v42 }
 0x10f   : > { %v8703_v29 = vpop.permute.xlu1 %6885 }
 0x111   : > { %1451 = vmatmul.f32.gmra.mxu0 %v8616_v27  ;;  %1787 = vmatmul.f32.gmra.mxu3 %v1178_v5  ;;  %v771_v27 = vrot.slane %v8088_v55, 1  ;;  %v8775_v12 = vpop.permute.xlu2 %983 }
 0x112   : > { %v8745_v60 = vpop.permute.xlu0 %6910 }
 0x113   : > { %1543 = vmatmul.f32.gmra.mxu1 %v1200_v18  ;;  %v6888_v18 = vunpack.i.h.bf16 %v8703_v29  ;;  %v8752_v36 = vsel %vm720_vm2, %v771_v27, %v772_v34 }
 0x115   : > { %1085 = vrot.lane.b32.xlu2 %v8727_v3, %s7733_s11  ;;  %v1202_v33 = vsel %vm333_vm0, %v8356_v41, %v6888_v18 }
 0x116   : > { %1093 = vrot.lane.b32.xlu1 %v8752_v36, %s7733_s11 }
 0x117   : > { %v8729_v15 = vpop.permute.xlu1 %6900 }
 0x119   : > { %1454 = vmatmul.f32.gmra.mxu0 %v1176_v39  ;;  %1790 = vmatmul.f32.gmra.mxu3 %v8738_v14  ;;  %v8757_v39 = vsel %vm591_vm1, %v667_v23, %v13330_v22  ;;  %v514_v23 = vld [vmem:[#allocation2 + $0x158] sm:$0xff]  ;;  %v527_v22 = vld [vmem:[#allocation2 + $0x1c0] sm:$0xff] }
 0x11a   : > { %1017 = vrot.lane.b32.xlu0 %v8757_v39, %s7733_s11  ;;  %v774_v56 = vrot.slane %v514_v23, 1  ;;  %v662_v57 = vrot.slane %v527_v22, 7  ;;  %v8793_v22 = vsel %vm333_vm0, %v8418_v28, %v8605_v21  ;;  %v535_v21 = vld [vmem:[#allocation2 + $0x200] sm:$0xff]  ;;  %v510_v28 = vld [vmem:[#allocation2 + $0x138] sm:$0xff]  ;;  %v1062_v23 = vpop.permute.xlu2 %1061 }
 0x11b   : > { %1546 = vmatmul.f32.gmra.mxu1 %v1201_v50  ;;  %v7578_v50 = vld [vmem:[#allocation2 + $0x28] sm:$0xff] }
 0x11c   : > { %v8784_v18 = vsel %vm591_vm1, %v662_v57, %v663_v10  ;;  %v1332_v10 = vld [vmem:[%s13306_s1 + $0x218] sm:$0xff] }
 0x11d   : > { %1013 = vrot.lane.b32.xlu2 %v8784_v18, %s7733_s11  ;;  %1869 = vmatpush.msrb.mxu0 %v1332_v10  ;;  %v7580_v10 = vld [vmem:[#allocation2 + $0x48] sm:$0xff] }
 0x11f   : > { %v8759_v35 = vpop.permute.xlu1 %6915 }
 0x120   : > { %13380 = vst [vmem:[#allocation10_spill] sm:$0xff] %v8759_v35  ;;  %v6917_v55 = vunpack.i.l.bf16 %v8759_v35  ;;  %v1060_v35 = vpop.permute.xlu0 %1059 }
 0x121   : > { %1457 = vmatmul.f32.gmra.mxu0 %v1177_v46  ;;  %1793 = vmatmul.f32.gmra.mxu3 %v8768_v48  ;;  %v8781_v46 = vsel %vm720_vm2, %v772_v34, %v774_v56  ;;  %v1203_v34 = vsel %vm333_vm0, %v8329_v43, %v6893_v59  ;;  %v13381_v56 = vrot.slane %v8106_v0, 1 }
 0x122   : > { %v1229_v27 = vsel %vm333_vm0, %v7578_v50, %v6917_v55  ;;  %1095 = vrot.lane.b32.xlu0 %v8781_v46, %s7733_s11  ;;  %v7579_v55 = vld [vmem:[#allocation2 + $0x30] sm:$0xff]  ;;  %v836_v50 = vrot.slane %v535_v21, 7  ;;  %v1231_v21 = vsel %vm333_vm0, %v7580_v10, %v1062_v23  ;;  %v8848_v10 = vsel %vm333_vm0, %v8375_v40, %v8590_v1  ;;  %v8861_v40 = vpop.permute.xlu2 %989 }
 0x123   : > { %1647 = vmatmul.f32.vlgmr.msra.gmra.mxu2 %v1229_v27  ;;  %1549 = vmatmul.f32.gmra.mxu1 %v1202_v33  ;;  %v1230_v61 = vsel %vm333_vm0, %v7579_v55, %v1060_v35  ;;  %v6898_v33 = vunpack.i.h.bf16 %v8716_v17  ;;  %v8805_v35 = vld [vmem:[#allocation2 + $0x208] sm:$0xff]  ;;  %v769_v27 = vrot.slane %v510_v28, 1  ;;  %v781_v1 = vrot.slane %v8101_v62, 1 }
 0x124   : > { %v837_v59 = vrot.slane %v8805_v35, 7  ;;  %v1184_v62 = vsel %vm333_vm0, %v8502_v25, %v8645_v37  ;;  %v6862_v37 = vunpack.i.l.bf16 %v8524_v49 }
 0x125   : > { %v8813_v55 = vsel %vm720_vm2, %v13381_v56, %v769_v27  ;;  %v1204_v0 = vsel %vm333_vm0, %v8455_v4, %v6898_v33 }
 0x126   : > { %1091 = vrot.lane.b32.xlu2 %v8813_v55, %s7733_s11 }
 0x127   : > { %v8799_v57 = vpop.permute.xlu1 %985 }
 0x128   : > { %v8832_v28 = vpop.permute.xlu0 %987 }
 0x129   : > { %1460 = vmatmul.f32.gmra.mxu0 %v1178_v5  ;;  %1796 = vmatmul.f32.gmra.mxu3 %v8793_v22  ;;  %v437_v5 = vld [vmem:[%s7946_s15 + $0xf8] sm:$0xff] }
 0x12a   : > { %470 = vst.msk [vmem:[#allocation2 + $0x210] sm:$0xff] %vm333_vm0, %v437_v5 }
 0x12b   : > { %1650 = vmatmul.f32.gmra.mxu2 %v1230_v61  ;;  %1552 = vmatmul.f32.gmra.mxu1 %v1203_v34  ;;  %v8816_v61 = vsel %vm591_vm1, %v836_v50, %v837_v59  ;;  %v8823_v34 = vsel %vm333_vm0, %v8395_v9, %v8492_v63  ;;  %v518_v50 = vld [vmem:[#allocation2 + $0x178] sm:$0xff]  ;;  %v777_v9 = vrot.slane %v8150_v31, 1  ;;  %v6903_v63 = vunpack.i.h.bf16 %v8729_v15  ;;  %v7581_v31 = vld [vmem:[#allocation2 + $0x50] sm:$0xff] }
 0x12c   : > { %13382 = vst [vmem:[#allocation11_spill] sm:$0xff] %v8816_v61  ;;  %1021 = vrot.lane.b32.xlu1 %v8816_v61, %s7733_s11  ;;  %v779_v27 = vrot.slane %v518_v50, 1  ;;  %v13334_v50 = vrot.slane %v8161_v44, 1  ;;  %v522_v61 = vld [vmem:[#allocation2 + $0x198] sm:$0xff] }
 0x12e   : > { %v8840_v56 = vsel %vm720_vm2, %v777_v9, %v779_v27  ;;  %v670_v27 = vrot.slane %v8238_v53, 7 }
 0x12f   : > { %v1064_v33 = vpop.permute.xlu1 %1063 }
 0x131   : > { %1463 = vmatmul.f32.gmra.mxu0 %v8738_v14  ;;  %1799 = vmatmul.f32.gmra.mxu3 %v8823_v34  ;;  %v8836_v5 = vld [vmem:[#allocation2 + $0x210] sm:$0xff] }
 0x132   : > { %13383 = vst [vmem:[#allocation12_spill] sm:$0xff] %v8836_v5  ;;  %v839_v23 = vrot.slane %v8836_v5, 7 }
 0x133   : > { %1653 = vmatmul.f32.gmra.mxu2 %v1231_v21  ;;  %1555 = vmatmul.f32.gmra.mxu1 %v1204_v0  ;;  %v1232_v21 = vsel %vm333_vm0, %v7581_v31, %v1064_v33  ;;  %v1205_v0 = vsel %vm333_vm0, %v8442_v52, %v6903_v63  ;;  %v6908_v63 = vunpack.i.h.bf16 %v8742_v47  ;;  %v1066_v33 = vpop.permute.xlu0 %1065 }
 0x134   : > { %v8843_v14 = vsel %vm591_vm1, %v837_v59, %v839_v23  ;;  %1099 = vrot.lane.b32.xlu1 %v8840_v56, %s7733_s11  ;;  %v8858_v59 = vpop.f32.mrf.mxu0  ;;  %v13385_v23 = vrot.slane %v8176_v54, 7 }
 0x135   : > { %13384 = vst [vmem:[#allocation13_spill] sm:$0xff] %v8843_v14  ;;  %1023 = vrot.lane.b32.xlu0 %v8843_v14, %s7733_s11  ;;  %v8941_v14 = vld [vmem:[#allocation2 + $0x8] sm:$0xff] }
 0x136   : > { %v8875_v31 = vsel %vm591_vm1, %v13385_v23, %v670_v27  ;;  %v8892_v27 = vld [vmem:[#allocation2 + $0x168] sm:$0xff] }
 0x137   : > { %1019 = vrot.lane.b32.xlu2 %v8875_v31, %s7733_s11  ;;  %v8888_v54 = vpop.permute.xlu1 %991  ;;  %v776_v25 = vrot.slane %v8892_v27, 1 }
 0x139   : > { %1466 = vmatmul.f32.gmra.mxu0 %v8768_v48  ;;  %1802 = vmatmul.f32.gmra.mxu3 %v8848_v10  ;;  %v8870_v48 = vsel %vm720_vm2, %v781_v1, %v13334_v50  ;;  %v8890_v1 = vld [vmem:[#allocation2 + $0x10] sm:$0xff]  ;;  %v8902_v23 = vsel %vm720_vm2, %v776_v25, %v777_v9  ;;  %v6867_v50 = vunpack.i.l.bf16 %v8622_v32 }
 0x13a   : > { %13386 = vst [vmem:[#allocation14_spill] sm:$0xff] %v8890_v1  ;;  %v1331_v25 = vld [vmem:[%s13306_s1 + $0x210] sm:$0xff] }
 0x13b   : > { %1656 = vmatmul.f32.gmra.mxu2 %v1232_v21  ;;  %1558 = vmatmul.f32.gmra.mxu1 %v1205_v0  ;;  %v7582_v21 = vld [vmem:[#allocation2 + $0x68] sm:$0xff]  ;;  %v1206_v0 = vsel %vm333_vm0, %v8415_v7, %v6908_v63  ;;  %v6913_v63 = vunpack.i.h.bf16 %v8745_v60  ;;  %v8913_v9 = vpop.permute.xlu0 %993 }
 0x13c   : > { %v1233_v53 = vsel %vm333_vm0, %v7582_v21, %v1066_v33  ;;  %v8897_v33 = vpop.f32.mrf.mxu0  ;;  %2428 = vrot.lane.b32.xlu1 %v8890_v1, %s7733_s11  ;;  %v7584_v21 = vld [vmem:[#allocation2 + $0x70] sm:$0xff]  ;;  %1870 = vmatpush.msrb.mxu0 %v1331_v25  ;;  %v784_v1 = vrot.slane %v522_v61, 1  ;;  %v1210_v61 = vsel %vm333_vm0, %v8643_v30, %v8832_v28 }
 0x13d   : > { %1101 = vrot.lane.b32.xlu0 %v8870_v48, %s7733_s11  ;;  %v1207_v49 = vsel %vm333_vm0, %v8530_v45, %v6913_v63 }
 0x13f   : > { %1097 = vrot.lane.b32.xlu2 %v8902_v23, %s7733_s11 }
 0x141   : > { %1469 = vmatmul.f32.gmra.mxu0 %v8793_v22  ;;  %1805 = vmatmul.f32.gmra.mxu3 %v1184_v62  ;;  %v1068_v22 = vpop.permute.xlu2 %1067 }
 0x143   : > { %1659 = vmatmul.f32.gmra.mxu2 %v1233_v53  ;;  %1561 = vmatmul.f32.gmra.mxu1 %v1206_v0  ;;  %v1234_v53 = vsel %vm333_vm0, %v7584_v21, %v1068_v22  ;;  %v1185_v0 = vsel %vm333_vm0, %v8464_v24, %v6862_v37  ;;  %v786_v22 = vrot.slane %v8192_v6, 1  ;;  %v8919_v21 = vld [vmem:[#allocation2 + $0x1b0] sm:$0xff]  ;;  %v1070_v24 = vpop.permute.xlu1 %1069  ;;  %v1186_v37 = vsel %vm333_vm0, %v8473_v19, %v6867_v50  ;;  %v7586_v6 = vld [vmem:[#allocation2 + $0x88] sm:$0xff]  ;;  %v1072_v19 = vpop.permute.xlu0 %1071 }
 0x144   : > { %v13335_v63 = vrot.slane %v8919_v21, 1 }
 0x146   : > { %v8925_v32 = vsel %vm720_vm2, %v786_v22, %v13335_v63  ;;  %v6872_v22 = vunpack.i.l.bf16 %v8673_v20  ;;  %v13389_v20 = vld [vmem:[#allocation5_spill] sm:$0xff] }
 0x147   : > { %1105 = vrot.lane.b32.xlu1 %v8925_v32, %s7733_s11  ;;  %2426 = vrot.lane.b32.xlu2 %v8941_v14, %s7733_s11 }
 0x149   : > { %1472 = vmatmul.f32.gmra.mxu0 %v8823_v34  ;;  %1808 = vmatmul.f32.gmra.mxu3 %v1185_v0  ;;  %v8939_v63 = vpop.permute.xlu2 %995 }
 0x14b   : > { %1662 = vmatmul.f32.gmra.mxu2 %v1234_v53  ;;  %1564 = vmatmul.f32.gmra.mxu1 %v1207_v49  ;;  %v1235_v53 = vsel %vm333_vm0, %v7586_v6, %v1070_v24  ;;  %v13387_v49 = vld [vmem:[#allocation4_spill] sm:$0xff]  ;;  %v7587_v24 = vld [vmem:[#allocation2 + $0x90] sm:$0xff]  ;;  %v1209_v6 = vsel %vm333_vm0, %v13389_v20, %v8799_v57  ;;  %v13391_v57 = vld [vmem:[#allocation6_spill] sm:$0xff] }
 0x14c   : > { %v1208_v25 = vsel %vm333_vm0, %v13387_v49, %v8775_v12  ;;  %13388 = vst [vmem:[#allocation4_spill] sm:$0xff] %v8941_v14  ;;  %v1187_v12 = vsel %vm333_vm0, %v8603_v13, %v6872_v22  ;;  %v13390_v13 = vrot.slane %v8161_v44, 1  ;;  %v6882_v44 = vunpack.i.l.bf16 %v8675_v11 }
 0x14d   : > { %v6887_v11 = vunpack.i.l.bf16 %v8703_v29  ;;  %v13394_v29 = vld [vmem:[#allocation9_spill] sm:$0xff] }
 0x14e   : > { %v8927_v34 = vpop.f32.mrf.mxu0  ;;  %v8961_v22 = vsel %vm720_vm2, %v13390_v13, %v784_v1  ;;  %v8972_v1 = vpop.permute.xlu0 %999  ;;  %v7589_v13 = vld [vmem:[#allocation2 + $0xb0] sm:$0xff] }
 0x14f   : > { %1103 = vrot.lane.b32.xlu2 %v8961_v22, %s7733_s11 }
 0x151   : > { %1475 = vmatmul.f32.gmra.mxu0 %v8848_v10  ;;  %1811 = vmatmul.f32.gmra.mxu3 %v1186_v37  ;;  %v1236_v10 = vsel %vm333_vm0, %v7587_v24, %v1072_v19  ;;  %v1074_v14 = vpop.permute.xlu2 %1073 }
 0x153   : > { %1665 = vmatmul.f32.gmra.mxu2 %v1235_v53  ;;  %1567 = vmatmul.f32.gmra.mxu1 %v1208_v25  ;;  %v6877_v53 = vunpack.i.l.bf16 %v8663_v2  ;;  %v8954_v25 = vpop.permute.xlu1 %997 }
 0x155   : > { %v1188_v2 = vsel %vm333_vm0, %v13391_v57, %v6877_v53  ;;  %v13393_v57 = vld [vmem:[#allocation7_spill] sm:$0xff] }
 0x156   : > { %v8945_v50 = vpop.f32.mrf.mxu0  ;;  %v1211_v28 = vsel %vm333_vm0, %v13393_v57, %v8861_v40  ;;  %v7590_v40 = vld [vmem:[#allocation2 + $0xc8] sm:$0xff] }
 0x159   : > { %1478 = vmatmul.f32.gmra.mxu0 %v1184_v62  ;;  %1814 = vmatmul.f32.gmra.mxu3 %v1187_v12  ;;  %v7588_v62 = vld [vmem:[#allocation2 + $0xa8] sm:$0xff] }
 0x15a   : > { %v1237_v19 = vsel %vm333_vm0, %v7588_v62, %v1074_v14  ;;  %v1330_v62 = vld [vmem:[%s13306_s1 + $0x208] sm:$0xff] }
 0x15b   : > { %1668 = vmatmul.f32.gmra.mxu2 %v1236_v10  ;;  %1570 = vmatmul.f32.gmra.mxu1 %v1209_v6  ;;  %v1076_v24 = vpop.permute.xlu1 %1075  ;;  %v13392_v6 = vld [vmem:[#allocation8_spill] sm:$0xff] }
 0x15c   : > { %v1189_v53 = vsel %vm333_vm0, %v13392_v6, %v6882_v44  ;;  %v1238_v14 = vsel %vm333_vm0, %v7589_v13, %v1076_v24  ;;  %1871 = vmatpush.msrb.mxu0 %v1330_v62  ;;  %v1190_v44 = vsel %vm333_vm0, %v8701_v16, %v6887_v11  ;;  %v1212_v24 = vsel %vm333_vm0, %v13394_v29, %v8888_v54  ;;  %v7591_v11 = vld [vmem:[#allocation2 + $0xd0] sm:$0xff] }
 0x15d   : > { %v6892_v6 = vunpack.i.l.bf16 %v8705_v42  ;;  %v1213_v54 = vsel %vm333_vm0, %v8727_v3, %v8913_v9  ;;  %v6897_v42 = vunpack.i.l.bf16 %v8716_v17  ;;  %v1214_v9 = vsel %vm333_vm0, %v8669_v51, %v8939_v63 }
 0x15e   : > { %v8956_v5 = vpop.f32.mrf.mxu0  ;;  %v6902_v17 = vunpack.i.l.bf16 %v8729_v15  ;;  %v1215_v63 = vsel %vm333_vm0, %v8696_v38, %v8954_v25  ;;  %v6907_v15 = vunpack.i.l.bf16 %v8742_v47 }
 0x15f   : > { %v1191_v16 = vsel %vm333_vm0, %v8638_v8, %v6892_v6  ;;  %v1192_v8 = vsel %vm333_vm0, %v8666_v26, %v6897_v42  ;;  %v9021_v6 = vpop.f32.mrf.mxu3  ;;  %v1329_v42 = vld [vmem:[%s13306_s1 + $0x200] sm:$0xff] }
 0x160   : > { %v1193_v26 = vsel %vm333_vm0, %v8784_v18, %v6902_v17  ;;  %1872 = vmatpush.msrb.mxu0 %v1329_v42  ;;  %v1194_v25 = vsel %vm333_vm0, %v8724_v58, %v6907_v15 }
 0x161   : > { %1481 = vmatmul.f32.gmra.mxu0 %v1185_v0  ;;  %1817 = vmatmul.f32.gmra.mxu3 %v1188_v2  ;;  %v8983_v0 = vpop.permute.xlu2 %1001 }
 0x163   : > { %1671 = vmatmul.f32.gmra.mxu2 %v1237_v19  ;;  %1573 = vmatmul.f32.gmra.mxu1 %v1210_v61  ;;  %v1078_v19 = vpop.permute.xlu0 %1077  ;;  %v8997_v13 = vpop.permute.xlu1 %1003 }
 0x166   : > { %v8974_v10 = vpop.f32.mrf.mxu0 }
 0x169   : > { %1484 = vmatmul.f32.gmra.mxu0 %v1186_v37  ;;  %1820 = vmatmul.f32.gmra.mxu3 %v1189_v53  ;;  %v1239_v37 = vsel %vm333_vm0, %v7590_v40, %v1078_v19 }
 0x16b   : > { %1674 = vmatmul.f32.gmra.mxu2 %v1238_v14  ;;  %1576 = vmatmul.f32.gmra.mxu1 %v1211_v28  ;;  %v1080_v14 = vpop.permute.xlu2 %1079  ;;  %v1082_v19 = vpop.permute.xlu1 %1081 }
 0x16c   : > { %v1240_v62 = vsel %vm333_vm0, %v7591_v11, %v1080_v14 }
 0x16e   : > { %v8988_v61 = vpop.f32.mrf.mxu0 }
 0x171   : > { %1487 = vmatmul.f32.gmra.mxu0 %v1187_v12  ;;  %1823 = vmatmul.f32.gmra.mxu3 %v1190_v44  ;;  %v9008_v12 = vpop.permute.xlu0 %1005 }
 0x173   : > { %1677 = vmatmul.f32.gmra.mxu2 %v1239_v37  ;;  %1579 = vmatmul.f32.gmra.mxu1 %v1212_v24  ;;  %v7592_v37 = vld [vmem:[#allocation2 + $0xe8] sm:$0xff] }
 0x174   : > { %v1241_v24 = vsel %vm333_vm0, %v7592_v37, %v1082_v19  ;;  %v9037_v19 = vpop.f32.mrf.mxu3 }
 0x176   : > { %v8999_v28 = vpop.f32.mrf.mxu0 }
 0x179   : > { %1490 = vmatmul.f32.gmra.mxu0 %v1188_v2  ;;  %1826 = vmatmul.f32.gmra.mxu3 %v1191_v16  ;;  %v9019_v2 = vpop.permute.xlu2 %1007  ;;  %v1084_v14 = vpop.permute.xlu0 %1083 }
 0x17b   : > { %1680 = vmatmul.f32.gmra.mxu2 %v1240_v62  ;;  %1582 = vmatmul.f32.gmra.mxu1 %v1213_v54  ;;  %v7593_v62 = vld [vmem:[#allocation2 + $0xf0] sm:$0xff] }
 0x17c   : > { %v1242_v54 = vsel %vm333_vm0, %v7593_v62, %v1084_v14 }
 0x17e   : > { %v9010_v40 = vpop.f32.mrf.mxu0 }
 0x181   : > { %1493 = vmatmul.f32.gmra.mxu0 %v1189_v53  ;;  %1829 = vmatmul.f32.gmra.mxu3 %v1192_v8  ;;  %v9032_v53 = vpop.permute.xlu1 %1009  ;;  %v1086_v18 = vpop.permute.xlu2 %1085 }
 0x182   : > { %v1012_v17 = vpop.permute.xlu0 %1011 }
 0x183   : > { %1683 = vmatmul.f32.gmra.mxu2 %v1241_v24  ;;  %1585 = vmatmul.f32.gmra.mxu1 %v1214_v9  ;;  %v1216_v24 = vsel %vm333_vm0, %v8813_v55, %v8972_v1  ;;  %v6912_v9 = vunpack.i.l.bf16 %v8745_v60  ;;  %v1217_v1 = vsel %vm333_vm0, %v8752_v36, %v8983_v0  ;;  %v13395_v60 = vld [vmem:[#allocation10_spill] sm:$0xff]  ;;  %v1218_v0 = vsel %vm333_vm0, %v8781_v46, %v8997_v13 }
 0x185   : > { %v1195_v58 = vsel %vm333_vm0, %v8757_v39, %v6912_v9 }
 0x186   : > { %v9023_v11 = vpop.f32.mrf.mxu0 }
 0x189   : > { %1496 = vmatmul.f32.gmra.mxu0 %v1190_v44  ;;  %1832 = vmatmul.f32.gmra.mxu3 %v1193_v26  ;;  %v7594_v44 = vld [vmem:[#allocation2 + $0x108] sm:$0xff]  ;;  %v1088_v14 = vpop.permute.xlu1 %1087  ;;  %v1014_v42 = vpop.permute.xlu2 %1013 }
 0x18a   : > { %v1243_v47 = vsel %vm333_vm0, %v7594_v44, %v1086_v18  ;;  %v1090_v18 = vpop.permute.xlu0 %1089 }
 0x18b   : > { %1686 = vmatmul.f32.gmra.mxu2 %v1242_v54  ;;  %1588 = vmatmul.f32.gmra.mxu1 %v1215_v63  ;;  %v9052_v54 = vpop.f32.mrf.mxu3  ;;  %v7595_v63 = vld [vmem:[#allocation2 + $0x110] sm:$0xff] }
 0x18c   : > { %v1244_v15 = vsel %vm333_vm0, %v7595_v63, %v1088_v14 }
 0x18e   : > { %v9039_v37 = vpop.f32.mrf.mxu0 }
 0x191   : > { %1499 = vmatmul.f32.gmra.mxu0 %v1191_v16  ;;  %1835 = vmatmul.f32.gmra.mxu3 %v1194_v25  ;;  %v6918_v16 = vunpack.i.h.bf16 %v13395_v60  ;;  %v1016_v9 = vpop.permute.xlu1 %1015  ;;  %v1092_v14 = vpop.permute.xlu2 %1091 }
 0x192   : > { %v9075_v13 = vpop.permute.xlu0 %1017 }
 0x193   : > { %1689 = vmatmul.f32.gmra.mxu2 %v1243_v47  ;;  %1591 = vmatmul.f32.gmra.mxu1 %v1216_v24  ;;  %v1196_v39 = vsel %vm333_vm0, %v8875_v31, %v6918_v16  ;;  %v7596_v47 = vld [vmem:[#allocation2 + $0x128] sm:$0xff]  ;;  %v9079_v16 = vpop.f32.mrf.mxu1 }
 0x194   : > { %v1245_v24 = vsel %vm333_vm0, %v7596_v47, %v1090_v18  ;;  %v7598_v18 = vld [vmem:[#allocation2 + $0x148] sm:$0xff] }
 0x196   : > { %v9048_v62 = vpop.f32.mrf.mxu0 }
 0x199   : > { %1502 = vmatmul.f32.gmra.mxu0 %v1192_v8  ;;  %1838 = vmatmul.f32.gmra.mxu3 %v1195_v58  ;;  %v9067_v8 = vpop.f32.mrf.mxu3 }
 0x19b   : > { %1692 = vmatmul.f32.gmra.mxu2 %v1244_v15  ;;  %1594 = vmatmul.f32.gmra.mxu1 %v1217_v1  ;;  %v7597_v15 = vld [vmem:[#allocation2 + $0x130] sm:$0xff]  ;;  %v1219_v1 = vsel %vm333_vm0, %v8902_v23, %v9008_v12  ;;  %v9085_v12 = vpop.permute.xlu2 %1019 }
 0x19c   : > { %v1246_v31 = vsel %vm333_vm0, %v7597_v15, %v1092_v14  ;;  %v9089_v14 = vpop.f32.mrf.mxu1  ;;  %v7599_v15 = vld [vmem:[#allocation2 + $0x150] sm:$0xff] }
 0x19e   : > { %v9059_v44 = vpop.f32.mrf.mxu0 }
 0x1a1   : > { %1505 = vmatmul.f32.gmra.mxu0 %v1193_v26  ;;  %1841 = vmatmul.f32.gmra.mxu3 %v1196_v39  ;;  %v1094_v26 = vpop.permute.xlu1 %1093 }
 0x1a2   : > { %v1247_v47 = vsel %vm333_vm0, %v7598_v18, %v1094_v26 }
 0x1a3   : > { %1695 = vmatmul.f32.gmra.mxu2 %v1245_v24  ;;  %1597 = vmatmul.f32.gmra.mxu1 %v1218_v0  ;;  %v1220_v24 = vsel %vm333_vm0, %v8840_v56, %v9019_v2 }
 0x1a6   : > { %v9069_v63 = vpop.f32.mrf.mxu0 }
 0x1a9   : > { %1508 = vmatmul.f32.gmra.mxu0 %v1194_v25  ;;  %v1096_v25 = vpop.permute.xlu0 %1095  ;;  %v9095_v2 = vpop.permute.xlu1 %1021 }
 0x1ab   : > { %1698 = vmatmul.f32.gmra.mxu2 %v1246_v31  ;;  %1600 = vmatmul.f32.gmra.mxu1 %v1219_v1  ;;  %v1248_v31 = vsel %vm333_vm0, %v7599_v15, %v1096_v25  ;;  %v1221_v1 = vsel %vm333_vm0, %v8870_v48, %v9032_v53  ;;  %v13399_v25 = vld [vmem:[#allocation3_spill] sm:$0xff] }
 0x1ae   : > { %v9077_v60 = vpop.f32.mrf.mxu0 }
 0x1af   : > { %13396 = vst [vmem:[#allocation5_spill] sm:$0xff] %v9077_v60  ;;  %v7605_v60 = vld [vmem:[#allocation2 + $0x1a8] sm:$0xff] }
 0x1b1   : > { %1511 = vmatmul.f32.gmra.mxu0 %v1195_v58  ;;  %v1098_v58 = vpop.permute.xlu2 %1097  ;;  %v9107_v53 = vpop.permute.xlu0 %1023 }
 0x1b2   : > { %v1249_v18 = vsel %vm333_vm0, %v8892_v27, %v1098_v58  ;;  %v1223_v27 = vsel %vm333_vm0, %v8925_v32, %v1014_v42 }
 0x1b3   : > { %1701 = vmatmul.f32.gmra.mxu2 %v1247_v47  ;;  %1603 = vmatmul.f32.gmra.mxu1 %v1220_v24  ;;  %v1222_v47 = vsel %vm333_vm0, %v8961_v22, %v1012_v17  ;;  %v9103_v24 = vpop.f32.mrf.mxu1 }
 0x1b6   : > { %v9087_v0 = vpop.f32.mrf.mxu0 }
 0x1b7   : > { %13397 = vst [vmem:[#allocation6_spill] sm:$0xff] %v9087_v0 }
 0x1b9   : > { %1514 = vmatmul.f32.gmra.mxu0 %v1196_v39  ;;  %v1100_v39 = vpop.permute.xlu1 %1099 }
 0x1bb   : > { %1704 = vmatmul.f32.gmra.mxu2 %v1248_v31  ;;  %1606 = vmatmul.f32.gmra.mxu1 %v1221_v1  ;;  %v526_v31 = vld [vmem:[#allocation2 + $0x1b8] sm:$0xff]  ;;  %v7600_v1 = vld [vmem:[#allocation2 + $0x170] sm:$0xff]  ;;  %v9116_v58 = vpop.f32.mrf.mxu1 }
 0x1bc   : > { %v789_v17 = vrot.slane %v526_v31, 1 }
 0x1be   : > { %v9097_v26 = vpop.f32.mrf.mxu0 }
 0x1bf   : > { %13398 = vst [vmem:[#allocation8_spill] sm:$0xff] %v9097_v26  ;;  %v1250_v26 = vsel %vm333_vm0, %v7600_v1, %v1100_v39  ;;  %v7601_v1 = vld [vmem:[#allocation2 + $0x188] sm:$0xff] }
 0x1c1   : > { %6717 = vmatmul.msk.f32.vlgmr.msrb.gmra.mxu0 %vm333_vm0, %v13399_v25  ;;  %v13401_v25 = vrot.slane %v8919_v21, 1 }
 0x1c3   : > { %1707 = vmatmul.f32.gmra.mxu2 %v1249_v18  ;;  %1609 = vmatmul.f32.gmra.mxu1 %v1222_v47  ;;  %v9118_v18 = vpop.permute.xlu2 %2426  ;;  %v1102_v47 = vpop.permute.xlu0 %1101 }
 0x1c4   : > { %v1251_v42 = vsel %vm333_vm0, %v7601_v1, %v1102_v47 }
 0x1c6   : > { %v9109_v15 = vpop.f32.mrf.mxu0 }
 0x1c7   : > { %13400 = vst [vmem:[#allocation7_spill] sm:$0xff] %v9109_v15  ;;  %v9123_v15 = vsel %vm720_vm2, %v13401_v25, %v789_v17  ;;  %v9138_v17 = vpop.permute.xlu1 %2428  ;;  %v9140_v25 = vpop.f32.mrf.mxu1 }
 0x1c9   : > { %6718 = vmatmul.msk.f32.gmra.mxu0 %vm333_vm0, %v8356_v41  ;;  %v1224_v41 = vsel %vm333_vm0, %v9123_v15, %v1016_v9 }
 0x1cb   : > { %1710 = vmatmul.f32.gmra.mxu2 %v1250_v26  ;;  %1612 = vmatmul.f32.gmra.mxu1 %v1223_v27  ;;  %v9132_v26 = vld [vmem:[#allocation2 + $0x1c8] sm:$0xff]  ;;  %v9135_v27 = vld [vmem:[#allocation2 + $0x1d0] sm:$0xff]  ;;  %v1104_v47 = vpop.permute.xlu2 %1103 }
 0x1cc   : > { %13403 = vst [vmem:[#allocation10_spill] sm:$0xff] %v9132_v26  ;;  %v791_v31 = vrot.slane %v9132_v26, 1  ;;  %v792_v21 = vrot.slane %v9135_v27, 1 }
 0x1cd   : > { %13404 = vst [vmem:[#allocation3_spill] sm:$0xff] %v9135_v27 }
 0x1ce   : > { %v9125_v39 = vpop.f32.mrf.mxu0  ;;  %v9143_v9 = vsel %vm720_vm2, %v791_v31, %v792_v21 }
 0x1cf   : > { %13402 = vst [vmem:[#allocation9_spill] sm:$0xff] %v9125_v39  ;;  %v7604_v39 = vld [vmem:[#allocation2 + $0x190] sm:$0xff]  ;;  %v1225_v27 = vsel %vm333_vm0, %v9143_v9, %v9075_v13 }
 0x1d0   : > { %v1252_v26 = vsel %vm333_vm0, %v7604_v39, %v1104_v47  ;;  %v1648_v47 = vpop.f32.mrf.mxu2 }
 0x1d1   : > { %6719 = vmatmul.msk.f32.gmra.mxu0 %vm333_vm0, %v8329_v43  ;;  %v530_v43 = vld [vmem:[#allocation2 + $0x1d8] sm:$0xff] }
 0x1d3   : > { %1713 = vmatmul.f32.gmra.mxu2 %v1251_v42  ;;  %1615 = vmatmul.f32.gmra.mxu1 %v1224_v41  ;;  %v794_v42 = vrot.slane %v530_v43, 1  ;;  %v1106_v41 = vpop.permute.xlu1 %1105 }
 0x1d4   : > { %v1253_v39 = vsel %vm333_vm0, %v7605_v60, %v1106_v41 }
 0x1d5   : > { %v9154_v31 = vsel %vm720_vm2, %v792_v21, %v794_v42  ;;  %v534_v42 = vld [vmem:[#allocation2 + $0x1f8] sm:$0xff] }
 0x1d6   : > { %v9145_v1 = vpop.f32.mrf.mxu0  ;;  %v1226_v13 = vsel %vm333_vm0, %v9154_v31, %v9085_v12  ;;  %v799_v41 = vrot.slane %v534_v42, 1 }
 0x1d7   : > { %13405 = vst [vmem:[#allocation15_spill] sm:$0xff] %v9145_v1  ;;  %v9158_v1 = vpop.f32.mrf.mxu1 }
 0x1d9   : > { %6720 = vmatmul.msk.f32.gmra.mxu0 %vm333_vm0, %v8455_v4  ;;  %v9166_v4 = vld [vmem:[#allocation2 + $0x1e8] sm:$0xff] }
 0x1db   : > { %1716 = vmatmul.f32.gmra.mxu2 %v1252_v26  ;;  %1618 = vmatmul.f32.gmra.mxu1 %v1225_v27  ;;  %v796_v26 = vrot.slane %v9166_v4, 1  ;;  %v7607_v27 = vld [vmem:[#allocation2 + $0x1f0] sm:$0xff] }
 0x1dc   : > { %v797_v21 = vrot.slane %v7607_v27, 1 }
 0x1de   : > { %v9156_v0 = vpop.f32.mrf.mxu0  ;;  %v9170_v43 = vsel %vm720_vm2, %v796_v26, %v797_v21 }
 0x1df   : > { %v1227_v12 = vsel %vm333_vm0, %v9170_v43, %v9095_v2  ;;  %v2841_v2 = vld [vmem:[%s13308_s3 + $0x78] sm:$0xff] }
 0x1e0   : > { %2966 = vmatpush.msrb.mxu1 %v2841_v2 }
 0x1e1   : > { %6721 = vmatmul.msk.f32.gmra.mxu0 %vm333_vm0, %v8442_v52  ;;  %v9177_v52 = vpop.f32.mrf.mxu1 }
 0x1e3   : > { %1719 = vmatmul.f32.gmra.mxu2 %v1253_v39  ;;  %1621 = vmatmul.f32.gmra.mxu1 %v1226_v13  ;;  %v9182_v39 = vsel %vm720_vm2, %v797_v21, %v799_v41 }
 0x1e4   : > { %v1228_v26 = vsel %vm333_vm0, %v9182_v39, %v9107_v53 }
 0x1e6   : > { %v9172_v60 = vpop.f32.mrf.mxu0 }
 0x1e9   : > { %6722 = vmatmul.msk.f32.gmra.mxu0 %vm333_vm0, %v8415_v7  ;;  %v9194_v7 = vpop.f32.mrf.mxu1 }
 0x1eb   : > { %1624 = vmatmul.f32.gmra.mxu1 %v1227_v12  ;;  %v1651_v12 = vpop.f32.mrf.mxu2 }
 0x1ee   : > { %v9184_v13 = vpop.f32.mrf.mxu0 }
 0x1f1   : > { %6723 = vmatmul.msk.f32.gmra.mxu0 %vm333_vm0, %v8530_v45  ;;  %v2840_v45 = vld [vmem:[%s13308_s3 + $0x70] sm:$0xff] }
 0x1f2   : > { %2967 = vmatpush.msrb.mxu1 %v2840_v45 }
 0x1f3   : > { %1627 = vmatmul.f32.gmra.mxu1 %v1228_v26  ;;  %v1654_v41 = vpop.f32.mrf.mxu2 }
 0x1f6   : > { %v9196_v27 = vpop.f32.mrf.mxu0 }
 0x1f7   : > { %13406 = vst [vmem:[#allocation16_spill] sm:$0xff] %v9196_v27 }
 0x1f9   : > { %6724 = vmatmul.msk.f32.gmra.mxu0 %vm333_vm0, %v13387_v49  ;;  %v2839_v49 = vld [vmem:[%s13308_s3 + $0x68] sm:$0xff] }
 0x1fa   : > { %2968 = vmatpush.msrb.mxu1 %v2839_v49 }
 0x1fe   : > { %v9200_v21 = vpop.f32.mrf.mxu0 }
 0x1ff   : > { %13407 = vst [vmem:[#allocation17_spill] sm:$0xff] %v9200_v21 }
 0x201   : > { %6725 = vmatmul.msk.f32.gmra.mxu0 %vm333_vm0, %v13389_v20 }
 0x206   : > { %v9207_v53 = vpop.f32.mrf.mxu0 }
 0x207   : > { %13408 = vst [vmem:[#allocation18_spill] sm:$0xff] %v9207_v53 }
 0x209   : > { %6726 = vmatmul.msk.f32.gmra.mxu0 %vm333_vm0, %v8643_v30  ;;  %v2838_v30 = vld [vmem:[%s13308_s3 + $0x60] sm:$0xff] }
 0x20a   : > { %2969 = vmatpush.msrb.mxu1 %v2838_v30  ;;  %v9245_v30 = vpop.f32.mrf.mxu3 }
 0x20e   : > { %v9211_v42 = vpop.f32.mrf.mxu0 }
 0x20f   : > { %13409 = vst [vmem:[#allocation19_spill] sm:$0xff] %v9211_v42 }
 0x211   : > { %6727 = vmatmul.msk.f32.gmra.mxu0 %vm333_vm0, %v13393_v57  ;;  %v1657_v57 = vpop.f32.mrf.mxu2 }
 0x212   : > { %v9259_v42 = vpop.f32.mrf.mxu3 }
 0x216   : > { %v9218_v20 = vpop.f32.mrf.mxu0 }
 0x217   : > { %13410 = vst [vmem:[#allocation20_spill] sm:$0xff] %v9218_v20 }
 0x219   : > { %6728 = vmatmul.msk.f32.gmra.mxu0 %vm333_vm0, %v13394_v29  ;;  %v1660_v45 = vpop.f32.mrf.mxu2  ;;  %v9238_v29 = vld [vmem:[%s13307_s2] ss:$0 sm:$0xff] }
 0x21e   : > { %v9222_v26 = vpop.f32.mrf.mxu0 }
 0x21f   : > { %13411 = vst [vmem:[#allocation21_spill] sm:$0xff] %v9222_v26 }
 0x221   : > { %6729 = vmatmul.msk.f32.gmra.mxu0 %vm333_vm0, %v8727_v3  ;;  %v2837_v3 = vld [vmem:[%s13308_s3 + $0x58] sm:$0xff]  ;;  %v9252_v26 = vpop.f32.mrf.mxu2 }
 0x222   : > { %2970 = vmatpush.msrb.mxu1 %v2837_v3 }
 0x226   : > { %v9229_v2 = vpop.f32.mrf.mxu0 }
 0x227   : > { %13412 = vst [vmem:[#allocation22_spill] sm:$0xff] %v9229_v2 }
 0x229   : > { %6730 = vmatmul.msk.f32.gmra.mxu0 %vm333_vm0, %v8669_v51  ;;  %v1423_v51 = vadd.f32 %v9238_v29, %v8858_v59 }
 0x22e   : > { %v9233_v49 = vpop.f32.mrf.mxu0 }
 0x22f   : > { %13413 = vst [vmem:[#allocation23_spill] sm:$0xff] %v9233_v49  ;;  %v1536_v49 = vadd.f32 %v9079_v16, %v1423_v51  ;;  %v9267_v16 = vpop.f32.mrf.mxu2  ;;  %v2835_v51 = vld [vmem:[%s13308_s3 + $0x48] sm:$0xff] }
 0x231   : > { %6731 = vmatmul.msk.f32.gmra.mxu0 %vm333_vm0, %v8696_v38  ;;  %v1649_v20 = vadd.f32 %v1648_v47, %v1536_v49  ;;  %v1426_v38 = vadd.f32 %v9238_v29, %v8897_v33  ;;  %v1429_v33 = vadd.f32 %v9238_v29, %v8927_v34 }
 0x233   : > { %v1762_v3 = vadd.f32 %v9021_v6, %v1649_v20  ;;  %v1539_v59 = vadd.f32 %v9089_v14, %v1426_v38  ;;  %v1542_v47 = vadd.f32 %v9103_v24, %v1429_v33 }
 0x236   : > { %v9249_v2 = vpop.f32.mrf.mxu0 }
 0x237   : > { %13414 = vst [vmem:[#allocation24_spill] sm:$0xff] %v9249_v2  ;;  %v1652_v2 = vadd.f32 %v1651_v12, %v1539_v59  ;;  %v9283_v34 = vpop.f32.mrf.mxu2 }
 0x239   : > { %6732 = vmatmul.msk.f32.gmra.mxu0 %vm333_vm0, %v8813_v55  ;;  %v2836_v55 = vld [vmem:[%s13308_s3 + $0x50] sm:$0xff]  ;;  %v1765_v6 = vadd.f32 %v9037_v19, %v1652_v2  ;;  %v1432_v19 = vadd.f32 %v9238_v29, %v8945_v50  ;;  %v9303_v50 = vpop.f32.mrf.mxu1 }
 0x23a   : > { %2971 = vmatpush.msrb.mxu1 %v2836_v55 }
 0x23c   : > { %2972 = vmatpush.msrb.mxu1 %v2835_v51 }
 0x23e   : > { %v1874_v53 = vpop.f32.mrf.mxu0 }
 0x23f   : > { %v1875_v21 = vadd.f32 %v1874_v53, %v1762_v3  ;;  %v9274_v53 = vpop.f32.mrf.mxu3 }
 0x241   : > { %v1970_v27 = vmul.f32 %v1875_v21, %v1875_v21  ;;  %6733 = vmatmul.msk.f32.gmra.mxu0 %vm333_vm0, %v8752_v36  ;;  %v1655_v36 = vadd.f32 %v1654_v41, %v1542_v47  ;;  %v1545_v41 = vadd.f32 %v9116_v58, %v1432_v19  ;;  %v9308_v58 = vpop.f32.mrf.mxu2 }
 0x243   : > { %2002 = vst.msk [vmem:[#allocation2 + $0x28] sm:$0xff] %vm333_vm0, %v1970_v27  ;;  %v1768_v24 = vadd.f32 %v9052_v54, %v1655_v36  ;;  %v1658_v49 = vadd.f32 %v1657_v57, %v1545_v41 }
 0x245   : > { %v1771_v54 = vadd.f32 %v9067_v8, %v1658_v49 }
 0x246   : > { %v1877_v14 = vpop.f32.mrf.mxu0 }
 0x247   : > { %v1878_v21 = vadd.f32 %v1877_v14, %v1765_v6  ;;  %v9294_v38 = vpop.f32.mrf.mxu3 }
 0x249   : > { %v1971_v12 = vmul.f32 %v1878_v21, %v1878_v21  ;;  %6734 = vmatmul.msk.f32.gmra.mxu0 %vm333_vm0, %v8781_v46  ;;  %v1675_v19 = vpop.f32.mrf.mxu2 }
 0x24a   : > { %v9278_v20 = vld [vmem:[#allocation2 + $0x28] sm:$0xff] }
 0x24b   : > { %2003 = vst.msk [vmem:[#allocation2 + $0x30] sm:$0xff] %vm333_vm0, %v1971_v12  ;;  %2430 = vrot.lane.b32.xlu0 %v9278_v20, %s7733_s11  ;;  %v6924_v12 = vpack.i.bf16 %v8805_v35, %v9170_v43 }
 0x24e   : > { %v1880_v27 = vpop.f32.mrf.mxu0 }
 0x24f   : > { %v1881_v2 = vadd.f32 %v1880_v27, %v1768_v24  ;;  %v9323_v8 = vpop.f32.mrf.mxu3 }
 0x251   : > { %v1972_v46 = vmul.f32 %v1881_v2, %v1881_v2  ;;  %6735 = vmatmul.msk.f32.gmra.mxu0 %vm333_vm0, %v8902_v23  ;;  %v1435_v23 = vadd.f32 %v9238_v29, %v8956_v5  ;;  %v2834_v5 = vld [vmem:[%s13308_s3 + $0x40] sm:$0xff]  ;;  %v1678_v51 = vpop.f32.mrf.mxu2 }
 0x252   : > { %v9296_v3 = vld [vmem:[#allocation2 + $0x30] sm:$0xff]  ;;  %2973 = vmatpush.msrb.mxu1 %v2834_v5 }
 0x253   : > { %2004 = vst.msk [vmem:[#allocation2 + $0x48] sm:$0xff] %vm333_vm0, %v1972_v46  ;;  %2432 = vrot.lane.b32.xlu2 %v9296_v3, %s7733_s11  ;;  %1107 = vrot.lane.b32.xlu0 %v9123_v15, %s7733_s11  ;;  %v1548_v59 = vadd.f32 %v9140_v25, %v1435_v23 }
 0x255   : > { %v1661_v33 = vadd.f32 %v1660_v45, %v1548_v59  ;;  %v9328_v45 = vpop.f32.mrf.mxu1 }
 0x256   : > { %v1883_v57 = vpop.f32.mrf.mxu0 }
 0x257   : > { %v1884_v55 = vadd.f32 %v1883_v57, %v1771_v54  ;;  %v1774_v25 = vadd.f32 %v9245_v30, %v1661_v33 }
 0x259   : > { %v1973_v6 = vmul.f32 %v1884_v55, %v1884_v55  ;;  %6736 = vmatmul.msk.f32.gmra.mxu0 %vm333_vm0, %v8840_v56  ;;  %v1438_v56 = vadd.f32 %v9238_v29, %v8974_v10  ;;  %v1441_v10 = vadd.f32 %v9238_v29, %v8988_v61 }
 0x25a   : > { %v9313_v14 = vld [vmem:[#allocation2 + $0x48] sm:$0xff] }
 0x25b   : > { %2005 = vst.msk [vmem:[#allocation2 + $0x50] sm:$0xff] %vm333_vm0, %v1973_v6  ;;  %2434 = vrot.lane.b32.xlu1 %v9313_v14, %s7733_s11  ;;  %1109 = vrot.lane.b32.xlu2 %v9143_v9, %s7733_s11  ;;  %v1551_v21 = vadd.f32 %v9158_v1, %v1438_v56  ;;  %v1788_v1 = vpop.f32.mrf.mxu3  ;;  %v1554_v30 = vadd.f32 %v9177_v52, %v1441_v10  ;;  %v2833_v52 = vld [vmem:[%s13308_s3 + $0x38] sm:$0xff] }
 0x25c   : > { %2974 = vmatpush.msrb.mxu1 %v2833_v52 }
 0x25d   : > { %v1664_v24 = vadd.f32 %v9252_v26, %v1551_v21  ;;  %v1667_v49 = vadd.f32 %v9267_v16, %v1554_v30 }
 0x25e   : > { %v1886_v47 = vpop.f32.mrf.mxu0 }
 0x25f   : > { %v1887_v36 = vadd.f32 %v1886_v47, %v1774_v25  ;;  %v1777_v35 = vadd.f32 %v9259_v42, %v1664_v24  ;;  %v1444_v42 = vadd.f32 %v9238_v29, %v8999_v28 }
 0x261   : > { %v1974_v27 = vmul.f32 %v1887_v36, %v1887_v36  ;;  %6737 = vmatmul.msk.f32.gmra.mxu0 %vm333_vm0, %v8870_v48  ;;  %v1565_v48 = vpop.f32.mrf.mxu1  ;;  %v1557_v54 = vadd.f32 %v9194_v7, %v1444_v42  ;;  %v1447_v7 = vadd.f32 %v9238_v29, %v9010_v40  ;;  %v13415_v40 = vld [vmem:[#allocation12_spill] sm:$0xff]  ;;  %v2034_v42 = vld [vmem:[#allocation2] sm:$0xff] }
 0x262   : > { %v9336_v41 = vld [vmem:[#allocation2 + $0x50] sm:$0xff] }
 0x263   : > { %2006 = vst.msk [vmem:[#allocation2 + $0x68] sm:$0xff] %vm333_vm0, %v1974_v27  ;;  %2436 = vrot.lane.b32.xlu0 %v9336_v41, %s7733_s11  ;;  %6925 = vrot.lane.b32.xlu2 %v6924_v12, %s7733_s11  ;;  %v1791_v59 = vpop.f32.mrf.mxu3  ;;  %v1670_v55 = vadd.f32 %v9283_v34, %v1557_v54 }
 0x265   : > { %v1783_v34 = vadd.f32 %v9294_v38, %v1670_v55  ;;  %v2832_v38 = vld [vmem:[%s13308_s3 + $0x30] sm:$0xff]  ;;  %v13416_v55 = vld [vmem:[#allocation4_spill] sm:$0xff] }
 0x266   : > { %v1889_v26 = vpop.f32.mrf.mxu0  ;;  %2975 = vmatpush.msrb.mxu1 %v2832_v38  ;;  %v1459_v38 = vadd.f32 %v9238_v29, %v9059_v44 }
 0x267   : > { %v1890_v2 = vadd.f32 %v1889_v26, %v1777_v35 }
 0x269   : > { %v1975_v46 = vmul.f32 %v1890_v2, %v1890_v2  ;;  %6738 = vmatmul.msk.f32.gmra.mxu0 %vm333_vm0, %v8961_v22  ;;  %v1780_v22 = vadd.f32 %v9274_v53, %v1667_v49  ;;  %v9365_v6 = vpop.f32.mrf.mxu1  ;;  %v9372_v53 = vpop.f32.mrf.mxu2 }
 0x26a   : > { %v9349_v23 = vld [vmem:[#allocation2 + $0x68] sm:$0xff] }
 0x26b   : > { %2007 = vst.msk [vmem:[#allocation2 + $0x70] sm:$0xff] %vm333_vm0, %v1975_v46  ;;  %v6919_v61 = vpack.i.bf16 %v9349_v23, %v9154_v31  ;;  %v9382_v36 = vpop.f32.mrf.mxu3 }
 0x26d   : > { %6920 = vrot.lane.b32.xlu1 %v6919_v61, %s7733_s11 }
 0x26e   : > { %v1892_v16 = vpop.f32.mrf.mxu0 }
 0x26f   : > { %v1893_v57 = vadd.f32 %v1892_v16, %v1780_v22 }
 0x271   : > { %v1976_v33 = vmul.f32 %v1893_v57, %v1893_v57  ;;  %6739 = vmatmul.msk.f32.gmra.mxu0 %vm333_vm0, %v8925_v32  ;;  %v1560_v32 = vadd.f32 %v9303_v50, %v1447_v7  ;;  %v9392_v50 = vpop.f32.mrf.mxu1  ;;  %v9398_v27 = vpop.f32.mrf.mxu2 }
 0x272   : > { %v9367_v5 = vld [vmem:[#allocation2 + $0x70] sm:$0xff] }
 0x273   : > { %2008 = vst.msk [vmem:[#allocation2 + $0x88] sm:$0xff] %vm333_vm0, %v1976_v33  ;;  %v6929_v28 = vpack.i.bf16 %v9182_v39, %v9367_v5  ;;  %v1673_v47 = vadd.f32 %v9308_v58, %v1560_v32  ;;  %v1450_v58 = vadd.f32 %v9238_v29, %v9023_v11  ;;  %v2831_v11 = vld [vmem:[%s13308_s3 + $0x28] sm:$0xff]  ;;  %v2155_v33 = vrot.slane %v13416_v55, 7 }
 0x274   : > { %2976 = vmatpush.msrb.mxu1 %v2831_v11  ;;  %v1462_v55 = vadd.f32 %v9238_v29, %v9069_v63  ;;  %v2883_v63 = vld [vmem:[%s13308_s3 + $0x1c8] sm:$0xff] }
 0x275   : > { %6930 = vrot.lane.b32.xlu0 %v6929_v28, %s7733_s11  ;;  %v1563_v35 = vadd.f32 %v9328_v45, %v1450_v58  ;;  %v1453_v45 = vadd.f32 %v9238_v29, %v9039_v37  ;;  %v2154_v28 = vrot.slane %v2034_v42, 7  ;;  %v2830_v37 = vld [vmem:[%s13308_s3 + $0x20] sm:$0xff]  ;;  %v2885_v42 = vld [vmem:[%s13308_s3 + $0x1d8] sm:$0xff] }
 0x276   : > { %v1895_v56 = vpop.f32.mrf.mxu0  ;;  %2977 = vmatpush.msrb.mxu1 %v2830_v37 }
 0x277   : > { %v1896_v25 = vadd.f32 %v1895_v56, %v1783_v34  ;;  %v1676_v30 = vadd.f32 %v1675_v19, %v1563_v35  ;;  %v1566_v61 = vadd.f32 %v1565_v48, %v1453_v45  ;;  %v2156_v56 = vsel %vm591_vm1, %v2154_v28, %v2155_v33  ;;  %v13417_v35 = vld [vmem:[#allocation14_spill] sm:$0xff] }
 0x279   : > { %v1977_v21 = vmul.f32 %v1896_v25, %v1896_v25  ;;  %6740 = vmatmul.msk.f32.gmra.mxu0 %vm333_vm0, %v9123_v15  ;;  %v1786_v15 = vadd.f32 %v9323_v8, %v1673_v47  ;;  %v9411_v8 = vpop.f32.mrf.mxu3  ;;  %v1789_v19 = vadd.f32 %v1788_v1, %v1676_v30  ;;  %v9415_v46 = vpop.f32.mrf.mxu1  ;;  %v1679_v16 = vadd.f32 %v1678_v51, %v1566_v61  ;;  %v2829_v1 = vld [vmem:[%s13308_s3 + $0x18] sm:$0xff]  ;;  %v2828_v51 = vld [vmem:[%s13308_s3 + $0x10] sm:$0xff]  ;;  %v2827_v47 = vld [vmem:[%s13308_s3 + $0x8] sm:$0xff] }
 0x27a   : > { %v9384_v12 = vld [vmem:[#allocation2 + $0x88] sm:$0xff]  ;;  %v9417_v22 = vpop.f32.mrf.mxu2  ;;  %2978 = vmatpush.msrb.mxu1 %v2829_v1  ;;  %v1572_v30 = vadd.f32 %v9392_v50, %v1459_v38 }
 0x27b   : > { %2009 = vst.msk [vmem:[#allocation2 + $0x90] sm:$0xff] %vm333_vm0, %v1977_v21  ;;  %v6934_v24 = vpack.i.bf16 %v9384_v12, %v13415_v40  ;;  %v1792_v48 = vadd.f32 %v1791_v59, %v1679_v16  ;;  %v2726_v40 = vsel %vm333_vm0, %v2156_v56, %v9118_v18  ;;  %v2888_v18 = vld [vmem:[%s13308_s3 + $0x1f0] sm:$0xff] }
 0x27c   : > { %2979 = vmatpush.msrb.mxu1 %v2828_v51  ;;  %v1685_v45 = vadd.f32 %v9398_v27, %v1572_v30  ;;  %v538_v51 = vld [vmem:[#allocation2 + $0x218] sm:$0xff] }
 0x27d   : > { %6935 = vrot.lane.b32.xlu1 %v6934_v24, %s7733_s11 }
 0x27e   : > { %v1898_v10 = vpop.f32.mrf.mxu0  ;;  %2980 = vmatpush.msrb.mxu1 %v2827_v47  ;;  %v1798_v28 = vadd.f32 %v9411_v8, %v1685_v45  ;;  %v13418_v47 = vld [vmem:[#allocation5_spill] sm:$0xff]  ;;  %v2877_v45 = vld [vmem:[%s13308_s3 + $0x198] sm:$0xff] }
 0x27f   : > { %v1899_v26 = vadd.f32 %v1898_v10, %v1786_v15  ;;  %v2887_v15 = vld [vmem:[%s13308_s3 + $0x1e8] sm:$0xff] }
 0x281   : > { %v1978_v2 = vmul.f32 %v1899_v26, %v1899_v26  ;;  %6741 = vmatmul.msk.f32.gmra.mxu0 %vm333_vm0, %v9143_v9  ;;  %v9438_v7 = vpop.f32.mrf.mxu3  ;;  %v9445_v21 = vpop.f32.mrf.mxu1  ;;  %v2157_v26 = vrot.slane %v13417_v35, 7 }
 0x282   : > { %v9403_v49 = vld [vmem:[#allocation2 + $0x90] sm:$0xff]  ;;  %v9452_v24 = vpop.f32.mrf.mxu2 }
 0x283   : > { %2010 = vst.msk [vmem:[#allocation2 + $0xa8] sm:$0xff] %vm333_vm0, %v1978_v2  ;;  %2444 = vrot.lane.b32.xlu2 %v9403_v49, %s7733_s11  ;;  %v2158_v27 = vsel %vm591_vm1, %v2155_v33, %v2157_v26  ;;  %v2884_v33 = vld [vmem:[%s13308_s3 + $0x1d0] sm:$0xff] }
 0x284   : > { %v9550_v26 = vld [vmem:[#allocation2 + $0x230] sm:$0xff] }
 0x286   : > { %v1901_v9 = vpop.f32.mrf.mxu0 }
 0x287   : > { %v1902_v52 = vadd.f32 %v1901_v9, %v1789_v19  ;;  %v9485_v9 = vld [vmem:[#allocation2 + $0x208] sm:$0xff] }
 0x288   : > { %v842_v61 = vrot.slane %v9485_v9, 1 }
 0x289   : > { %v1979_v54 = vmul.f32 %v1902_v52, %v1902_v52  ;;  %6742 = vmatmul.msk.f32.gmra.mxu0 %vm333_vm0, %v9154_v31  ;;  %v1456_v31 = vadd.f32 %v9238_v29, %v9048_v62  ;;  %v9476_v11 = vpop.f32.mrf.mxu3  ;;  %v9488_v52 = vld [vmem:[#allocation2 + $0x210] sm:$0xff] }
 0x28a   : > { %v9421_v57 = vld [vmem:[#allocation2 + $0xa8] sm:$0xff]  ;;  %v843_v50 = vrot.slane %v9488_v52, 1  ;;  %v9501_v16 = vpop.f32.mrf.mxu2 }
 0x28b   : > { %2011 = vst.msk [vmem:[#allocation2 + $0xb0] sm:$0xff] %vm333_vm0, %v1979_v54  ;;  %2446 = vrot.lane.b32.xlu0 %v9421_v57, %s7733_s11  ;;  %v1569_v32 = vadd.f32 %v9365_v6, %v1456_v31  ;;  %v2727_v54 = vsel %vm333_vm0, %v2158_v27, %v9138_v17  ;;  %v1575_v31 = vadd.f32 %v9415_v46, %v1462_v55  ;;  %v2882_v46 = vld [vmem:[%s13308_s3 + $0x1c0] sm:$0xff]  ;;  %v2876_v27 = vld [vmem:[%s13308_s3 + $0x190] sm:$0xff] }
 0x28c   : > { %v9512_v1 = vsel %vm720_vm2, %v842_v61, %v843_v50  ;;  %v13419_v61 = vld [vmem:[#allocation6_spill] sm:$0xff] }
 0x28d   : > { %v1682_v62 = vadd.f32 %v9372_v53, %v1569_v32  ;;  %v2826_v53 = vld [vmem:[%s13308_s3] sm:$0xff]  ;;  %v1688_v17 = vadd.f32 %v9417_v22, %v1575_v31  ;;  %v845_v32 = vrot.slane %v538_v51, 1  ;;  %v2881_v22 = vld [vmem:[%s13308_s3 + $0x1b8] sm:$0xff]  ;;  %v2875_v31 = vld [vmem:[%s13308_s3 + $0x188] sm:$0xff] }
 0x28e   : > { %v1904_v34 = vpop.f32.mrf.mxu0  ;;  %2981 = vmatpush.msrb.mxu1 %v2826_v53 }
 0x28f   : > { %v1905_v25 = vadd.f32 %v1904_v34, %v1792_v48  ;;  %v1795_v58 = vadd.f32 %v9382_v36, %v1682_v62  ;;  %2982 = vmatmul.f32.vlgmr.msrb.gmra.mxu1 %v2726_v40  ;;  %v9481_v36 = vpop.f32.mrf.mxu1  ;;  %v1465_v62 = vadd.f32 %v9238_v29, %v13418_v47  ;;  %v2880_v40 = vld [vmem:[%s13308_s3 + $0x1b0] sm:$0xff] }
 0x291   : > { %v1980_v59 = vmul.f32 %v1905_v25, %v1905_v25  ;;  %6743 = vmatmul.msk.f32.gmra.mxu0 %vm333_vm0, %v9170_v43  ;;  %v2889_v43 = vld [vmem:[%s13308_s3 + $0x1f8] sm:$0xff]  ;;  %v1806_v34 = vpop.f32.mrf.mxu3  ;;  %v1578_v38 = vadd.f32 %v9445_v21, %v1465_v62  ;;  %v2038_v62 = vld [vmem:[#allocation2 + $0x20] sm:$0xff] }
 0x292   : > { %v9454_v6 = vld [vmem:[#allocation2 + $0xb0] sm:$0xff]  ;;  %3305 = vmatpush.msra.mxu0 %v2889_v43  ;;  %v1696_v53 = vpop.f32.mrf.mxu2 }
 0x293   : > { %2012 = vst.msk [vmem:[#allocation2 + $0xc8] sm:$0xff] %vm333_vm0, %v1980_v59  ;;  %2448 = vrot.lane.b32.xlu1 %v9454_v6, %s7733_s11  ;;  %v1801_v59 = vadd.f32 %v9438_v7, %v1688_v17  ;;  %v1691_v7 = vadd.f32 %v9452_v24, %v1578_v38  ;;  %v2878_v24 = vld [vmem:[%s13308_s3 + $0x1a0] sm:$0xff] }
 0x294   : > { %3306 = vmatpush.msra.mxu0 %v2888_v18  ;;  %v9539_v18 = vsel %vm720_vm2, %v843_v50, %v845_v32  ;;  %v1468_v50 = vadd.f32 %v9238_v29, %v13419_v61  ;;  %v13420_v32 = vld [vmem:[#allocation8_spill] sm:$0xff] }
 0x296   : > { %v1907_v10 = vpop.f32.mrf.mxu0  ;;  %3307 = vmatpush.msra.mxu0 %v2887_v15  ;;  %v9542_v15 = vld [vmem:[#allocation2 + $0x228] sm:$0xff] }
 0x297   : > { %v1908_v2 = vadd.f32 %v1907_v10, %v1795_v58  ;;  %2985 = vmatmul.f32.gmra.mxu1 %v2727_v54  ;;  %v1583_v25 = vpop.f32.mrf.mxu1  ;;  %v2879_v10 = vld [vmem:[%s13308_s3 + $0x1a8] sm:$0xff]  ;;  %v860_v21 = vrot.slane %v9542_v15, 1 }
 0x299   : > { %v1981_v44 = vmul.f32 %v1908_v2, %v1908_v2  ;;  %6744 = vmatmul.msk.f32.gmra.mxu0 %vm333_vm0, %v9182_v39  ;;  %v2886_v39 = vld [vmem:[%s13308_s3 + $0x1e0] sm:$0xff]  ;;  %v861_v2 = vrot.slane %v9550_v26, 1 }
 0x29a   : > { %v9483_v19 = vld [vmem:[#allocation2 + $0xc8] sm:$0xff]  ;;  %3308 = vmatpush.msra.mxu0 %v2886_v39  ;;  %v1804_v39 = vadd.f32 %v9476_v11, %v1691_v7  ;;  %v2159_v7 = vrot.slane %v2038_v62, 7 }
 0x29b   : > { %2013 = vst.msk [vmem:[#allocation2 + $0xd0] sm:$0xff] %vm333_vm0, %v1981_v44  ;;  %2450 = vrot.lane.b32.xlu2 %v9483_v19, %s7733_s11  ;;  %v1809_v44 = vpop.f32.mrf.mxu3  ;;  %v862_v55 = vsel %vm720_vm2, %v860_v21, %v861_v2 }
 0x29c   : > { %3309 = vmatpush.msra.mxu0 %v2885_v42 }
 0x29e   : > { %v1910_v37 = vpop.f32.mrf.mxu0  ;;  %3310 = vmatpush.msra.mxu0 %v2884_v33 }
 0x29f   : > { %v1911_v48 = vadd.f32 %v1910_v37, %v1798_v28  ;;  %v1586_v42 = vpop.f32.mrf.mxu1  ;;  %v1581_v28 = vadd.f32 %v9481_v36, %v1468_v50  ;;  %v542_v37 = vld [vmem:[#allocation2 + $0x238] sm:$0xff]  ;;  %v2874_v36 = vld [vmem:[%s13308_s3 + $0x180] sm:$0xff] }
 0x2a0   : > { %3311 = vmatpush.msra.mxu0 %v2883_v63  ;;  %v863_v17 = vrot.slane %v542_v37, 1 }
 0x2a1   : > { %v1982_v8 = vmul.f32 %v1911_v48, %v1911_v48  ;;  %6745 = vmatmul.msk.f32.gmra.mxu0 %vm333_vm0, %v9512_v1  ;;  %v1699_v48 = vpop.f32.mrf.mxu2  ;;  %v1694_v11 = vadd.f32 %v9501_v16, %v1581_v28  ;;  %v1471_v16 = vadd.f32 %v9238_v29, %v13420_v32  ;;  %v7610_v32 = vld [vmem:[#allocation2 + $0x1b0] sm:$0xff] }
 0x2a2   : > { %v9521_v56 = vld [vmem:[#allocation2 + $0xd0] sm:$0xff]  ;;  %3312 = vmatpush.msra.mxu0 %v2882_v46 }
 0x2a3   : > { %2014 = vst.msk [vmem:[#allocation2 + $0xe8] sm:$0xff] %vm333_vm0, %v1982_v8  ;;  %2452 = vrot.lane.b32.xlu0 %v9521_v56, %s7733_s11  ;;  %v1807_v46 = vadd.f32 %v1806_v34, %v1694_v11  ;;  %v13422_v11 = vld [vmem:[#allocation9_spill] sm:$0xff] }
 0x2a4   : > { %3313 = vmatpush.msra.mxu0 %v2881_v22  ;;  %v1812_v22 = vpop.f32.mrf.mxu3 }
 0x2a6   : > { %v1913_v43 = vpop.f32.mrf.mxu0  ;;  %3314 = vmatpush.msra.mxu0 %v2880_v40  ;;  %v1584_v40 = vadd.f32 %v1583_v25, %v1471_v16 }
 0x2a7   : > { %v1914_v58 = vadd.f32 %v1913_v43, %v1801_v59  ;;  %v864_v59 = vsel %vm720_vm2, %v861_v2, %v863_v17  ;;  %v1589_v38 = vpop.f32.mrf.mxu1  ;;  %v13421_v2 = vld [vmem:[#allocation7_spill] sm:$0xff] }
 0x2a8   : > { %3315 = vmatpush.msra.mxu0 %v2879_v10  ;;  %v1474_v25 = vadd.f32 %v9238_v29, %v13421_v2  ;;  %v13423_v2 = vld [vmem:[#allocation11_spill] sm:$0xff] }
 0x2a9   : > { %v1983_v35 = vmul.f32 %v1914_v58, %v1914_v58  ;;  %6746 = vmatmul.msk.f32.gmra.mxu0 %vm333_vm0, %v9539_v18  ;;  %v1697_v58 = vadd.f32 %v1696_v53, %v1584_v40  ;;  %v1702_v21 = vpop.f32.mrf.mxu2 }
 0x2aa   : > { %v9552_v30 = vld [vmem:[#allocation2 + $0xe8] sm:$0xff]  ;;  %3316 = vmatpush.msra.mxu0 %v2878_v24 }
 0x2ab   : > { %2015 = vst.msk [vmem:[#allocation2 + $0xf0] sm:$0xff] %vm333_vm0, %v1983_v35  ;;  %2454 = vrot.lane.b32.xlu1 %v9552_v30, %s7733_s11  ;;  %v2160_v35 = vrot.slane %v9278_v20, 7  ;;  %v1810_v53 = vadd.f32 %v1809_v44, %v1697_v58 }
 0x2ac   : > { %3317 = vmatpush.msra.mxu0 %v2877_v45 }
 0x2ad   : > { %v2433_v8 = vpop.permute.xlu2 %2432  ;;  %v9599_v61 = vsel %vm591_vm1, %v2159_v7, %v2160_v35 }
 0x2ae   : > { %v1916_v54 = vpop.f32.mrf.mxu0  ;;  %3318 = vmatpush.msra.mxu0 %v2876_v27 }
 0x2af   : > { %v1917_v33 = vadd.f32 %v1916_v54, %v1804_v39  ;;  %v1587_v39 = vadd.f32 %v1586_v42, %v1474_v25  ;;  %v1815_v54 = vpop.f32.mrf.mxu3  ;;  %v1592_v37 = vpop.f32.mrf.mxu1 }
 0x2b0   : > { %3319 = vmatpush.msra.mxu0 %v2875_v31 }
 0x2b1   : > { %v1984_v51 = vmul.f32 %v1917_v33, %v1917_v33  ;;  %6747 = vmatmul.msk.f32.gmra.mxu0 %vm333_vm0, %v862_v55  ;;  %v1700_v55 = vadd.f32 %v1699_v48, %v1587_v39  ;;  %v2162_v33 = vrot.slane %v9296_v3, 7  ;;  %v1705_v44 = vpop.f32.mrf.mxu2 }
 0x2b2   : > { %v9578_v63 = vld [vmem:[#allocation2 + $0xf0] sm:$0xff]  ;;  %3320 = vmatpush.msra.mxu0 %v2874_v36 }
 0x2b3   : > { %2016 = vst.msk [vmem:[#allocation2 + $0x108] sm:$0xff] %vm333_vm0, %v1984_v51  ;;  %2456 = vrot.lane.b32.xlu2 %v9578_v63, %s7733_s11  ;;  %v1477_v51 = vadd.f32 %v9238_v29, %v13422_v11  ;;  %v1813_v17 = vadd.f32 %v1812_v22, %v1700_v55  ;;  %v9612_v36 = vsel %vm591_vm1, %v2160_v35, %v2162_v33 }
 0x2b4   : > { %v2729_v16 = vsel %vm333_vm0, %v9612_v36, %v2433_v8 }
 0x2b5   : > { %v1110_v34 = vpop.permute.xlu2 %1109  ;;  %v1590_v62 = vadd.f32 %v1589_v38, %v1477_v51  ;;  %v2167_v51 = vrot.slane %v9336_v41, 7 }
 0x2b6   : > { %v1919_v47 = vpop.f32.mrf.mxu0 }
 0x2b7   : > { %v1920_v43 = vadd.f32 %v1919_v47, %v1807_v46  ;;  %v2042_v46 = vld [vmem:[#allocation2 + $0x40] sm:$0xff]  ;;  %v1703_v22 = vadd.f32 %v1702_v21, %v1590_v62  ;;  %v1818_v7 = vpop.f32.mrf.mxu3  ;;  %v1595_v25 = vpop.f32.mrf.mxu1 }
 0x2b8   : > { %v2164_v58 = vrot.slane %v2042_v46, 7  ;;  %v13425_v21 = vld [vmem:[#allocation15_spill] sm:$0xff] }
 0x2b9   : > { %v1985_v10 = vmul.f32 %v1920_v43, %v1920_v43  ;;  %6748 = vmatmul.msk.f32.gmra.mxu0 %vm333_vm0, %v864_v59 }
 0x2ba   : > { %v9591_v24 = vld [vmem:[#allocation2 + $0x108] sm:$0xff] }
 0x2bb   : > { %2017 = vst.msk [vmem:[#allocation2 + $0x110] sm:$0xff] %vm333_vm0, %v1985_v10  ;;  %2458 = vrot.lane.b32.xlu0 %v9591_v24, %s7733_s11  ;;  %v2165_v10 = vrot.slane %v9313_v14, 7 }
 0x2bd   : > { %v2431_v45 = vpop.permute.xlu0 %2430  ;;  %v9617_v47 = vpop.permute.xlu2 %6925  ;;  %v9634_v39 = vsel %vm591_vm1, %v2164_v58, %v2165_v10  ;;  %v2857_v58 = vld [vmem:[%s13308_s3 + $0xf8] sm:$0xff] }
 0x2be   : > { %v1922_v20 = vpop.f32.mrf.mxu0  ;;  %v2728_v50 = vsel %vm333_vm0, %v9599_v61, %v2431_v45  ;;  %v6928_v40 = vunpack.i.h.bf16 %v9617_v47  ;;  %v13424_v45 = vld [vmem:[#allocation10_spill] sm:$0xff]  ;;  %3079 = vmatpush.msrb.mxu2 %v2857_v58  ;;  %v2856_v58 = vld [vmem:[%s13308_s3 + $0xf0] sm:$0xff] }
 0x2bf   : > { %v1923_v27 = vadd.f32 %v1922_v20, %v1810_v53  ;;  %2988 = vmatmul.f32.gmra.mxu1 %v2728_v50  ;;  %v1255_v53 = vsel %vm333_vm0, %v13424_v45, %v1110_v34  ;;  %v1480_v20 = vadd.f32 %v9238_v29, %v13425_v21  ;;  %v1816_v50 = vadd.f32 %v1815_v54, %v1703_v22  ;;  %v2046_v22 = vld [vmem:[#allocation2 + $0x60] sm:$0xff] }
 0x2c0   : > { %v1261_v38 = vsel %vm333_vm0, %v13423_v2, %v6928_v40  ;;  %v2170_v2 = vrot.slane %v9349_v23, 7  ;;  %3080 = vmatpush.msrb.mxu2 %v2856_v58  ;;  %v2871_v58 = vld [vmem:[%s13308_s3 + $0x168] sm:$0xff] }
 0x2c1   : > { %v1986_v28 = vmul.f32 %v1923_v27, %v1923_v27  ;;  %1844 = vmatmul.f32.gmra.mxu3 %v1261_v38  ;;  %v1708_v27 = vpop.f32.mrf.mxu2 }
 0x2c2   : > { %v9604_v31 = vld [vmem:[#allocation2 + $0x110] sm:$0xff] }
 0x2c3   : > { %2018 = vst.msk [vmem:[#allocation2 + $0x128] sm:$0xff] %vm333_vm0, %v1986_v28  ;;  %2460 = vrot.lane.b32.xlu1 %v9604_v31, %s7733_s11  ;;  %v1593_v28 = vadd.f32 %v1592_v37, %v1480_v20 }
 0x2c5   : > { %v1108_v42 = vpop.permute.xlu0 %1107  ;;  %v1706_v34 = vadd.f32 %v1705_v44, %v1593_v28  ;;  %v9648_v44 = vsel %vm591_vm1, %v2165_v10, %v2167_v51  ;;  %v1486_v10 = vadd.f32 %v9238_v29, %v9172_v60  ;;  %v6927_v51 = vunpack.i.l.bf16 %v9617_v47 }
 0x2c6   : > { %v1925_v48 = vpop.f32.mrf.mxu0  ;;  %v1254_v3 = vsel %vm333_vm0, %v7610_v32, %v1108_v42 }
 0x2c7   : > { %v1926_v59 = vadd.f32 %v1925_v48, %v1813_v17  ;;  %1722 = vmatmul.f32.gmra.mxu2 %v1254_v3  ;;  %2991 = vmatmul.f32.gmra.mxu1 %v2729_v16  ;;  %v1821_v17 = vpop.f32.mrf.mxu3  ;;  %v1483_v48 = vadd.f32 %v9238_v29, %v9156_v0  ;;  %v1819_v32 = vadd.f32 %v1818_v7, %v1706_v34  ;;  %v1598_v3 = vpop.f32.mrf.mxu1 }
 0x2c8   : > { %v1599_v45 = vadd.f32 %v1598_v3, %v1486_v10  ;;  %v13427_v10 = vld [vmem:[#allocation16_spill] sm:$0xff] }
 0x2c9   : > { %v1987_v43 = vmul.f32 %v1926_v59, %v1926_v59  ;;  %v1596_v46 = vadd.f32 %v1595_v25, %v1483_v48  ;;  %v2172_v48 = vrot.slane %v9367_v5, 7 }
 0x2ca   : > { %v9621_v35 = vld [vmem:[#allocation2 + $0x128] sm:$0xff] }
 0x2cb   : > { %2019 = vst.msk [vmem:[#allocation2 + $0x130] sm:$0xff] %vm333_vm0, %v1987_v43  ;;  %v6939_v8 = vpack.i.bf16 %v9621_v35, %v9512_v1  ;;  %v1709_v59 = vadd.f32 %v1708_v27, %v1596_v46  ;;  %v1257_v46 = vsel %vm333_vm0, %v9166_v4, %v6927_v51 }
 0x2cd   : > { %6940 = vrot.lane.b32.xlu2 %v6939_v8, %s7733_s11  ;;  %v2435_v14 = vpop.permute.xlu1 %2434  ;;  %v1822_v7 = vadd.f32 %v1821_v17, %v1709_v59  ;;  %v2169_v8 = vrot.slane %v2046_v22, 7  ;;  %v2050_v22 = vld [vmem:[#allocation2 + $0x80] sm:$0xff] }
 0x2ce   : > { %v1928_v1 = vpop.f32.mrf.mxu0  ;;  %v2730_v55 = vsel %vm333_vm0, %v9634_v39, %v2435_v14 }
 0x2cf   : > { %v1929_v33 = vadd.f32 %v1928_v1, %v1816_v50  ;;  %1725 = vmatmul.f32.gmra.mxu2 %v1255_v53  ;;  %2994 = vmatmul.f32.gmra.mxu1 %v2730_v55  ;;  %v1824_v38 = vpop.f32.mrf.mxu3  ;;  %v9665_v1 = vsel %vm591_vm1, %v2169_v8, %v2170_v2 }
 0x2d0   : > { %3321 = vmatmul.f32.vlgmr.msra.gmra.mxu0 %v2730_v55  ;;  %v13426_v55 = vld [vmem:[#allocation3_spill] sm:$0xff] }
 0x2d1   : > { %v1988_v11 = vmul.f32 %v1929_v33, %v1929_v33 }
 0x2d2   : > { %v9639_v42 = vld [vmem:[#allocation2 + $0x130] sm:$0xff] }
 0x2d3   : > { %2020 = vst.msk [vmem:[#allocation2 + $0x148] sm:$0xff] %vm333_vm0, %v1988_v11  ;;  %v6944_v54 = vpack.i.bf16 %v9639_v42, %v9539_v18  ;;  %v1711_v18 = vpop.f32.mrf.mxu2  ;;  %v2873_v11 = vld [vmem:[%s13308_s3 + $0x178] sm:$0xff] }
 0x2d4   : > { %v1712_v50 = vadd.f32 %v1711_v18, %v1599_v45  ;;  %3192 = vmatpush.msrb.mxu3 %v2873_v11  ;;  %v9690_v18 = vsel %vm591_vm1, %v2170_v2, %v2172_v48  ;;  %v2174_v2 = vrot.slane %v2050_v22, 7  ;;  %v13429_v48 = vld [vmem:[#allocation17_spill] sm:$0xff]  ;;  %v2054_v22 = vld [vmem:[#allocation2 + $0xa0] sm:$0xff] }
 0x2d5   : > { %6945 = vrot.lane.b32.xlu0 %v6944_v54, %s7733_s11  ;;  %v2437_v37 = vpop.permute.xlu0 %2436  ;;  %v1489_v54 = vadd.f32 %v9238_v29, %v9184_v13 }
 0x2d6   : > { %v1931_v41 = vpop.f32.mrf.mxu0  ;;  %v2731_v16 = vsel %vm333_vm0, %v9648_v44, %v2437_v37  ;;  %v1825_v17 = vadd.f32 %v1824_v38, %v1712_v50  ;;  %v2175_v38 = vrot.slane %v9384_v12, 7  ;;  %v7611_v12 = vld [vmem:[#allocation2 + $0x1f0] sm:$0xff] }
 0x2d7   : > { %v1932_v62 = vadd.f32 %v1931_v41, %v1819_v32  ;;  %2997 = vmatmul.f32.gmra.mxu1 %v2731_v16  ;;  %v1827_v47 = vpop.f32.mrf.mxu3 }
 0x2d8   : > { %3324 = vmatmul.f32.gmra.mxu0 %v2731_v16 }
 0x2d9   : > { %v1989_v40 = vmul.f32 %v1932_v62, %v1932_v62 }
 0x2da   : > { %v9652_v0 = vld [vmem:[#allocation2 + $0x148] sm:$0xff] }
 0x2db   : > { %2021 = vst.msk [vmem:[#allocation2 + $0x150] sm:$0xff] %vm333_vm0, %v1989_v40  ;;  %v6949_v43 = vpack.i.bf16 %v9599_v61, %v9652_v0  ;;  %v1601_v61 = vpop.f32.mrf.mxu1  ;;  %v1714_v60 = vpop.f32.mrf.mxu2 }
 0x2dc   : > { %v1602_v32 = vadd.f32 %v1601_v61, %v1489_v54 }
 0x2dd   : > { %6950 = vrot.lane.b32.xlu1 %v6949_v43, %s7733_s11 }
 0x2de   : > { %v1934_v25 = vpop.f32.mrf.mxu0  ;;  %v1715_v13 = vadd.f32 %v1714_v60, %v1602_v32  ;;  %v9710_v60 = vsel %vm591_vm1, %v2174_v2, %v2175_v38 }
 0x2df   : > { %v1935_v53 = vadd.f32 %v1934_v25, %v1822_v7  ;;  %v6921_v21 = vpop.permute.xlu1 %6920  ;;  %v1492_v7 = vadd.f32 %v9238_v29, %v13427_v10 }
 0x2e0   : > { %v6923_v20 = vunpack.i.h.bf16 %v6921_v21  ;;  %v6922_v14 = vunpack.i.l.bf16 %v6921_v21  ;;  %v1828_v8 = vadd.f32 %v1827_v47, %v1715_v13 }
 0x2e1   : > { %v1990_v27 = vmul.f32 %v1935_v53, %v1935_v53 }
 0x2e2   : > { %v1256_v28 = vsel %vm333_vm0, %v13426_v55, %v6922_v14  ;;  %v2732_v23 = vsel %vm333_vm0, %v9665_v1, %v6923_v20  ;;  %v9671_v33 = vld [vmem:[#allocation2 + $0x150] sm:$0xff]  ;;  %v1830_v55 = vpop.f32.mrf.mxu3 }
 0x2e3   : > { %2022 = vst.msk [vmem:[#allocation2 + $0x168] sm:$0xff] %vm333_vm0, %v1990_v27  ;;  %1728 = vmatmul.f32.gmra.mxu2 %v1256_v28  ;;  %3000 = vmatmul.f32.gmra.mxu1 %v2732_v23  ;;  %v6954_v34 = vpack.i.bf16 %v9612_v36, %v9671_v33  ;;  %v2897_v36 = vld [vmem:[%s13308_s3 + $0x238] sm:$0xff]  ;;  %v1604_v5 = vpop.f32.mrf.mxu1  ;;  %v1717_v4 = vpop.f32.mrf.mxu2 }
 0x2e4   : > { %3327 = vmatmul.f32.gmra.mxu0 %v2732_v23  ;;  %3426 = vmatpush.msra.mxu1 %v2897_v36  ;;  %v1605_v53 = vadd.f32 %v1604_v5, %v1492_v7  ;;  %v13428_v23 = vld [vmem:[#allocation13_spill] sm:$0xff]  ;;  %v1495_v36 = vadd.f32 %v9238_v29, %v13429_v48  ;;  %v2179_v7 = vrot.slane %v2054_v22, 7  ;;  %v2192_v22 = vrot.slane %v9578_v63, 7 }
 0x2e5   : > { %6955 = vrot.lane.b32.xlu2 %v6954_v34, %s7733_s11 }
 0x2e6   : > { %v1937_v37 = vpop.f32.mrf.mxu0  ;;  %v1718_v50 = vadd.f32 %v1717_v4, %v1605_v53 }
 0x2e7   : > { %v1938_v3 = vadd.f32 %v1937_v37, %v1825_v17  ;;  %v6931_v41 = vpop.permute.xlu0 %6930 }
 0x2e8   : > { %v6932_v16 = vunpack.i.l.bf16 %v6931_v41  ;;  %v6933_v25 = vunpack.i.h.bf16 %v6931_v41  ;;  %v1831_v37 = vadd.f32 %v1830_v55, %v1718_v50  ;;  %v2177_v41 = vrot.slane %v9403_v49, 7  ;;  %v2855_v49 = vld [vmem:[%s13308_s3 + $0xe8] sm:$0xff]  ;;  %v2058_v55 = vld [vmem:[#allocation2 + $0xc0] sm:$0xff] }
 0x2e9   : > { %v1991_v62 = vmul.f32 %v1938_v3, %v1938_v3  ;;  %3081 = vmatpush.msrb.mxu2 %v2855_v49 }
 0x2ea   : > { %v2733_v59 = vsel %vm333_vm0, %v9690_v18, %v6932_v16  ;;  %v9694_v40 = vld [vmem:[#allocation2 + $0x168] sm:$0xff]  ;;  %v1258_v28 = vsel %vm333_vm0, %v7611_v12, %v6933_v25  ;;  %v2854_v12 = vld [vmem:[%s13308_s3 + $0xe0] sm:$0xff] }
 0x2eb   : > { %2023 = vst.msk [vmem:[#allocation2 + $0x170] sm:$0xff] %vm333_vm0, %v1991_v62  ;;  %1731 = vmatmul.f32.gmra.mxu2 %v1257_v46  ;;  %3003 = vmatmul.f32.gmra.mxu1 %v2733_v59  ;;  %v6959_v43 = vpack.i.bf16 %v9634_v39, %v9694_v40  ;;  %v2872_v39 = vld [vmem:[%s13308_s3 + $0x170] sm:$0xff]  ;;  %v1607_v17 = vpop.f32.mrf.mxu1  ;;  %v1720_v32 = vpop.f32.mrf.mxu2 }
 0x2ec   : > { %3330 = vmatmul.f32.gmra.mxu0 %v2733_v59  ;;  %3193 = vmatpush.msrb.mxu3 %v2872_v39  ;;  %v1608_v47 = vadd.f32 %v1607_v17, %v1495_v36  ;;  %v2445_v46 = vpop.permute.xlu2 %2444  ;;  %v2187_v17 = vrot.slane %v9521_v56, 7  ;;  %v2869_v56 = vld [vmem:[%s13308_s3 + $0x158] sm:$0xff] }
 0x2ed   : > { %6960 = vrot.lane.b32.xlu0 %v6959_v43, %s7733_s11  ;;  %v1833_v43 = vpop.f32.mrf.mxu3  ;;  %3082 = vmatpush.msrb.mxu2 %v2854_v12 }
 0x2ee   : > { %v1940_v45 = vpop.f32.mrf.mxu0  ;;  %v1721_v13 = vadd.f32 %v1720_v32, %v1608_v47  ;;  %3194 = vmatpush.msrb.mxu3 %v2871_v58  ;;  %v2853_v32 = vld [vmem:[%s13308_s3 + $0xd8] sm:$0xff]  ;;  %v2190_v47 = vrot.slane %v9552_v30, 7  ;;  %v2895_v58 = vld [vmem:[%s13308_s3 + $0x228] sm:$0xff] }
 0x2ef   : > { %v1941_v21 = vadd.f32 %v1940_v45, %v1828_v8  ;;  %v6936_v61 = vpop.permute.xlu1 %6935  ;;  %3083 = vmatpush.msrb.mxu2 %v2853_v32  ;;  %v2867_v32 = vld [vmem:[%s13308_s3 + $0x148] sm:$0xff] }
 0x2f0   : > { %v6938_v20 = vunpack.i.h.bf16 %v6936_v61  ;;  %v6937_v14 = vunpack.i.l.bf16 %v6936_v61  ;;  %v1834_v4 = vadd.f32 %v1833_v43, %v1721_v13  ;;  %v2896_v61 = vld [vmem:[%s13308_s3 + $0x230] sm:$0xff]  ;;  %v9828_v63 = vsel %vm591_vm1, %v2190_v47, %v2192_v22 }
 0x2f1   : > { %v1992_v27 = vmul.f32 %v1941_v21, %v1941_v21  ;;  %3427 = vmatpush.msra.mxu1 %v2896_v61  ;;  %v2848_v43 = vld [vmem:[%s13308_s3 + $0xb0] sm:$0xff]  ;;  %v2846_v61 = vld [vmem:[%s13308_s3 + $0xa0] sm:$0xff] }
 0x2f2   : > { %v1262_v34 = vsel %vm333_vm0, %v13428_v23, %v6937_v14  ;;  %v2734_v11 = vsel %vm333_vm0, %v9710_v60, %v6938_v20  ;;  %v9717_v51 = vld [vmem:[#allocation2 + $0x170] sm:$0xff]  ;;  %v2184_v23 = vrot.slane %v2058_v55, 7  ;;  %v7612_v55 = vld [vmem:[#allocation2 + $0x8] sm:$0xff] }
 0x2f3   : > { %2024 = vst.msk [vmem:[#allocation2 + $0x188] sm:$0xff] %vm333_vm0, %v1992_v27  ;;  %1734 = vmatmul.f32.gmra.mxu2 %v1258_v28  ;;  %1847 = vmatmul.f32.gmra.mxu3 %v1262_v34  ;;  %v6964_v54 = vpack.i.bf16 %v9648_v44, %v9717_v51  ;;  %v2178_v44 = vsel %vm591_vm1, %v2175_v38, %v2177_v41  ;;  %v9761_v50 = vpop.f32.mrf.mxu1  ;;  %v2870_v28 = vld [vmem:[%s13308_s3 + $0x160] sm:$0xff]  ;;  %v2282_v12 = vrot.slane %v7612_v55, 1 }
 0x2f4   : > { %3006 = vmatmul.f32.gmra.mxu1 %v2734_v11  ;;  %3333 = vmatmul.f32.gmra.mxu0 %v2734_v11  ;;  %v2735_v29 = vsel %vm333_vm0, %v2178_v44, %v2445_v46 }
 0x2f5   : > { %6965 = vrot.lane.b32.xlu1 %v6964_v54, %s7733_s11  ;;  %3195 = vmatpush.msrb.mxu3 %v2870_v28 }
 0x2f6   : > { %v1943_v3 = vpop.f32.mrf.mxu0  ;;  %3428 = vmatpush.msra.mxu1 %v2895_v58  ;;  %v1836_v58 = vpop.f32.mrf.mxu3 }
 0x2f7   : > { %v1944_v16 = vadd.f32 %v1943_v3, %v1831_v37  ;;  %v2062_v37 = vld [vmem:[#allocation2 + $0xe0] sm:$0xff]  ;;  %v2852_v3 = vld [vmem:[%s13308_s3 + $0xd0] sm:$0xff]  ;;  %3196 = vmatpush.msrb.mxu3 %v2869_v56  ;;  %v2200_v56 = vrot.slane %v9621_v35, 7 }
 0x2f8   : > { %v2189_v41 = vrot.slane %v2062_v37, 7  ;;  %3084 = vmatpush.msrb.mxu2 %v2852_v3 }
 0x2f9   : > { %v1993_v62 = vmul.f32 %v1944_v16, %v1944_v16 }
 0x2fa   : > { %v9727_v5 = vld [vmem:[#allocation2 + $0x188] sm:$0xff] }
 0x2fb   : > { %2025 = vst.msk [vmem:[#allocation2 + $0x190] sm:$0xff] %vm333_vm0, %v1993_v62  ;;  %v6969_v59 = vpack.i.bf16 %v9665_v1, %v9727_v5  ;;  %v2180_v1 = vrot.slane %v9421_v57, 7  ;;  %v2182_v57 = vrot.slane %v9454_v6, 7  ;;  %v6989_v6 = vpack.i.bf16 %v9550_v26, %v2178_v44  ;;  %v2451_v26 = vpop.permute.xlu2 %2450  ;;  %v9782_v54 = vpop.f32.mrf.mxu1  ;;  %v2851_v62 = vld [vmem:[%s13308_s3 + $0xc8] sm:$0xff] }
 0x2fc   : > { %3009 = vmatmul.f32.gmra.mxu1 %v2735_v29  ;;  %3336 = vmatmul.f32.gmra.mxu0 %v2735_v29  ;;  %v9806_v44 = vsel %vm591_vm1, %v2189_v41, %v2190_v47  ;;  %v2850_v29 = vld [vmem:[%s13308_s3 + $0xc0] sm:$0xff] }
 0x2fd   : > { %6970 = vrot.lane.b32.xlu2 %v6969_v59, %s7733_s11  ;;  %v2447_v2 = vpop.permute.xlu0 %2446  ;;  %v9742_v39 = vsel %vm591_vm1, %v2179_v7, %v2180_v1  ;;  %v9757_v20 = vsel %vm591_vm1, %v2180_v1, %v2182_v57  ;;  %3085 = vmatpush.msrb.mxu2 %v2851_v62  ;;  %v2849_v59 = vld [vmem:[%s13308_s3 + $0xb8] sm:$0xff]  ;;  %v2847_v1 = vld [vmem:[%s13308_s3 + $0xa8] sm:$0xff]  ;;  %v9888_v62 = vld [vmem:[%s13307_s2] ss:$0 sm:$0xff] }
 0x2fe   : > { %v1946_v10 = vpop.f32.mrf.mxu0  ;;  %v2736_v45 = vsel %vm333_vm0, %v9742_v39, %v2447_v2  ;;  %v2066_v2 = vld [vmem:[#allocation2 + $0x100] sm:$0xff] }
 0x2ff   : > { %v1947_v8 = vadd.f32 %v1946_v10, %v1834_v4  ;;  %3086 = vmatpush.msrb.mxu2 %v2850_v29  ;;  %v13430_v29 = vld [vmem:[#allocation18_spill] sm:$0xff] }
 0x300   : > { %v1498_v35 = vadd.f32 %v9888_v62, %v13430_v29  ;;  %v2207_v29 = vrot.slane %v9671_v33, 7 }
 0x301   : > { %v1994_v38 = vmul.f32 %v1947_v8, %v1947_v8  ;;  %3087 = vmatpush.msrb.mxu2 %v2849_v59 }
 0x302   : > { %v9744_v25 = vld [vmem:[#allocation2 + $0x190] sm:$0xff] }
 0x303   : > { %2026 = vst.msk [vmem:[#allocation2 + $0x1a8] sm:$0xff] %vm333_vm0, %v1994_v38  ;;  %v6974_v53 = vpack.i.bf16 %v9690_v18, %v9744_v25  ;;  %v9800_v16 = vpop.f32.mrf.mxu1  ;;  %3088 = vmatpush.msrb.mxu2 %v2848_v43  ;;  %v2194_v38 = vrot.slane %v2066_v2, 7 }
 0x304   : > { %3012 = vmatmul.f32.gmra.mxu1 %v2736_v45  ;;  %3339 = vmatmul.f32.gmra.mxu0 %v2736_v45  ;;  %v2195_v45 = vrot.slane %v9591_v24, 7  ;;  %v2868_v24 = vld [vmem:[%s13308_s3 + $0x150] sm:$0xff] }
 0x305   : > { %6975 = vrot.lane.b32.xlu0 %v6974_v53, %s7733_s11  ;;  %v2449_v21 = vpop.permute.xlu1 %2448  ;;  %3089 = vmatpush.msrb.mxu2 %v2847_v1 }
 0x306   : > { %v2737_v18 = vsel %vm333_vm0, %v9757_v20, %v2449_v21  ;;  %3197 = vmatpush.msrb.mxu3 %v2868_v24 }
 0x307   : > { %3090 = vmatpush.msrb.mxu2 %v2846_v61 }
 0x308   : > { %3198 = vmatpush.msrb.mxu3 %v2867_v32 }
 0x30a   : > { %v9759_v14 = vld [vmem:[#allocation2 + $0x1a8] sm:$0xff] }
 0x30b   : > { %v6979_v27 = vpack.i.bf16 %v9710_v60, %v9759_v14  ;;  %v2185_v60 = vrot.slane %v9483_v19, 7  ;;  %v9823_v10 = vpop.f32.mrf.mxu1 }
 0x30c   : > { %3015 = vmatmul.f32.gmra.mxu1 %v2737_v18  ;;  %3342 = vmatmul.f32.gmra.mxu0 %v2737_v18  ;;  %v2845_v18 = vld [vmem:[%s13308_s3 + $0x98] sm:$0xff] }
 0x30d   : > { %6980 = vrot.lane.b32.xlu1 %v6979_v27, %s7733_s11  ;;  %6990 = vrot.lane.b32.xlu0 %v6989_v6, %s7733_s11  ;;  %v9778_v34 = vsel %vm591_vm1, %v2184_v23, %v2185_v60  ;;  %v9786_v36 = vsel %vm591_vm1, %v2185_v60, %v2187_v17  ;;  %v2457_v46 = vpop.permute.xlu2 %2456  ;;  %v2197_v27 = vrot.slane %v9604_v31, 7  ;;  %v2844_v6 = vld [vmem:[%s13308_s3 + $0x90] sm:$0xff]  ;;  %v2843_v23 = vld [vmem:[%s13308_s3 + $0x88] sm:$0xff]  ;;  %v2070_v17 = vld [vmem:[#allocation2 + $0x120] sm:$0xff] }
 0x30e   : > { %v2738_v11 = vsel %vm333_vm0, %v9778_v34, %v2451_v26  ;;  %v2741_v8 = vsel %vm333_vm0, %v9828_v63, %v2457_v46  ;;  %3091 = vmatpush.msrb.mxu2 %v2845_v18  ;;  %v9859_v60 = vld [vmem:[#allocation2 + $0x10] sm:$0xff]  ;;  %v2199_v3 = vrot.slane %v2070_v17, 7 }
 0x30f   : > { %v2283_v26 = vrot.slane %v9859_v60, 1 }
 0x310   : > { %3092 = vmatpush.msrb.mxu2 %v2844_v6  ;;  %v9880_v47 = vsel %vm591_vm1, %v2199_v3, %v2200_v56 }
 0x312   : > { %3093 = vmatpush.msrb.mxu2 %v2843_v23 }
 0x313   : > { %v9839_v57 = vpop.f32.mrf.mxu1 }
 0x314   : > { %3018 = vmatmul.f32.gmra.mxu1 %v2738_v11  ;;  %3345 = vmatmul.f32.gmra.mxu0 %v2738_v11  ;;  %v9863_v11 = vsel %vm591_vm1, %v2195_v45, %v2197_v27  ;;  %v2894_v27 = vld [vmem:[%s13308_s3 + $0x220] sm:$0xff] }
 0x315   : > { %v2453_v48 = vpop.permute.xlu0 %2452  ;;  %3429 = vmatpush.msra.mxu1 %v2894_v27 }
 0x316   : > { %v2739_v19 = vsel %vm333_vm0, %v9786_v36, %v2453_v48  ;;  %v2842_v48 = vld [vmem:[%s13308_s3 + $0x80] sm:$0xff] }
 0x317   : > { %3094 = vmatpush.msrb.mxu2 %v2842_v48 }
 0x31b   : > { %v9873_v37 = vpop.f32.mrf.mxu1 }
 0x31c   : > { %3021 = vmatmul.f32.gmra.mxu1 %v2739_v19  ;;  %3348 = vmatmul.f32.gmra.mxu0 %v2739_v19  ;;  %v2284_v19 = vsel %vm720_vm2, %v2282_v12, %v2283_v26  ;;  %v2037_v12 = vld [vmem:[#allocation2 + $0x18] sm:$0xff] }
 0x31d   : > { %v2455_v13 = vpop.permute.xlu1 %2454 }
 0x31e   : > { %v2740_v30 = vsel %vm333_vm0, %v9806_v44, %v2455_v13  ;;  %v2202_v13 = vrot.slane %v9639_v42, 7 }
 0x324   : > { %3024 = vmatmul.f32.gmra.mxu1 %v2740_v30  ;;  %3351 = vmatmul.f32.gmra.mxu0 %v2740_v30  ;;  %v9892_v30 = vpop.f32.mrf.mxu1 }
 0x327   : > { %v6941_v49 = vpop.permute.xlu2 %6940 }
 0x328   : > { %v6942_v4 = vunpack.i.l.bf16 %v6941_v49  ;;  %v6943_v41 = vunpack.i.h.bf16 %v6941_v49  ;;  %v1611_v49 = vadd.f32 %v9761_v50, %v1498_v35  ;;  %v2205_v50 = vrot.slane %v9652_v0, 7 }
 0x32a   : > { %v1259_v7 = vsel %vm333_vm0, %v9485_v9, %v6942_v4  ;;  %v9837_v9 = vsel %vm591_vm1, %v2194_v38, %v2195_v45  ;;  %v2744_v46 = vsel %vm333_vm0, %v9880_v47, %v6943_v41  ;;  %v9896_v4 = vsel %vm591_vm1, %v2200_v56, %v2202_v13  ;;  %v1949_v38 = vpop.f32.mrf.mxu0  ;;  %v1839_v41 = vpop.f32.mrf.mxu3 }
 0x32b   : > { %1737 = vmatmul.f32.gmra.mxu2 %v1259_v7  ;;  %v2285_v56 = vrot.slane %v2037_v12, 1  ;;  %v2041_v12 = vld [vmem:[#allocation2 + $0x38] sm:$0xff] }
 0x32c   : > { %3027 = vmatmul.f32.gmra.mxu1 %v2741_v8  ;;  %3354 = vmatmul.f32.gmra.mxu0 %v2741_v8  ;;  %v2074_v8 = vld [vmem:[#allocation2 + $0x140] sm:$0xff]  ;;  %v9905_v18 = vpop.f32.mrf.mxu1 }
 0x32d   : > { %v2459_v53 = vpop.permute.xlu0 %2458 }
 0x32e   : > { %v2742_v21 = vsel %vm333_vm0, %v9837_v9, %v2459_v53  ;;  %v2204_v53 = vrot.slane %v2074_v8, 7 }
 0x330   : > { %v9912_v0 = vsel %vm591_vm1, %v2204_v53, %v2205_v50 }
 0x334   : > { %3030 = vmatmul.f32.gmra.mxu1 %v2742_v21  ;;  %3357 = vmatmul.f32.gmra.mxu0 %v2742_v21  ;;  %v13431_v21 = vld [vmem:[#allocation19_spill] sm:$0xff] }
 0x335   : > { %v2461_v28 = vpop.permute.xlu1 %2460  ;;  %v1501_v61 = vadd.f32 %v9888_v62, %v13431_v21 }
 0x336   : > { %v2743_v31 = vsel %vm333_vm0, %v9863_v11, %v2461_v28 }
 0x337   : > { %v1614_v28 = vadd.f32 %v9782_v54, %v1501_v61 }
 0x33c   : > { %3033 = vmatmul.f32.gmra.mxu1 %v2743_v31  ;;  %3360 = vmatmul.f32.gmra.mxu0 %v2743_v31 }
 0x33f   : > { %v6956_v32 = vpop.permute.xlu2 %6955 }
 0x340   : > { %v6958_v13 = vunpack.i.h.bf16 %v6956_v32  ;;  %v6957_v35 = vunpack.i.l.bf16 %v6956_v32 }
 0x344   : > { %3036 = vmatmul.f32.gmra.mxu1 %v2744_v46  ;;  %3363 = vmatmul.f32.gmra.mxu0 %v2744_v46  ;;  %v1952_v46 = vpop.f32.mrf.mxu0 }
 0x347   : > { %v6946_v59 = vpop.permute.xlu0 %6945 }
 0x348   : > { %v6948_v22 = vunpack.i.h.bf16 %v6946_v59  ;;  %v6947_v43 = vunpack.i.l.bf16 %v6946_v59 }
 0x34a   : > { %v1723_v42 = vpop.f32.mrf.mxu2  ;;  %v1260_v7 = vsel %vm333_vm0, %v9488_v52, %v6947_v43  ;;  %v2745_v1 = vsel %vm333_vm0, %v9896_v4, %v6948_v22  ;;  %v2866_v22 = vld [vmem:[%s13308_s3 + $0x140] sm:$0xff]  ;;  %v9925_v43 = vpop.f32.mrf.mxu1 }
 0x34b   : > { %v1724_v2 = vadd.f32 %v1723_v42, %v1611_v49  ;;  %1740 = vmatmul.f32.gmra.mxu2 %v1260_v7  ;;  %3199 = vmatpush.msrb.mxu3 %v2866_v22  ;;  %13432 = vst [vmem:[#allocation12_spill] sm:$0xff] %v9925_v43 }
 0x34c   : > { %3039 = vmatmul.f32.gmra.mxu1 %v2745_v1  ;;  %3366 = vmatmul.f32.gmra.mxu0 %v2745_v1  ;;  %v2078_v1 = vld [vmem:[#allocation2 + $0x160] sm:$0xff] }
 0x34d   : > { %v1837_v45 = vadd.f32 %v1836_v58, %v1724_v2  ;;  %v9928_v58 = vsel %vm591_vm1, %v2205_v50, %v2207_v29  ;;  %v2209_v8 = vrot.slane %v2078_v1, 7  ;;  %v2210_v2 = vrot.slane %v9694_v40, 7  ;;  %v9943_v50 = vld [vmem:[#allocation2 + $0x28] sm:$0xff] }
 0x34e   : > { %v2747_v60 = vsel %vm333_vm0, %v9928_v58, %v6957_v35  ;;  %v2287_v21 = vrot.slane %v9943_v50, 1 }
 0x34f   : > { %v1950_v24 = vadd.f32 %v1949_v38, %v1837_v45  ;;  %v6951_v52 = vpop.permute.xlu1 %6950  ;;  %v9940_v38 = vld [vmem:[#allocation2 + $0x30] sm:$0xff] }
 0x350   : > { %v6953_v6 = vunpack.i.h.bf16 %v6951_v52  ;;  %v6952_v55 = vunpack.i.l.bf16 %v6951_v52  ;;  %v2288_v45 = vrot.slane %v9940_v38, 1  ;;  %v9950_v52 = vsel %vm591_vm1, %v2209_v8, %v2210_v2  ;;  %v2082_v8 = vld [vmem:[#allocation2 + $0x180] sm:$0xff] }
 0x351   : > { %v1995_v23 = vmul.f32 %v1950_v24, %v1950_v24 }
 0x352   : > { %v1726_v31 = vpop.f32.mrf.mxu2  ;;  %v2746_v17 = vsel %vm333_vm0, %v9912_v0, %v6952_v55  ;;  %v2758_v48 = vsel %vm333_vm0, %v2284_v19, %v6953_v6  ;;  %v2286_v19 = vsel %vm720_vm2, %v2283_v26, %v2285_v56  ;;  %v9953_v40 = vsel %vm720_vm2, %v2287_v21, %v2288_v45 }
 0x353   : > { %2027 = vst.msk [vmem:[#allocation2 + $0x1b0] sm:$0xff] %vm333_vm0, %v1995_v23  ;;  %v1727_v3 = vadd.f32 %v1726_v31, %v1614_v28  ;;  %3095 = vmatmul.f32.vlgmr.msrb.gmra.mxu2 %v2758_v48  ;;  %v2759_v42 = vsel %vm333_vm0, %v2286_v19, %v6958_v13  ;;  %v13433_v28 = vld [vmem:[#allocation20_spill] sm:$0xff]  ;;  %v9963_v31 = vpop.f32.mrf.mxu1  ;;  %v1842_v48 = vpop.f32.mrf.mxu3  ;;  %v2290_v56 = vrot.slane %v2041_v12, 1  ;;  %v2214_v12 = vrot.slane %v2082_v8, 7 }
 0x354   : > { %3042 = vmatmul.f32.gmra.mxu1 %v2746_v17  ;;  %3369 = vmatmul.f32.gmra.mxu0 %v2746_v17  ;;  %v1504_v23 = vadd.f32 %v9888_v62, %v13433_v28  ;;  %13434 = vst [vmem:[#allocation4_spill] sm:$0xff] %v9963_v31  ;;  %v2215_v28 = vrot.slane %v9727_v5, 7  ;;  %v2045_v5 = vld [vmem:[#allocation2 + $0x58] sm:$0xff]  ;;  %v539_v31 = vld [vmem:[#allocation2 + $0x220] sm:$0xff] }
 0x355   : > { %v1840_v54 = vadd.f32 %v1839_v41, %v1727_v3  ;;  %v2212_v3 = vrot.slane %v9717_v51, 7  ;;  %v1955_v41 = vpop.f32.mrf.mxu0  ;;  %v850_v43 = vrot.slane %v539_v31, 7 }
 0x356   : > { %v1617_v32 = vadd.f32 %v9800_v16, %v1504_v23 }
 0x357   : > { %v1953_v59 = vadd.f32 %v1952_v46, %v1840_v54  ;;  %v9971_v19 = vsel %vm591_vm1, %v2210_v2, %v2212_v3  ;;  %v2864_v2 = vld [vmem:[%s13308_s3 + $0x130] sm:$0xff] }
 0x359   : > { %v1996_v49 = vmul.f32 %v1953_v59, %v1953_v59 }
 0x35a   : > { %v9931_v7 = vld [vmem:[#allocation2 + $0x1b0] sm:$0xff] }
 0x35b   : > { %2028 = vst.msk [vmem:[#allocation2 + $0x1c8] sm:$0xff] %vm333_vm0, %v1996_v49  ;;  %3098 = vmatmul.f32.gmra.mxu2 %v2759_v42  ;;  %v6984_v26 = vpack.i.bf16 %v9931_v7, %v9542_v15  ;;  %v2865_v15 = vld [vmem:[%s13308_s3 + $0x138] sm:$0xff]  ;;  %v13435_v42 = vld [vmem:[#allocation21_spill] sm:$0xff] }
 0x35c   : > { %3045 = vmatmul.f32.gmra.mxu1 %v2747_v60  ;;  %3372 = vmatmul.f32.gmra.mxu0 %v2747_v60  ;;  %v2893_v49 = vld [vmem:[%s13308_s3 + $0x218] sm:$0xff]  ;;  %v1507_v1 = vadd.f32 %v9888_v62, %v13435_v42  ;;  %v6971_v60 = vpop.permute.xlu2 %6970 }
 0x35d   : > { %6985 = vrot.lane.b32.xlu2 %v6984_v26, %s7733_s11  ;;  %3200 = vmatpush.msrb.mxu3 %v2865_v15  ;;  %v9991_v15 = vld [vmem:[#allocation2 + $0x50] sm:$0xff]  ;;  %v6972_v23 = vunpack.i.l.bf16 %v6971_v60 }
 0x35e   : > { %3430 = vmatpush.msra.mxu1 %v2893_v49  ;;  %v2295_v49 = vrot.slane %v2045_v5, 1 }
 0x35f   : > { %v6961_v53 = vpop.permute.xlu0 %6960  ;;  %3201 = vmatpush.msrb.mxu3 %v2864_v2 }
 0x360   : > { %v6963_v61 = vunpack.i.h.bf16 %v6961_v53  ;;  %v6962_v24 = vunpack.i.l.bf16 %v6961_v53  ;;  %v9989_v53 = vpop.f32.mrf.mxu1 }
 0x361   : > { %13436 = vst [vmem:[#allocation14_spill] sm:$0xff] %v9989_v53  ;;  %v2860_v53 = vld [vmem:[%s13308_s3 + $0x110] sm:$0xff] }
 0x362   : > { %v2748_v27 = vsel %vm333_vm0, %v9950_v52, %v6962_v24  ;;  %v2760_v6 = vsel %vm333_vm0, %v9953_v40, %v6963_v61  ;;  %v9959_v55 = vld [vmem:[#allocation2 + $0x1c8] sm:$0xff]  ;;  %v2293_v61 = vrot.slane %v9991_v15, 1  ;;  %v6973_v24 = vunpack.i.h.bf16 %v6971_v60 }
 0x363   : > { %3101 = vmatmul.f32.gmra.mxu2 %v2760_v6  ;;  %v6994_v17 = vpack.i.bf16 %v9742_v39, %v9959_v55  ;;  %v9974_v39 = vsel %vm720_vm2, %v2288_v45, %v2290_v56  ;;  %v1620_v45 = vadd.f32 %v9823_v10, %v1507_v1  ;;  %v1845_v6 = vpop.f32.mrf.mxu3 }
 0x364   : > { %3048 = vmatmul.f32.gmra.mxu1 %v2748_v27  ;;  %3375 = vmatmul.f32.gmra.mxu0 %v2748_v27 }
 0x365   : > { %6995 = vrot.lane.b32.xlu1 %v6994_v17, %s7733_s11 }
 0x366   : > { %v1729_v54 = vpop.f32.mrf.mxu2 }
 0x367   : > { %v1730_v46 = vadd.f32 %v1729_v54, %v1617_v32  ;;  %v6966_v13 = vpop.permute.xlu1 %6965  ;;  %v1958_v32 = vpop.f32.mrf.mxu0 }
 0x368   : > { %v6968_v29 = vunpack.i.h.bf16 %v6966_v13  ;;  %v6967_v35 = vunpack.i.l.bf16 %v6966_v13  ;;  %v10018_v2 = vpop.f32.mrf.mxu1 }
 0x369   : > { %v1843_v59 = vadd.f32 %v1842_v48, %v1730_v46  ;;  %v9996_v48 = vld [vmem:[#allocation2 + $0x48] sm:$0xff]  ;;  %v13437_v46 = vld [vmem:[#allocation22_spill] sm:$0xff]  ;;  %13439 = vst [vmem:[#allocation6_spill] sm:$0xff] %v10018_v2 }
 0x36a   : > { %v2749_v16 = vsel %vm333_vm0, %v9971_v19, %v6967_v35  ;;  %v2761_v22 = vsel %vm333_vm0, %v9974_v39, %v6968_v29  ;;  %v2292_v10 = vrot.slane %v9996_v48, 1  ;;  %v1510_v13 = vadd.f32 %v9888_v62, %v13437_v46 }
 0x36b   : > { %v1956_v26 = vadd.f32 %v1955_v41, %v1843_v59  ;;  %3104 = vmatmul.f32.gmra.mxu2 %v2761_v22  ;;  %v10003_v41 = vsel %vm591_vm1, %v2214_v12, %v2215_v28  ;;  %v2217_v22 = vrot.slane %v9744_v25, 7 }
 0x36c   : > { %3051 = vmatmul.f32.gmra.mxu1 %v2749_v16  ;;  %3378 = vmatmul.f32.gmra.mxu0 %v2749_v16  ;;  %v10000_v56 = vsel %vm720_vm2, %v2292_v10, %v2293_v61  ;;  %v2750_v35 = vsel %vm333_vm0, %v10003_v41, %v6972_v23  ;;  %v1623_v59 = vadd.f32 %v9839_v57, %v1510_v13  ;;  %v2086_v23 = vld [vmem:[#allocation2 + $0x1a0] sm:$0xff] }
 0x36d   : > { %v1997_v21 = vmul.f32 %v1956_v26, %v1956_v26  ;;  %v2762_v54 = vsel %vm333_vm0, %v10000_v56, %v6973_v24  ;;  %v10022_v25 = vsel %vm591_vm1, %v2215_v28, %v2217_v22 }
 0x36e   : > { %v1732_v27 = vpop.f32.mrf.mxu2 }
 0x36f   : > { %2029 = vst.msk [vmem:[#allocation2 + $0x1d0] sm:$0xff] %vm333_vm0, %v1997_v21  ;;  %v1733_v17 = vadd.f32 %v1732_v27, %v1620_v45  ;;  %v10025_v27 = vsel %vm720_vm2, %v2293_v61, %v2295_v49  ;;  %v2219_v61 = vrot.slane %v2086_v23, 7 }
 0x371   : > { %v1846_v3 = vadd.f32 %v1845_v6, %v1733_v17  ;;  %v1961_v6 = vpop.f32.mrf.mxu0  ;;  %v2863_v17 = vld [vmem:[%s13308_s3 + $0x128] sm:$0xff] }
 0x372   : > { %3202 = vmatpush.msrb.mxu3 %v2863_v17  ;;  %v10086_v17 = vld [vmem:[#allocation2 + $0x90] sm:$0xff] }
 0x373   : > { %v1959_v29 = vadd.f32 %v1958_v32, %v1846_v3  ;;  %3107 = vmatmul.f32.gmra.mxu2 %v2762_v54  ;;  %v13343_v32 = vrot.slane %v9759_v14, 7  ;;  %v10035_v3 = vld [vmem:[#allocation2 + $0x70] sm:$0xff] }
 0x374   : > { %3054 = vmatmul.f32.gmra.mxu1 %v2750_v35  ;;  %3381 = vmatmul.f32.gmra.mxu0 %v2750_v35  ;;  %v2298_v54 = vrot.slane %v10035_v3, 1 }
 0x375   : > { %v1998_v16 = vmul.f32 %v1959_v29, %v1959_v29  ;;  %v10043_v29 = vld [vmem:[#allocation2 + $0x68] sm:$0xff]  ;;  %v10052_v22 = vsel %vm591_vm1, %v2219_v61, %v13343_v32 }
 0x376   : > { %v1735_v42 = vpop.f32.mrf.mxu2  ;;  %v10013_v1 = vld [vmem:[#allocation2 + $0x1d0] sm:$0xff]  ;;  %v1848_v45 = vpop.f32.mrf.mxu3  ;;  %v2297_v35 = vrot.slane %v10043_v29, 1 }
 0x377   : > { %13438 = vst [vmem:[#allocation5_spill] sm:$0xff] %v10013_v1  ;;  %v1736_v60 = vadd.f32 %v1735_v42, %v1623_v59  ;;  %v6976_v26 = vpop.permute.xlu0 %6975  ;;  %v6999_v8 = vpack.i.bf16 %v9757_v20, %v10013_v1 }
 0x378   : > { %2030 = vst.msk [vmem:[#allocation2 + $0x1e8] sm:$0xff] %vm333_vm0, %v1998_v16  ;;  %v6978_v21 = vunpack.i.h.bf16 %v6976_v26  ;;  %v6977_v24 = vunpack.i.l.bf16 %v6976_v26  ;;  %v10055_v49 = vsel %vm720_vm2, %v2297_v35, %v2298_v54  ;;  %v2049_v26 = vld [vmem:[#allocation2 + $0x78] sm:$0xff] }
 0x379   : > { %v1849_v57 = vadd.f32 %v1848_v45, %v1736_v60  ;;  %7000 = vrot.lane.b32.xlu2 %v6999_v8, %s7733_s11  ;;  %v10065_v8 = vpop.f32.mrf.mxu0  ;;  %v2300_v45 = vrot.slane %v2049_v26, 1  ;;  %v7029_v35 = vpack.i.bf16 %v9863_v11, %v10055_v49 }
 0x37a   : > { %v2751_v12 = vsel %vm333_vm0, %v10022_v25, %v6977_v24  ;;  %v2763_v20 = vsel %vm333_vm0, %v10025_v27, %v6978_v21 }
 0x37b   : > { %v1962_v10 = vadd.f32 %v1961_v6, %v1849_v57  ;;  %3110 = vmatmul.f32.gmra.mxu2 %v2763_v20  ;;  %v7024_v57 = vpack.i.bf16 %v9837_v9, %v10025_v27  ;;  %v10079_v20 = vsel %vm720_vm2, %v2298_v54, %v2300_v45  ;;  %v7019_v54 = vpack.i.bf16 %v9828_v63, %v10000_v56 }
 0x37c   : > { %3057 = vmatmul.f32.gmra.mxu1 %v2751_v12  ;;  %3384 = vmatmul.f32.gmra.mxu0 %v2751_v12  ;;  %v7014_v12 = vpack.i.bf16 %v9806_v44, %v9974_v39  ;;  %v2892_v44 = vld [vmem:[%s13308_s3 + $0x210] sm:$0xff]  ;;  %v10092_v39 = vld [vmem:[#allocation2 + $0x88] sm:$0xff]  ;;  %v7034_v45 = vpack.i.bf16 %v9880_v47, %v10079_v20 }
 0x37d   : > { %v1999_v28 = vmul.f32 %v1962_v10, %v1962_v10  ;;  %3431 = vmatpush.msra.mxu1 %v2892_v44  ;;  %v2302_v10 = vrot.slane %v10092_v39, 1  ;;  %v10139_v44 = vld [vmem:[#allocation2 + $0xa8] sm:$0xff] }
 0x37f   : > { %v10038_v5 = vld [vmem:[#allocation2 + $0x1e8] sm:$0xff]  ;;  %2031 = vst.msk [vmem:[#allocation2 + $0x1f0] sm:$0xff] %vm333_vm0, %v1999_v28  ;;  %v6981_v46 = vpop.permute.xlu1 %6980 }
 0x380   : > { %v7004_v13 = vpack.i.bf16 %v9778_v34, %v10038_v5  ;;  %v6983_v59 = vunpack.i.h.bf16 %v6981_v46  ;;  %v6982_v16 = vunpack.i.l.bf16 %v6981_v46  ;;  %v10057_v34 = vpop.f32.mrf.mxu1  ;;  %v2057_v46 = vld [vmem:[#allocation2 + $0xb8] sm:$0xff] }
 0x381   : > { %2544 = vrot.lane.b32.xlu2 %v9786_v36, %s7733_s11  ;;  %13440 = vst [vmem:[#allocation8_spill] sm:$0xff] %v10057_v34  ;;  %v10063_v36 = vpop.permute.xlu0 %6990  ;;  %v13449_v34 = vrot.slane %v9671_v33, 1 }
 0x382   : > { %7005 = vrot.lane.b32.xlu0 %v7004_v13, %s7733_s11  ;;  %v2752_v42 = vsel %vm333_vm0, %v10052_v22, %v6982_v16  ;;  %v2764_v60 = vsel %vm333_vm0, %v10055_v49, %v6983_v59  ;;  %v6992_v21 = vunpack.i.l.bf16 %v10063_v36  ;;  %v2862_v13 = vld [vmem:[%s13308_s3 + $0x120] sm:$0xff]  ;;  %v2053_v59 = vld [vmem:[#allocation2 + $0x98] sm:$0xff]  ;;  %v2310_v16 = vrot.slane %v2057_v46, 1 }
 0x383   : > { %3113 = vmatmul.f32.gmra.mxu2 %v2764_v60  ;;  %3203 = vmatpush.msrb.mxu3 %v2862_v13  ;;  %v2090_v46 = vld [vmem:[#allocation2 + $0x1c0] sm:$0xff] }
 0x384   : > { %3060 = vmatmul.f32.gmra.mxu1 %v2752_v42  ;;  %3387 = vmatmul.f32.gmra.mxu0 %v2752_v42  ;;  %v2765_v9 = vsel %vm333_vm0, %v10079_v20, %v6992_v21  ;;  %v2305_v42 = vrot.slane %v2053_v59, 1  ;;  %v2224_v32 = vrot.slane %v2090_v46, 7 }
 0x386   : > { %v10068_v24 = vld [vmem:[#allocation2 + $0x1f0] sm:$0xff] }
 0x387   : > { %13441 = vst [vmem:[#allocation7_spill] sm:$0xff] %v10068_v24  ;;  %v7009_v6 = vpack.i.bf16 %v10068_v24, %v9953_v40  ;;  %v2303_v40 = vrot.slane %v10086_v17, 1 }
 0x388   : > { %v10081_v23 = vpop.f32.mrf.mxu1 }
 0x389   : > { %7025 = vrot.lane.b32.xlu2 %v7024_v57, %s7733_s11  ;;  %7010 = vrot.lane.b32.xlu1 %v7009_v6, %s7733_s11  ;;  %13442 = vst [vmem:[#allocation9_spill] sm:$0xff] %v10081_v23  ;;  %v10096_v28 = vsel %vm720_vm2, %v2302_v10, %v2303_v40  ;;  %v10123_v21 = vsel %vm720_vm2, %v2303_v40, %v2305_v42  ;;  %v10130_v6 = vld [vmem:[#allocation2 + $0xf0] sm:$0xff]  ;;  %v2861_v10 = vld [vmem:[%s13308_s3 + $0x118] sm:$0xff]  ;;  %v10221_v23 = vld [vmem:[#allocation2 + $0x128] sm:$0xff] }
 0x38a   : > { %7015 = vrot.lane.b32.xlu0 %v7014_v12, %s7733_s11  ;;  %v7039_v61 = vpack.i.bf16 %v9896_v4, %v10096_v28  ;;  %v10110_v4 = vld [vmem:[#allocation2 + $0xb0] sm:$0xff]  ;;  %v7044_v57 = vpack.i.bf16 %v9912_v0, %v10123_v21  ;;  %v2318_v12 = vrot.slane %v10130_v6, 1  ;;  %v2307_v0 = vrot.slane %v10139_v44, 1  ;;  %3204 = vmatpush.msrb.mxu3 %v2861_v10 }
 0x38b   : > { %3116 = vmatmul.f32.gmra.mxu2 %v2765_v9  ;;  %v2308_v63 = vrot.slane %v10110_v4, 1  ;;  %v10136_v9 = vld [vmem:[#allocation2 + $0xe8] sm:$0xff] }
 0x38c   : > { %v2317_v40 = vrot.slane %v10136_v9, 1  ;;  %3205 = vmatpush.msrb.mxu3 %v2860_v53  ;;  %v7634_v53 = vld [vmem:[#allocation2 + $0x228] sm:$0xff] }
 0x38d   : > { %v10116_v26 = vsel %vm720_vm2, %v2308_v63, %v2310_v16  ;;  %v10154_v59 = vsel %vm720_vm2, %v2307_v0, %v2308_v63 }
 0x38e   : > { %v7054_v11 = vpack.i.bf16 %v9950_v52, %v10116_v26  ;;  %v10133_v52 = vld [vmem:[#allocation2 + $0xd0] sm:$0xff]  ;;  %v7049_v42 = vpack.i.bf16 %v9928_v58, %v10154_v59 }
 0x38f   : > { %v2313_v47 = vrot.slane %v10133_v52, 1 }
 0x390   : > { %v10113_v60 = vpop.f32.mrf.mxu1 }
 0x391   : > { %7040 = vrot.lane.b32.xlu2 %v7039_v61, %s7733_s11  ;;  %7020 = vrot.lane.b32.xlu1 %v7019_v54, %s7733_s11  ;;  %13443 = vst [vmem:[#allocation11_spill] sm:$0xff] %v10113_v60  ;;  %v10145_v61 = vld [vmem:[#allocation2 + $0xc8] sm:$0xff] }
 0x392   : > { %7030 = vrot.lane.b32.xlu0 %v7029_v35, %s7733_s11  ;;  %v2312_v54 = vrot.slane %v10145_v61, 1  ;;  %v10151_v35 = vsel %vm720_vm2, %v2317_v40, %v2318_v12  ;;  %v2225_v40 = vrot.slane %v9959_v55, 7 }
 0x393   : > { %v7069_v16 = vpack.i.bf16 %v10022_v25, %v10151_v35  ;;  %v10169_v25 = vld [vmem:[#allocation2 + $0x110] sm:$0xff] }
 0x394   : > { %v2323_v58 = vrot.slane %v10169_v25, 1  ;;  %v10173_v60 = vsel %vm591_vm1, %v2224_v32, %v2225_v40 }
 0x398   : > { %v10148_v13 = vpop.f32.mrf.mxu1 }
 0x399   : > { %7055 = vrot.lane.b32.xlu2 %v7054_v11, %s7733_s11  ;;  %7035 = vrot.lane.b32.xlu1 %v7034_v45, %s7733_s11  ;;  %13444 = vst [vmem:[#allocation10_spill] sm:$0xff] %v10148_v13  ;;  %v10161_v11 = vsel %vm720_vm2, %v2312_v54, %v2313_v47  ;;  %v2069_v45 = vld [vmem:[#allocation2 + $0x118] sm:$0xff] }
 0x39a   : > { %7045 = vrot.lane.b32.xlu0 %v7044_v57, %s7733_s11  ;;  %v2061_v57 = vld [vmem:[#allocation2 + $0xd8] sm:$0xff]  ;;  %v7059_v10 = vpack.i.bf16 %v9971_v19, %v10161_v11  ;;  %v2325_v63 = vrot.slane %v2069_v45, 1 }
 0x39b   : > { %v2065_v13 = vld [vmem:[#allocation2 + $0xf8] sm:$0xff]  ;;  %v2315_v0 = vrot.slane %v2061_v57, 1  ;;  %v2222_v57 = vrot.slane %v9931_v7, 7 }
 0x39c   : > { %v2320_v54 = vrot.slane %v2065_v13, 1  ;;  %v10176_v19 = vsel %vm720_vm2, %v2323_v58, %v2325_v63  ;;  %v2232_v13 = vrot.slane %v10068_v24, 7  ;;  %v2094_v24 = vld [vmem:[#allocation2 + $0x1e0] sm:$0xff] }
 0x39d   : > { %v10179_v55 = vsel %vm720_vm2, %v2313_v47, %v2315_v0  ;;  %v7084_v46 = vpack.i.bf16 %v10173_v60, %v10176_v19  ;;  %v2227_v47 = vrot.slane %v10013_v1, 7  ;;  %v10254_v1 = vld [vmem:[#allocation2 + $0x8] sm:$0xff] }
 0x3a0   : > { %v10188_v45 = vpop.f32.mrf.mxu1 }
 0x3a1   : > { %7070 = vrot.lane.b32.xlu2 %v7069_v16, %s7733_s11  ;;  %7050 = vrot.lane.b32.xlu1 %v7049_v42, %s7733_s11  ;;  %v7064_v16 = vpack.i.bf16 %v10003_v41, %v10179_v55  ;;  %v10186_v42 = vsel %vm720_vm2, %v2318_v12, %v2320_v54  ;;  %13445 = vst [vmem:[#allocation15_spill] sm:$0xff] %v10188_v45  ;;  %v2230_v41 = vrot.slane %v10038_v5, 7  ;;  %v10209_v54 = vld [vmem:[#allocation2 + $0x148] sm:$0xff]  ;;  %v13448_v5 = vrot.slane %v9759_v14, 7 }
 0x3a2   : > { %7060 = vrot.lane.b32.xlu0 %v7059_v10, %s7733_s11  ;;  %v7074_v32 = vpack.i.bf16 %v10052_v22, %v10186_v42  ;;  %v2891_v22 = vld [vmem:[%s13308_s3 + $0x208] sm:$0xff]  ;;  %v10203_v10 = vld [vmem:[#allocation2 + $0x130] sm:$0xff]  ;;  %13447 = vst [vmem:[#allocation16_spill] sm:$0xff] %v10209_v54  ;;  %v10219_v45 = vsel %vm591_vm1, %v2225_v40, %v2227_v47 }
 0x3a3   : > { %13446 = vst [vmem:[#allocation3_spill] sm:$0xff] %v10203_v10  ;;  %v2328_v63 = vrot.slane %v10203_v10, 1  ;;  %3432 = vmatpush.msra.mxu1 %v2891_v22  ;;  %v10207_v0 = vsel %vm591_vm1, %v2230_v41, %v2232_v13  ;;  %v2327_v13 = vrot.slane %v10221_v23, 1  ;;  %v2081_v22 = vld [vmem:[#allocation2 + $0x178] sm:$0xff] }
 0x3a5   : > { %v10236_v47 = vsel %vm720_vm2, %v2327_v13, %v2328_v63 }
 0x3a8   : > { %v10246_v13 = vpop.f32.mrf.mxu1 }
 0x3a9   : > { %7085 = vrot.lane.b32.xlu2 %v7084_v46, %s7733_s11  ;;  %7065 = vrot.lane.b32.xlu1 %v7064_v16, %s7733_s11  ;;  %v2332_v46 = vrot.slane %v10209_v54, 1  ;;  %v2223_v16 = vsel %vm591_vm1, %v13448_v5, %v2222_v57  ;;  %v2073_v5 = vld [vmem:[#allocation2 + $0x138] sm:$0xff]  ;;  %13450 = vst [vmem:[#allocation13_spill] sm:$0xff] %v10246_v13 }
 0x3aa   : > { %7075 = vrot.lane.b32.xlu0 %v7074_v32, %s7733_s11  ;;  %v10215_v32 = vld [vmem:[#allocation2 + $0x108] sm:$0xff]  ;;  %v2330_v54 = vrot.slane %v2073_v5, 1 }
 0x3ab   : > { %v2322_v12 = vrot.slane %v10215_v32, 1  ;;  %v10227_v2 = vsel %vm720_vm2, %v2332_v46, %v13449_v34  ;;  %v7089_v34 = vpack.i.bf16 %v10219_v45, %v10236_v47  ;;  %v13348_v46 = vrot.slane %v9717_v51, 1 }
 0x3ac   : > { %v7099_v57 = vpack.i.bf16 %v10207_v0, %v10227_v2 }
 0x3ad   : > { %v10230_v14 = vsel %vm720_vm2, %v2322_v12, %v2323_v58  ;;  %v2340_v58 = vrot.slane %v2081_v22, 1  ;;  %v2229_v12 = vrot.slane %v2094_v24, 7  ;;  %v851_v22 = vrot.slane %v7634_v53, 7  ;;  %v10268_v53 = vpop.f32.mrf.mxu0 }
 0x3ae   : > { %v7079_v40 = vpack.i.bf16 %v2223_v16, %v10230_v14 }
 0x3af   : > { %v10252_v10 = vsel %vm720_vm2, %v13348_v46, %v2340_v58  ;;  %v2231_v24 = vsel %vm591_vm1, %v2229_v12, %v2230_v41  ;;  %v852_v5 = vsel %vm591_vm1, %v850_v43, %v851_v22  ;;  %v6993_v43 = vunpack.i.h.bf16 %v10063_v36  ;;  %v2858_v36 = vld [vmem:[%s13308_s3 + $0x100] sm:$0xff] }
 0x3b0   : > { %v10270_v46 = vpop.f32.mrf.mxu1 }
 0x3b1   : > { %7100 = vrot.lane.b32.xlu2 %v7099_v57, %s7733_s11  ;;  %7080 = vrot.lane.b32.xlu1 %v7079_v40, %s7733_s11  ;;  %v10258_v57 = vsel %vm720_vm2, %v2328_v63, %v2330_v54  ;;  %v7635_v63 = vld [vmem:[#allocation2 + $0x230] sm:$0xff] }
 0x3b2   : > { %7090 = vrot.lane.b32.xlu0 %v7089_v34, %s7733_s11  ;;  %v7114_v34 = vpack.i.bf16 %v10254_v1, %v10252_v10  ;;  %v7094_v31 = vpack.i.bf16 %v2231_v24, %v10258_v57  ;;  %v853_v54 = vrot.slane %v7635_v63, 7 }
 0x3b7   : > { %v6986_v40 = vpop.permute.xlu2 %6985 }
 0x3b8   : > { %v6988_v13 = vunpack.i.h.bf16 %v6986_v40  ;;  %v6987_v58 = vunpack.i.l.bf16 %v6986_v40  ;;  %v854_v40 = vsel %vm591_vm1, %v851_v22, %v853_v54 }
 0x3b9   : > { %7115 = vrot.lane.b32.xlu2 %v7114_v34, %s7733_s11  ;;  %7095 = vrot.lane.b32.xlu1 %v7094_v31, %s7733_s11  ;;  %v2859_v34 = vld [vmem:[%s13308_s3 + $0x108] sm:$0xff]  ;;  %v2890_v31 = vld [vmem:[%s13308_s3 + $0x200] sm:$0xff] }
 0x3ba   : > { %v1263_v41 = vsel %vm333_vm0, %v852_v5, %v6987_v58  ;;  %v2753_v12 = vsel %vm333_vm0, %v2223_v16, %v6988_v13  ;;  %3206 = vmatpush.msrb.mxu3 %v2859_v34  ;;  %v1264_v16 = vsel %vm333_vm0, %v854_v40, %v6993_v43  ;;  %v10278_v13 = vpop.f32.mrf.mxu1  ;;  %3433 = vmatpush.msra.mxu1 %v2890_v31 }
 0x3bb   : > { %1850 = vmatmul.f32.gmra.mxu3 %v1263_v41  ;;  %3063 = vmatmul.f32.gmra.mxu1 %v2753_v12 }
 0x3bc   : > { %3390 = vmatmul.f32.gmra.mxu0 %v2753_v12  ;;  %3207 = vmatpush.msrb.mxu3 %v2858_v36  ;;  %v10288_v12 = vpop.f32.mrf.mxu0 }
 0x3c2   : > { %v10286_v22 = vpop.f32.mrf.mxu1 }
 0x3c3   : > { %1853 = vmatmul.f32.gmra.mxu3 %v1264_v16 }
 0x3ca   : > { %v10290_v63 = vpop.f32.mrf.mxu1 }
 0x3cb   : > { %13451 = vst [vmem:[#allocation17_spill] sm:$0xff] %v10290_v63 }
 0x3d3   : > { %v7001_v40 = vpop.permute.xlu2 %7000 }
 0x3d4   : > { %v7003_v34 = vunpack.i.h.bf16 %v7001_v40  ;;  %v7002_v16 = vunpack.i.l.bf16 %v7001_v40 }
 0x3d6   : > { %v2755_v31 = vsel %vm333_vm0, %v10219_v45, %v7002_v16  ;;  %v2767_v36 = vsel %vm333_vm0, %v10123_v21, %v7003_v34 }
 0x3d7   : > { %v6996_v5 = vpop.permute.xlu1 %6995 }
 0x3d8   : > { %v6998_v58 = vunpack.i.h.bf16 %v6996_v5  ;;  %v6997_v41 = vunpack.i.l.bf16 %v6996_v5  ;;  %v10300_v5 = vpop.f32.mrf.mxu0 }
 0x3da   : > { %v2754_v54 = vsel %vm333_vm0, %v10173_v60, %v6997_v41  ;;  %v2766_v43 = vsel %vm333_vm0, %v10096_v28, %v6998_v58  ;;  %v10302_v60 = vpop.f32.mrf.mxu1 }
 0x3db   : > { %3066 = vmatmul.f32.gmra.mxu1 %v2754_v54  ;;  %3119 = vmatmul.f32.gmra.mxu2 %v2766_v43  ;;  %13452 = vst [vmem:[#allocation18_spill] sm:$0xff] %v10302_v60  ;;  %v2545_v16 = vpop.permute.xlu2 %2544 }
 0x3dc   : > { %3393 = vmatmul.f32.gmra.mxu0 %v2754_v54 }
 0x3e0   : > { %v10306_v63 = vpop.f32.mrf.mxu0 }
 0x3e2   : > { %v10304_v58 = vpop.f32.mrf.mxu1 }
 0x3e3   : > { %3069 = vmatmul.f32.gmra.mxu1 %v2755_v31  ;;  %3122 = vmatmul.f32.gmra.mxu2 %v2767_v36  ;;  %13453 = vst [vmem:[#allocation19_spill] sm:$0xff] %v10304_v58 }
 0x3e4   : > { %3396 = vmatmul.f32.gmra.mxu0 %v2755_v31 }
 0x3ea   : > { %v10311_v34 = vpop.f32.mrf.mxu1 }
 0x3f4   : > { %v7006_v41 = vpop.permute.xlu0 %7005 }
 0x3f5   : > { %v7008_v43 = vunpack.i.h.bf16 %v7006_v41  ;;  %v7007_v54 = vunpack.i.l.bf16 %v7006_v41  ;;  %v2769_v41 = vsel %vm333_vm0, %v10116_v26, %v2545_v16 }
 0x3f7   : > { %v2756_v40 = vsel %vm333_vm0, %v2231_v24, %v7007_v54  ;;  %v2768_v45 = vsel %vm333_vm0, %v10154_v59, %v7008_v43  ;;  %v10319_v43 = vpop.f32.mrf.mxu0 }
 0x3f8   : > { %3072 = vmatmul.f32.gmra.mxu1 %v2756_v40  ;;  %3125 = vmatmul.f32.gmra.mxu2 %v2768_v45 }
 0x3f9   : > { %3399 = vmatmul.f32.gmra.mxu0 %v2756_v40  ;;  %v10321_v40 = vpop.f32.mrf.mxu1 }
 0x3fb   : > { %v7011_v36 = vpop.permute.xlu1 %7010 }
 0x3fc   : > { %v7013_v31 = vunpack.i.h.bf16 %v7011_v36  ;;  %v7012_v60 = vunpack.i.l.bf16 %v7011_v36  ;;  %v7016_v54 = vpop.permute.xlu0 %7015 }
 0x3fd   : > { %v7018_v45 = vunpack.i.h.bf16 %v7016_v54  ;;  %v7017_v36 = vunpack.i.l.bf16 %v7016_v54 }
 0x3fe   : > { %v2757_v58 = vsel %vm333_vm0, %v10207_v0, %v7013_v31  ;;  %v2790_v24 = vsel %vm333_vm0, %v9943_v50, %v7012_v60 }
 0x3ff   : > { %3208 = vmatmul.f32.vlgmr.msrb.gmra.mxu3 %v2790_v24  ;;  %v2770_v0 = vsel %vm333_vm0, %v10161_v11, %v7018_v45  ;;  %v2791_v16 = vsel %vm333_vm0, %v9940_v38, %v7017_v36  ;;  %v7026_v24 = vpop.permute.xlu2 %7025 }
 0x400   : > { %3075 = vmatmul.f32.gmra.mxu1 %v2757_v58  ;;  %3128 = vmatmul.f32.gmra.mxu2 %v2769_v41  ;;  %v7028_v38 = vunpack.i.h.bf16 %v7026_v24  ;;  %v7027_v45 = vunpack.i.l.bf16 %v7026_v24 }
 0x401   : > { %3402 = vmatmul.f32.gmra.mxu0 %v2757_v58  ;;  %v10329_v41 = vpop.f32.mrf.mxu1 }
 0x402   : > { %v2772_v36 = vsel %vm333_vm0, %v10151_v35, %v7028_v38 }
 0x403   : > { %v7021_v31 = vpop.permute.xlu1 %7020 }
 0x404   : > { %v7023_v50 = vunpack.i.h.bf16 %v7021_v31  ;;  %v7022_v60 = vunpack.i.l.bf16 %v7021_v31  ;;  %v2793_v31 = vsel %vm333_vm0, %v9991_v15, %v7027_v45 }
 0x406   : > { %v2771_v58 = vsel %vm333_vm0, %v10179_v55, %v7023_v50  ;;  %v2792_v54 = vsel %vm333_vm0, %v9996_v48, %v7022_v60 }
 0x407   : > { %3211 = vmatmul.f32.gmra.mxu3 %v2791_v16 }
 0x408   : > { %3131 = vmatmul.f32.gmra.mxu2 %v2770_v0  ;;  %6749 = vmatmul.msk.f32.vlgmr.msra.gmra.mxu1 %vm333_vm0, %v10000_v56  ;;  %v7031_v0 = vpop.permute.xlu0 %7030 }
 0x409   : > { %v10337_v56 = vpop.f32.mrf.mxu1  ;;  %v7033_v48 = vunpack.i.h.bf16 %v7031_v0  ;;  %v7032_v16 = vunpack.i.l.bf16 %v7031_v0 }
 0x40b   : > { %v7036_v50 = vpop.permute.xlu1 %7035  ;;  %v2794_v60 = vsel %vm333_vm0, %v10043_v29, %v7032_v16 }
 0x40c   : > { %v7038_v15 = vunpack.i.h.bf16 %v7036_v50  ;;  %v7037_v24 = vunpack.i.l.bf16 %v7036_v50 }
 0x40e   : > { %v2795_v38 = vsel %vm333_vm0, %v10035_v3, %v7037_v24 }
 0x40f   : > { %3214 = vmatmul.f32.gmra.mxu3 %v2792_v54  ;;  %v7041_v54 = vpop.permute.xlu2 %7040 }
 0x410   : > { %3134 = vmatmul.f32.gmra.mxu2 %v2771_v58  ;;  %6750 = vmatmul.msk.f32.gmra.mxu1 %vm333_vm0, %v10025_v27  ;;  %v2773_v27 = vsel %vm333_vm0, %v10186_v42, %v7033_v48  ;;  %v7042_v45 = vunpack.i.l.bf16 %v7041_v54 }
 0x411   : > { %v10351_v58 = vpop.f32.mrf.mxu1 }
 0x412   : > { %v2796_v3 = vsel %vm333_vm0, %v10092_v39, %v7042_v45  ;;  %v13454_v39 = vld [vmem:[#allocation23_spill] sm:$0xff] }
 0x413   : > { %v7051_v50 = vpop.permute.xlu1 %7050 }
 0x414   : > { %v7053_v24 = vunpack.i.h.bf16 %v7051_v50 }
 0x417   : > { %3217 = vmatmul.f32.gmra.mxu3 %v2793_v31  ;;  %v7046_v31 = vpop.permute.xlu0 %7045 }
 0x418   : > { %3137 = vmatmul.f32.gmra.mxu2 %v2772_v36  ;;  %6751 = vmatmul.msk.f32.gmra.mxu1 %vm333_vm0, %v10055_v49  ;;  %v2774_v49 = vsel %vm333_vm0, %v10230_v14, %v7038_v15  ;;  %v4370_v36 = vld [vmem:[%s13310_s5 + $0x78] sm:$0xff]  ;;  %v7047_v48 = vunpack.i.l.bf16 %v7046_v31  ;;  %v1738_v15 = vpop.f32.mrf.mxu2 }
 0x419   : > { %v10359_v29 = vpop.f32.mrf.mxu1  ;;  %4495 = vmatpush.msra.mxu2 %v4370_v36  ;;  %v7056_v36 = vpop.permute.xlu2 %7055 }
 0x41f   : > { %3220 = vmatmul.f32.gmra.mxu3 %v2794_v60  ;;  %v2797_v60 = vsel %vm333_vm0, %v10086_v17, %v7047_v48 }
 0x420   : > { %3140 = vmatmul.f32.gmra.mxu2 %v2773_v27  ;;  %6752 = vmatmul.msk.f32.gmra.mxu1 %vm333_vm0, %v10079_v20  ;;  %v7043_v20 = vunpack.i.h.bf16 %v7041_v54  ;;  %v1741_v48 = vpop.f32.mrf.mxu2 }
 0x421   : > { %v10370_v16 = vpop.f32.mrf.mxu1 }
 0x422   : > { %v2775_v0 = vsel %vm333_vm0, %v10176_v19, %v7043_v20 }
 0x427   : > { %3223 = vmatmul.f32.gmra.mxu3 %v2795_v38  ;;  %v7052_v38 = vunpack.i.l.bf16 %v7051_v50 }
 0x428   : > { %3143 = vmatmul.f32.gmra.mxu2 %v2774_v49  ;;  %6753 = vmatmul.msk.f32.gmra.mxu1 %vm333_vm0, %v10096_v28  ;;  %v7048_v28 = vunpack.i.h.bf16 %v7046_v31  ;;  %v4369_v49 = vld [vmem:[%s13310_s5 + $0x70] sm:$0xff] }
 0x429   : > { %4496 = vmatpush.msra.mxu2 %v4369_v49  ;;  %v10384_v45 = vpop.f32.mrf.mxu1  ;;  %v2798_v31 = vsel %vm333_vm0, %v10139_v44, %v7052_v38 }
 0x42a   : > { %v2776_v27 = vsel %vm333_vm0, %v10236_v47, %v7048_v28 }
 0x42f   : > { %3226 = vmatmul.f32.gmra.mxu3 %v2796_v3 }
 0x430   : > { %3146 = vmatmul.f32.gmra.mxu2 %v2775_v0  ;;  %6754 = vmatmul.msk.f32.gmra.mxu1 %vm333_vm0, %v10123_v21  ;;  %v1513_v21 = vadd.f32 %v9888_v62, %v13454_v39 }
 0x432   : > { %v1626_v54 = vadd.f32 %v9873_v37, %v1513_v21  ;;  %v13455_v37 = vld [vmem:[#allocation24_spill] sm:$0xff] }
 0x433   : > { %v1516_v3 = vadd.f32 %v9888_v62, %v13455_v37 }
 0x434   : > { %v1739_v20 = vadd.f32 %v1738_v15, %v1626_v54  ;;  %v4368_v54 = vld [vmem:[%s13310_s5 + $0x68] sm:$0xff] }
 0x435   : > { %v1629_v50 = vadd.f32 %v9892_v30, %v1516_v3  ;;  %v10403_v30 = vpop.f32.mrf.mxu1  ;;  %4497 = vmatpush.msra.mxu2 %v4368_v54  ;;  %v7066_v3 = vpop.permute.xlu1 %7065 }
 0x437   : > { %3229 = vmatmul.f32.gmra.mxu3 %v2797_v60  ;;  %v7057_v60 = vunpack.i.l.bf16 %v7056_v36  ;;  %v1742_v21 = vadd.f32 %v1741_v48, %v1629_v50 }
 0x438   : > { %3149 = vmatmul.f32.gmra.mxu2 %v2776_v27  ;;  %6755 = vmatmul.msk.f32.gmra.mxu1 %vm333_vm0, %v10154_v59  ;;  %v2777_v59 = vsel %vm333_vm0, %v10258_v57, %v7053_v24  ;;  %v7058_v27 = vunpack.i.h.bf16 %v7056_v36  ;;  %v7061_v24 = vpop.permute.xlu0 %7060 }
 0x439   : > { %v2799_v62 = vsel %vm333_vm0, %v10110_v4, %v7057_v60 }
 0x43a   : > { %v2778_v44 = vsel %vm333_vm0, %v10227_v2, %v7058_v27  ;;  %v10429_v27 = vld [vmem:[#allocation2 + $0x190] sm:$0xff] }
 0x43b   : > { %v2343_v50 = vrot.slane %v10429_v27, 1 }
 0x43d   : > { %v10432_v60 = vpop.f32.mrf.mxu1 }
 0x43e   : > { %v1851_v17 = vpop.f32.mrf.mxu3 }
 0x43f   : > { %v1852_v0 = vadd.f32 %v1851_v17, %v1739_v20  ;;  %3232 = vmatmul.f32.gmra.mxu3 %v2798_v31  ;;  %v7063_v17 = vunpack.i.h.bf16 %v7061_v24 }
 0x440   : > { %3152 = vmatmul.f32.gmra.mxu2 %v2777_v59  ;;  %6756 = vmatmul.msk.f32.gmra.mxu1 %vm333_vm0, %v10116_v26  ;;  %v2077_v26 = vld [vmem:[#allocation2 + $0x158] sm:$0xff]  ;;  %v7062_v59 = vunpack.i.l.bf16 %v7061_v24  ;;  %v13457_v24 = vrot.slane %v9717_v51, 1 }
 0x441   : > { %v1965_v28 = vadd.f32 %v10065_v8, %v1852_v0  ;;  %v2098_v8 = vld [vmem:[#allocation2 + $0x200] sm:$0xff]  ;;  %v2335_v20 = vrot.slane %v2077_v26, 1 }
 0x442   : > { %v2397_v0 = vrot.slane %v2098_v8, 7  ;;  %v10451_v8 = vld [vmem:[#allocation2 + $0x10] sm:$0xff] }
 0x443   : > { %v2000_v39 = vmul.f32 %v1965_v28, %v1965_v28  ;;  %v2800_v28 = vsel %vm333_vm0, %v10145_v61, %v7062_v59  ;;  %v7067_v61 = vunpack.i.l.bf16 %v7066_v3 }
 0x445   : > { %2032 = vst.msk [vmem:[#allocation2 + $0x208] sm:$0xff] %vm333_vm0, %v2000_v39  ;;  %v7068_v39 = vunpack.i.h.bf16 %v7066_v3  ;;  %v7076_v3 = vpop.permute.xlu0 %7075 }
 0x446   : > { %v1854_v15 = vpop.f32.mrf.mxu3 }
 0x447   : > { %v1855_v49 = vadd.f32 %v1854_v15, %v1742_v21  ;;  %3235 = vmatmul.f32.gmra.mxu3 %v2799_v62  ;;  %v10435_v21 = vld [vmem:[#allocation2 + $0x168] sm:$0xff] }
 0x448   : > { %3155 = vmatmul.f32.gmra.mxu2 %v2778_v44  ;;  %6757 = vmatmul.msk.f32.gmra.mxu1 %vm333_vm0, %v10161_v11  ;;  %v13456_v11 = vrot.slane %v9671_v33, 1  ;;  %v10438_v15 = vld [vmem:[#allocation2 + $0x188] sm:$0xff] }
 0x449   : > { %v1968_v38 = vadd.f32 %v10268_v53, %v1855_v49  ;;  %v2342_v44 = vrot.slane %v10438_v15, 1 }
 0x44a   : > { %v10415_v31 = vsel %vm720_vm2, %v13456_v11, %v2335_v20  ;;  %v7071_v20 = vpop.permute.xlu2 %7070  ;;  %v10467_v11 = vpop.f32.mrf.mxu1 }
 0x44b   : > { %v2001_v36 = vmul.f32 %v1968_v38, %v1968_v38  ;;  %v2779_v53 = vsel %vm333_vm0, %v10415_v31, %v7063_v17  ;;  %v10449_v62 = vsel %vm720_vm2, %v2342_v44, %v2343_v50  ;;  %v2801_v17 = vsel %vm333_vm0, %v10133_v52, %v7067_v61  ;;  %v2085_v44 = vld [vmem:[#allocation2 + $0x198] sm:$0xff] }
 0x44c   : > { %v10409_v4 = vld [vmem:[#allocation2 + $0x208] sm:$0xff]  ;;  %v7119_v59 = vpack.i.bf16 %v10451_v8, %v10449_v62  ;;  %v7072_v52 = vunpack.i.l.bf16 %v7071_v20  ;;  %v7077_v61 = vunpack.i.l.bf16 %v7076_v3 }
 0x44d   : > { %2033 = vst.msk [vmem:[#allocation2 + $0x210] sm:$0xff] %vm333_vm0, %v2001_v36  ;;  %v2398_v37 = vrot.slane %v10409_v4, 7 }
 0x44f   : > { %v10425_v48 = vsel %vm591_vm1, %v2397_v0, %v2398_v37  ;;  %3238 = vmatmul.f32.gmra.mxu3 %v2800_v28  ;;  %v7073_v0 = vunpack.i.h.bf16 %v7071_v20  ;;  %v2802_v28 = vsel %vm333_vm0, %v10136_v9, %v7072_v52  ;;  %v2345_v9 = vrot.slane %v2085_v44, 1 }
 0x450   : > { %3158 = vmatmul.f32.gmra.mxu2 %v2779_v53  ;;  %6758 = vmatmul.msk.f32.gmra.mxu1 %vm333_vm0, %v10179_v55  ;;  %v7104_v33 = vpack.i.bf16 %v10425_v48, %v10415_v31  ;;  %v2337_v55 = vrot.slane %v10435_v21, 1 }
 0x451   : > { %v2781_v53 = vsel %vm333_vm0, %v10252_v10, %v7073_v0 }
 0x452   : > { %7105 = vrot.lane.b32.xlu0 %v7104_v33, %s7733_s11  ;;  %v10446_v49 = vsel %vm720_vm2, %v2337_v55, %v13457_v24  ;;  %v7078_v33 = vunpack.i.h.bf16 %v7076_v3  ;;  %v7086_v0 = vpop.permute.xlu2 %7085  ;;  %v10509_v3 = vld [vmem:[#allocation2 + $0x1a8] sm:$0xff] }
 0x453   : > { %v2780_v38 = vsel %vm333_vm0, %v10446_v49, %v7068_v39 }
 0x454   : > { %v10441_v26 = vld [vmem:[#allocation2 + $0x210] sm:$0xff]  ;;  %v2782_v55 = vsel %vm333_vm0, %v10449_v62, %v7078_v33 }
 0x455   : > { %v2400_v54 = vrot.slane %v10441_v26, 7 }
 0x457   : > { %v10461_v51 = vsel %vm591_vm1, %v2398_v37, %v2400_v54  ;;  %3241 = vmatmul.f32.gmra.mxu3 %v2801_v17  ;;  %v10474_v37 = vpop.f32.mrf.mxu2  ;;  %v7081_v54 = vpop.permute.xlu1 %7080 }
 0x458   : > { %3161 = vmatmul.f32.gmra.mxu2 %v2780_v38  ;;  %6759 = vmatmul.msk.f32.gmra.mxu1 %vm333_vm0, %v10151_v35  ;;  %v7109_v36 = vpack.i.bf16 %v10461_v51, %v10446_v49  ;;  %v4367_v35 = vld [vmem:[%s13310_s5 + $0x60] sm:$0xff]  ;;  %v10482_v39 = vpop.f32.mrf.mxu1  ;;  %v2803_v38 = vsel %vm333_vm0, %v10130_v6, %v7077_v61  ;;  %v7082_v20 = vunpack.i.l.bf16 %v7081_v54 }
 0x459   : > { %4498 = vmatpush.msra.mxu2 %v4367_v35  ;;  %v2348_v35 = vrot.slane %v9931_v7, 1 }
 0x45a   : > { %7120 = vrot.lane.b32.xlu0 %v7119_v59, %s7733_s11  ;;  %7110 = vrot.lane.b32.xlu1 %v7109_v36, %s7733_s11  ;;  %v4366_v59 = vld [vmem:[%s13310_s5 + $0x58] sm:$0xff]  ;;  %v10498_v36 = vsel %vm720_vm2, %v2343_v50, %v2345_v9  ;;  %v7087_v50 = vunpack.i.l.bf16 %v7086_v0 }
 0x45b   : > { %4499 = vmatpush.msra.mxu2 %v4366_v59 }
 0x45c   : > { %v2805_v7 = vsel %vm333_vm0, %v10169_v25, %v7087_v50  ;;  %v4365_v25 = vld [vmem:[%s13310_s5 + $0x50] sm:$0xff] }
 0x45d   : > { %4500 = vmatpush.msra.mxu2 %v4365_v25  ;;  %v7101_v25 = vpop.permute.xlu2 %7100 }
 0x45f   : > { %3244 = vmatmul.f32.gmra.mxu3 %v2802_v28  ;;  %v10486_v24 = vpop.f32.mrf.mxu2  ;;  %v2347_v28 = vrot.slane %v10509_v3, 1 }
 0x460   : > { %3164 = vmatmul.f32.gmra.mxu2 %v2781_v53  ;;  %6760 = vmatmul.msk.f32.gmra.mxu1 %vm333_vm0, %v10186_v42  ;;  %v7083_v42 = vunpack.i.h.bf16 %v7081_v54  ;;  %v10492_v17 = vpop.f32.mrf.mxu1  ;;  %v7088_v53 = vunpack.i.h.bf16 %v7086_v0 }
 0x461   : > { %v10515_v61 = vsel %vm720_vm2, %v2347_v28, %v2348_v35 }
 0x462   : > { %v2783_v6 = vsel %vm333_vm0, %v10498_v36, %v7083_v42  ;;  %v10528_v42 = vld [vmem:[%s13309_s4] ss:$0 sm:$0xff] }
 0x467   : > { %3247 = vmatmul.f32.gmra.mxu3 %v2803_v38  ;;  %v10506_v52 = vpop.f32.mrf.mxu2 }
 0x468   : > { %3167 = vmatmul.f32.gmra.mxu2 %v2782_v55  ;;  %6761 = vmatmul.msk.f32.gmra.mxu1 %vm333_vm0, %v10230_v14  ;;  %v2804_v14 = vsel %vm333_vm0, %v10215_v32, %v7082_v20  ;;  %v2784_v32 = vsel %vm333_vm0, %v10515_v61, %v7088_v53  ;;  %v7091_v55 = vpop.permute.xlu0 %7090  ;;  %v13459_v53 = vld [vmem:[#allocation5_spill] sm:$0xff] }
 0x469   : > { %v7093_v54 = vunpack.i.h.bf16 %v7091_v55  ;;  %v7092_v9 = vunpack.i.l.bf16 %v7091_v55  ;;  %v2353_v50 = vrot.slane %v13459_v53, 1  ;;  %v10548_v55 = vld [vmem:[#allocation2 + $0x1c8] sm:$0xff] }
 0x46b   : > { %v2806_v0 = vsel %vm333_vm0, %v10221_v23, %v7092_v9 }
 0x46f   : > { %3250 = vmatmul.f32.gmra.mxu3 %v2804_v14  ;;  %v10523_v38 = vpop.f32.mrf.mxu2  ;;  %v2984_v14 = vadd.f32 %v10528_v42, %v9905_v18 }
 0x470   : > { %3170 = vmatmul.f32.gmra.mxu2 %v2783_v6  ;;  %6762 = vmatmul.msk.f32.gmra.mxu1 %vm333_vm0, %v10176_v19  ;;  %v2089_v19 = vld [vmem:[#allocation2 + $0x1b8] sm:$0xff]  ;;  %v7096_v6 = vpop.permute.xlu1 %7095 }
 0x471   : > { %v2350_v44 = vrot.slane %v2089_v19, 1  ;;  %v7098_v28 = vunpack.i.h.bf16 %v7096_v6 }
 0x473   : > { %v10536_v59 = vsel %vm720_vm2, %v2348_v35, %v2350_v44  ;;  %v3097_v35 = vadd.f32 %v10474_v37, %v2984_v14  ;;  %v2093_v37 = vld [vmem:[#allocation2 + $0x1d8] sm:$0xff] }
 0x475   : > { %v10512_v33 = vpop.f32.mrf.mxu1 }
 0x477   : > { %3253 = vmatmul.f32.gmra.mxu3 %v2805_v7  ;;  %v2352_v7 = vrot.slane %v10548_v55, 1 }
 0x478   : > { %3173 = vmatmul.f32.gmra.mxu2 %v2784_v32  ;;  %6763 = vmatmul.msk.f32.gmra.mxu1 %vm333_vm0, %v10236_v47  ;;  %v2785_v47 = vsel %vm333_vm0, %v10536_v59, %v7093_v54  ;;  %v7097_v32 = vunpack.i.l.bf16 %v7096_v6  ;;  %v10551_v54 = vpop.f32.mrf.mxu2 }
 0x47d   : > { %v10530_v20 = vpop.f32.mrf.mxu1 }
 0x47e   : > { %13458 = vst [vmem:[#allocation20_spill] sm:$0xff] %v10530_v20 }
 0x47f   : > { %3256 = vmatmul.f32.gmra.mxu3 %v2806_v0  ;;  %v13461_v0 = vld [vmem:[#allocation12_spill] sm:$0xff] }
 0x480   : > { %3176 = vmatmul.f32.gmra.mxu2 %v2785_v47  ;;  %6764 = vmatmul.msk.f32.gmra.mxu1 %vm333_vm0, %v10258_v57  ;;  %v10554_v57 = vsel %vm720_vm2, %v2352_v7, %v2353_v50  ;;  %v13460_v47 = vld [vmem:[#allocation3_spill] sm:$0xff]  ;;  %v2987_v14 = vadd.f32 %v10528_v42, %v13461_v0  ;;  %v7103_v7 = vunpack.i.h.bf16 %v7101_v25 }
 0x481   : > { %v2786_v9 = vsel %vm333_vm0, %v10554_v57, %v7098_v28  ;;  %v2807_v6 = vsel %vm333_vm0, %v13460_v47, %v7097_v32  ;;  %v7102_v28 = vunpack.i.l.bf16 %v7101_v25  ;;  %v13463_v47 = vld [vmem:[#allocation4_spill] sm:$0xff] }
 0x482   : > { %v3209_v19 = vpop.f32.mrf.mxu3 }
 0x483   : > { %v3210_v44 = vadd.f32 %v3209_v19, %v3097_v35  ;;  %v3334_v35 = vpop.f32.mrf.mxu0  ;;  %v2355_v19 = vrot.slane %v2093_v37, 1  ;;  %v13462_v37 = vld [vmem:[#allocation16_spill] sm:$0xff] }
 0x484   : > { %v2808_v25 = vsel %vm333_vm0, %v13462_v37, %v7102_v28 }
 0x485   : > { %v3435_v23 = vpop.f32.mrf.mxu1  ;;  %v3323_v18 = vadd.f32 %v10288_v12, %v3210_v44  ;;  %v3100_v12 = vadd.f32 %v10486_v24, %v2987_v14  ;;  %v10571_v32 = vsel %vm720_vm2, %v2353_v50, %v2355_v19 }
 0x486   : > { %v2787_v24 = vsel %vm333_vm0, %v10571_v32, %v7103_v7 }
 0x487   : > { %v3436_v53 = vadd.f32 %v3435_v23, %v3323_v18  ;;  %3259 = vmatmul.f32.gmra.mxu3 %v2807_v6  ;;  %v3111_v18 = vpop.f32.mrf.mxu2  ;;  %v2990_v6 = vadd.f32 %v10528_v42, %v13463_v47 }
 0x488   : > { %3179 = vmatmul.f32.gmra.mxu2 %v2786_v9  ;;  %6765 = vmatmul.msk.f32.gmra.mxu1 %vm333_vm0, %v10227_v2  ;;  %v4364_v2 = vld [vmem:[%s13310_s5 + $0x48] sm:$0xff] }
 0x489   : > { %3531 = vst.msk [vmem:[#allocation2 + $0x28] sm:$0xff] %vm333_vm0, %v3436_v53  ;;  %4501 = vmatpush.msra.mxu2 %v4364_v2 }
 0x48a   : > { %v3212_v44 = vpop.f32.mrf.mxu3 }
 0x48b   : > { %v3213_v9 = vadd.f32 %v3212_v44, %v3100_v12  ;;  %v3337_v53 = vpop.f32.mrf.mxu0 }
 0x48d   : > { %v3438_v20 = vpop.f32.mrf.mxu1  ;;  %v3326_v23 = vadd.f32 %v10300_v5, %v3213_v9  ;;  %v3103_v5 = vadd.f32 %v10506_v52, %v2990_v6 }
 0x48f   : > { %v3439_v0 = vadd.f32 %v3438_v20, %v3326_v23  ;;  %3262 = vmatmul.f32.gmra.mxu3 %v2808_v25  ;;  %v13464_v20 = vld [vmem:[#allocation14_spill] sm:$0xff]  ;;  %v3114_v23 = vpop.f32.mrf.mxu2 }
 0x490   : > { %3182 = vmatmul.f32.gmra.mxu2 %v2787_v24  ;;  %6766 = vmatmul.msk.f32.gmra.mxu1 %vm333_vm0, %v10415_v31  ;;  %v10582_v50 = vld [vmem:[#allocation2 + $0x28] sm:$0xff]  ;;  %v2993_v28 = vadd.f32 %v10528_v42, %v13464_v20 }
 0x491   : > { %3532 = vst.msk [vmem:[#allocation2 + $0x30] sm:$0xff] %vm333_vm0, %v3439_v0  ;;  %v7124_v14 = vpack.i.bf16 %v10582_v50, %v10498_v36 }
 0x492   : > { %v3215_v19 = vpop.f32.mrf.mxu3  ;;  %v3106_v9 = vadd.f32 %v10523_v38, %v2993_v28  ;;  %v13465_v38 = vld [vmem:[#allocation6_spill] sm:$0xff]  ;;  %v13466_v28 = vld [vmem:[#allocation8_spill] sm:$0xff] }
 0x493   : > { %v3216_v12 = vadd.f32 %v3215_v19, %v3103_v5  ;;  %7125 = vrot.lane.b32.xlu1 %v7124_v14, %s7733_s11  ;;  %v3340_v25 = vpop.f32.mrf.mxu0  ;;  %v2996_v6 = vadd.f32 %v10528_v42, %v13465_v38  ;;  %v13467_v38 = vld [vmem:[#allocation7_spill] sm:$0xff] }
 0x495   : > { %v3441_v31 = vpop.f32.mrf.mxu1  ;;  %v3329_v7 = vadd.f32 %v10306_v63, %v3216_v12  ;;  %v3109_v14 = vadd.f32 %v10551_v54, %v2996_v6  ;;  %v2999_v54 = vadd.f32 %v10528_v42, %v13466_v28  ;;  %v2358_v6 = vrot.slane %v13467_v38, 1 }
 0x497   : > { %v3442_v52 = vadd.f32 %v3441_v31, %v3329_v7  ;;  %v3117_v7 = vpop.f32.mrf.mxu2 }
 0x498   : > { %6767 = vmatmul.msk.f32.gmra.mxu1 %vm333_vm0, %v10446_v49  ;;  %v10594_v44 = vld [vmem:[#allocation2 + $0x30] sm:$0xff]  ;;  %v4363_v49 = vld [vmem:[%s13310_s5 + $0x40] sm:$0xff] }
 0x499   : > { %3533 = vst.msk [vmem:[#allocation2 + $0x48] sm:$0xff] %vm333_vm0, %v3442_v52  ;;  %v7129_v2 = vpack.i.bf16 %v10594_v44, %v10515_v61  ;;  %4502 = vmatpush.msra.mxu2 %v4363_v49 }
 0x49a   : > { %v3218_v24 = vpop.f32.mrf.mxu3 }
 0x49b   : > { %v3219_v37 = vadd.f32 %v3218_v24, %v3106_v9  ;;  %7130 = vrot.lane.b32.xlu2 %v7129_v2, %s7733_s11  ;;  %v10616_v20 = vpop.f32.mrf.mxu0  ;;  %v3112_v2 = vadd.f32 %v3111_v18, %v2999_v54  ;;  %v4361_v18 = vld [vmem:[%s13310_s5 + $0x30] sm:$0xff] }
 0x49d   : > { %v3444_v63 = vpop.f32.mrf.mxu1  ;;  %v3332_v47 = vadd.f32 %v10319_v43, %v3219_v37  ;;  %v2097_v37 = vld [vmem:[#allocation2 + $0x1f8] sm:$0xff] }
 0x49f   : > { %v3445_v0 = vadd.f32 %v3444_v63, %v3332_v47  ;;  %v3120_v47 = vpop.f32.mrf.mxu2 }
 0x4a0   : > { %6768 = vmatmul.msk.f32.gmra.mxu1 %vm333_vm0, %v10252_v10  ;;  %v10609_v5 = vld [vmem:[#allocation2 + $0x48] sm:$0xff] }
 0x4a1   : > { %3534 = vst.msk [vmem:[#allocation2 + $0x50] sm:$0xff] %vm333_vm0, %v3445_v0  ;;  %v7134_v19 = vpack.i.bf16 %v10609_v5, %v10536_v59  ;;  %v2360_v0 = vrot.slane %v2097_v37, 1 }
 0x4a2   : > { %v3221_v12 = vpop.f32.mrf.mxu3 }
 0x4a3   : > { %v3222_v31 = vadd.f32 %v3221_v12, %v3109_v14  ;;  %7135 = vrot.lane.b32.xlu0 %v7134_v19, %s7733_s11  ;;  %v13468_v19 = vld [vmem:[#allocation9_spill] sm:$0xff] }
 0x4a4   : > { %v3002_v12 = vadd.f32 %v10528_v42, %v13468_v19 }
 0x4a5   : > { %v3447_v43 = vpop.f32.mrf.mxu1  ;;  %v3335_v10 = vadd.f32 %v3334_v35, %v3222_v31  ;;  %v4362_v35 = vld [vmem:[%s13310_s5 + $0x38] sm:$0xff] }
 0x4a6   : > { %4503 = vmatpush.msra.mxu2 %v4362_v35  ;;  %v3115_v54 = vadd.f32 %v3114_v23, %v3002_v12  ;;  %v4358_v35 = vld [vmem:[%s13310_s5 + $0x18] sm:$0xff] }
 0x4a7   : > { %v3448_v52 = vadd.f32 %v3447_v43, %v3335_v10  ;;  %v3346_v43 = vpop.f32.mrf.mxu0  ;;  %v10640_v10 = vsel %vm720_vm2, %v2358_v6, %v2360_v0  ;;  %v13469_v0 = vld [vmem:[#allocation11_spill] sm:$0xff] }
 0x4a8   : > { %6769 = vmatmul.msk.f32.gmra.mxu1 %vm333_vm0, %v10449_v62  ;;  %v10622_v9 = vld [vmem:[#allocation2 + $0x50] sm:$0xff]  ;;  %4504 = vmatpush.msra.mxu2 %v4361_v18  ;;  %v10665_v18 = vld [vmem:[#allocation2 + $0x1e8] sm:$0xff] }
 0x4a9   : > { %3535 = vst.msk [vmem:[#allocation2 + $0x68] sm:$0xff] %vm333_vm0, %v3448_v52  ;;  %v7139_v24 = vpack.i.bf16 %v10622_v9, %v10554_v57  ;;  %v7154_v52 = vpack.i.bf16 %v10409_v4, %v10640_v10  ;;  %v2357_v38 = vrot.slane %v10665_v18, 1 }
 0x4aa   : > { %v3224_v63 = vpop.f32.mrf.mxu3 }
 0x4ab   : > { %v3225_v62 = vadd.f32 %v3224_v63, %v3112_v2  ;;  %7140 = vrot.lane.b32.xlu1 %v7139_v24, %s7733_s11  ;;  %v4359_v2 = vld [vmem:[%s13310_s5 + $0x20] sm:$0xff]  ;;  %v10671_v12 = vsel %vm720_vm2, %v2357_v38, %v2358_v6 }
 0x4ad   : > { %v3450_v49 = vpop.f32.mrf.mxu1  ;;  %v3338_v14 = vadd.f32 %v3337_v53, %v3225_v62  ;;  %v4357_v62 = vld [vmem:[%s13310_s5 + $0x10] sm:$0xff] }
 0x4af   : > { %v3451_v31 = vadd.f32 %v3450_v49, %v3338_v14  ;;  %v3123_v49 = vpop.f32.mrf.mxu2  ;;  %v3005_v14 = vadd.f32 %v10528_v42, %v13469_v0 }
 0x4b0   : > { %6770 = vmatmul.msk.f32.gmra.mxu1 %vm333_vm0, %v10498_v36  ;;  %v10642_v28 = vld [vmem:[#allocation2 + $0x68] sm:$0xff] }
 0x4b1   : > { %3536 = vst.msk [vmem:[#allocation2 + $0x70] sm:$0xff] %vm333_vm0, %v3451_v31  ;;  %v7144_v53 = vpack.i.bf16 %v10642_v28, %v10571_v32  ;;  %v4360_v36 = vld [vmem:[%s13310_s5 + $0x28] sm:$0xff]  ;;  %v3118_v31 = vadd.f32 %v3117_v7, %v3005_v14 }
 0x4b2   : > { %v3227_v24 = vpop.f32.mrf.mxu3  ;;  %4505 = vmatpush.msra.mxu2 %v4360_v36 }
 0x4b3   : > { %v3228_v37 = vadd.f32 %v3227_v24, %v3115_v54  ;;  %7155 = vrot.lane.b32.xlu1 %v7154_v52, %s7733_s11  ;;  %7145 = vrot.lane.b32.xlu2 %v7144_v53, %s7733_s11  ;;  %v4356_v54 = vld [vmem:[%s13310_s5 + $0x8] sm:$0xff]  ;;  %v4355_v52 = vld [vmem:[%s13310_s5] sm:$0xff]  ;;  %v3349_v53 = vpop.f32.mrf.mxu0 }
 0x4b4   : > { %4506 = vmatpush.msra.mxu2 %v4359_v2 }
 0x4b5   : > { %v3453_v23 = vpop.f32.mrf.mxu1  ;;  %v3341_v63 = vadd.f32 %v3340_v25, %v3228_v37  ;;  %v13470_v37 = vld [vmem:[#allocation10_spill] sm:$0xff] }
 0x4b6   : > { %4507 = vmatpush.msra.mxu2 %v4358_v35 }
 0x4b7   : > { %v3454_v19 = vadd.f32 %v3453_v23, %v3341_v63  ;;  %v3126_v24 = vpop.f32.mrf.mxu2  ;;  %v3008_v23 = vadd.f32 %v10528_v42, %v13470_v37 }
 0x4b8   : > { %6771 = vmatmul.msk.f32.gmra.mxu1 %vm333_vm0, %v10515_v61  ;;  %v10673_v25 = vld [vmem:[#allocation2 + $0x70] sm:$0xff]  ;;  %4508 = vmatpush.msra.mxu2 %v4357_v62 }
 0x4b9   : > { %3537 = vst.msk [vmem:[#allocation2 + $0x88] sm:$0xff] %vm333_vm0, %v3454_v19  ;;  %v7149_v61 = vpack.i.bf16 %v10673_v25, %v10671_v12  ;;  %v3121_v62 = vadd.f32 %v3120_v47, %v3008_v23  ;;  %v7642_v47 = vld [vmem:[#allocation2 + $0x150] sm:$0xff] }
 0x4ba   : > { %v3230_v6 = vpop.f32.mrf.mxu3  ;;  %4509 = vmatpush.msra.mxu2 %v4356_v54 }
 0x4bb   : > { %v3231_v36 = vadd.f32 %v3230_v6, %v3118_v31  ;;  %7150 = vrot.lane.b32.xlu0 %v7149_v61, %s7733_s11  ;;  %v3352_v19 = vpop.f32.mrf.mxu0  ;;  %v13471_v6 = vld [vmem:[#allocation15_spill] sm:$0xff] }
 0x4bc   : > { %4510 = vmatpush.msra.mxu2 %v4355_v52 }
 0x4bd   : > { %v3456_v7 = vpop.f32.mrf.mxu1  ;;  %v3344_v2 = vadd.f32 %v10616_v20, %v3231_v36  ;;  %v3011_v36 = vadd.f32 %v10528_v42, %v13471_v6  ;;  %v7116_v6 = vpop.permute.xlu2 %7115 }
 0x4bf   : > { %v3457_v35 = vadd.f32 %v3456_v7, %v3344_v2  ;;  %v3129_v2 = vpop.f32.mrf.mxu2  ;;  %v3124_v23 = vadd.f32 %v3123_v49, %v3011_v36 }
 0x4c0   : > { %6772 = vmatmul.msk.f32.gmra.mxu1 %vm333_vm0, %v10536_v59  ;;  %v10690_v63 = vld [vmem:[#allocation2 + $0x88] sm:$0xff] }
 0x4c1   : > { %3538 = vst.msk [vmem:[#allocation2 + $0x90] sm:$0xff] %vm333_vm0, %v3457_v35  ;;  %3971 = vrot.lane.b32.xlu2 %v10690_v63, %s7733_s11 }
 0x4c2   : > { %v3233_v38 = vpop.f32.mrf.mxu3 }
 0x4c3   : > { %v3234_v0 = vadd.f32 %v3233_v38, %v3121_v62 }
 0x4c4   : > { %v7106_v14 = vpop.permute.xlu0 %7105 }
 0x4c5   : > { %v3459_v20 = vpop.f32.mrf.mxu1  ;;  %v7108_v31 = vunpack.i.h.bf16 %v7106_v14  ;;  %v7107_v61 = vunpack.i.l.bf16 %v7106_v14  ;;  %v3347_v59 = vadd.f32 %v3346_v43, %v3234_v0 }
 0x4c7   : > { %v2788_v54 = vsel %vm333_vm0, %v10671_v12, %v7108_v31  ;;  %v2809_v52 = vsel %vm333_vm0, %v7642_v47, %v7107_v61  ;;  %v3460_v7 = vadd.f32 %v3459_v20, %v3347_v59  ;;  %v3563_v20 = vld [vmem:[#allocation2] sm:$0xff]  ;;  %v3355_v61 = vpop.f32.mrf.mxu0 }
 0x4c8   : > { %6773 = vmatmul.msk.f32.gmra.mxu1 %vm333_vm0, %v10554_v57  ;;  %3185 = vmatmul.f32.gmra.mxu2 %v2788_v54  ;;  %v10702_v37 = vld [vmem:[#allocation2 + $0x90] sm:$0xff] }
 0x4c9   : > { %3265 = vmatmul.f32.gmra.mxu3 %v2809_v52  ;;  %3539 = vst.msk [vmem:[#allocation2 + $0xa8] sm:$0xff] %vm333_vm0, %v3460_v7  ;;  %v7159_v57 = vpack.i.bf16 %v10702_v37, %v10441_v26  ;;  %v13472_v54 = vld [vmem:[#allocation13_spill] sm:$0xff]  ;;  %v3684_v52 = vrot.slane %v10254_v1, 7 }
 0x4ca   : > { %v3236_v43 = vpop.f32.mrf.mxu3  ;;  %v3014_v47 = vadd.f32 %v10528_v42, %v13472_v54 }
 0x4cb   : > { %v3237_v35 = vadd.f32 %v3236_v43, %v3124_v23  ;;  %7160 = vrot.lane.b32.xlu0 %v7159_v57, %s7733_s11  ;;  %v3132_v57 = vpop.f32.mrf.mxu2 }
 0x4cc   : > { %v7111_v62 = vpop.permute.xlu1 %7110  ;;  %v3127_v23 = vadd.f32 %v3126_v24, %v3014_v47 }
 0x4cd   : > { %v7113_v38 = vunpack.i.h.bf16 %v7111_v62  ;;  %v7112_v0 = vunpack.i.l.bf16 %v7111_v62  ;;  %v3462_v14 = vpop.f32.mrf.mxu1  ;;  %v3350_v31 = vadd.f32 %v3349_v53, %v3237_v35  ;;  %v3683_v53 = vrot.slane %v3563_v20, 7 }
 0x4ce   : > { %v3017_v20 = vadd.f32 %v10528_v42, %v10270_v46 }
 0x4cf   : > { %v2789_v49 = vsel %vm333_vm0, %v10640_v10, %v7113_v38  ;;  %v2810_v59 = vsel %vm333_vm0, %v10435_v21, %v7112_v0  ;;  %v3463_v36 = vadd.f32 %v3462_v14, %v3350_v31  ;;  %v7117_v21 = vunpack.i.l.bf16 %v7116_v6  ;;  %v7643_v0 = vld [vmem:[#allocation2 + $0x170] sm:$0xff]  ;;  %v7121_v31 = vpop.permute.xlu0 %7120  ;;  %v3358_v54 = vpop.f32.mrf.mxu0 }
 0x4d0   : > { %6774 = vmatmul.msk.f32.gmra.mxu1 %vm333_vm0, %v10571_v32  ;;  %3188 = vmatmul.f32.gmra.mxu2 %v2789_v49  ;;  %v10717_v7 = vld [vmem:[#allocation2 + $0xa8] sm:$0xff]  ;;  %v7118_v32 = vunpack.i.h.bf16 %v7116_v6  ;;  %v3685_v1 = vsel %vm591_vm1, %v3683_v53, %v3684_v52  ;;  %v7122_v6 = vunpack.i.l.bf16 %v7121_v31 }
 0x4d1   : > { %3268 = vmatmul.f32.gmra.mxu3 %v2810_v59  ;;  %3540 = vst.msk [vmem:[#allocation2 + $0xb0] sm:$0xff] %vm333_vm0, %v3463_v36  ;;  %3975 = vrot.lane.b32.xlu1 %v10717_v7, %s7733_s11  ;;  %v2811_v24 = vsel %vm333_vm0, %v7643_v0, %v7117_v21  ;;  %v3686_v59 = vrot.slane %v10451_v8, 7 }
 0x4d2   : > { %v3239_v43 = vpop.f32.mrf.mxu3  ;;  %v4255_v14 = vsel %vm333_vm0, %v3685_v1, %v7118_v32 }
 0x4d3   : > { %v3240_v35 = vadd.f32 %v3239_v43, %v3127_v23  ;;  %v3687_v46 = vsel %vm591_vm1, %v3684_v52, %v3686_v59  ;;  %v4418_v23 = vld [vmem:[%s13310_s5 + $0x1f8] sm:$0xff]  ;;  %v3135_v8 = vpop.f32.mrf.mxu2 }
 0x4d4   : > { %4834 = vmatpush.msrb.mxu1 %v4418_v23  ;;  %v4414_v59 = vld [vmem:[%s13310_s5 + $0x1d8] sm:$0xff] }
 0x4d5   : > { %v3465_v62 = vpop.f32.mrf.mxu1  ;;  %v3353_v38 = vadd.f32 %v3352_v19, %v3240_v35  ;;  %v3130_v19 = vadd.f32 %v3129_v2, %v3017_v20  ;;  %v2812_v2 = vsel %vm333_vm0, %v10438_v15, %v7122_v6  ;;  %v3020_v35 = vadd.f32 %v10528_v42, %v10278_v13  ;;  %v4417_v15 = vld [vmem:[%s13310_s5 + $0x1f0] sm:$0xff]  ;;  %v4416_v13 = vld [vmem:[%s13310_s5 + $0x1e8] sm:$0xff] }
 0x4d6   : > { %4835 = vmatpush.msrb.mxu1 %v4417_v15 }
 0x4d7   : > { %v3466_v49 = vadd.f32 %v3465_v62, %v3353_v38  ;;  %v3133_v62 = vadd.f32 %v3132_v57, %v3020_v35  ;;  %v2403_v57 = vrot.slane %v10409_v4, 1  ;;  %v3023_v4 = vadd.f32 %v10528_v42, %v10286_v22  ;;  %v4412_v22 = vld [vmem:[%s13310_s5 + $0x1c8] sm:$0xff]  ;;  %v10793_v35 = vld [vmem:[#allocation2 + $0x230] sm:$0xff] }
 0x4d8   : > { %6775 = vmatmul.msk.f32.gmra.mxu1 %vm333_vm0, %v10671_v12  ;;  %4511 = vmatmul.f32.vlgmr.msra.gmra.mxu2 %v4255_v14  ;;  %v10730_v47 = vld [vmem:[#allocation2 + $0xb0] sm:$0xff]  ;;  %v7123_v12 = vunpack.i.h.bf16 %v7121_v31 }
 0x4d9   : > { %3271 = vmatmul.f32.gmra.mxu3 %v2811_v24  ;;  %3541 = vst.msk [vmem:[#allocation2 + $0xc8] sm:$0xff] %vm333_vm0, %v3466_v49  ;;  %3977 = vrot.lane.b32.xlu2 %v10730_v47, %s7733_s11  ;;  %v2101_v49 = vld [vmem:[#allocation2 + $0x218] sm:$0xff] }
 0x4da   : > { %v3242_v36 = vpop.f32.mrf.mxu3  ;;  %v4256_v43 = vsel %vm333_vm0, %v3687_v46, %v7123_v12  ;;  %4836 = vmatpush.msrb.mxu1 %v4416_v13  ;;  %v2406_v6 = vrot.slane %v2101_v49, 1 }
 0x4db   : > { %v3243_v53 = vadd.f32 %v3242_v36, %v3130_v19  ;;  %v3138_v31 = vpop.f32.mrf.mxu2  ;;  %v4413_v36 = vld [vmem:[%s13310_s5 + $0x1d0] sm:$0xff] }
 0x4dd   : > { %v3468_v32 = vpop.f32.mrf.mxu1  ;;  %v3356_v21 = vadd.f32 %v3355_v61, %v3243_v53  ;;  %v3361_v61 = vpop.f32.mrf.mxu0 }
 0x4df   : > { %v3469_v52 = vadd.f32 %v3468_v32, %v3356_v21  ;;  %v4411_v32 = vld [vmem:[%s13310_s5 + $0x1c0] sm:$0xff]  ;;  %v10786_v21 = vld [vmem:[#allocation2 + $0x228] sm:$0xff] }
 0x4e0   : > { %6776 = vmatmul.msk.f32.gmra.mxu1 %vm333_vm0, %v10640_v10  ;;  %4514 = vmatmul.f32.gmra.mxu2 %v4256_v43  ;;  %v10746_v1 = vld [vmem:[#allocation2 + $0xc8] sm:$0xff]  ;;  %v2404_v10 = vrot.slane %v10441_v26, 1  ;;  %v4415_v26 = vld [vmem:[%s13310_s5 + $0x1e0] sm:$0xff] }
 0x4e1   : > { %3274 = vmatmul.f32.gmra.mxu3 %v2812_v2  ;;  %3542 = vst.msk [vmem:[#allocation2 + $0xd0] sm:$0xff] %vm333_vm0, %v3469_v52  ;;  %3979 = vrot.lane.b32.xlu0 %v10746_v1, %s7733_s11  ;;  %v4410_v52 = vld [vmem:[%s13310_s5 + $0x1b8] sm:$0xff] }
 0x4e2   : > { %v3245_v38 = vpop.f32.mrf.mxu3  ;;  %v10763_v20 = vsel %vm720_vm2, %v2403_v57, %v2404_v10  ;;  %4837 = vmatpush.msrb.mxu1 %v4415_v26  ;;  %v10789_v43 = vsel %vm720_vm2, %v2404_v10, %v2406_v6  ;;  %v2422_v10 = vrot.slane %v10793_v35, 1 }
 0x4e3   : > { %v3246_v0 = vadd.f32 %v3245_v38, %v3133_v62  ;;  %v13473_v62 = vld [vmem:[#allocation17_spill] sm:$0xff]  ;;  %v3141_v38 = vpop.f32.mrf.mxu2 }
 0x4e4   : > { %4838 = vmatpush.msrb.mxu1 %v4414_v59  ;;  %v3026_v15 = vadd.f32 %v10528_v42, %v13473_v62 }
 0x4e5   : > { %v3471_v24 = vpop.f32.mrf.mxu1  ;;  %v3359_v14 = vadd.f32 %v3358_v54, %v3246_v0  ;;  %v3136_v54 = vadd.f32 %v3135_v8, %v3023_v4  ;;  %v3364_v23 = vpop.f32.mrf.mxu0  ;;  %v4407_v4 = vld [vmem:[%s13310_s5 + $0x1a0] sm:$0xff] }
 0x4e6   : > { %4839 = vmatpush.msrb.mxu1 %v4413_v36  ;;  %v3139_v57 = vadd.f32 %v3138_v31, %v3026_v15  ;;  %v4406_v36 = vld [vmem:[%s13310_s5 + $0x198] sm:$0xff]  ;;  %v4404_v15 = vld [vmem:[%s13310_s5 + $0x188] sm:$0xff] }
 0x4e7   : > { %v3472_v19 = vadd.f32 %v3471_v24, %v3359_v14  ;;  %v4409_v24 = vld [vmem:[%s13310_s5 + $0x1b0] sm:$0xff]  ;;  %v4408_v14 = vld [vmem:[%s13310_s5 + $0x1a8] sm:$0xff] }
 0x4e8   : > { %6777 = vmatmul.msk.f32.gmra.mxu1 %vm333_vm0, %v10763_v20  ;;  %v10772_v12 = vld [vmem:[#allocation2 + $0xd0] sm:$0xff] }
 0x4e9   : > { %3543 = vst.msk [vmem:[#allocation2 + $0xe8] sm:$0xff] %vm333_vm0, %v3472_v19  ;;  %3981 = vrot.lane.b32.xlu1 %v10772_v12, %s7733_s11  ;;  %4840 = vmatpush.msrb.mxu1 %v4412_v22  ;;  %v2105_v19 = vld [vmem:[#allocation2 + $0x238] sm:$0xff] }
 0x4ea   : > { %v3248_v53 = vpop.f32.mrf.mxu3 }
 0x4eb   : > { %v3249_v46 = vadd.f32 %v3248_v53, %v3136_v54  ;;  %4841 = vmatpush.msrb.mxu1 %v4411_v32  ;;  %v13474_v53 = vld [vmem:[#allocation18_spill] sm:$0xff] }
 0x4ec   : > { %v3029_v22 = vadd.f32 %v10528_v42, %v13474_v53 }
 0x4ed   : > { %v3474_v8 = vpop.f32.mrf.mxu1  ;;  %v3362_v2 = vadd.f32 %v3361_v61, %v3249_v46  ;;  %v2421_v61 = vrot.slane %v10786_v21, 1  ;;  %4842 = vmatpush.msrb.mxu1 %v4410_v52  ;;  %v3367_v6 = vpop.f32.mrf.mxu0 }
 0x4ee   : > { %v3144_v52 = vpop.f32.mrf.mxu2 }
 0x4ef   : > { %v3475_v13 = vadd.f32 %v3474_v8, %v3362_v2  ;;  %v2423_v59 = vsel %vm720_vm2, %v2421_v61, %v2422_v10  ;;  %4843 = vmatpush.msrb.mxu1 %v4409_v24  ;;  %v2424_v8 = vrot.slane %v2105_v19, 1  ;;  %v3142_v2 = vadd.f32 %v3141_v38, %v3029_v22 }
 0x4f0   : > { %6778 = vmatmul.msk.f32.gmra.mxu1 %vm333_vm0, %v10789_v43  ;;  %v10802_v0 = vld [vmem:[#allocation2 + $0xe8] sm:$0xff] }
 0x4f1   : > { %3544 = vst.msk [vmem:[#allocation2 + $0xf0] sm:$0xff] %vm333_vm0, %v3475_v13  ;;  %3983 = vrot.lane.b32.xlu2 %v10802_v0, %s7733_s11  ;;  %4844 = vmatpush.msrb.mxu1 %v4408_v14  ;;  %v2425_v61 = vsel %vm720_vm2, %v2422_v10, %v2424_v8 }
 0x4f2   : > { %v3251_v26 = vpop.f32.mrf.mxu3 }
 0x4f3   : > { %v3252_v49 = vadd.f32 %v3251_v26, %v3139_v57  ;;  %4845 = vmatpush.msrb.mxu1 %v4407_v4  ;;  %v4403_v57 = vld [vmem:[%s13310_s5 + $0x180] sm:$0xff] }
 0x4f4   : > { %v13475_v26 = vld [vmem:[#allocation19_spill] sm:$0xff] }
 0x4f5   : > { %v3477_v31 = vpop.f32.mrf.mxu1  ;;  %v3365_v54 = vadd.f32 %v3364_v23, %v3252_v49  ;;  %4846 = vmatpush.msrb.mxu1 %v4406_v36  ;;  %v4405_v23 = vld [vmem:[%s13310_s5 + $0x190] sm:$0xff]  ;;  %v3032_v14 = vadd.f32 %v10528_v42, %v13475_v26  ;;  %v3567_v4 = vld [vmem:[#allocation2 + $0x20] sm:$0xff]  ;;  %v3689_v36 = vrot.slane %v10582_v50, 7 }
 0x4f6   : > { %v3147_v53 = vpop.f32.mrf.mxu2 }
 0x4f7   : > { %v3478_v46 = vadd.f32 %v3477_v31, %v3365_v54  ;;  %4847 = vmatpush.msrb.mxu1 %v4405_v23  ;;  %v3145_v10 = vadd.f32 %v3144_v52, %v3032_v14  ;;  %v3691_v14 = vrot.slane %v10594_v44, 7  ;;  %v3571_v44 = vld [vmem:[#allocation2 + $0x40] sm:$0xff] }
 0x4f8   : > { %6779 = vmatmul.msk.f32.gmra.mxu1 %vm333_vm0, %v2423_v59  ;;  %v10823_v32 = vld [vmem:[#allocation2 + $0xf0] sm:$0xff]  ;;  %v3370_v59 = vpop.f32.mrf.mxu0 }
 0x4f9   : > { %3545 = vst.msk [vmem:[#allocation2 + $0x108] sm:$0xff] %vm333_vm0, %v3478_v46  ;;  %3985 = vrot.lane.b32.xlu0 %v10823_v32, %s7733_s11  ;;  %4848 = vmatpush.msrb.mxu1 %v4404_v15 }
 0x4fa   : > { %v3254_v62 = vpop.f32.mrf.mxu3 }
 0x4fb   : > { %v3255_v13 = vadd.f32 %v3254_v62, %v3142_v2  ;;  %4849 = vmatpush.msrb.mxu1 %v4403_v57  ;;  %v3035_v62 = vadd.f32 %v10528_v42, %v10311_v34  ;;  %v7131_v57 = vpop.permute.xlu2 %7130 }
 0x4fd   : > { %v3480_v38 = vpop.f32.mrf.mxu1  ;;  %v3368_v24 = vadd.f32 %v3367_v6, %v3255_v13  ;;  %v3688_v6 = vrot.slane %v3567_v4, 7 }
 0x4ff   : > { %v3481_v49 = vadd.f32 %v3480_v38, %v3368_v24  ;;  %v10850_v15 = vsel %vm591_vm1, %v3688_v6, %v3689_v36  ;;  %v3148_v38 = vadd.f32 %v3147_v53, %v3035_v62  ;;  %v10865_v6 = vsel %vm591_vm1, %v3689_v36, %v3691_v14 }
 0x500   : > { %6780 = vmatmul.msk.f32.gmra.mxu1 %vm333_vm0, %v2425_v61  ;;  %v10841_v31 = vld [vmem:[#allocation2 + $0x108] sm:$0xff]  ;;  %v3373_v24 = vpop.f32.mrf.mxu0 }
 0x501   : > { %3546 = vst.msk [vmem:[#allocation2 + $0x110] sm:$0xff] %vm333_vm0, %v3481_v49  ;;  %3987 = vrot.lane.b32.xlu1 %v10841_v31, %s7733_s11  ;;  %v7132_v49 = vunpack.i.l.bf16 %v7131_v57 }
 0x502   : > { %v3257_v19 = vpop.f32.mrf.mxu3 }
 0x503   : > { %v3258_v54 = vadd.f32 %v3257_v19, %v3145_v10  ;;  %v3150_v10 = vpop.f32.mrf.mxu2  ;;  %v3038_v19 = vadd.f32 %v10528_v42, %v10321_v40  ;;  %v2814_v53 = vsel %vm333_vm0, %v10509_v3, %v7132_v49  ;;  %v3696_v49 = vrot.slane %v10622_v9, 7 }
 0x505   : > { %v3483_v22 = vpop.f32.mrf.mxu1  ;;  %v3371_v46 = vadd.f32 %v3370_v59, %v3258_v54  ;;  %v7126_v8 = vpop.permute.xlu1 %7125 }
 0x506   : > { %v7128_v2 = vunpack.i.h.bf16 %v7126_v8  ;;  %v7127_v23 = vunpack.i.l.bf16 %v7126_v8  ;;  %v3151_v8 = vadd.f32 %v3150_v10, %v3038_v19 }
 0x507   : > { %v3484_v52 = vadd.f32 %v3483_v22, %v3371_v46 }
 0x508   : > { %v2813_v13 = vsel %vm333_vm0, %v10429_v27, %v7127_v23  ;;  %v4257_v61 = vsel %vm333_vm0, %v10850_v15, %v7128_v2  ;;  %v10856_v50 = vld [vmem:[#allocation2 + $0x110] sm:$0xff]  ;;  %v7133_v27 = vunpack.i.h.bf16 %v7131_v57  ;;  %v3693_v2 = vrot.slane %v3571_v44, 7  ;;  %v3376_v3 = vpop.f32.mrf.mxu0  ;;  %v3575_v44 = vld [vmem:[#allocation2 + $0x60] sm:$0xff] }
 0x509   : > { %3547 = vst.msk [vmem:[#allocation2 + $0x128] sm:$0xff] %vm333_vm0, %v3484_v52  ;;  %3277 = vmatmul.f32.gmra.mxu3 %v2813_v13  ;;  %4517 = vmatmul.f32.gmra.mxu2 %v4257_v61  ;;  %v3694_v23 = vrot.slane %v10609_v5, 7 }
 0x50a   : > { %3989 = vrot.lane.b32.xlu2 %v10856_v50, %s7733_s11  ;;  %v3260_v34 = vpop.f32.mrf.mxu3  ;;  %v4258_v22 = vsel %vm333_vm0, %v10865_v6, %v7133_v27 }
 0x50b   : > { %v3261_v26 = vadd.f32 %v3260_v34, %v3148_v38  ;;  %v7644_v34 = vld [vmem:[#allocation2 + $0x1b0] sm:$0xff]  ;;  %v10891_v19 = vsel %vm591_vm1, %v3694_v23, %v3696_v49 }
 0x50d   : > { %v3486_v59 = vpop.f32.mrf.mxu1  ;;  %v3374_v4 = vadd.f32 %v3373_v24, %v3261_v26  ;;  %v10878_v24 = vsel %vm591_vm1, %v3693_v2, %v3694_v23  ;;  %v4386_v2 = vld [vmem:[%s13310_s5 + $0xf8] sm:$0xff] }
 0x50e   : > { %4608 = vmatpush.msra.mxu3 %v4386_v2 }
 0x50f   : > { %v3487_v54 = vadd.f32 %v3486_v59, %v3374_v4 }
 0x510   : > { %v10871_v46 = vld [vmem:[#allocation2 + $0x128] sm:$0xff] }
 0x511   : > { %3548 = vst.msk [vmem:[#allocation2 + $0x130] sm:$0xff] %vm333_vm0, %v3487_v54  ;;  %3280 = vmatmul.f32.gmra.mxu3 %v2814_v53  ;;  %4520 = vmatmul.f32.gmra.mxu2 %v4258_v22 }
 0x512   : > { %3991 = vrot.lane.b32.xlu0 %v10871_v46, %s7733_s11  ;;  %v3263_v40 = vpop.f32.mrf.mxu3 }
 0x513   : > { %v3264_v36 = vadd.f32 %v3263_v40, %v3151_v8  ;;  %v10901_v8 = vpop.f32.mrf.mxu2 }
 0x515   : > { %v3377_v62 = vadd.f32 %v3376_v3, %v3264_v36  ;;  %v7136_v52 = vpop.permute.xlu0 %7135  ;;  %v3489_v13 = vpop.f32.mrf.mxu1  ;;  %v3698_v36 = vrot.slane %v3575_v44, 7 }
 0x516   : > { %v7138_v61 = vunpack.i.h.bf16 %v7136_v52  ;;  %v7137_v38 = vunpack.i.l.bf16 %v7136_v52  ;;  %v7645_v52 = vld [vmem:[#allocation2 + $0x1d0] sm:$0xff] }
 0x517   : > { %v3490_v57 = vadd.f32 %v3489_v13, %v3377_v62 }
 0x518   : > { %v2815_v26 = vsel %vm333_vm0, %v7644_v34, %v7137_v38  ;;  %v4259_v14 = vsel %vm333_vm0, %v10878_v24, %v7138_v61  ;;  %v10883_v27 = vld [vmem:[#allocation2 + $0x130] sm:$0xff]  ;;  %v3701_v38 = vrot.slane %v10673_v25, 7  ;;  %v4426_v25 = vld [vmem:[%s13310_s5 + $0x238] sm:$0xff] }
 0x519   : > { %3549 = vst.msk [vmem:[#allocation2 + $0x148] sm:$0xff] %vm333_vm0, %v3490_v57  ;;  %3283 = vmatmul.f32.gmra.mxu3 %v2815_v26  ;;  %4523 = vmatmul.f32.gmra.mxu2 %v4259_v14  ;;  %v7164_v5 = vpack.i.bf16 %v10883_v27, %v10763_v20  ;;  %v7146_v20 = vpop.permute.xlu2 %7145 }
 0x51a   : > { %4850 = vmatmul.f32.vlgmr.msrb.gmra.mxu1 %v4259_v14  ;;  %v7147_v40 = vunpack.i.l.bf16 %v7146_v20  ;;  %v7148_v23 = vunpack.i.h.bf16 %v7146_v20  ;;  %4955 = vmatpush.msrb.mxu2 %v4426_v25 }
 0x51b   : > { %7165 = vrot.lane.b32.xlu1 %v7164_v5, %s7733_s11  ;;  %v10917_v57 = vpop.f32.mrf.mxu2 }
 0x51d   : > { %v7141_v59 = vpop.permute.xlu1 %7140 }
 0x51e   : > { %v7143_v4 = vunpack.i.h.bf16 %v7141_v59  ;;  %v7142_v10 = vunpack.i.l.bf16 %v7141_v59  ;;  %v3579_v59 = vld [vmem:[#allocation2 + $0x80] sm:$0xff] }
 0x520   : > { %v2816_v54 = vsel %vm333_vm0, %v10548_v55, %v7142_v10  ;;  %v4260_v53 = vsel %vm333_vm0, %v10891_v19, %v7143_v4  ;;  %v10897_v22 = vld [vmem:[#allocation2 + $0x148] sm:$0xff]  ;;  %v3699_v55 = vrot.slane %v10642_v28, 7  ;;  %v4402_v4 = vld [vmem:[%s13310_s5 + $0x178] sm:$0xff] }
 0x521   : > { %3286 = vmatmul.f32.gmra.mxu3 %v2816_v54  ;;  %4526 = vmatmul.f32.gmra.mxu2 %v4260_v53  ;;  %v7169_v9 = vpack.i.bf16 %v10897_v22, %v10789_v43  ;;  %v2817_v43 = vsel %vm333_vm0, %v7645_v52, %v7147_v40  ;;  %v3703_v54 = vrot.slane %v3579_v59, 7  ;;  %v3972_v20 = vpop.permute.xlu2 %3971 }
 0x522   : > { %4853 = vmatmul.f32.gmra.mxu1 %v4260_v53  ;;  %v10912_v61 = vsel %vm591_vm1, %v3698_v36, %v3699_v55  ;;  %v10920_v5 = vsel %vm591_vm1, %v3699_v55, %v3701_v38  ;;  %4721 = vmatpush.msrb.mxu0 %v4402_v4  ;;  %v4385_v55 = vld [vmem:[%s13310_s5 + $0xf0] sm:$0xff]  ;;  %v4384_v4 = vld [vmem:[%s13310_s5 + $0xe8] sm:$0xff] }
 0x523   : > { %7170 = vrot.lane.b32.xlu2 %v7169_v9, %s7733_s11  ;;  %v4261_v28 = vsel %vm333_vm0, %v10912_v61, %v7148_v23  ;;  %v10933_v53 = vpop.f32.mrf.mxu2  ;;  %v7646_v9 = vld [vmem:[#allocation2 + $0x1f0] sm:$0xff]  ;;  %4609 = vmatpush.msra.mxu3 %v4385_v55 }
 0x525   : > { %v7156_v3 = vpop.permute.xlu1 %7155  ;;  %4610 = vmatpush.msra.mxu3 %v4384_v4 }
 0x526   : > { %v7158_v62 = vunpack.i.h.bf16 %v7156_v3  ;;  %v7157_v10 = vunpack.i.l.bf16 %v7156_v3 }
 0x528   : > { %v2822_v13 = vsel %vm333_vm0, %v10425_v48, %v7158_v62  ;;  %v2819_v44 = vsel %vm333_vm0, %v7646_v9, %v7157_v10 }
 0x529   : > { %3289 = vmatmul.f32.gmra.mxu3 %v2817_v43  ;;  %3405 = vmatmul.f32.gmra.mxu0 %v2822_v13 }
 0x52a   : > { %4529 = vmatmul.f32.gmra.mxu2 %v4261_v28  ;;  %4856 = vmatmul.f32.gmra.mxu1 %v4261_v28  ;;  %v3583_v28 = vld [vmem:[#allocation2 + $0xa0] sm:$0xff] }
 0x52b   : > { %v10948_v52 = vpop.f32.mrf.mxu2  ;;  %v3708_v38 = vrot.slane %v3583_v28, 7 }
 0x52d   : > { %v7151_v34 = vpop.permute.xlu0 %7150 }
 0x52e   : > { %v7153_v26 = vunpack.i.h.bf16 %v7151_v34  ;;  %v7152_v14 = vunpack.i.l.bf16 %v7151_v34  ;;  %v3709_v34 = vrot.slane %v10717_v7, 7 }
 0x530   : > { %v2818_v48 = vsel %vm333_vm0, %v10665_v18, %v7152_v14  ;;  %v4262_v49 = vsel %vm333_vm0, %v10920_v5, %v7153_v26  ;;  %v3704_v18 = vrot.slane %v10690_v63, 7  ;;  %v3706_v63 = vrot.slane %v10702_v37, 7  ;;  %v4401_v37 = vld [vmem:[%s13310_s5 + $0x170] sm:$0xff]  ;;  %v3379_v26 = vpop.f32.mrf.mxu0 }
 0x531   : > { %3292 = vmatmul.f32.gmra.mxu3 %v2818_v48  ;;  %4722 = vmatpush.msrb.mxu0 %v4401_v37  ;;  %v3492_v48 = vpop.f32.mrf.mxu1 }
 0x532   : > { %4532 = vmatmul.f32.gmra.mxu2 %v4262_v49  ;;  %4859 = vmatmul.f32.gmra.mxu1 %v4262_v49  ;;  %v10937_v40 = vsel %vm591_vm1, %v3703_v54, %v3704_v18  ;;  %v10946_v62 = vsel %vm591_vm1, %v3704_v18, %v3706_v63  ;;  %v10961_v49 = vsel %vm591_vm1, %v3708_v38, %v3709_v34  ;;  %v4400_v18 = vld [vmem:[%s13310_s5 + $0x168] sm:$0xff] }
 0x533   : > { %v4263_v36 = vsel %vm333_vm0, %v10937_v40, %v3972_v20  ;;  %v10969_v10 = vpop.f32.mrf.mxu2  ;;  %4723 = vmatpush.msrb.mxu0 %v4400_v18  ;;  %v3978_v9 = vpop.permute.xlu2 %3977 }
 0x538   : > { %v3382_v55 = vpop.f32.mrf.mxu0 }
 0x539   : > { %3295 = vmatmul.f32.gmra.mxu3 %v2819_v44  ;;  %v3044_v44 = vadd.f32 %v10528_v42, %v10337_v56  ;;  %v4383_v56 = vld [vmem:[%s13310_s5 + $0xe0] sm:$0xff] }
 0x53a   : > { %4535 = vmatmul.f32.gmra.mxu2 %v4263_v36  ;;  %4862 = vmatmul.f32.gmra.mxu1 %v4263_v36 }
 0x53b   : > { %4611 = vmatpush.msra.mxu3 %v4383_v56 }
 0x53d   : > { %v7161_v2 = vpop.permute.xlu0 %7160 }
 0x53e   : > { %v7163_v23 = vunpack.i.h.bf16 %v7161_v2  ;;  %v7162_v3 = vunpack.i.l.bf16 %v7161_v2  ;;  %v3157_v2 = vadd.f32 %v10917_v57, %v3044_v44  ;;  %v3714_v57 = vrot.slane %v10746_v1, 7 }
 0x540   : > { %v2823_v43 = vsel %vm333_vm0, %v10461_v51, %v7162_v3  ;;  %v4264_v13 = vsel %vm333_vm0, %v10946_v62, %v7163_v23  ;;  %v3041_v51 = vadd.f32 %v10528_v42, %v10329_v41  ;;  %v4425_v41 = vld [vmem:[%s13310_s5 + $0x230] sm:$0xff]  ;;  %v3587_v23 = vld [vmem:[#allocation2 + $0xc0] sm:$0xff]  ;;  %v3495_v3 = vpop.f32.mrf.mxu1  ;;  %v10990_v42 = vpop.f32.mrf.mxu2 }
 0x541   : > { %3408 = vmatmul.f32.gmra.mxu0 %v2823_v43  ;;  %4956 = vmatpush.msrb.mxu2 %v4425_v41  ;;  %v3713_v28 = vrot.slane %v3587_v23, 7  ;;  %v3385_v4 = vpop.f32.mrf.mxu0 }
 0x542   : > { %4538 = vmatmul.f32.gmra.mxu2 %v4264_v13  ;;  %4865 = vmatmul.f32.gmra.mxu1 %v4264_v13  ;;  %v3154_v59 = vadd.f32 %v10901_v8, %v3041_v51  ;;  %v3711_v8 = vrot.slane %v10730_v47, 7 }
 0x543   : > { %v3976_v14 = vpop.permute.xlu1 %3975  ;;  %v11001_v51 = vsel %vm591_vm1, %v3713_v28, %v3714_v57 }
 0x544   : > { %v4265_v25 = vsel %vm333_vm0, %v10961_v49, %v3976_v14  ;;  %v10981_v63 = vsel %vm591_vm1, %v3709_v34, %v3711_v8  ;;  %v10996_v34 = vld [vmem:[%s13309_s4] ss:$0 sm:$0xff] }
 0x545   : > { %v4266_v47 = vsel %vm333_vm0, %v10981_v63, %v3978_v9 }
 0x548   : > { %v11016_v18 = vpop.f32.mrf.mxu2 }
 0x54a   : > { %4541 = vmatmul.f32.gmra.mxu2 %v4265_v25  ;;  %4868 = vmatmul.f32.gmra.mxu1 %v4265_v25 }
 0x54c   : > { %v3266_v7 = vpop.f32.mrf.mxu3 }
 0x54d   : > { %v3267_v54 = vadd.f32 %v3266_v7, %v3154_v59  ;;  %v4399_v7 = vld [vmem:[%s13310_s5 + $0x160] sm:$0xff] }
 0x54e   : > { %4724 = vmatpush.msrb.mxu0 %v4399_v7 }
 0x54f   : > { %v3380_v20 = vadd.f32 %v3379_v26, %v3267_v54  ;;  %v3047_v26 = vadd.f32 %v10996_v34, %v10351_v58  ;;  %v3716_v54 = vrot.slane %v10772_v12, 7 }
 0x551   : > { %v3493_v36 = vadd.f32 %v3492_v48, %v3380_v20  ;;  %v3160_v59 = vadd.f32 %v10933_v53, %v3047_v26  ;;  %v3498_v53 = vpop.f32.mrf.mxu1  ;;  %v11021_v44 = vsel %vm591_vm1, %v3714_v57, %v3716_v54  ;;  %v3984_v57 = vpop.permute.xlu2 %3983 }
 0x552   : > { %4544 = vmatmul.f32.gmra.mxu2 %v4266_v47  ;;  %4871 = vmatmul.f32.gmra.mxu1 %v4266_v47  ;;  %v3591_v47 = vld [vmem:[#allocation2 + $0xe0] sm:$0xff] }
 0x553   : > { %3550 = vst.msk [vmem:[#allocation2 + $0x150] sm:$0xff] %vm333_vm0, %v3493_v36  ;;  %v3980_v38 = vpop.permute.xlu0 %3979 }
 0x554   : > { %v3269_v43 = vpop.f32.mrf.mxu3  ;;  %v4267_v1 = vsel %vm333_vm0, %v11001_v51, %v3980_v38 }
 0x555   : > { %v3270_v13 = vadd.f32 %v3269_v43, %v3157_v2  ;;  %v3718_v43 = vrot.slane %v3591_v47, 7 }
 0x557   : > { %v3383_v37 = vadd.f32 %v3382_v55, %v3270_v13  ;;  %v3719_v13 = vrot.slane %v10802_v0, 7 }
 0x559   : > { %v3496_v14 = vadd.f32 %v3495_v3, %v3383_v37  ;;  %v3388_v3 = vpop.f32.mrf.mxu0  ;;  %v3501_v28 = vpop.f32.mrf.mxu1  ;;  %v11039_v38 = vsel %vm591_vm1, %v3718_v43, %v3719_v13 }
 0x55a   : > { %v11003_v48 = vld [vmem:[#allocation2 + $0x150] sm:$0xff]  ;;  %4547 = vmatmul.f32.gmra.mxu2 %v4267_v1  ;;  %4874 = vmatmul.f32.gmra.mxu1 %v4267_v1  ;;  %v11036_v37 = vpop.f32.mrf.mxu2  ;;  %v4269_v0 = vsel %vm333_vm0, %v11039_v38, %v3984_v57  ;;  %v3721_v1 = vrot.slane %v10823_v32, 7  ;;  %v4398_v32 = vld [vmem:[%s13310_s5 + $0x158] sm:$0xff]  ;;  %v3053_v57 = vadd.f32 %v10996_v34, %v10370_v16 }
 0x55b   : > { %3551 = vst.msk [vmem:[#allocation2 + $0x168] sm:$0xff] %vm333_vm0, %v3496_v14  ;;  %v7174_v25 = vpack.i.bf16 %v10850_v15, %v11003_v48  ;;  %v3982_v20 = vpop.permute.xlu1 %3981  ;;  %v3050_v15 = vadd.f32 %v10996_v34, %v10359_v29  ;;  %4725 = vmatpush.msrb.mxu0 %v4398_v32 }
 0x55c   : > { %v3272_v58 = vpop.f32.mrf.mxu3  ;;  %v4268_v12 = vsel %vm333_vm0, %v11021_v44, %v3982_v20 }
 0x55d   : > { %v3273_v41 = vadd.f32 %v3272_v58, %v3160_v59  ;;  %7175 = vrot.lane.b32.xlu0 %v7174_v25, %s7733_s11  ;;  %v3163_v55 = vadd.f32 %v10948_v52, %v3050_v15  ;;  %v4382_v52 = vld [vmem:[%s13310_s5 + $0xd8] sm:$0xff]  ;;  %v4424_v59 = vld [vmem:[%s13310_s5 + $0x228] sm:$0xff] }
 0x55e   : > { %4612 = vmatpush.msra.mxu3 %v4382_v52  ;;  %4957 = vmatpush.msrb.mxu2 %v4424_v59  ;;  %v4380_v59 = vld [vmem:[%s13310_s5 + $0xc8] sm:$0xff] }
 0x55f   : > { %v3386_v8 = vadd.f32 %v3385_v4, %v3273_v41  ;;  %v11054_v4 = vsel %vm591_vm1, %v3719_v13, %v3721_v1  ;;  %v3595_v41 = vld [vmem:[#allocation2 + $0x100] sm:$0xff]  ;;  %v3729_v13 = vrot.slane %v10871_v46, 7  ;;  %v3731_v46 = vrot.slane %v10883_v27, 7 }
 0x560   : > { %v3723_v54 = vrot.slane %v3595_v41, 7  ;;  %v4423_v1 = vld [vmem:[%s13310_s5 + $0x220] sm:$0xff] }
 0x561   : > { %v3499_v9 = vadd.f32 %v3498_v53, %v3386_v8  ;;  %v3724_v8 = vrot.slane %v10841_v31, 7  ;;  %4958 = vmatpush.msrb.mxu2 %v4423_v1  ;;  %v11109_v27 = vsel %vm591_vm1, %v3729_v13, %v3731_v46 }
 0x562   : > { %v11023_v36 = vld [vmem:[#allocation2 + $0x168] sm:$0xff]  ;;  %4550 = vmatmul.f32.gmra.mxu2 %v4268_v12  ;;  %4877 = vmatmul.f32.gmra.mxu1 %v4268_v12  ;;  %v11062_v53 = vpop.f32.mrf.mxu2  ;;  %v3726_v12 = vrot.slane %v10856_v50, 7 }
 0x563   : > { %3552 = vst.msk [vmem:[#allocation2 + $0x170] sm:$0xff] %vm333_vm0, %v3499_v9  ;;  %v7179_v2 = vpack.i.bf16 %v10865_v6, %v11023_v36  ;;  %v11070_v15 = vsel %vm591_vm1, %v3723_v54, %v3724_v8  ;;  %v4381_v9 = vld [vmem:[%s13310_s5 + $0xd0] sm:$0xff] }
 0x564   : > { %v3275_v29 = vpop.f32.mrf.mxu3  ;;  %4613 = vmatpush.msra.mxu3 %v4381_v9  ;;  %v3990_v31 = vpop.permute.xlu2 %3989  ;;  %v3056_v9 = vadd.f32 %v10996_v34, %v10384_v45  ;;  %v3734_v45 = vrot.slane %v10897_v22, 7 }
 0x565   : > { %v3276_v23 = vadd.f32 %v3275_v29, %v3163_v55  ;;  %7180 = vrot.lane.b32.xlu1 %v7179_v2, %s7733_s11  ;;  %v11081_v2 = vsel %vm591_vm1, %v3724_v8, %v3726_v12  ;;  %v3599_v29 = vld [vmem:[#allocation2 + $0x120] sm:$0xff]  ;;  %v7648_v8 = vld [vmem:[#allocation2 + $0x208] sm:$0xff] }
 0x566   : > { %v4272_v47 = vsel %vm333_vm0, %v11081_v2, %v3990_v31  ;;  %v3728_v43 = vrot.slane %v3599_v29, 7  ;;  %4614 = vmatpush.msra.mxu3 %v4380_v59  ;;  %v7649_v59 = vld [vmem:[#allocation2 + $0x210] sm:$0xff] }
 0x567   : > { %v3389_v56 = vadd.f32 %v3388_v3, %v3276_v23  ;;  %v3504_v23 = vpop.f32.mrf.mxu1  ;;  %v4397_v3 = vld [vmem:[%s13310_s5 + $0x150] sm:$0xff] }
 0x568   : > { %4726 = vmatpush.msrb.mxu0 %v4397_v3  ;;  %v3169_v3 = vadd.f32 %v10990_v42, %v3056_v9  ;;  %v3062_v9 = vadd.f32 %v10996_v34, %v10432_v60 }
 0x569   : > { %v3502_v6 = vadd.f32 %v3501_v28, %v3389_v56  ;;  %v11092_v28 = vsel %vm591_vm1, %v3728_v43, %v3729_v13  ;;  %v4396_v43 = vld [vmem:[%s13310_s5 + $0x148] sm:$0xff] }
 0x56a   : > { %v11041_v26 = vld [vmem:[#allocation2 + $0x170] sm:$0xff]  ;;  %4553 = vmatmul.f32.gmra.mxu2 %v4269_v0  ;;  %4880 = vmatmul.f32.gmra.mxu1 %v4269_v0  ;;  %v11077_v55 = vpop.f32.mrf.mxu2  ;;  %v3391_v0 = vpop.f32.mrf.mxu0 }
 0x56b   : > { %3553 = vst.msk [vmem:[#allocation2 + $0x188] sm:$0xff] %vm333_vm0, %v3502_v6  ;;  %v7184_v14 = vpack.i.bf16 %v10878_v24, %v11041_v26  ;;  %v3986_v25 = vpop.permute.xlu0 %3985  ;;  %4727 = vmatpush.msrb.mxu0 %v4396_v43  ;;  %v4378_v43 = vld [vmem:[%s13310_s5 + $0xb8] sm:$0xff] }
 0x56c   : > { %v4270_v24 = vsel %vm333_vm0, %v11054_v4, %v3986_v25 }
 0x56d   : > { %7185 = vrot.lane.b32.xlu2 %v7184_v14, %s7733_s11  ;;  %v3166_v14 = vadd.f32 %v10969_v10, %v3053_v57 }
 0x56f   : > { %v3507_v16 = vpop.f32.mrf.mxu1 }
 0x572   : > { %v11056_v58 = vld [vmem:[#allocation2 + $0x188] sm:$0xff]  ;;  %4556 = vmatmul.f32.gmra.mxu2 %v4270_v24  ;;  %4883 = vmatmul.f32.gmra.mxu1 %v4270_v24  ;;  %v11089_v52 = vpop.f32.mrf.mxu2  ;;  %v3394_v29 = vpop.f32.mrf.mxu0 }
 0x573   : > { %v7189_v7 = vpack.i.bf16 %v10891_v19, %v11056_v58  ;;  %v3988_v20 = vpop.permute.xlu1 %3987 }
 0x574   : > { %v4271_v19 = vsel %vm333_vm0, %v11070_v15, %v3988_v20 }
 0x575   : > { %7190 = vrot.lane.b32.xlu0 %v7189_v7, %s7733_s11 }
 0x57a   : > { %4559 = vmatmul.f32.gmra.mxu2 %v4271_v19  ;;  %4886 = vmatmul.f32.gmra.mxu1 %v4271_v19  ;;  %v11106_v41 = vpop.f32.mrf.mxu2 }
 0x57d   : > { %v7171_v12 = vpop.permute.xlu2 %7170 }
 0x57e   : > { %v7172_v13 = vunpack.i.l.bf16 %v7171_v12 }
 0x580   : > { %v2821_v42 = vsel %vm333_vm0, %v7649_v59, %v7172_v13 }
 0x582   : > { %4562 = vmatmul.f32.gmra.mxu2 %v4272_v47  ;;  %4889 = vmatmul.f32.gmra.mxu1 %v4272_v47  ;;  %v3603_v47 = vld [vmem:[#allocation2 + $0x140] sm:$0xff]  ;;  %v11122_v46 = vpop.f32.mrf.mxu2 }
 0x583   : > { %v3733_v57 = vrot.slane %v3603_v47, 7 }
 0x584   : > { %v3992_v56 = vpop.permute.xlu0 %3991 }
 0x585   : > { %v4273_v6 = vsel %vm333_vm0, %v11092_v28, %v3992_v56  ;;  %v11128_v1 = vsel %vm591_vm1, %v3733_v57, %v3734_v45  ;;  %v4377_v57 = vld [vmem:[%s13310_s5 + $0xb0] sm:$0xff] }
 0x58a   : > { %4565 = vmatmul.f32.gmra.mxu2 %v4273_v6  ;;  %4892 = vmatmul.f32.gmra.mxu1 %v4273_v6 }
 0x58c   : > { %v3278_v25 = vpop.f32.mrf.mxu3 }
 0x58d   : > { %v3279_v24 = vadd.f32 %v3278_v25, %v3166_v14  ;;  %v7166_v7 = vpop.permute.xlu1 %7165  ;;  %v3059_v25 = vadd.f32 %v10996_v34, %v10403_v30  ;;  %v4379_v30 = vld [vmem:[%s13310_s5 + $0xc0] sm:$0xff] }
 0x58e   : > { %v7168_v32 = vunpack.i.h.bf16 %v7166_v7  ;;  %v7167_v10 = vunpack.i.l.bf16 %v7166_v7  ;;  %4615 = vmatpush.msra.mxu3 %v4379_v30 }
 0x58f   : > { %v3392_v54 = vadd.f32 %v3391_v0, %v3279_v24  ;;  %v3510_v0 = vpop.f32.mrf.mxu1 }
 0x590   : > { %v2820_v20 = vsel %vm333_vm0, %v7648_v8, %v7167_v10  ;;  %v4274_v19 = vsel %vm333_vm0, %v11109_v27, %v7168_v32  ;;  %v3172_v10 = vadd.f32 %v11016_v18, %v3059_v25  ;;  %4616 = vmatpush.msra.mxu3 %v4378_v43 }
 0x591   : > { %v3505_v31 = vadd.f32 %v3504_v23, %v3392_v54  ;;  %3298 = vmatmul.f32.gmra.mxu3 %v2820_v20  ;;  %v7173_v23 = vunpack.i.h.bf16 %v7171_v12 }
 0x592   : > { %4568 = vmatmul.f32.gmra.mxu2 %v4274_v19  ;;  %4895 = vmatmul.f32.gmra.mxu1 %v4274_v19  ;;  %v4395_v19 = vld [vmem:[%s13310_s5 + $0x140] sm:$0xff] }
 0x593   : > { %3554 = vst.msk [vmem:[#allocation2 + $0x190] sm:$0xff] %vm333_vm0, %v3505_v31  ;;  %v4275_v7 = vsel %vm333_vm0, %v11128_v1, %v7173_v23  ;;  %4728 = vmatpush.msrb.mxu0 %v4395_v19  ;;  %v11149_v31 = vpop.f32.mrf.mxu2  ;;  %4617 = vmatpush.msra.mxu3 %v4377_v57  ;;  %v4375_v23 = vld [vmem:[%s13310_s5 + $0xa0] sm:$0xff]  ;;  %v3068_v19 = vadd.f32 %v10996_v34, %v10482_v39  ;;  %v11213_v39 = vld [vmem:[#allocation2 + $0x30] sm:$0xff] }
 0x594   : > { %v3281_v56 = vpop.f32.mrf.mxu3  ;;  %v3071_v57 = vadd.f32 %v10996_v34, %v10492_v17  ;;  %v11234_v17 = vld [vmem:[#allocation2 + $0x50] sm:$0xff] }
 0x595   : > { %v3282_v6 = vadd.f32 %v3281_v56, %v3169_v3 }
 0x597   : > { %v3395_v14 = vadd.f32 %v3394_v29, %v3282_v6  ;;  %v3175_v29 = vadd.f32 %v11036_v37, %v3062_v9  ;;  %v4422_v6 = vld [vmem:[%s13310_s5 + $0x218] sm:$0xff] }
 0x598   : > { %4959 = vmatpush.msrb.mxu2 %v4422_v6  ;;  %v3184_v6 = vadd.f32 %v11089_v52, %v3071_v57  ;;  %v4421_v57 = vld [vmem:[%s13310_s5 + $0x210] sm:$0xff] }
 0x599   : > { %v3508_v24 = vadd.f32 %v3507_v16, %v3395_v14  ;;  %3301 = vmatmul.f32.gmra.mxu3 %v2821_v42  ;;  %v3397_v16 = vpop.f32.mrf.mxu0  ;;  %v4374_v42 = vld [vmem:[%s13310_s5 + $0x98] sm:$0xff] }
 0x59a   : > { %4571 = vmatmul.f32.gmra.mxu2 %v4275_v7  ;;  %4898 = vmatmul.f32.gmra.mxu1 %v4275_v7  ;;  %v11134_v32 = vld [vmem:[#allocation2 + $0x190] sm:$0xff] }
 0x59b   : > { %3555 = vst.msk [vmem:[#allocation2 + $0x1a8] sm:$0xff] %vm333_vm0, %v3508_v24  ;;  %v7194_v54 = vpack.i.bf16 %v10912_v61, %v11134_v32  ;;  %v3513_v61 = vpop.f32.mrf.mxu1  ;;  %4960 = vmatpush.msrb.mxu2 %v4421_v57 }
 0x59c   : > { %v3284_v8 = vpop.f32.mrf.mxu3 }
 0x59d   : > { %v3285_v20 = vadd.f32 %v3284_v8, %v3172_v10  ;;  %7195 = vrot.lane.b32.xlu1 %v7194_v54, %s7733_s11  ;;  %v11184_v10 = vpop.f32.mrf.mxu2 }
 0x59e   : > { %13476 = vst [vmem:[#allocation21_spill] sm:$0xff] %v11184_v10 }
 0x59f   : > { %v3398_v18 = vadd.f32 %v3397_v16, %v3285_v20  ;;  %v4373_v16 = vld [vmem:[%s13310_s5 + $0x90] sm:$0xff]  ;;  %v4371_v20 = vld [vmem:[%s13310_s5 + $0x80] sm:$0xff] }
 0x5a1   : > { %v3511_v12 = vadd.f32 %v3510_v0, %v3398_v18  ;;  %v3400_v13 = vpop.f32.mrf.mxu0  ;;  %v3065_v0 = vadd.f32 %v10996_v34, %v10467_v11  ;;  %v3822_v34 = vrot.slane %v11234_v17, 1 }
 0x5a2   : > { %v11151_v47 = vld [vmem:[#allocation2 + $0x1a8] sm:$0xff] }
 0x5a3   : > { %3556 = vst.msk [vmem:[#allocation2 + $0x1b0] sm:$0xff] %vm333_vm0, %v3511_v12  ;;  %v7199_v3 = vpack.i.bf16 %v10920_v5, %v11151_v47  ;;  %v4376_v5 = vld [vmem:[%s13310_s5 + $0xa8] sm:$0xff]  ;;  %v3178_v25 = vadd.f32 %v11062_v53, %v3065_v0  ;;  %v3516_v24 = vpop.f32.mrf.mxu1  ;;  %v4394_v53 = vld [vmem:[%s13310_s5 + $0x138] sm:$0xff]  ;;  %v7219_v12 = vpack.i.bf16 %v10793_v35, %v10961_v49 }
 0x5a4   : > { %v3287_v56 = vpop.f32.mrf.mxu3  ;;  %4618 = vmatpush.msra.mxu3 %v4376_v5  ;;  %4729 = vmatpush.msrb.mxu0 %v4394_v53 }
 0x5a5   : > { %v3288_v60 = vadd.f32 %v3287_v56, %v3175_v29  ;;  %7200 = vrot.lane.b32.xlu2 %v7199_v3, %s7733_s11  ;;  %v11209_v3 = vpop.f32.mrf.mxu2 }
 0x5a6   : > { %4619 = vmatpush.msra.mxu3 %v4375_v23  ;;  %13477 = vst [vmem:[#allocation22_spill] sm:$0xff] %v11209_v3 }
 0x5a7   : > { %v3401_v37 = vadd.f32 %v3400_v13, %v3288_v60  ;;  %v11216_v60 = vld [vmem:[#allocation2 + $0x28] sm:$0xff] }
 0x5a8   : > { %4620 = vmatpush.msra.mxu3 %v4374_v42 }
 0x5a9   : > { %v3514_v14 = vadd.f32 %v3513_v61, %v3401_v37  ;;  %v3403_v30 = vpop.f32.mrf.mxu0  ;;  %v3181_v61 = vadd.f32 %v11077_v55, %v3068_v19  ;;  %v3817_v55 = vrot.slane %v11213_v39, 1  ;;  %v11256_v19 = vld [vmem:[#allocation2 + $0x90] sm:$0xff] }
 0x5aa   : > { %v11175_v59 = vld [vmem:[#allocation2 + $0x1b0] sm:$0xff]  ;;  %4621 = vmatpush.msra.mxu3 %v4373_v16 }
 0x5ab   : > { %3557 = vst.msk [vmem:[#allocation2 + $0x1c8] sm:$0xff] %vm333_vm0, %v3514_v14  ;;  %v7204_v7 = vpack.i.bf16 %v10937_v40, %v11175_v59  ;;  %v4372_v40 = vld [vmem:[%s13310_s5 + $0x88] sm:$0xff]  ;;  %v3519_v56 = vpop.f32.mrf.mxu1  ;;  %v3574_v14 = vld [vmem:[#allocation2 + $0x58] sm:$0xff] }
 0x5ac   : > { %v3290_v11 = vpop.f32.mrf.mxu3  ;;  %4622 = vmatpush.msra.mxu3 %v4372_v40  ;;  %v3824_v52 = vrot.slane %v3574_v14, 1  ;;  %v3736_v14 = vrot.slane %v11003_v48, 7 }
 0x5ad   : > { %v3291_v54 = vadd.f32 %v3290_v11, %v3178_v25  ;;  %7205 = vrot.lane.b32.xlu0 %v7204_v7, %s7733_s11  ;;  %v11237_v7 = vpop.f32.mrf.mxu2  ;;  %v4393_v11 = vld [vmem:[%s13310_s5 + $0x130] sm:$0xff] }
 0x5ae   : > { %4623 = vmatpush.msra.mxu3 %v4371_v20  ;;  %13478 = vst [vmem:[#allocation23_spill] sm:$0xff] %v11237_v7  ;;  %4730 = vmatpush.msrb.mxu0 %v4393_v11  ;;  %v11245_v16 = vsel %vm720_vm2, %v3822_v34, %v3824_v52  ;;  %v3570_v20 = vld [vmem:[#allocation2 + $0x38] sm:$0xff]  ;;  %v3739_v52 = vrot.slane %v11023_v36, 7  ;;  %v11289_v11 = vld [vmem:[#allocation2 + $0xb0] sm:$0xff] }
 0x5af   : > { %v3404_v8 = vadd.f32 %v3403_v30, %v3291_v54 }
 0x5b1   : > { %v3517_v18 = vadd.f32 %v3516_v24, %v3404_v8  ;;  %v3406_v35 = vpop.f32.mrf.mxu0  ;;  %v7249_v8 = vpack.i.bf16 %v11245_v16, %v11070_v15 }
 0x5b2   : > { %v11201_v9 = vld [vmem:[#allocation2 + $0x1c8] sm:$0xff] }
 0x5b3   : > { %3558 = vst.msk [vmem:[#allocation2 + $0x1d0] sm:$0xff] %vm333_vm0, %v3517_v18  ;;  %v7209_v29 = vpack.i.bf16 %v10946_v62, %v11201_v9  ;;  %v3816_v62 = vrot.slane %v11216_v60, 1  ;;  %v3832_v18 = vrot.slane %v11256_v19, 1 }
 0x5b4   : > { %v3293_v43 = vpop.f32.mrf.mxu3 }
 0x5b5   : > { %v3294_v13 = vadd.f32 %v3293_v43, %v3181_v61  ;;  %7220 = vrot.lane.b32.xlu0 %v7219_v12, %s7733_s11  ;;  %7210 = vrot.lane.b32.xlu1 %v7209_v29, %s7733_s11  ;;  %v11222_v5 = vsel %vm720_vm2, %v3816_v62, %v3817_v55  ;;  %v3819_v61 = vrot.slane %v3570_v20, 1  ;;  %v11259_v12 = vld [vmem:[#allocation2 + $0x88] sm:$0xff]  ;;  %v11262_v15 = vpop.f32.mrf.mxu2  ;;  %v11301_v20 = vsel %vm591_vm1, %v3734_v45, %v3736_v14  ;;  %v3582_v14 = vld [vmem:[#allocation2 + $0x98] sm:$0xff] }
 0x5b6   : > { %v7234_v0 = vpack.i.bf16 %v11222_v5, %v11021_v44  ;;  %v3831_v29 = vrot.slane %v11259_v12, 1  ;;  %13479 = vst [vmem:[#allocation24_spill] sm:$0xff] %v11262_v15  ;;  %v7655_v43 = vld [vmem:[#allocation2 + $0x8] sm:$0xff]  ;;  %v13483_v15 = vrot.slane %v11056_v58, 7 }
 0x5b7   : > { %v3407_v49 = vadd.f32 %v3406_v35, %v3294_v13  ;;  %v3811_v13 = vrot.slane %v7655_v43, 1  ;;  %v3607_v35 = vld [vmem:[#allocation2 + $0x160] sm:$0xff] }
 0x5b9   : > { %v3520_v37 = vadd.f32 %v3519_v56, %v3407_v49  ;;  %v7656_v56 = vld [vmem:[#allocation2 + $0x10] sm:$0xff]  ;;  %v11267_v49 = vsel %vm720_vm2, %v3831_v29, %v3832_v18 }
 0x5ba   : > { %v11224_v23 = vld [vmem:[#allocation2 + $0x1d0] sm:$0xff] }
 0x5bb   : > { %3559 = vst.msk [vmem:[#allocation2 + $0x1e8] sm:$0xff] %vm333_vm0, %v3520_v37  ;;  %v7214_v42 = vpack.i.bf16 %v11224_v23, %v10786_v21  ;;  %v3522_v21 = vpop.f32.mrf.mxu1  ;;  %v11275_v37 = vsel %vm720_vm2, %v3817_v55, %v3819_v61  ;;  %v11303_v61 = vld [vmem:[#allocation2 + $0x48] sm:$0xff] }
 0x5bc   : > { %v3296_v25 = vpop.f32.mrf.mxu3  ;;  %v3821_v29 = vrot.slane %v11303_v61, 1 }
 0x5bd   : > { %v3297_v24 = vadd.f32 %v3296_v25, %v3184_v6  ;;  %7235 = vrot.lane.b32.xlu0 %v7234_v0, %s7733_s11  ;;  %7215 = vrot.lane.b32.xlu2 %v7214_v42, %s7733_s11  ;;  %v7264_v6 = vpack.i.bf16 %v11267_v49, %v11109_v27  ;;  %v3586_v42 = vld [vmem:[#allocation2 + $0xb8] sm:$0xff]  ;;  %v7239_v25 = vpack.i.bf16 %v11275_v37, %v11039_v38 }
 0x5be   : > { %v3409_v44 = vpop.f32.mrf.mxu0  ;;  %v3566_v38 = vld [vmem:[#allocation2 + $0x18] sm:$0xff] }
 0x5bf   : > { %v3410_v54 = vadd.f32 %v3409_v44, %v3297_v24  ;;  %v3738_v24 = vrot.slane %v3607_v35, 7  ;;  %v11312_v35 = vld [vmem:[#allocation2 + $0x68] sm:$0xff]  ;;  %v3814_v45 = vrot.slane %v3566_v38, 1  ;;  %v3834_v38 = vrot.slane %v3582_v14, 1 }
 0x5c0   : > { %v3826_v57 = vrot.slane %v11312_v35, 1 }
 0x5c1   : > { %v3523_v30 = vadd.f32 %v3522_v21, %v3410_v54  ;;  %v3837_v54 = vrot.slane %v11289_v11, 1  ;;  %v3839_v21 = vrot.slane %v3586_v42, 1  ;;  %v11320_v42 = vpop.f32.mrf.mxu2 }
 0x5c2   : > { %v11247_v53 = vld [vmem:[#allocation2 + $0x1e8] sm:$0xff]  ;;  %13480 = vst [vmem:[#allocation5_spill] sm:$0xff] %v11320_v42 }
 0x5c3   : > { %3560 = vst.msk [vmem:[#allocation2 + $0x1f0] sm:$0xff] %vm333_vm0, %v3523_v30  ;;  %v7224_v40 = vpack.i.bf16 %v10981_v63, %v11247_v53  ;;  %v3812_v63 = vrot.slane %v7656_v56, 1  ;;  %v4392_v30 = vld [vmem:[%s13310_s5 + $0x128] sm:$0xff]  ;;  %v3740_v56 = vsel %vm591_vm1, %v3738_v24, %v3739_v52 }
 0x5c4   : > { %4731 = vmatpush.msrb.mxu0 %v4392_v30 }
 0x5c5   : > { %7250 = vrot.lane.b32.xlu0 %v7249_v8, %s7733_s11  ;;  %7225 = vrot.lane.b32.xlu1 %v7224_v40, %s7733_s11  ;;  %v3813_v27 = vsel %vm720_vm2, %v3811_v13, %v3812_v63  ;;  %v11295_v8 = vld [vmem:[#allocation2 + $0x70] sm:$0xff]  ;;  %v3815_v30 = vsel %vm720_vm2, %v3812_v63, %v3814_v45 }
 0x5c6   : > { %v3827_v40 = vrot.slane %v11295_v8, 1 }
 0x5c7   : > { %v7186_v45 = vpop.permute.xlu2 %7185 }
 0x5ca   : > { %v11269_v62 = vld [vmem:[#allocation2 + $0x1f0] sm:$0xff] }
 0x5cb   : > { %v7229_v0 = vpack.i.bf16 %v11001_v51, %v11269_v62 }
 0x5cd   : > { %7265 = vrot.lane.b32.xlu0 %v7264_v6, %s7733_s11  ;;  %7230 = vrot.lane.b32.xlu2 %v7229_v0, %s7733_s11  ;;  %v11318_v6 = vsel %vm720_vm2, %v3821_v29, %v3822_v34  ;;  %v3578_v0 = vld [vmem:[#allocation2 + $0x78] sm:$0xff] }
 0x5ce   : > { %7240 = vrot.lane.b32.xlu1 %v7239_v25, %s7733_s11  ;;  %v11325_v25 = vsel %vm720_vm2, %v3837_v54, %v3839_v21  ;;  %v7244_v24 = vpack.i.bf16 %v11318_v6, %v11054_v4  ;;  %v11339_v4 = vld [vmem:[#allocation2 + $0xf0] sm:$0xff] }
 0x5cf   : > { %v7176_v55 = vpop.permute.xlu0 %7175  ;;  %v13349_v29 = vrot.slane %v11339_v4, 1 }
 0x5d0   : > { %v7178_v51 = vunpack.i.h.bf16 %v7176_v55  ;;  %v7177_v44 = vunpack.i.l.bf16 %v7176_v55  ;;  %v11330_v55 = vsel %vm720_vm2, %v3826_v57, %v3827_v40 }
 0x5d1   : > { %v7254_v34 = vpack.i.bf16 %v11330_v55, %v11081_v2  ;;  %v13351_v2 = vrot.slane %v11056_v58, 7 }
 0x5d2   : > { %v4276_v43 = vsel %vm333_vm0, %v11301_v20, %v7177_v44  ;;  %v4287_v13 = vsel %vm333_vm0, %v3813_v27, %v7178_v51  ;;  %v7279_v27 = vpack.i.bf16 %v11325_v25, %v3740_v56  ;;  %v3746_v51 = vrot.slane %v11134_v32, 7  ;;  %v11344_v32 = vld [vmem:[#allocation2 + $0xe8] sm:$0xff] }
 0x5d3   : > { %4574 = vmatmul.f32.gmra.mxu2 %v4276_v43  ;;  %4624 = vmatmul.f32.vlgmr.msra.gmra.mxu3 %v4287_v13  ;;  %v3829_v44 = vrot.slane %v3578_v0, 1  ;;  %v3846_v57 = vrot.slane %v11344_v32, 1 }
 0x5d4   : > { %4901 = vmatmul.f32.gmra.mxu1 %v4276_v43  ;;  %v11352_v63 = vsel %vm591_vm1, %v13351_v2, %v3746_v51 }
 0x5d5   : > { %7280 = vrot.lane.b32.xlu0 %v7279_v27, %s7733_s11  ;;  %7245 = vrot.lane.b32.xlu2 %v7244_v24, %s7733_s11  ;;  %v3619_v24 = vld [vmem:[#allocation2 + $0x1c0] sm:$0xff]  ;;  %v11355_v27 = vsel %vm720_vm2, %v3827_v40, %v3829_v44  ;;  %v3741_v44 = vrot.slane %v11041_v26, 7 }
 0x5d6   : > { %7255 = vrot.lane.b32.xlu1 %v7254_v34, %s7733_s11  ;;  %v11360_v34 = vsel %vm720_vm2, %v3832_v18, %v3834_v38  ;;  %v7259_v51 = vpack.i.bf16 %v11355_v27, %v11092_v28  ;;  %v11374_v18 = vpop.f32.mrf.mxu2  ;;  %v7188_v38 = vunpack.i.h.bf16 %v7186_v45  ;;  %v13352_v28 = vrot.slane %v10856_v50, 1 }
 0x5d7   : > { %v7181_v21 = vpop.permute.xlu1 %7180  ;;  %13481 = vst [vmem:[#allocation3_spill] sm:$0xff] %v11374_v18 }
 0x5d8   : > { %v7183_v43 = vunpack.i.h.bf16 %v7181_v21  ;;  %v7182_v13 = vunpack.i.l.bf16 %v7181_v21  ;;  %v7269_v21 = vpack.i.bf16 %v11360_v34, %v11128_v1 }
 0x5da   : > { %v4277_v0 = vsel %vm333_vm0, %v3740_v56, %v7182_v13  ;;  %v4288_v14 = vsel %vm333_vm0, %v3815_v30, %v7183_v43  ;;  %v11365_v56 = vsel %vm720_vm2, %v3846_v57, %v13349_v29  ;;  %v3598_v30 = vld [vmem:[#allocation2 + $0x118] sm:$0xff]  ;;  %v7187_v43 = vunpack.i.l.bf16 %v7186_v45  ;;  %v11387_v45 = vld [vmem:[#allocation2 + $0xd0] sm:$0xff] }
 0x5db   : > { %4577 = vmatmul.f32.gmra.mxu2 %v4277_v0  ;;  %4627 = vmatmul.f32.gmra.mxu3 %v4288_v14  ;;  %v7294_v40 = vpack.i.bf16 %v11365_v56, %v11352_v63  ;;  %v3753_v13 = vrot.slane %v3619_v24, 7  ;;  %v13350_v57 = vrot.slane %v11201_v9, 7  ;;  %v3854_v1 = vrot.slane %v3598_v30, 1 }
 0x5dc   : > { %4904 = vmatmul.f32.gmra.mxu1 %v4277_v0  ;;  %v4391_v0 = vld [vmem:[%s13310_s5 + $0x120] sm:$0xff]  ;;  %v3742_v14 = vsel %vm591_vm1, %v3739_v52, %v3741_v44  ;;  %v3842_v24 = vrot.slane %v11387_v45, 1  ;;  %v4289_v30 = vsel %vm333_vm0, %v11222_v5, %v7188_v38  ;;  %v11401_v44 = vld [vmem:[#allocation2 + $0xc8] sm:$0xff]  ;;  %v3590_v38 = vld [vmem:[#allocation2 + $0xd8] sm:$0xff] }
 0x5dd   : > { %7295 = vrot.lane.b32.xlu0 %v7294_v40, %s7733_s11  ;;  %7260 = vrot.lane.b32.xlu2 %v7259_v51, %s7733_s11  ;;  %v11390_v40 = vld [vmem:[#allocation2 + $0xa8] sm:$0xff]  ;;  %v11399_v36 = vsel %vm591_vm1, %v3753_v13, %v13350_v57  ;;  %v3611_v52 = vld [vmem:[#allocation2 + $0x180] sm:$0xff]  ;;  %v3841_v29 = vrot.slane %v11401_v44, 1  ;;  %v11412_v5 = vsel %vm720_vm2, %v13352_v28, %v3854_v1  ;;  %v3844_v28 = vrot.slane %v3590_v38, 1 }
 0x5de   : > { %7270 = vrot.lane.b32.xlu1 %v7269_v21, %s7733_s11  ;;  %4732 = vmatpush.msrb.mxu0 %v4391_v0  ;;  %v3836_v51 = vrot.slane %v11390_v40, 1  ;;  %v4278_v21 = vsel %vm333_vm0, %v3742_v14, %v7187_v43  ;;  %v3615_v43 = vld [vmem:[#allocation2 + $0x1a0] sm:$0xff]  ;;  %v3743_v2 = vrot.slane %v3611_v52, 7  ;;  %v4420_v38 = vld [vmem:[%s13310_s5 + $0x208] sm:$0xff] }
 0x5df   : > { %v11417_v57 = vsel %vm720_vm2, %v3841_v29, %v3842_v24  ;;  %v3748_v18 = vrot.slane %v3615_v43, 7  ;;  %v11426_v29 = vpop.f32.mrf.mxu2  ;;  %4961 = vmatpush.msrb.mxu2 %v4420_v38 }
 0x5e0   : > { %v11407_v0 = vsel %vm720_vm2, %v3836_v51, %v3837_v54  ;;  %v7284_v54 = vpack.i.bf16 %v11417_v57, %v3742_v14  ;;  %v3761_v51 = vrot.slane %v11269_v62, 7  ;;  %13482 = vst [vmem:[#allocation12_spill] sm:$0xff] %v11426_v29  ;;  %v3759_v14 = vrot.slane %v11247_v53, 7 }
 0x5e1   : > { %v7274_v13 = vpack.i.bf16 %v11407_v0, %v11301_v20  ;;  %v3749_v20 = vrot.slane %v11151_v47, 7  ;;  %v13353_v62 = vrot.slane %v11003_v48, 1  ;;  %v3861_v53 = vrot.slane %v10897_v22, 1 }
 0x5e3   : > { %4580 = vmatmul.f32.gmra.mxu2 %v4278_v21  ;;  %4630 = vmatmul.f32.gmra.mxu3 %v4289_v30  ;;  %v7309_v30 = vpack.i.bf16 %v11412_v5, %v11399_v36  ;;  %v11445_v58 = vsel %vm591_vm1, %v3748_v18, %v3749_v20 }
 0x5e4   : > { %4907 = vmatmul.f32.gmra.mxu1 %v4278_v21  ;;  %v3594_v21 = vld [vmem:[#allocation2 + $0xf8] sm:$0xff] }
 0x5e5   : > { %7310 = vrot.lane.b32.xlu0 %v7309_v30, %s7733_s11  ;;  %7275 = vrot.lane.b32.xlu2 %v7274_v13, %s7733_s11  ;;  %v3745_v30 = vsel %vm591_vm1, %v3743_v2, %v13483_v15  ;;  %v3849_v13 = vrot.slane %v3594_v21, 1  ;;  %v3610_v15 = vld [vmem:[#allocation2 + $0x178] sm:$0xff]  ;;  %v11448_v2 = vsel %vm720_vm2, %v3842_v24, %v3844_v28  ;;  %v13354_v24 = vrot.slane %v11041_v26, 1 }
 0x5e6   : > { %7285 = vrot.lane.b32.xlu1 %v7284_v54, %s7733_s11  ;;  %v11441_v54 = vsel %vm591_vm1, %v3759_v14, %v3761_v51  ;;  %v13484_v51 = vrot.slane %v11339_v4, 1  ;;  %v3869_v21 = vrot.slane %v3610_v15, 1 }
 0x5e7   : > { %v7191_v1 = vpop.permute.xlu0 %7190 }
 0x5e8   : > { %v7193_v42 = vunpack.i.h.bf16 %v7191_v1  ;;  %v7192_v52 = vunpack.i.l.bf16 %v7191_v1  ;;  %v11461_v18 = vsel %vm720_vm2, %v13484_v51, %v3849_v13  ;;  %v3751_v1 = vrot.slane %v11175_v59, 7  ;;  %v11474_v13 = vld [vmem:[#allocation2 + $0x130] sm:$0xff] }
 0x5e9   : > { %v7299_v28 = vpack.i.bf16 %v11461_v18, %v11445_v58  ;;  %v3857_v38 = vrot.slane %v11474_v13, 1  ;;  %v13486_v51 = vrot.slane %v11201_v9, 7 }
 0x5ea   : > { %v4279_v47 = vsel %vm333_vm0, %v3745_v30, %v7192_v52  ;;  %v4290_v43 = vsel %vm333_vm0, %v11275_v37, %v7193_v42  ;;  %v11453_v37 = vsel %vm720_vm2, %v3861_v53, %v13353_v62  ;;  %v7289_v42 = vpack.i.bf16 %v11448_v2, %v3745_v30  ;;  %v4390_v30 = vld [vmem:[%s13310_s5 + $0x118] sm:$0xff]  ;;  %v5125_v53 = vld [vmem:[#allocation2 + $0x8] sm:$0xff] }
 0x5eb   : > { %4583 = vmatmul.f32.gmra.mxu2 %v4279_v47  ;;  %4633 = vmatmul.f32.gmra.mxu3 %v4290_v43  ;;  %v7324_v22 = vpack.i.bf16 %v11453_v37, %v11441_v54  ;;  %v3756_v52 = vrot.slane %v11224_v23, 7  ;;  %v11480_v43 = vpop.f32.mrf.mxu2  ;;  %v11485_v23 = vsel %vm720_vm2, %v13354_v24, %v3869_v21  ;;  %v11488_v15 = vsel %vm591_vm1, %v3749_v20, %v3751_v1  ;;  %v3602_v24 = vld [vmem:[#allocation2 + $0x138] sm:$0xff] }
 0x5ec   : > { %4910 = vmatmul.f32.gmra.mxu1 %v4279_v47  ;;  %4733 = vmatpush.msrb.mxu0 %v4390_v30  ;;  %v11477_v47 = vld [vmem:[#allocation2 + $0x108] sm:$0xff]  ;;  %13485 = vst [vmem:[#allocation16_spill] sm:$0xff] %v11480_v43  ;;  %v3623_v30 = vld [vmem:[#allocation2 + $0x1e0] sm:$0xff]  ;;  %v13487_v62 = vrot.slane %v10856_v50, 1  ;;  %v7339_v21 = vpack.i.bf16 %v11485_v23, %v5125_v53  ;;  %v3859_v50 = vrot.slane %v3602_v24, 1 }
 0x5ed   : > { %7325 = vrot.lane.b32.xlu0 %v7324_v22, %s7733_s11  ;;  %7290 = vrot.lane.b32.xlu2 %v7289_v42, %s7733_s11  ;;  %v3851_v59 = vrot.slane %v11477_v47, 1  ;;  %v11490_v42 = vld [vmem:[#allocation2 + $0x128] sm:$0xff] }
 0x5ee   : > { %7300 = vrot.lane.b32.xlu1 %v7299_v28, %s7733_s11  ;;  %v3856_v22 = vrot.slane %v11490_v42, 1  ;;  %v11496_v28 = vsel %vm591_vm1, %v13486_v51, %v3756_v52  ;;  %v3758_v52 = vrot.slane %v3623_v30, 7  ;;  %v11520_v53 = vsel %vm720_vm2, %v3857_v38, %v3859_v50  ;;  %v4389_v51 = vld [vmem:[%s13310_s5 + $0x110] sm:$0xff]  ;;  %v4388_v24 = vld [vmem:[%s13310_s5 + $0x108] sm:$0xff]  ;;  %v2102_v50 = vld [vmem:[#allocation2 + $0x220] sm:$0xff] }
 0x5ef   : > { %v11501_v43 = vsel %vm720_vm2, %v3851_v59, %v13487_v62  ;;  %4734 = vmatpush.msrb.mxu0 %v4389_v51 }
 0x5f0   : > { %v7304_v20 = vpack.i.bf16 %v11501_v43, %v11488_v15  ;;  %v11507_v1 = vsel %vm720_vm2, %v3856_v22, %v3857_v38  ;;  %v11515_v62 = vsel %vm591_vm1, %v3758_v52, %v3759_v14  ;;  %v4419_v14 = vld [vmem:[%s13310_s5 + $0x200] sm:$0xff] }
 0x5f1   : > { %v7314_v9 = vpack.i.bf16 %v11507_v1, %v11496_v28  ;;  %v7319_v22 = vpack.i.bf16 %v11520_v53, %v11515_v62  ;;  %4962 = vmatpush.msrb.mxu2 %v4419_v14  ;;  %4735 = vmatpush.msrb.mxu0 %v4388_v24  ;;  %v2411_v14 = vrot.slane %v2102_v50, 7  ;;  %v7669_v24 = vld [vmem:[#allocation2 + $0x228] sm:$0xff] }
 0x5f3   : > { %v11517_v59 = vpop.f32.mrf.mxu2 }
 0x5f4   : > { %13488 = vst [vmem:[#allocation4_spill] sm:$0xff] %v11517_v59  ;;  %v11545_v59 = vpop.f32.mrf.mxu1 }
 0x5f5   : > { %7340 = vrot.lane.b32.xlu0 %v7339_v21, %s7733_s11  ;;  %7305 = vrot.lane.b32.xlu2 %v7304_v20, %s7733_s11 }
 0x5f6   : > { %7315 = vrot.lane.b32.xlu1 %v7314_v9, %s7733_s11 }
 0x5fb   : > { %v11528_v30 = vpop.f32.mrf.mxu2 }
 0x5fc   : > { %13489 = vst [vmem:[#allocation14_spill] sm:$0xff] %v11528_v30 }
 0x5fd   : > { %7320 = vrot.lane.b32.xlu2 %v7319_v22, %s7733_s11  ;;  %v4387_v22 = vld [vmem:[%s13310_s5 + $0x100] sm:$0xff] }
 0x5fe   : > { %4736 = vmatpush.msrb.mxu0 %v4387_v22 }
 0x5ff   : > { %v7201_v21 = vpop.permute.xlu2 %7200 }
 0x600   : > { %v7203_v29 = vunpack.i.h.bf16 %v7201_v21 }
 0x603   : > { %v11536_v38 = vpop.f32.mrf.mxu2 }
 0x604   : > { %13490 = vst [vmem:[#allocation6_spill] sm:$0xff] %v11536_v38  ;;  %v2412_v38 = vrot.slane %v7669_v24, 7 }
 0x606   : > { %v2413_v3 = vsel %vm591_vm1, %v2411_v14, %v2412_v38 }
 0x60b   : > { %v11548_v22 = vpop.f32.mrf.mxu2 }
 0x60c   : > { %13491 = vst [vmem:[#allocation8_spill] sm:$0xff] %v11548_v22 }
 0x60f   : > { %v7196_v20 = vpop.permute.xlu1 %7195 }
 0x610   : > { %v7198_v9 = vunpack.i.h.bf16 %v7196_v20  ;;  %v7197_v52 = vunpack.i.l.bf16 %v7196_v20  ;;  %v7202_v20 = vunpack.i.l.bf16 %v7201_v21 }
 0x612   : > { %v4280_v51 = vsel %vm333_vm0, %v11352_v63, %v7197_v52  ;;  %v4291_v30 = vsel %vm333_vm0, %v11318_v6, %v7198_v9  ;;  %v4281_v9 = vsel %vm333_vm0, %v11445_v58, %v7202_v20  ;;  %v11555_v52 = vpop.f32.mrf.mxu1  ;;  %v7670_v58 = vld [vmem:[#allocation2 + $0x230] sm:$0xff] }
 0x613   : > { %4586 = vmatmul.f32.gmra.mxu2 %v4280_v51  ;;  %4636 = vmatmul.f32.gmra.mxu3 %v4291_v30  ;;  %v4292_v30 = vsel %vm333_vm0, %v11245_v16, %v7203_v29  ;;  %v11557_v14 = vpop.f32.mrf.mxu2  ;;  %v2414_v24 = vrot.slane %v7670_v58, 7 }
 0x614   : > { %4913 = vmatmul.f32.gmra.mxu1 %v4280_v51  ;;  %13492 = vst [vmem:[#allocation7_spill] sm:$0xff] %v11557_v14 }
 0x617   : > { %v7216_v7 = vpop.permute.xlu2 %7215 }
 0x618   : > { %v7217_v10 = vunpack.i.l.bf16 %v7216_v7 }
 0x61a   : > { %v2824_v63 = vsel %vm333_vm0, %v2413_v3, %v7217_v10  ;;  %v11563_v29 = vpop.f32.mrf.mxu1 }
 0x61b   : > { %3411 = vmatmul.f32.gmra.mxu0 %v2824_v63  ;;  %4589 = vmatmul.f32.gmra.mxu2 %v4281_v9  ;;  %v2415_v63 = vsel %vm591_vm1, %v2412_v38, %v2414_v24 }
 0x61c   : > { %4639 = vmatmul.f32.gmra.mxu3 %v4292_v30  ;;  %4916 = vmatmul.f32.gmra.mxu1 %v4281_v9 }
 0x61f   : > { %v7206_v21 = vpop.permute.xlu0 %7205 }
 0x620   : > { %v7208_v50 = vunpack.i.h.bf16 %v7206_v21  ;;  %v7207_v51 = vunpack.i.l.bf16 %v7206_v21 }
 0x622   : > { %v4282_v10 = vsel %vm333_vm0, %v11488_v15, %v7207_v51  ;;  %v4293_v3 = vsel %vm333_vm0, %v11330_v55, %v7208_v50  ;;  %v11571_v51 = vpop.f32.mrf.mxu2  ;;  %v11573_v24 = vpop.f32.mrf.mxu1 }
 0x623   : > { %4592 = vmatmul.f32.gmra.mxu2 %v4282_v10 }
 0x624   : > { %4642 = vmatmul.f32.gmra.mxu3 %v4293_v3  ;;  %4919 = vmatmul.f32.gmra.mxu1 %v4282_v10  ;;  %v7218_v10 = vunpack.i.h.bf16 %v7216_v7 }
 0x627   : > { %v7221_v20 = vpop.permute.xlu0 %7220  ;;  %v7211_v30 = vpop.permute.xlu1 %7210 }
 0x628   : > { %v7223_v9 = vunpack.i.h.bf16 %v7221_v20  ;;  %v7213_v21 = vunpack.i.h.bf16 %v7211_v30  ;;  %v7212_v14 = vunpack.i.l.bf16 %v7211_v30  ;;  %v7222_v38 = vunpack.i.l.bf16 %v7221_v20 }
 0x62a   : > { %v2825_v22 = vsel %vm333_vm0, %v2415_v63, %v7223_v9  ;;  %v4283_v15 = vsel %vm333_vm0, %v11399_v36, %v7212_v14  ;;  %v4294_v50 = vsel %vm333_vm0, %v11355_v27, %v7213_v21  ;;  %v4284_v36 = vsel %vm333_vm0, %v11496_v28, %v7218_v10  ;;  %v11581_v63 = vpop.f32.mrf.mxu2  ;;  %v11583_v30 = vpop.f32.mrf.mxu1 }
 0x62b   : > { %3414 = vmatmul.f32.gmra.mxu0 %v2825_v22  ;;  %4595 = vmatmul.f32.gmra.mxu2 %v4283_v15  ;;  %v4295_v14 = vsel %vm333_vm0, %v11267_v49, %v7222_v38  ;;  %v7231_v21 = vpop.permute.xlu2 %7230 }
 0x62c   : > { %4645 = vmatmul.f32.gmra.mxu3 %v4294_v50  ;;  %4922 = vmatmul.f32.gmra.mxu1 %v4283_v15  ;;  %v7233_v15 = vunpack.i.h.bf16 %v7231_v21  ;;  %v7232_v50 = vunpack.i.l.bf16 %v7231_v21 }
 0x62f   : > { %v7236_v3 = vpop.permute.xlu0 %7235 }
 0x630   : > { %v7238_v58 = vunpack.i.h.bf16 %v7236_v3 }
 0x632   : > { %v4319_v22 = vsel %vm333_vm0, %v11216_v60, %v7238_v58  ;;  %v11589_v10 = vpop.f32.mrf.mxu2 }
 0x633   : > { %4737 = vmatmul.f32.vlgmr.msrb.gmra.mxu0 %v4319_v22  ;;  %4598 = vmatmul.f32.gmra.mxu2 %v4284_v36  ;;  %v4286_v22 = vsel %vm333_vm0, %v11441_v54, %v7232_v50 }
 0x634   : > { %4648 = vmatmul.f32.gmra.mxu3 %v4295_v14  ;;  %4925 = vmatmul.f32.gmra.mxu1 %v4284_v36  ;;  %v4297_v36 = vsel %vm333_vm0, %v11407_v0, %v7233_v15  ;;  %v11597_v14 = vpop.f32.mrf.mxu1 }
 0x637   : > { %v7226_v7 = vpop.permute.xlu1 %7225 }
 0x638   : > { %v7228_v20 = vunpack.i.h.bf16 %v7226_v7  ;;  %v7227_v9 = vunpack.i.l.bf16 %v7226_v7  ;;  %v7246_v7 = vpop.permute.xlu2 %7245 }
 0x63a   : > { %v4285_v60 = vsel %vm333_vm0, %v11515_v62, %v7227_v9  ;;  %v4296_v28 = vsel %vm333_vm0, %v11360_v34, %v7228_v20  ;;  %v7237_v20 = vunpack.i.l.bf16 %v7236_v3  ;;  %v7248_v9 = vunpack.i.h.bf16 %v7246_v7  ;;  %v11599_v21 = vpop.f32.mrf.mxu2 }
 0x63b   : > { %4601 = vmatmul.f32.gmra.mxu2 %v4285_v60 }
 0x63c   : > { %4651 = vmatmul.f32.gmra.mxu3 %v4296_v28  ;;  %4928 = vmatmul.f32.gmra.mxu1 %v4285_v60  ;;  %v4298_v54 = vsel %vm333_vm0, %v11325_v25, %v7237_v20  ;;  %v4321_v60 = vsel %vm333_vm0, %v11303_v61, %v7248_v9 }
 0x640   : > { %v7241_v38 = vpop.permute.xlu1 %7240 }
 0x641   : > { %v7243_v58 = vunpack.i.h.bf16 %v7241_v38  ;;  %v7242_v28 = vunpack.i.l.bf16 %v7241_v38 }
 0x642   : > { %v11609_v50 = vpop.f32.mrf.mxu2 }
 0x643   : > { %v4320_v62 = vsel %vm333_vm0, %v11213_v39, %v7243_v58  ;;  %4604 = vmatmul.f32.gmra.mxu2 %v4286_v22  ;;  %v7251_v39 = vpop.permute.xlu0 %7250  ;;  %v4299_v3 = vsel %vm333_vm0, %v11417_v57, %v7242_v28 }
 0x644   : > { %4654 = vmatmul.f32.gmra.mxu3 %v4297_v36  ;;  %4740 = vmatmul.f32.gmra.mxu0 %v4320_v62  ;;  %v7253_v15 = vunpack.i.h.bf16 %v7251_v39  ;;  %v7261_v62 = vpop.permute.xlu2 %7260  ;;  %v7252_v20 = vunpack.i.l.bf16 %v7251_v39 }
 0x645   : > { %4931 = vmatmul.f32.gmra.mxu1 %v4286_v22  ;;  %v7247_v22 = vunpack.i.l.bf16 %v7246_v7 }
 0x646   : > { %v4322_v58 = vsel %vm333_vm0, %v11234_v17, %v7253_v15  ;;  %v4301_v7 = vsel %vm333_vm0, %v11365_v56, %v7252_v20  ;;  %v7262_v15 = vunpack.i.l.bf16 %v7261_v62 }
 0x647   : > { %v4300_v38 = vsel %vm333_vm0, %v11448_v2, %v7247_v22 }
 0x648   : > { %v7256_v61 = vpop.permute.xlu1 %7255 }
 0x64a   : > { %v11621_v17 = vpop.f32.mrf.mxu2 }
 0x64b   : > { %6781 = vmatmul.msk.f32.vlgmr.msrb.gmra.mxu2 %vm333_vm0, %v11318_v6  ;;  %v7258_v6 = vunpack.i.h.bf16 %v7256_v61 }
 0x64c   : > { %4657 = vmatmul.f32.gmra.mxu3 %v4298_v54  ;;  %4743 = vmatmul.f32.gmra.mxu0 %v4321_v60  ;;  %v7257_v54 = vunpack.i.l.bf16 %v7256_v61 }
 0x64d   : > { %v4323_v36 = vsel %vm333_vm0, %v11312_v35, %v7258_v6  ;;  %v7266_v35 = vpop.permute.xlu0 %7265 }
 0x64e   : > { %v7268_v60 = vunpack.i.h.bf16 %v7266_v35  ;;  %v4302_v39 = vsel %vm333_vm0, %v11461_v18, %v7257_v54  ;;  %v7267_v22 = vunpack.i.l.bf16 %v7266_v35 }
 0x650   : > { %v4325_v28 = vsel %vm333_vm0, %v11259_v12, %v7268_v60  ;;  %v7276_v12 = vpop.permute.xlu2 %7275 }
 0x653   : > { %6782 = vmatmul.msk.f32.gmra.mxu2 %vm333_vm0, %v11245_v16  ;;  %v7263_v16 = vunpack.i.h.bf16 %v7261_v62 }
 0x654   : > { %4660 = vmatmul.f32.gmra.mxu3 %v4299_v3  ;;  %4746 = vmatmul.f32.gmra.mxu0 %v4322_v58  ;;  %v4303_v58 = vsel %vm333_vm0, %v11501_v43, %v7262_v15  ;;  %v7671_v15 = vld [vmem:[%s13309_s4] ss:$0 sm:$0xff] }
 0x655   : > { %v4324_v9 = vsel %vm333_vm0, %v11295_v8, %v7263_v16  ;;  %v7271_v8 = vpop.permute.xlu1 %7270 }
 0x656   : > { %v7272_v62 = vunpack.i.l.bf16 %v7271_v8 }
 0x658   : > { %v4305_v20 = vsel %vm333_vm0, %v11507_v1, %v7272_v62  ;;  %v7291_v60 = vpop.permute.xlu2 %7290 }
 0x65b   : > { %6783 = vmatmul.msk.f32.gmra.mxu2 %vm333_vm0, %v11330_v55  ;;  %v11629_v55 = vpop.f32.mrf.mxu2 }
 0x65c   : > { %4663 = vmatmul.f32.gmra.mxu3 %v4300_v38  ;;  %4749 = vmatmul.f32.gmra.mxu0 %v4323_v36  ;;  %v4304_v38 = vsel %vm333_vm0, %v11412_v5, %v7267_v22 }
 0x663   : > { %6784 = vmatmul.msk.f32.gmra.mxu2 %vm333_vm0, %v11355_v27  ;;  %v7273_v27 = vunpack.i.h.bf16 %v7271_v8  ;;  %v11637_v3 = vpop.f32.mrf.mxu2  ;;  %v3299_v8 = vpop.f32.mrf.mxu3 }
 0x664   : > { %4666 = vmatmul.f32.gmra.mxu3 %v4301_v7  ;;  %4752 = vmatmul.f32.gmra.mxu0 %v4324_v9  ;;  %v7277_v9 = vunpack.i.l.bf16 %v7276_v12 }
 0x665   : > { %v4326_v61 = vsel %vm333_vm0, %v11256_v19, %v7273_v27  ;;  %v7281_v19 = vpop.permute.xlu0 %7280  ;;  %v3606_v27 = vld [vmem:[#allocation2 + $0x158] sm:$0xff] }
 0x666   : > { %v4306_v35 = vsel %vm333_vm0, %v11520_v53, %v7277_v9 }
 0x66b   : > { %6785 = vmatmul.msk.f32.gmra.mxu2 %vm333_vm0, %v11267_v49  ;;  %v7278_v49 = vunpack.i.h.bf16 %v7276_v12  ;;  %v11645_v6 = vpop.f32.mrf.mxu2 }
 0x66c   : > { %4669 = vmatmul.f32.gmra.mxu3 %v4302_v39  ;;  %4755 = vmatmul.f32.gmra.mxu0 %v4325_v28  ;;  %v7282_v39 = vunpack.i.l.bf16 %v7281_v19  ;;  %v7293_v28 = vunpack.i.h.bf16 %v7291_v60 }
 0x66d   : > { %v4327_v36 = vsel %vm333_vm0, %v11390_v40, %v7278_v49  ;;  %v7286_v40 = vpop.permute.xlu1 %7285  ;;  %v7296_v12 = vpop.permute.xlu0 %7295  ;;  %v3864_v49 = vrot.slane %v3606_v27, 1 }
 0x673   : > { %6786 = vmatmul.msk.f32.gmra.mxu2 %vm333_vm0, %v11360_v34  ;;  %v7283_v34 = vunpack.i.h.bf16 %v7281_v19  ;;  %v11655_v16 = vpop.f32.mrf.mxu2 }
 0x674   : > { %4672 = vmatmul.f32.gmra.mxu3 %v4303_v58  ;;  %4758 = vmatmul.f32.gmra.mxu0 %v4326_v61  ;;  %v4330_v58 = vsel %vm333_vm0, %v11387_v45, %v7293_v28  ;;  %v3302_v45 = vpop.f32.mrf.mxu3 }
 0x675   : > { %v4328_v7 = vsel %vm333_vm0, %v11289_v11, %v7283_v34  ;;  %v5931_v11 = vld [vmem:[%s13312_s7 + $0x78] sm:$0xff]  ;;  %v13493_v34 = vrot.slane %v11003_v48, 1  ;;  %v5930_v48 = vld [vmem:[%s13312_s7 + $0x70] sm:$0xff] }
 0x676   : > { %6056 = vmatpush.msrb.mxu3 %v5931_v11 }
 0x678   : > { %6057 = vmatpush.msrb.mxu3 %v5930_v48 }
 0x67b   : > { %6787 = vmatmul.msk.f32.gmra.mxu2 %vm333_vm0, %v11407_v0  ;;  %v7288_v0 = vunpack.i.h.bf16 %v7286_v40 }
 0x67c   : > { %4675 = vmatmul.f32.gmra.mxu3 %v4304_v38  ;;  %4761 = vmatmul.f32.gmra.mxu0 %v4327_v36  ;;  %v7298_v36 = vunpack.i.h.bf16 %v7296_v12 }
 0x67d   : > { %v4329_v54 = vsel %vm333_vm0, %v11401_v44, %v7288_v0  ;;  %v3074_v44 = vadd.f32 %v7671_v15, %v10512_v33  ;;  %v7287_v33 = vunpack.i.l.bf16 %v7286_v40  ;;  %v7301_v40 = vpop.permute.xlu1 %7300 }
 0x67e   : > { %v7303_v0 = vunpack.i.h.bf16 %v7301_v40 }
 0x67f   : > { %v3187_v61 = vadd.f32 %v11106_v41, %v3074_v44 }
 0x680   : > { %v4332_v27 = vsel %vm333_vm0, %v11339_v4, %v7303_v0  ;;  %v5929_v0 = vld [vmem:[%s13312_s7 + $0x68] sm:$0xff] }
 0x681   : > { %v3300_v38 = vadd.f32 %v3299_v8, %v3187_v61  ;;  %v11712_v8 = vpop.f32.mrf.mxu3  ;;  %6058 = vmatpush.msrb.mxu3 %v5929_v0 }
 0x683   : > { %6788 = vmatmul.msk.f32.gmra.mxu2 %vm333_vm0, %v11325_v25  ;;  %v11670_v25 = vpop.f32.mrf.mxu2 }
 0x684   : > { %4678 = vmatmul.f32.gmra.mxu3 %v4305_v20  ;;  %4764 = vmatmul.f32.gmra.mxu0 %v4328_v7  ;;  %v11688_v20 = vsel %vm720_vm2, %v13493_v34, %v3864_v49  ;;  %v4331_v7 = vsel %vm333_vm0, %v11344_v32, %v7298_v36 }
 0x685   : > { %v4308_v41 = vsel %vm333_vm0, %v11688_v20, %v7287_v33 }
 0x689   : > { %v11745_v48 = vpop.f32.mrf.mxu3 }
 0x68b   : > { %6789 = vmatmul.msk.f32.gmra.mxu2 %vm333_vm0, %v11417_v57  ;;  %v4307_v57 = vsel %vm333_vm0, %v11453_v37, %v7282_v39  ;;  %v13495_v39 = vld [vmem:[#allocation20_spill] sm:$0xff] }
 0x68c   : > { %4681 = vmatmul.f32.gmra.mxu3 %v4306_v35  ;;  %4767 = vmatmul.f32.gmra.mxu0 %v4329_v54  ;;  %v3627_v35 = vld [vmem:[#allocation2 + $0x200] sm:$0xff]  ;;  %v11703_v54 = vld [vmem:[#allocation2 + $0x168] sm:$0xff]  ;;  %v3077_v28 = vadd.f32 %v7671_v15, %v13495_v39  ;;  %v3614_v39 = vld [vmem:[#allocation2 + $0x198] sm:$0xff] }
 0x68d   : > { %v3866_v32 = vrot.slane %v11703_v54, 1  ;;  %v3926_v44 = vrot.slane %v3627_v35, 7 }
 0x693   : > { %6790 = vmatmul.msk.f32.gmra.mxu2 %vm333_vm0, %v11448_v2 }
 0x694   : > { %4684 = vmatmul.f32.gmra.mxu3 %v4307_v57  ;;  %4770 = vmatmul.f32.gmra.mxu0 %v4330_v58  ;;  %v7306_v58 = vpop.permute.xlu2 %7305 }
 0x695   : > { %v7308_v36 = vunpack.i.h.bf16 %v7306_v58 }
 0x696   : > { %v11683_v22 = vpop.f32.mrf.mxu2 }
 0x698   : > { %v3412_v19 = vpop.f32.mrf.mxu0 }
 0x699   : > { %v3413_v62 = vadd.f32 %v3412_v19, %v3300_v38  ;;  %v7297_v38 = vunpack.i.l.bf16 %v7296_v12 }
 0x69b   : > { %v3526_v2 = vadd.f32 %v11545_v59, %v3413_v62  ;;  %6791 = vmatmul.msk.f32.gmra.mxu2 %vm333_vm0, %v11365_v56  ;;  %v7292_v59 = vunpack.i.l.bf16 %v7291_v60  ;;  %v13494_v56 = vrot.slane %v11041_v26, 1  ;;  %v3190_v26 = vadd.f32 %v11122_v46, %v3077_v28  ;;  %v7675_v28 = vld [vmem:[#allocation2 + $0x110] sm:$0xff] }
 0x69c   : > { %4687 = vmatmul.f32.gmra.mxu3 %v4308_v41  ;;  %4773 = vmatmul.f32.gmra.mxu0 %v4331_v7  ;;  %v4310_v12 = vsel %vm333_vm0, %v11485_v23, %v7297_v38  ;;  %v4333_v41 = vsel %vm333_vm0, %v11477_v47, %v7308_v36  ;;  %v7311_v7 = vpop.permute.xlu0 %7310  ;;  %v7302_v47 = vunpack.i.l.bf16 %v7301_v40  ;;  %v11769_v38 = vpop.f32.mrf.mxu3 }
 0x69d   : > { %3561 = vst.msk [vmem:[#allocation2 + $0x208] sm:$0xff] %vm333_vm0, %v3526_v2  ;;  %v11709_v11 = vsel %vm720_vm2, %v3866_v32, %v13494_v56  ;;  %v3303_v49 = vadd.f32 %v3302_v45, %v3190_v26  ;;  %v11738_v45 = vld [vmem:[#allocation2 + $0x188] sm:$0xff]  ;;  %v3874_v26 = vrot.slane %v3614_v39, 1  ;;  %v7312_v0 = vunpack.i.l.bf16 %v7311_v7 }
 0x69e   : > { %v11701_v9 = vpop.f32.mrf.mxu2  ;;  %v4309_v57 = vsel %vm333_vm0, %v11709_v11, %v7292_v59  ;;  %v3871_v2 = vrot.slane %v11738_v45, 1  ;;  %v11751_v59 = vld [vmem:[#allocation2 + $0x10] sm:$0xff] }
 0x6a3   : > { %6792 = vmatmul.msk.f32.gmra.mxu2 %vm333_vm0, %v11461_v18  ;;  %v11731_v18 = vld [vmem:[#allocation2 + $0x190] sm:$0xff] }
 0x6a4   : > { %v11716_v60 = vld [vmem:[#allocation2 + $0x208] sm:$0xff]  ;;  %4690 = vmatmul.f32.gmra.mxu3 %v4309_v57  ;;  %4776 = vmatmul.f32.gmra.mxu0 %v4332_v27  ;;  %v3872_v46 = vrot.slane %v11731_v18, 1  ;;  %v7316_v57 = vpop.permute.xlu1 %7315 }
 0x6a5   : > { %v3927_v15 = vrot.slane %v11716_v60, 7 }
 0x6a6   : > { %v11724_v61 = vpop.f32.mrf.mxu2 }
 0x6a7   : > { %13496 = vst [vmem:[#allocation9_spill] sm:$0xff] %v11724_v61  ;;  %v11727_v33 = vsel %vm591_vm1, %v3926_v44, %v3927_v15 }
 0x6a8   : > { %v7329_v4 = vpack.i.bf16 %v11688_v20, %v11727_v33  ;;  %v3415_v19 = vpop.f32.mrf.mxu0 }
 0x6a9   : > { %v3416_v62 = vadd.f32 %v3415_v19, %v3303_v49  ;;  %v7307_v49 = vunpack.i.l.bf16 %v7306_v58  ;;  %v7318_v19 = vunpack.i.h.bf16 %v7316_v57 }
 0x6aa   : > { %7330 = vrot.lane.b32.xlu1 %v7329_v4, %s7733_s11 }
 0x6ab   : > { %v3529_v34 = vadd.f32 %v11555_v52, %v3416_v62  ;;  %6793 = vmatmul.msk.f32.gmra.mxu2 %vm333_vm0, %v11501_v43  ;;  %v11749_v52 = vsel %vm720_vm2, %v3871_v2, %v3872_v46  ;;  %v7313_v43 = vunpack.i.h.bf16 %v7311_v7  ;;  %v7321_v2 = vpop.permute.xlu2 %7320 }
 0x6ac   : > { %4693 = vmatmul.f32.gmra.mxu3 %v4310_v12  ;;  %4779 = vmatmul.f32.gmra.mxu0 %v4333_v41  ;;  %v7344_v32 = vpack.i.bf16 %v11749_v52, %v11751_v59  ;;  %v4311_v56 = vsel %vm333_vm0, %v11749_v52, %v7302_v47  ;;  %v4335_v12 = vsel %vm333_vm0, %v11490_v42, %v7318_v19  ;;  %v11791_v41 = vld [vmem:[#allocation2 + $0x1b0] sm:$0xff] }
 0x6ad   : > { %3562 = vst.msk [vmem:[#allocation2 + $0x210] sm:$0xff] %vm333_vm0, %v3529_v34  ;;  %v4334_v44 = vsel %vm333_vm0, %v7675_v28, %v7313_v43  ;;  %v11780_v34 = vsel %vm720_vm2, %v3872_v46, %v3874_v26  ;;  %v3877_v46 = vrot.slane %v11791_v41, 1  ;;  %v7323_v43 = vunpack.i.h.bf16 %v7321_v2  ;;  %v7326_v26 = vpop.permute.xlu0 %7325 }
 0x6ae   : > { %v11756_v35 = vpop.f32.mrf.mxu2  ;;  %v4312_v58 = vsel %vm333_vm0, %v11780_v34, %v7307_v49 }
 0x6af   : > { %13497 = vst [vmem:[#allocation11_spill] sm:$0xff] %v11756_v35 }
 0x6b2   : > { %7345 = vrot.lane.b32.xlu1 %v7344_v32, %s7733_s11  ;;  %v11796_v32 = vld [vmem:[#allocation2 + $0x1a8] sm:$0xff] }
 0x6b3   : > { %6794 = vmatmul.msk.f32.gmra.mxu2 %vm333_vm0, %v11412_v5  ;;  %v4738_v5 = vpop.f32.mrf.mxu0  ;;  %v3876_v42 = vrot.slane %v11796_v32, 1 }
 0x6b4   : > { %4696 = vmatmul.f32.gmra.mxu3 %v4311_v56  ;;  %v11766_v40 = vld [vmem:[#allocation2 + $0x210] sm:$0xff]  ;;  %4782 = vmatmul.f32.gmra.mxu0 %v4334_v44  ;;  %v11804_v56 = vld [vmem:[%s13311_s6] ss:$0 sm:$0xff]  ;;  %v3618_v44 = vld [vmem:[#allocation2 + $0x1b8] sm:$0xff] }
 0x6b5   : > { %v3929_v27 = vrot.slane %v11766_v40, 7  ;;  %v11807_v28 = vsel %vm720_vm2, %v3876_v42, %v3877_v46  ;;  %v4513_v49 = vadd.f32 %v11804_v56, %v11149_v31  ;;  %v3879_v19 = vrot.slane %v3618_v44, 1  ;;  %v11836_v44 = vld [vmem:[#allocation2 + $0x1d0] sm:$0xff] }
 0x6b6   : > { %v11771_v36 = vpop.f32.mrf.mxu2  ;;  %v4313_v7 = vsel %vm333_vm0, %v11807_v28, %v7312_v0 }
 0x6b7   : > { %13498 = vst [vmem:[#allocation10_spill] sm:$0xff] %v11771_v36  ;;  %v11774_v4 = vsel %vm591_vm1, %v3927_v15, %v3929_v27  ;;  %v5928_v15 = vld [vmem:[%s13312_s7 + $0x60] sm:$0xff]  ;;  %v4336_v27 = vsel %vm333_vm0, %v11474_v13, %v7323_v43  ;;  %v11823_v13 = vsel %vm720_vm2, %v3877_v46, %v3879_v19  ;;  %v7678_v43 = vld [vmem:[#allocation2 + $0x148] sm:$0xff] }
 0x6b8   : > { %v7334_v62 = vpack.i.bf16 %v11709_v11, %v11774_v4  ;;  %6059 = vmatpush.msrb.mxu3 %v5928_v15  ;;  %v7328_v15 = vunpack.i.h.bf16 %v7326_v26 }
 0x6ba   : > { %7335 = vrot.lane.b32.xlu2 %v7334_v62, %s7733_s11  ;;  %v7317_v62 = vunpack.i.l.bf16 %v7316_v57  ;;  %v4337_v31 = vsel %vm333_vm0, %v7678_v43, %v7328_v15  ;;  %v13501_v57 = vld [vmem:[#allocation21_spill] sm:$0xff] }
 0x6bb   : > { %6795 = vmatmul.msk.f32.gmra.mxu2 %vm333_vm0, %v11507_v1  ;;  %v11799_v1 = vpop.f32.mrf.mxu3 }
 0x6bc   : > { %4699 = vmatmul.f32.gmra.mxu3 %v4312_v58  ;;  %4785 = vmatmul.f32.gmra.mxu0 %v4335_v12  ;;  %v4626_v12 = vadd.f32 %v11712_v8, %v4513_v49  ;;  %v5927_v8 = vld [vmem:[%s13312_s7 + $0x58] sm:$0xff]  ;;  %v7322_v49 = vunpack.i.l.bf16 %v7321_v2 }
 0x6bd   : > { %6060 = vmatpush.msrb.mxu3 %v5927_v8 }
 0x6be   : > { %v11794_v47 = vpop.f32.mrf.mxu2  ;;  %v4739_v42 = vadd.f32 %v4738_v5, %v4626_v12  ;;  %v4516_v5 = vadd.f32 %v11804_v56, %v13501_v57  ;;  %v11840_v12 = vld [vmem:[#allocation2 + $0x1c8] sm:$0xff]  ;;  %v3622_v57 = vld [vmem:[#allocation2 + $0x1d8] sm:$0xff] }
 0x6bf   : > { %13499 = vst [vmem:[#allocation15_spill] sm:$0xff] %v11794_v47  ;;  %v3881_v15 = vrot.slane %v11840_v12, 1 }
 0x6c0   : > { %v4852_v46 = vadd.f32 %v11563_v29, %v4739_v42 }
 0x6c1   : > { %v4741_v39 = vpop.f32.mrf.mxu0 }
 0x6c3   : > { %6796 = vmatmul.msk.f32.gmra.mxu2 %vm333_vm0, %v11520_v53  ;;  %v11820_v0 = vpop.f32.mrf.mxu3  ;;  %v4314_v53 = vsel %vm333_vm0, %v11823_v13, %v7317_v62  ;;  %v4629_v62 = vadd.f32 %v11745_v48, %v4516_v5  ;;  %v13502_v48 = vld [vmem:[#allocation22_spill] sm:$0xff] }
 0x6c4   : > { %4702 = vmatmul.f32.gmra.mxu3 %v4313_v7  ;;  %4788 = vmatmul.f32.gmra.mxu0 %v4336_v27  ;;  %v3882_v27 = vrot.slane %v11836_v44, 1  ;;  %v4519_v5 = vadd.f32 %v11804_v56, %v13502_v48 }
 0x6c5   : > { %v4742_v43 = vadd.f32 %v4741_v39, %v4629_v62 }
 0x6c6   : > { %v11817_v58 = vpop.f32.mrf.mxu2  ;;  %v11846_v29 = vsel %vm720_vm2, %v3881_v15, %v3882_v27 }
 0x6c7   : > { %13500 = vst [vmem:[#allocation13_spill] sm:$0xff] %v11817_v58  ;;  %v4315_v2 = vsel %vm333_vm0, %v11846_v29, %v7322_v49  ;;  %v4855_v39 = vadd.f32 %v11573_v24, %v4742_v43 }
 0x6c9   : > { %v4744_v7 = vpop.f32.mrf.mxu0 }
 0x6cb   : > { %6797 = vmatmul.msk.f32.gmra.mxu2 %vm333_vm0, %v11453_v37  ;;  %v4640_v42 = vpop.f32.mrf.mxu3 }
 0x6cc   : > { %4705 = vmatmul.f32.gmra.mxu3 %v4314_v53  ;;  %4791 = vmatmul.f32.gmra.mxu0 %v4337_v31  ;;  %v11843_v53 = vpop.f32.mrf.mxu1 }
 0x6ce   : > { %v4964_v19 = vpop.f32.mrf.mxu2 }
 0x6cf   : > { %v4965_v37 = vadd.f32 %v4964_v19, %v4852_v46  ;;  %v3884_v46 = vrot.slane %v3622_v57, 1  ;;  %v7327_v19 = vunpack.i.l.bf16 %v7326_v26 }
 0x6d1   : > { %v5060_v31 = vmul.f32 %v4965_v37, %v4965_v37  ;;  %v4747_v8 = vpop.f32.mrf.mxu0  ;;  %v4632_v37 = vadd.f32 %v11769_v38, %v4519_v5  ;;  %v5926_v38 = vld [vmem:[%s13312_s7 + $0x50] sm:$0xff] }
 0x6d2   : > { %6061 = vmatpush.msrb.mxu3 %v5926_v38 }
 0x6d3   : > { %5092 = vst.msk [vmem:[#allocation2 + $0x28] sm:$0xff] %vm333_vm0, %v5060_v31  ;;  %6798 = vmatmul.msk.f32.gmra.mxu2 %vm333_vm0, %v11688_v20  ;;  %v4745_v58 = vadd.f32 %v4744_v7, %v4632_v37  ;;  %v11858_v31 = vsel %vm720_vm2, %v3882_v27, %v3884_v46  ;;  %v4643_v26 = vpop.f32.mrf.mxu3  ;;  %v13503_v7 = vld [vmem:[#allocation23_spill] sm:$0xff] }
 0x6d4   : > { %4708 = vmatmul.f32.gmra.mxu3 %v4315_v2  ;;  %v4316_v20 = vsel %vm333_vm0, %v11858_v31, %v7327_v19  ;;  %v4866_v48 = vpop.f32.mrf.mxu1  ;;  %v4522_v27 = vadd.f32 %v11804_v56, %v13503_v7 }
 0x6d5   : > { %v4858_v43 = vadd.f32 %v11583_v30, %v4745_v58 }
 0x6d6   : > { %v4967_v62 = vpop.f32.mrf.mxu2  ;;  %v4635_v5 = vadd.f32 %v11799_v1, %v4522_v27 }
 0x6d7   : > { %v4968_v15 = vadd.f32 %v4967_v62, %v4855_v39 }
 0x6d8   : > { %v4748_v39 = vadd.f32 %v4747_v8, %v4635_v5 }
 0x6d9   : > { %v5061_v49 = vmul.f32 %v4968_v15, %v4968_v15  ;;  %v4750_v47 = vpop.f32.mrf.mxu0  ;;  %v13504_v15 = vld [vmem:[#allocation24_spill] sm:$0xff] }
 0x6da   : > { %v11862_v2 = vld [vmem:[#allocation2 + $0x28] sm:$0xff]  ;;  %v4525_v30 = vadd.f32 %v11804_v56, %v13504_v15  ;;  %v4861_v1 = vadd.f32 %v11597_v14, %v4748_v39 }
 0x6db   : > { %5093 = vst.msk [vmem:[#allocation2 + $0x30] sm:$0xff] %vm333_vm0, %v5061_v49  ;;  %6799 = vmatmul.msk.f32.gmra.mxu2 %vm333_vm0, %v11709_v11  ;;  %v7349_v24 = vpack.i.bf16 %v11780_v34, %v11862_v2  ;;  %v4646_v8 = vpop.f32.mrf.mxu3  ;;  %v5925_v14 = vld [vmem:[%s13312_s7 + $0x48] sm:$0xff] }
 0x6dc   : > { %4711 = vmatmul.f32.gmra.mxu3 %v4316_v20  ;;  %v4869_v58 = vpop.f32.mrf.mxu1  ;;  %v4638_v20 = vadd.f32 %v11820_v0, %v4525_v30  ;;  %v13505_v0 = vld [vmem:[#allocation5_spill] sm:$0xff] }
 0x6dd   : > { %7350 = vrot.lane.b32.xlu2 %v7349_v24, %s7733_s11  ;;  %6062 = vmatpush.msrb.mxu3 %v5925_v14 }
 0x6de   : > { %v4970_v57 = vpop.f32.mrf.mxu2  ;;  %v4751_v38 = vadd.f32 %v4750_v47, %v4638_v20  ;;  %v4528_v47 = vadd.f32 %v11804_v56, %v13505_v0  ;;  %v13506_v20 = vld [vmem:[#allocation3_spill] sm:$0xff] }
 0x6df   : > { %v4971_v11 = vadd.f32 %v4970_v57, %v4858_v43 }
 0x6e0   : > { %v4864_v57 = vadd.f32 %v11843_v53, %v4751_v38  ;;  %v4641_v39 = vadd.f32 %v4640_v42, %v4528_v47  ;;  %v4531_v53 = vadd.f32 %v11804_v56, %v13506_v20 }
 0x6e1   : > { %v5062_v46 = vmul.f32 %v4971_v11, %v4971_v11  ;;  %v4753_v19 = vpop.f32.mrf.mxu0 }
 0x6e2   : > { %v11877_v62 = vld [vmem:[#allocation2 + $0x30] sm:$0xff] }
 0x6e3   : > { %5094 = vst.msk [vmem:[#allocation2 + $0x48] sm:$0xff] %vm333_vm0, %v5062_v46  ;;  %6800 = vmatmul.msk.f32.gmra.mxu2 %vm333_vm0, %v11485_v23  ;;  %v7354_v37 = vpack.i.bf16 %v11807_v28, %v11877_v62 }
 0x6e4   : > { %v4872_v11 = vpop.f32.mrf.mxu1 }
 0x6e5   : > { %7355 = vrot.lane.b32.xlu0 %v7354_v37, %s7733_s11  ;;  %v4754_v37 = vadd.f32 %v4753_v19, %v4641_v39  ;;  %v4644_v19 = vadd.f32 %v4643_v26, %v4531_v53  ;;  %v13507_v26 = vld [vmem:[#allocation12_spill] sm:$0xff] }
 0x6e6   : > { %v4973_v49 = vpop.f32.mrf.mxu2  ;;  %v11929_v53 = vld [vmem:[#allocation2 + $0x1e8] sm:$0xff] }
 0x6e7   : > { %v4974_v24 = vadd.f32 %v4973_v49, %v4861_v1  ;;  %v4867_v42 = vadd.f32 %v4866_v48, %v4754_v37  ;;  %v5924_v48 = vld [vmem:[%s13312_s7 + $0x40] sm:$0xff]  ;;  %v11926_v37 = vld [vmem:[#allocation2 + $0x1f0] sm:$0xff] }
 0x6e8   : > { %6063 = vmatpush.msrb.mxu3 %v5924_v48  ;;  %v5922_v48 = vld [vmem:[%s13312_s7 + $0x30] sm:$0xff] }
 0x6e9   : > { %v5063_v7 = vmul.f32 %v4974_v24, %v4974_v24  ;;  %v4756_v27 = vpop.f32.mrf.mxu0 }
 0x6ea   : > { %v11889_v23 = vld [vmem:[#allocation2 + $0x48] sm:$0xff] }
 0x6eb   : > { %5095 = vst.msk [vmem:[#allocation2 + $0x50] sm:$0xff] %vm333_vm0, %v5063_v7  ;;  %6801 = vmatmul.msk.f32.gmra.mxu2 %vm333_vm0, %v11749_v52  ;;  %v7359_v43 = vpack.i.bf16 %v11823_v13, %v11889_v23  ;;  %v4649_v52 = vpop.f32.mrf.mxu3 }
 0x6ec   : > { %v4875_v7 = vpop.f32.mrf.mxu1 }
 0x6ed   : > { %7360 = vrot.lane.b32.xlu1 %v7359_v43, %s7733_s11  ;;  %v4757_v43 = vadd.f32 %v4756_v27, %v4644_v19  ;;  %v4534_v27 = vadd.f32 %v11804_v56, %v13507_v26 }
 0x6ee   : > { %v4976_v5 = vpop.f32.mrf.mxu2 }
 0x6ef   : > { %v4977_v46 = vadd.f32 %v4976_v5, %v4864_v57  ;;  %v3626_v5 = vld [vmem:[#allocation2 + $0x1f8] sm:$0xff]  ;;  %v4870_v39 = vadd.f32 %v4869_v58, %v4757_v43 }
 0x6f1   : > { %v5064_v15 = vmul.f32 %v4977_v46, %v4977_v46  ;;  %v4759_v30 = vpop.f32.mrf.mxu0 }
 0x6f2   : > { %v11903_v1 = vld [vmem:[#allocation2 + $0x50] sm:$0xff] }
 0x6f3   : > { %5096 = vst.msk [vmem:[#allocation2 + $0x68] sm:$0xff] %vm333_vm0, %v5064_v15  ;;  %6802 = vmatmul.msk.f32.gmra.mxu2 %vm333_vm0, %v11780_v34  ;;  %v7364_v49 = vpack.i.bf16 %v11846_v29, %v11903_v1  ;;  %v4652_v47 = vpop.f32.mrf.mxu3  ;;  %v3889_v15 = vrot.slane %v3626_v5, 1  ;;  %v5923_v5 = vld [vmem:[%s13312_s7 + $0x38] sm:$0xff] }
 0x6f4   : > { %6064 = vmatpush.msrb.mxu3 %v5923_v5 }
 0x6f5   : > { %7365 = vrot.lane.b32.xlu2 %v7364_v49, %s7733_s11  ;;  %v4647_v49 = vadd.f32 %v4646_v8, %v4534_v27  ;;  %v13508_v27 = vld [vmem:[#allocation16_spill] sm:$0xff] }
 0x6f6   : > { %v4979_v24 = vpop.f32.mrf.mxu2  ;;  %6065 = vmatpush.msrb.mxu3 %v5922_v48 }
 0x6f7   : > { %v4980_v38 = vadd.f32 %v4979_v24, %v4867_v42  ;;  %v3886_v42 = vrot.slane %v11929_v53, 1  ;;  %v4760_v24 = vadd.f32 %v4759_v30, %v4647_v49 }
 0x6f9   : > { %v5065_v14 = vmul.f32 %v4980_v38, %v4980_v38  ;;  %v4762_v0 = vpop.f32.mrf.mxu0 }
 0x6fa   : > { %v11913_v57 = vld [vmem:[#allocation2 + $0x68] sm:$0xff] }
 0x6fb   : > { %5097 = vst.msk [vmem:[#allocation2 + $0x70] sm:$0xff] %vm333_vm0, %v5065_v14  ;;  %6803 = vmatmul.msk.f32.gmra.mxu2 %vm333_vm0, %v11807_v28  ;;  %v7369_v34 = vpack.i.bf16 %v11858_v31, %v11913_v57  ;;  %v3887_v28 = vrot.slane %v11926_v37, 1  ;;  %v4655_v26 = vpop.f32.mrf.mxu3 }
 0x6fd   : > { %7370 = vrot.lane.b32.xlu0 %v7369_v34, %s7733_s11  ;;  %v11933_v14 = vsel %vm720_vm2, %v3886_v42, %v3887_v28  ;;  %v11938_v43 = vsel %vm720_vm2, %v3887_v28, %v3889_v15  ;;  %v4878_v34 = vpop.f32.mrf.mxu1 }
 0x6fe   : > { %v4982_v46 = vpop.f32.mrf.mxu2  ;;  %v7384_v30 = vpack.i.bf16 %v11766_v40, %v11938_v43 }
 0x6ff   : > { %v4983_v20 = vadd.f32 %v4982_v46, %v4870_v39  ;;  %v4537_v39 = vadd.f32 %v11804_v56, %v13508_v27  ;;  %v5921_v46 = vld [vmem:[%s13312_s7 + $0x28] sm:$0xff] }
 0x700   : > { %6066 = vmatpush.msrb.mxu3 %v5921_v46 }
 0x701   : > { %v5066_v19 = vmul.f32 %v4983_v20, %v4983_v20  ;;  %v4765_v38 = vpop.f32.mrf.mxu0  ;;  %v4650_v15 = vadd.f32 %v4649_v52, %v4537_v39  ;;  %v5919_v52 = vld [vmem:[%s13312_s7 + $0x18] sm:$0xff] }
 0x702   : > { %v11935_v58 = vld [vmem:[#allocation2 + $0x70] sm:$0xff] }
 0x703   : > { %5098 = vst.msk [vmem:[#allocation2 + $0x88] sm:$0xff] %vm333_vm0, %v5066_v19  ;;  %6804 = vmatmul.msk.f32.gmra.mxu2 %vm333_vm0, %v11823_v13  ;;  %v7374_v8 = vpack.i.bf16 %v11933_v14, %v11935_v58  ;;  %v4873_v13 = vadd.f32 %v4872_v11, %v4760_v24  ;;  %v4763_v20 = vadd.f32 %v4762_v0, %v4650_v15  ;;  %v5920_v24 = vld [vmem:[%s13312_s7 + $0x20] sm:$0xff]  ;;  %v13509_v0 = vld [vmem:[#allocation4_spill] sm:$0xff]  ;;  %v4658_v27 = vpop.f32.mrf.mxu3 }
 0x704   : > { %6067 = vmatpush.msrb.mxu3 %v5920_v24 }
 0x705   : > { %7375 = vrot.lane.b32.xlu1 %v7374_v8, %s7733_s11  ;;  %7385 = vrot.lane.b32.xlu0 %v7384_v30, %s7733_s11  ;;  %v4540_v8 = vadd.f32 %v11804_v56, %v13509_v0  ;;  %v4881_v30 = vpop.f32.mrf.mxu1  ;;  %v4876_v48 = vadd.f32 %v4875_v7, %v4763_v20  ;;  %v5916_v7 = vld [vmem:[%s13312_s7] sm:$0xff] }
 0x706   : > { %v4985_v28 = vpop.f32.mrf.mxu2  ;;  %6068 = vmatpush.msrb.mxu3 %v5919_v52 }
 0x707   : > { %v4986_v49 = vadd.f32 %v4985_v28, %v4873_v13  ;;  %v4653_v13 = vadd.f32 %v4652_v47, %v4540_v8  ;;  %v5917_v28 = vld [vmem:[%s13312_s7 + $0x8] sm:$0xff]  ;;  %v13510_v47 = vld [vmem:[#allocation14_spill] sm:$0xff] }
 0x709   : > { %v5067_v42 = vmul.f32 %v4986_v49, %v4986_v49  ;;  %v4768_v19 = vpop.f32.mrf.mxu0  ;;  %v4766_v15 = vadd.f32 %v4765_v38, %v4653_v13  ;;  %v4543_v38 = vadd.f32 %v11804_v56, %v13510_v47  ;;  %v7683_v47 = vld [vmem:[#allocation2 + $0x150] sm:$0xff] }
 0x70a   : > { %v11960_v5 = vld [vmem:[#allocation2 + $0x88] sm:$0xff] }
 0x70b   : > { %5099 = vst.msk [vmem:[#allocation2 + $0x90] sm:$0xff] %vm333_vm0, %v5067_v42  ;;  %6805 = vmatmul.msk.f32.gmra.mxu2 %vm333_vm0, %v11846_v29  ;;  %v7379_v11 = vpack.i.bf16 %v11960_v5, %v11716_v60  ;;  %v5918_v29 = vld [vmem:[%s13312_s7 + $0x10] sm:$0xff]  ;;  %v4879_v20 = vadd.f32 %v4878_v34, %v4766_v15  ;;  %v4656_v0 = vadd.f32 %v4655_v26, %v4543_v38  ;;  %v13511_v15 = vld [vmem:[#allocation6_spill] sm:$0xff] }
 0x70c   : > { %6069 = vmatpush.msrb.mxu3 %v5918_v29  ;;  %v4546_v26 = vadd.f32 %v11804_v56, %v13511_v15 }
 0x70d   : > { %7380 = vrot.lane.b32.xlu2 %v7379_v11, %s7733_s11  ;;  %v4884_v52 = vpop.f32.mrf.mxu1  ;;  %v4769_v29 = vadd.f32 %v4768_v19, %v4656_v0 }
 0x70e   : > { %v4988_v39 = vpop.f32.mrf.mxu2  ;;  %6070 = vmatpush.msrb.mxu3 %v5917_v28 }
 0x70f   : > { %v4989_v46 = vadd.f32 %v4988_v39, %v4876_v48  ;;  %v4661_v48 = vpop.f32.mrf.mxu3 }
 0x710   : > { %6071 = vmatpush.msrb.mxu3 %v5916_v7 }
 0x711   : > { %v5068_v49 = vmul.f32 %v4989_v46, %v4989_v46  ;;  %v4771_v42 = vpop.f32.mrf.mxu0 }
 0x712   : > { %v11982_v24 = vld [vmem:[#allocation2 + $0x90] sm:$0xff] }
 0x713   : > { %5100 = vst.msk [vmem:[#allocation2 + $0xa8] sm:$0xff] %vm333_vm0, %v5068_v49  ;;  %6806 = vmatmul.msk.f32.gmra.mxu2 %vm333_vm0, %v11858_v31  ;;  %5534 = vrot.lane.b32.xlu1 %v11982_v24, %s7733_s11  ;;  %v4882_v49 = vadd.f32 %v4881_v30, %v4769_v29 }
 0x716   : > { %v4991_v11 = vpop.f32.mrf.mxu2 }
 0x717   : > { %v4992_v8 = vadd.f32 %v4991_v11, %v4879_v20  ;;  %v4659_v20 = vadd.f32 %v4658_v27, %v4546_v26  ;;  %v7336_v11 = vpop.permute.xlu2 %7335  ;;  %v5124_v27 = vld [vmem:[#allocation2] sm:$0xff] }
 0x718   : > { %v7338_v35 = vunpack.i.h.bf16 %v7336_v11  ;;  %v7337_v61 = vunpack.i.l.bf16 %v7336_v11  ;;  %v5244_v11 = vrot.slane %v5124_v27, 7  ;;  %v13514_v27 = vld [vmem:[#allocation7_spill] sm:$0xff] }
 0x719   : > { %v5069_v39 = vmul.f32 %v4992_v8, %v4992_v8  ;;  %v4774_v31 = vpop.f32.mrf.mxu0  ;;  %v4887_v8 = vpop.f32.mrf.mxu1 }
 0x71a   : > { %v11994_v13 = vld [vmem:[#allocation2 + $0xa8] sm:$0xff]  ;;  %v4339_v26 = vsel %vm333_vm0, %v11703_v54, %v7338_v35 }
 0x71b   : > { %5101 = vst.msk [vmem:[#allocation2 + $0xb0] sm:$0xff] %vm333_vm0, %v5069_v39  ;;  %6807 = vmatmul.msk.f32.gmra.mxu2 %vm333_vm0, %v11933_v14  ;;  %5536 = vrot.lane.b32.xlu2 %v11994_v13, %s7733_s11  ;;  %v4772_v39 = vadd.f32 %v4771_v42, %v4659_v20  ;;  %v13512_v42 = vld [vmem:[#allocation8_spill] sm:$0xff] }
 0x71c   : > { %v7331_v46 = vpop.permute.xlu1 %7330  ;;  %v4549_v29 = vadd.f32 %v11804_v56, %v13512_v42 }
 0x71d   : > { %v7333_v34 = vunpack.i.h.bf16 %v7331_v46  ;;  %v7332_v28 = vunpack.i.l.bf16 %v7331_v46  ;;  %v4664_v46 = vpop.f32.mrf.mxu3 }
 0x71e   : > { %v4994_v19 = vpop.f32.mrf.mxu2 }
 0x71f   : > { %v4317_v7 = vsel %vm333_vm0, %v11933_v14, %v7332_v28  ;;  %v4338_v38 = vsel %vm333_vm0, %v7683_v47, %v7333_v34  ;;  %v4995_v0 = vadd.f32 %v4994_v19, %v4882_v49  ;;  %v5979_v14 = vld [vmem:[%s13312_s7 + $0x1f8] sm:$0xff]  ;;  %v4885_v34 = vadd.f32 %v4884_v52, %v4772_v39  ;;  %v7684_v19 = vld [vmem:[#allocation2 + $0x8] sm:$0xff]  ;;  %v7341_v47 = vpop.permute.xlu0 %7340 }
 0x720   : > { %4714 = vmatmul.f32.gmra.mxu3 %v4317_v7  ;;  %4794 = vmatmul.f32.gmra.mxu0 %v4338_v38  ;;  %v3933_v49 = vrot.slane %v11766_v40, 1  ;;  %v5245_v7 = vrot.slane %v7684_v19, 7  ;;  %v4662_v38 = vadd.f32 %v4661_v48, %v4549_v29  ;;  %v7342_v42 = vunpack.i.l.bf16 %v7341_v47  ;;  %v3630_v40 = vld [vmem:[#allocation2 + $0x218] sm:$0xff]  ;;  %v5977_v48 = vld [vmem:[%s13312_s7 + $0x1e8] sm:$0xff]  ;;  %v7685_v19 = vld [vmem:[#allocation2 + $0x170] sm:$0xff] }
 0x721   : > { %v5070_v36 = vmul.f32 %v4995_v0, %v4995_v0  ;;  %v4777_v30 = vpop.f32.mrf.mxu0  ;;  %6395 = vmatpush.msra.mxu2 %v5979_v14  ;;  %v3932_v0 = vrot.slane %v11716_v60, 1  ;;  %v7343_v14 = vunpack.i.h.bf16 %v7341_v47  ;;  %v4890_v35 = vpop.f32.mrf.mxu1  ;;  %v4552_v29 = vadd.f32 %v11804_v56, %v13514_v27 }
 0x722   : > { %v12006_v15 = vld [vmem:[#allocation2 + $0xb0] sm:$0xff]  ;;  %v4775_v52 = vadd.f32 %v4774_v31, %v4662_v38  ;;  %v5246_v60 = vsel %vm591_vm1, %v5244_v11, %v5245_v7 }
 0x723   : > { %5102 = vst.msk [vmem:[#allocation2 + $0xc8] sm:$0xff] %vm333_vm0, %v5070_v36  ;;  %6808 = vmatmul.msk.f32.gmra.mxu2 %vm333_vm0, %v11938_v43  ;;  %5538 = vrot.lane.b32.xlu0 %v12006_v15, %s7733_s11  ;;  %v4318_v36 = vsel %vm333_vm0, %v11938_v43, %v7337_v61  ;;  %v12025_v61 = vsel %vm720_vm2, %v3932_v0, %v3933_v49  ;;  %v5978_v43 = vld [vmem:[%s13312_s7 + $0x1f0] sm:$0xff] }
 0x724   : > { %13513 = vst [vmem:[#allocation17_spill] sm:$0xff] %v12025_v61  ;;  %6396 = vmatpush.msra.mxu2 %v5978_v43  ;;  %v4340_v47 = vsel %vm333_vm0, %v7685_v19, %v7343_v14  ;;  %v5816_v38 = vsel %vm333_vm0, %v5246_v60, %v7342_v42  ;;  %v4665_v11 = vadd.f32 %v4664_v46, %v4552_v29  ;;  %v7346_v0 = vpop.permute.xlu1 %7345  ;;  %v12058_v46 = vld [vmem:[#allocation2 + $0x228] sm:$0xff] }
 0x725   : > { %v4667_v31 = vpop.f32.mrf.mxu3  ;;  %v7347_v14 = vunpack.i.l.bf16 %v7346_v0  ;;  %v4555_v29 = vadd.f32 %v11804_v56, %v11571_v51 }
 0x726   : > { %v4997_v28 = vpop.f32.mrf.mxu2  ;;  %6397 = vmatpush.msra.mxu2 %v5977_v48  ;;  %v4778_v43 = vadd.f32 %v4777_v30, %v4665_v11  ;;  %v5974_v30 = vld [vmem:[%s13312_s7 + $0x1d0] sm:$0xff]  ;;  %v3950_v48 = vrot.slane %v12058_v46, 1  ;;  %v5128_v11 = vld [vmem:[#allocation2 + $0x20] sm:$0xff] }
 0x727   : > { %v4998_v20 = vadd.f32 %v4997_v28, %v4885_v34  ;;  %v4888_v34 = vadd.f32 %v4887_v8, %v4775_v52  ;;  %v5976_v28 = vld [vmem:[%s13312_s7 + $0x1e0] sm:$0xff]  ;;  %v5247_v8 = vrot.slane %v11751_v59, 7  ;;  %v5975_v52 = vld [vmem:[%s13312_s7 + $0x1d8] sm:$0xff] }
 0x728   : > { %4717 = vmatmul.f32.gmra.mxu3 %v4318_v36  ;;  %4797 = vmatmul.f32.gmra.mxu0 %v4339_v26 }
 0x729   : > { %v5071_v39 = vmul.f32 %v4998_v20, %v4998_v20  ;;  %v4780_v36 = vpop.f32.mrf.mxu0  ;;  %v3935_v20 = vrot.slane %v3630_v40, 1  ;;  %6398 = vmatpush.msra.mxu2 %v5976_v28  ;;  %v5248_v59 = vsel %vm591_vm1, %v5245_v7, %v5247_v8  ;;  %v12071_v40 = vld [vmem:[#allocation2 + $0x230] sm:$0xff]  ;;  %v4891_v28 = vadd.f32 %v4890_v35, %v4778_v43  ;;  %v5972_v7 = vld [vmem:[%s13312_s7 + $0x1c0] sm:$0xff]  ;;  %v5971_v35 = vld [vmem:[%s13312_s7 + $0x1b8] sm:$0xff] }
 0x72a   : > { %v12027_v54 = vld [vmem:[#allocation2 + $0xc8] sm:$0xff] }
 0x72b   : > { %5103 = vst.msk [vmem:[#allocation2 + $0xd0] sm:$0xff] %vm333_vm0, %v5071_v39  ;;  %6809 = vmatmul.msk.f32.gmra.mxu2 %vm333_vm0, %v12025_v61  ;;  %5540 = vrot.lane.b32.xlu1 %v12027_v54, %s7733_s11  ;;  %v7348_v61 = vunpack.i.h.bf16 %v7346_v0  ;;  %v12053_v42 = vsel %vm720_vm2, %v3933_v49, %v3935_v20  ;;  %v5973_v49 = vld [vmem:[%s13312_s7 + $0x1c8] sm:$0xff]  ;;  %v5817_v20 = vsel %vm333_vm0, %v5248_v59, %v7347_v14 }
 0x72c   : > { %6399 = vmatpush.msra.mxu2 %v5975_v52  ;;  %v4668_v0 = vadd.f32 %v4667_v31, %v4555_v29 }
 0x72d   : > { %v4670_v19 = vpop.f32.mrf.mxu3 }
 0x72e   : > { %v5000_v26 = vpop.f32.mrf.mxu2  ;;  %6400 = vmatpush.msra.mxu2 %v5974_v30  ;;  %v4781_v43 = vadd.f32 %v4780_v36, %v4668_v0  ;;  %v5970_v36 = vld [vmem:[%s13312_s7 + $0x1b0] sm:$0xff]  ;;  %v5969_v30 = vld [vmem:[%s13312_s7 + $0x1a8] sm:$0xff]  ;;  %v5967_v0 = vld [vmem:[%s13312_s7 + $0x198] sm:$0xff] }
 0x72f   : > { %v5001_v39 = vadd.f32 %v5000_v26, %v4888_v34  ;;  %v4893_v34 = vpop.f32.mrf.mxu1  ;;  %v3951_v26 = vrot.slane %v12071_v40, 1 }
 0x730   : > { %4800 = vmatmul.f32.gmra.mxu0 %v4340_v47  ;;  %6072 = vmatmul.f32.vlgmr.msrb.gmra.mxu3 %v5816_v38  ;;  %v4341_v38 = vsel %vm333_vm0, %v11738_v45, %v7348_v61  ;;  %v5249_v45 = vrot.slane %v5128_v11, 7  ;;  %v5250_v61 = vrot.slane %v11862_v2, 7  ;;  %v4894_v29 = vadd.f32 %v4893_v34, %v4781_v43 }
 0x731   : > { %v5072_v27 = vmul.f32 %v5001_v39, %v5001_v39  ;;  %6401 = vmatpush.msra.mxu2 %v5973_v49  ;;  %v4783_v8 = vpop.f32.mrf.mxu0  ;;  %v3952_v52 = vsel %vm720_vm2, %v3950_v48, %v3951_v26  ;;  %v3634_v49 = vld [vmem:[#allocation2 + $0x238] sm:$0xff]  ;;  %v4558_v48 = vadd.f32 %v11804_v56, %v11581_v63 }
 0x732   : > { %v12055_v60 = vld [vmem:[#allocation2 + $0xd0] sm:$0xff] }
 0x733   : > { %5104 = vst.msk [vmem:[#allocation2 + $0xe8] sm:$0xff] %vm333_vm0, %v5072_v27  ;;  %6810 = vmatmul.msk.f32.gmra.mxu2 %vm333_vm0, %v12053_v42  ;;  %5542 = vrot.lane.b32.xlu2 %v12055_v60, %s7733_s11  ;;  %v4671_v63 = vadd.f32 %v4670_v19, %v4558_v48  ;;  %v5966_v19 = vld [vmem:[%s13312_s7 + $0x190] sm:$0xff] }
 0x734   : > { %6402 = vmatpush.msra.mxu2 %v5972_v7  ;;  %v5968_v7 = vld [vmem:[%s13312_s7 + $0x1a0] sm:$0xff] }
 0x736   : > { %v5003_v47 = vpop.f32.mrf.mxu2  ;;  %6403 = vmatpush.msra.mxu2 %v5971_v35 }
 0x737   : > { %v5004_v39 = vadd.f32 %v5003_v47, %v4891_v28  ;;  %v7351_v51 = vpop.permute.xlu2 %7350  ;;  %v12105_v28 = vsel %vm591_vm1, %v5249_v45, %v5250_v61  ;;  %v3953_v47 = vrot.slane %v3634_v49, 1 }
 0x738   : > { %4803 = vmatmul.f32.gmra.mxu0 %v4341_v38  ;;  %6075 = vmatmul.f32.gmra.mxu3 %v5817_v20  ;;  %v7353_v14 = vunpack.i.h.bf16 %v7351_v51  ;;  %v7352_v59 = vunpack.i.l.bf16 %v7351_v51  ;;  %v4673_v51 = vpop.f32.mrf.mxu3 }
 0x739   : > { %v5073_v27 = vmul.f32 %v5004_v39, %v5004_v39  ;;  %6404 = vmatpush.msra.mxu2 %v5970_v36  ;;  %v4896_v39 = vpop.f32.mrf.mxu1  ;;  %v3954_v35 = vsel %vm720_vm2, %v3951_v26, %v3953_v47  ;;  %v5965_v26 = vld [vmem:[%s13312_s7 + $0x188] sm:$0xff] }
 0x73a   : > { %v12088_v31 = vld [vmem:[#allocation2 + $0xe8] sm:$0xff]  ;;  %v4342_v20 = vsel %vm333_vm0, %v11731_v18, %v7353_v14  ;;  %v5818_v11 = vsel %vm333_vm0, %v12105_v28, %v7352_v59  ;;  %v4786_v18 = vpop.f32.mrf.mxu0  ;;  %v5964_v14 = vld [vmem:[%s13312_s7 + $0x180] sm:$0xff] }
 0x73b   : > { %5105 = vst.msk [vmem:[#allocation2 + $0xf0] sm:$0xff] %vm333_vm0, %v5073_v27  ;;  %5544 = vrot.lane.b32.xlu0 %v12088_v31, %s7733_s11  ;;  %6811 = vmatmul.msk.f32.gmra.mxu2 %vm333_vm0, %v3952_v52  ;;  %v4784_v52 = vadd.f32 %v4783_v8, %v4671_v63  ;;  %v4561_v8 = vadd.f32 %v11804_v56, %v11589_v10 }
 0x73c   : > { %6405 = vmatpush.msra.mxu2 %v5969_v30 }
 0x73d   : > { %v4897_v45 = vadd.f32 %v4896_v39, %v4784_v52  ;;  %v4674_v36 = vadd.f32 %v4673_v51, %v4561_v8 }
 0x73e   : > { %v5006_v38 = vpop.f32.mrf.mxu2  ;;  %6406 = vmatpush.msra.mxu2 %v5968_v7 }
 0x73f   : > { %v5007_v34 = vadd.f32 %v5006_v38, %v4894_v29  ;;  %v4787_v49 = vadd.f32 %v4786_v18, %v4674_v36  ;;  %v4564_v38 = vadd.f32 %v11804_v56, %v11599_v21  ;;  %v5252_v21 = vrot.slane %v11877_v62, 7 }
 0x740   : > { %4806 = vmatmul.f32.gmra.mxu0 %v4342_v20  ;;  %6078 = vmatmul.f32.gmra.mxu3 %v5818_v11  ;;  %v4676_v7 = vpop.f32.mrf.mxu3 }
 0x741   : > { %v5074_v43 = vmul.f32 %v5007_v34, %v5007_v34  ;;  %6407 = vmatpush.msra.mxu2 %v5967_v0  ;;  %v4899_v29 = vpop.f32.mrf.mxu1  ;;  %v4677_v63 = vadd.f32 %v4676_v7, %v4564_v38 }
 0x742   : > { %v12118_v27 = vld [vmem:[#allocation2 + $0xf0] sm:$0xff]  ;;  %v4789_v10 = vpop.f32.mrf.mxu0  ;;  %v4900_v20 = vadd.f32 %v4899_v29, %v4787_v49  ;;  %v5132_v29 = vld [vmem:[#allocation2 + $0x40] sm:$0xff] }
 0x743   : > { %5106 = vst.msk [vmem:[#allocation2 + $0x108] sm:$0xff] %vm333_vm0, %v5074_v43  ;;  %5546 = vrot.lane.b32.xlu1 %v12118_v27, %s7733_s11  ;;  %6812 = vmatmul.msk.f32.gmra.mxu2 %vm333_vm0, %v3954_v35  ;;  %v4790_v0 = vadd.f32 %v4789_v10, %v4677_v63  ;;  %v4567_v43 = vadd.f32 %v11804_v56, %v11609_v50  ;;  %v5255_v10 = vrot.slane %v11889_v23, 7  ;;  %v5257_v23 = vrot.slane %v11903_v1, 7 }
 0x744   : > { %6408 = vmatpush.msra.mxu2 %v5966_v19 }
 0x746   : > { %v5009_v59 = vpop.f32.mrf.mxu2  ;;  %6409 = vmatpush.msra.mxu2 %v5965_v26 }
 0x747   : > { %v5010_v30 = vadd.f32 %v5009_v59, %v4897_v45 }
 0x748   : > { %6410 = vmatpush.msra.mxu2 %v5964_v14  ;;  %v4679_v52 = vpop.f32.mrf.mxu3 }
 0x749   : > { %v5075_v48 = vmul.f32 %v5010_v30, %v5010_v30  ;;  %v4902_v51 = vpop.f32.mrf.mxu1  ;;  %v4680_v8 = vadd.f32 %v4679_v52, %v4567_v43 }
 0x74a   : > { %v12135_v47 = vld [vmem:[#allocation2 + $0x108] sm:$0xff]  ;;  %v4903_v18 = vadd.f32 %v4902_v51, %v4790_v0  ;;  %v4792_v19 = vpop.f32.mrf.mxu0 }
 0x74b   : > { %5107 = vst.msk [vmem:[#allocation2 + $0x110] sm:$0xff] %vm333_vm0, %v5075_v48  ;;  %5548 = vrot.lane.b32.xlu2 %v12135_v47, %s7733_s11  ;;  %v4793_v30 = vadd.f32 %v4792_v19, %v4680_v8  ;;  %v12153_v48 = vsel %vm591_vm1, %v5250_v61, %v5252_v21  ;;  %v5254_v61 = vrot.slane %v5132_v29, 7 }
 0x74d   : > { %v12168_v51 = vsel %vm591_vm1, %v5254_v61, %v5255_v10 }
 0x74e   : > { %v5012_v11 = vpop.f32.mrf.mxu2 }
 0x74f   : > { %v5013_v34 = vadd.f32 %v5012_v11, %v4900_v20 }
 0x750   : > { %v12165_v0 = vpop.f32.mrf.mxu3 }
 0x751   : > { %v5076_v39 = vmul.f32 %v5013_v34, %v5013_v34  ;;  %v4905_v7 = vpop.f32.mrf.mxu1 }
 0x752   : > { %v12142_v35 = vld [vmem:[#allocation2 + $0x110] sm:$0xff]  ;;  %v4906_v2 = vadd.f32 %v4905_v7, %v4793_v30  ;;  %v5136_v30 = vld [vmem:[#allocation2 + $0x60] sm:$0xff] }
 0x753   : > { %5108 = vst.msk [vmem:[#allocation2 + $0x128] sm:$0xff] %vm333_vm0, %v5076_v39  ;;  %5550 = vrot.lane.b32.xlu0 %v12142_v35, %s7733_s11 }
 0x756   : > { %v5015_v26 = vpop.f32.mrf.mxu2 }
 0x757   : > { %v5016_v45 = vadd.f32 %v5015_v26, %v4903_v18  ;;  %v7356_v14 = vpop.permute.xlu0 %7355 }
 0x758   : > { %v7358_v59 = vunpack.i.h.bf16 %v7356_v14  ;;  %v7357_v36 = vunpack.i.l.bf16 %v7356_v14  ;;  %v12191_v1 = vpop.f32.mrf.mxu3 }
 0x759   : > { %v5077_v49 = vmul.f32 %v5016_v45, %v5016_v45 }
 0x75a   : > { %v4343_v50 = vsel %vm333_vm0, %v11796_v32, %v7358_v59  ;;  %v5819_v56 = vsel %vm333_vm0, %v12153_v48, %v7357_v36  ;;  %v12159_v62 = vld [vmem:[#allocation2 + $0x128] sm:$0xff]  ;;  %v7366_v32 = vpop.permute.xlu2 %7365 }
 0x75b   : > { %5109 = vst.msk [vmem:[#allocation2 + $0x130] sm:$0xff] %vm333_vm0, %v5077_v49  ;;  %4809 = vmatmul.f32.gmra.mxu0 %v4343_v50  ;;  %6081 = vmatmul.f32.gmra.mxu3 %v5819_v56  ;;  %v7368_v21 = vunpack.i.h.bf16 %v7366_v32  ;;  %v7367_v19 = vunpack.i.l.bf16 %v7366_v32  ;;  %v5259_v49 = vrot.slane %v5136_v30, 7  ;;  %v5270_v30 = vrot.slane %v11994_v13, 7  ;;  %v5987_v13 = vld [vmem:[%s13312_s7 + $0x238] sm:$0xff] }
 0x75c   : > { %5552 = vrot.lane.b32.xlu1 %v12159_v62, %s7733_s11  ;;  %6516 = vmatpush.msra.mxu3 %v5987_v13 }
 0x75d   : > { %v4345_v45 = vsel %vm333_vm0, %v11840_v12, %v7368_v21  ;;  %v5260_v12 = vrot.slane %v11913_v57, 7 }
 0x75e   : > { %v5018_v38 = vpop.f32.mrf.mxu2 }
 0x75f   : > { %v5019_v20 = vadd.f32 %v5018_v38, %v4906_v2  ;;  %v7361_v11 = vpop.permute.xlu1 %7360  ;;  %v12197_v7 = vsel %vm591_vm1, %v5259_v49, %v5260_v12 }
 0x760   : > { %v7363_v63 = vunpack.i.h.bf16 %v7361_v11  ;;  %v7362_v34 = vunpack.i.l.bf16 %v7361_v11  ;;  %v12203_v61 = vpop.f32.mrf.mxu3 }
 0x761   : > { %v5078_v39 = vmul.f32 %v5019_v20, %v5019_v20 }
 0x762   : > { %v4344_v52 = vsel %vm333_vm0, %v11791_v41, %v7363_v63  ;;  %v5820_v43 = vsel %vm333_vm0, %v12168_v51, %v7362_v34  ;;  %v12174_v18 = vld [vmem:[#allocation2 + $0x130] sm:$0xff]  ;;  %v12181_v41 = vsel %vm591_vm1, %v5255_v10, %v5257_v23  ;;  %v5262_v10 = vrot.slane %v11935_v58, 7  ;;  %v5140_v58 = vld [vmem:[#allocation2 + $0x80] sm:$0xff] }
 0x763   : > { %5110 = vst.msk [vmem:[#allocation2 + $0x148] sm:$0xff] %vm333_vm0, %v5078_v39  ;;  %4812 = vmatmul.f32.gmra.mxu0 %v4344_v52  ;;  %6084 = vmatmul.f32.gmra.mxu3 %v5820_v43  ;;  %v5821_v14 = vsel %vm333_vm0, %v12181_v41, %v7367_v19  ;;  %v5265_v23 = vrot.slane %v11960_v5, 7 }
 0x764   : > { %6411 = vmatmul.f32.vlgmr.msra.gmra.mxu2 %v5820_v43  ;;  %5554 = vrot.lane.b32.xlu2 %v12174_v18, %s7733_s11  ;;  %v12207_v63 = vsel %vm591_vm1, %v5260_v12, %v5262_v10  ;;  %v5264_v43 = vrot.slane %v5140_v58, 7  ;;  %v4908_v10 = vpop.f32.mrf.mxu1 }
 0x767   : > { %v7381_v26 = vpop.permute.xlu2 %7380 }
 0x768   : > { %v7382_v8 = vunpack.i.l.bf16 %v7381_v26  ;;  %v12216_v21 = vpop.f32.mrf.mxu3  ;;  %v7383_v19 = vunpack.i.h.bf16 %v7381_v26  ;;  %v5144_v26 = vld [vmem:[#allocation2 + $0xa0] sm:$0xff] }
 0x769   : > { %v5269_v49 = vrot.slane %v5144_v26, 7 }
 0x76a   : > { %v12187_v59 = vld [vmem:[#allocation2 + $0x148] sm:$0xff]  ;;  %v4351_v36 = vsel %vm333_vm0, %v11727_v33, %v7382_v8 }
 0x76b   : > { %4815 = vmatmul.f32.gmra.mxu0 %v4345_v45  ;;  %6087 = vmatmul.f32.gmra.mxu3 %v5821_v14  ;;  %v5267_v45 = vrot.slane %v11982_v24, 7 }
 0x76c   : > { %6414 = vmatmul.f32.gmra.mxu2 %v5821_v14  ;;  %5556 = vrot.lane.b32.xlu0 %v12187_v59, %s7733_s11 }
 0x76d   : > { %4934 = vmatmul.f32.gmra.mxu1 %v4351_v36  ;;  %v12229_v5 = vsel %vm591_vm1, %v5265_v23, %v5267_v45 }
 0x76f   : > { %v7371_v50 = vpop.permute.xlu0 %7370 }
 0x770   : > { %v7373_v56 = vunpack.i.h.bf16 %v7371_v50  ;;  %v7372_v29 = vunpack.i.l.bf16 %v7371_v50  ;;  %v12226_v36 = vpop.f32.mrf.mxu3  ;;  %v12235_v50 = vsel %vm591_vm1, %v5269_v49, %v5270_v30 }
 0x772   : > { %v4346_v33 = vsel %vm333_vm0, %v11836_v44, %v7373_v56  ;;  %v5822_v2 = vsel %vm333_vm0, %v12197_v7, %v7372_v29  ;;  %v5947_v29 = vld [vmem:[%s13312_s7 + $0xf8] sm:$0xff] }
 0x773   : > { %4818 = vmatmul.f32.gmra.mxu0 %v4346_v33  ;;  %6090 = vmatmul.f32.gmra.mxu3 %v5822_v2  ;;  %v5963_v33 = vld [vmem:[%s13312_s7 + $0x178] sm:$0xff] }
 0x774   : > { %6417 = vmatmul.f32.gmra.mxu2 %v5822_v2  ;;  %v5272_v2 = vrot.slane %v12006_v15, 7  ;;  %6169 = vmatpush.msra.mxu0 %v5947_v29 }
 0x775   : > { %v5537_v12 = vpop.permute.xlu2 %5536  ;;  %6282 = vmatpush.msra.mxu1 %v5963_v33 }
 0x776   : > { %v5826_v56 = vsel %vm333_vm0, %v12235_v50, %v5537_v12  ;;  %v5962_v12 = vld [vmem:[%s13312_s7 + $0x170] sm:$0xff] }
 0x777   : > { %v7376_v57 = vpop.permute.xlu1 %7375  ;;  %v7386_v38 = vpop.permute.xlu0 %7385  ;;  %6283 = vmatpush.msra.mxu1 %v5962_v12 }
 0x778   : > { %v7378_v32 = vunpack.i.h.bf16 %v7376_v57  ;;  %v7377_v20 = vunpack.i.l.bf16 %v7376_v57  ;;  %v7388_v11 = vunpack.i.h.bf16 %v7386_v38  ;;  %v7387_v52 = vunpack.i.l.bf16 %v7386_v38  ;;  %v12237_v24 = vpop.f32.mrf.mxu3  ;;  %v5021_v57 = vpop.f32.mrf.mxu2 }
 0x77a   : > { %v4347_v44 = vsel %vm333_vm0, %v11929_v53, %v7378_v32  ;;  %v4352_v34 = vsel %vm333_vm0, %v11774_v4, %v7388_v11  ;;  %v5823_v39 = vsel %vm333_vm0, %v12207_v63, %v7377_v20  ;;  %v4348_v53 = vsel %vm333_vm0, %v11926_v37, %v7387_v52  ;;  %v12254_v32 = vld [vmem:[%s13311_s6] ss:$0 sm:$0xff] }
 0x77b   : > { %4821 = vmatmul.f32.gmra.mxu0 %v4347_v44  ;;  %4937 = vmatmul.f32.gmra.mxu1 %v4352_v34  ;;  %v12221_v4 = vsel %vm591_vm1, %v5264_v43, %v5265_v23  ;;  %v4570_v20 = vadd.f32 %v12254_v32, %v11621_v17  ;;  %v12259_v11 = vsel %vm591_vm1, %v5270_v30, %v5272_v2  ;;  %v5148_v34 = vld [vmem:[#allocation2 + $0xc0] sm:$0xff]  ;;  %v5275_v43 = vrot.slane %v12027_v54, 7 }
 0x77c   : > { %6093 = vmatmul.f32.gmra.mxu3 %v5823_v39  ;;  %6420 = vmatmul.f32.gmra.mxu2 %v5823_v39  ;;  %v5824_v8 = vsel %vm333_vm0, %v12221_v4, %v7383_v19  ;;  %v5274_v23 = vrot.slane %v5148_v34, 7  ;;  %v4576_v33 = vadd.f32 %v12254_v32, %v11637_v3  ;;  %v5945_v3 = vld [vmem:[%s13312_s7 + $0xe8] sm:$0xff] }
 0x77d   : > { %v4683_v44 = vadd.f32 %v12165_v0, %v4570_v20  ;;  %v4911_v0 = vpop.f32.mrf.mxu1 }
 0x780   : > { %v12264_v58 = vpop.f32.mrf.mxu3  ;;  %v5024_v45 = vpop.f32.mrf.mxu2 }
 0x783   : > { %4824 = vmatmul.f32.gmra.mxu0 %v4348_v53  ;;  %v4573_v53 = vadd.f32 %v12254_v32, %v11629_v55  ;;  %v5946_v55 = vld [vmem:[%s13312_s7 + $0xf0] sm:$0xff] }
 0x784   : > { %6096 = vmatmul.f32.gmra.mxu3 %v5824_v8  ;;  %6423 = vmatmul.f32.gmra.mxu2 %v5824_v8 }
 0x785   : > { %v5535_v14 = vpop.permute.xlu1 %5534  ;;  %6170 = vmatpush.msra.mxu0 %v5946_v55 }
 0x786   : > { %v5825_v37 = vsel %vm333_vm0, %v12229_v5, %v5535_v14  ;;  %v12270_v14 = vsel %vm591_vm1, %v5274_v23, %v5275_v43  ;;  %v5280_v23 = vrot.slane %v12088_v31, 7 }
 0x787   : > { %6171 = vmatpush.msra.mxu0 %v5945_v3 }
 0x788   : > { %v5027_v34 = vpop.f32.mrf.mxu2 }
 0x78c   : > { %6099 = vmatmul.f32.gmra.mxu3 %v5825_v37  ;;  %6426 = vmatmul.f32.gmra.mxu2 %v5825_v37  ;;  %v4686_v37 = vadd.f32 %v12191_v1, %v4573_v53  ;;  %v5277_v1 = vrot.slane %v12055_v60, 7 }
 0x78d   : > { %v5543_v13 = vpop.permute.xlu2 %5542 }
 0x794   : > { %6102 = vmatmul.f32.gmra.mxu3 %v5826_v56  ;;  %6429 = vmatmul.f32.gmra.mxu2 %v5826_v56  ;;  %v12283_v56 = vpop.f32.mrf.mxu3 }
 0x795   : > { %v5539_v38 = vpop.permute.xlu0 %5538 }
 0x796   : > { %v5827_v15 = vsel %vm333_vm0, %v12259_v11, %v5539_v38  ;;  %v4689_v38 = vadd.f32 %v12203_v61, %v4576_v33  ;;  %v4582_v33 = vadd.f32 %v12254_v32, %v11655_v16 }
 0x79c   : > { %6105 = vmatmul.f32.gmra.mxu3 %v5827_v15  ;;  %6432 = vmatmul.f32.gmra.mxu2 %v5827_v15  ;;  %v5152_v15 = vld [vmem:[#allocation2 + $0xe0] sm:$0xff] }
 0x79d   : > { %v4795_v39 = vpop.f32.mrf.mxu0  ;;  %v5541_v17 = vpop.permute.xlu1 %5540 }
 0x79e   : > { %v4796_v52 = vadd.f32 %v4795_v39, %v4683_v44  ;;  %v5828_v30 = vsel %vm333_vm0, %v12270_v14, %v5541_v17  ;;  %v5961_v17 = vld [vmem:[%s13312_s7 + $0x168] sm:$0xff] }
 0x79f   : > { %6284 = vmatpush.msra.mxu1 %v5961_v17 }
 0x7a0   : > { %v4909_v19 = vadd.f32 %v4908_v10, %v4796_v52  ;;  %v4914_v10 = vpop.f32.mrf.mxu1 }
 0x7a2   : > { %v5022_v8 = vadd.f32 %v5021_v57, %v4909_v19  ;;  %v12288_v57 = vsel %vm591_vm1, %v5275_v43, %v5277_v1  ;;  %v5986_v43 = vld [vmem:[%s13312_s7 + $0x230] sm:$0xff]  ;;  %v5279_v19 = vrot.slane %v5152_v15, 7  ;;  %v5282_v1 = vrot.slane %v12118_v27, 7 }
 0x7a3   : > { %v5829_v44 = vsel %vm333_vm0, %v12288_v57, %v5543_v13  ;;  %6517 = vmatpush.msra.mxu3 %v5986_v43 }
 0x7a4   : > { %v5079_v26 = vmul.f32 %v5022_v8, %v5022_v8  ;;  %6108 = vmatmul.f32.gmra.mxu3 %v5828_v30  ;;  %6435 = vmatmul.f32.gmra.mxu2 %v5828_v30 }
 0x7a5   : > { %v4798_v54 = vpop.f32.mrf.mxu0  ;;  %v5549_v17 = vpop.permute.xlu2 %5548 }
 0x7a6   : > { %5111 = vst.msk [vmem:[#allocation2 + $0x150] sm:$0xff] %vm333_vm0, %v5079_v26  ;;  %v4799_v49 = vadd.f32 %v4798_v54, %v4686_v37  ;;  %v12313_v26 = vsel %vm591_vm1, %v5279_v19, %v5280_v23 }
 0x7a8   : > { %v4912_v29 = vadd.f32 %v4911_v0, %v4799_v49  ;;  %v4579_v0 = vadd.f32 %v12254_v32, %v11645_v6  ;;  %v4917_v49 = vpop.f32.mrf.mxu1 }
 0x7aa   : > { %v5025_v2 = vadd.f32 %v5024_v45, %v4912_v29  ;;  %v12310_v45 = vpop.f32.mrf.mxu3  ;;  %v4692_v31 = vadd.f32 %v12216_v21, %v4579_v0  ;;  %v5030_v29 = vpop.f32.mrf.mxu2  ;;  %v5960_v0 = vld [vmem:[%s13312_s7 + $0x160] sm:$0xff] }
 0x7ab   : > { %6285 = vmatpush.msra.mxu1 %v5960_v0 }
 0x7ac   : > { %v5080_v20 = vmul.f32 %v5025_v2, %v5025_v2  ;;  %6111 = vmatmul.f32.gmra.mxu3 %v5829_v44  ;;  %6438 = vmatmul.f32.gmra.mxu2 %v5829_v44 }
 0x7ad   : > { %v4801_v39 = vpop.f32.mrf.mxu0  ;;  %v12293_v52 = vld [vmem:[#allocation2 + $0x150] sm:$0xff]  ;;  %v5545_v8 = vpop.permute.xlu0 %5544 }
 0x7ae   : > { %5112 = vst.msk [vmem:[#allocation2 + $0x168] sm:$0xff] %vm333_vm0, %v5080_v20  ;;  %v4802_v61 = vadd.f32 %v4801_v39, %v4689_v38  ;;  %5558 = vrot.lane.b32.xlu1 %v12293_v52, %s7733_s11  ;;  %v5830_v54 = vsel %vm333_vm0, %v12313_v26, %v5545_v8  ;;  %v4695_v38 = vadd.f32 %v12226_v36, %v4582_v33  ;;  %v5285_v36 = vrot.slane %v12135_v47, 7  ;;  %v5944_v8 = vld [vmem:[%s13312_s7 + $0xe0] sm:$0xff] }
 0x7af   : > { %6172 = vmatpush.msra.mxu0 %v5944_v8 }
 0x7b0   : > { %v4915_v53 = vadd.f32 %v4914_v10, %v4802_v61  ;;  %v12327_v10 = vsel %vm591_vm1, %v5280_v23, %v5282_v1  ;;  %v4920_v43 = vpop.f32.mrf.mxu1 }
 0x7b2   : > { %v5028_v37 = vadd.f32 %v5027_v34, %v4915_v53  ;;  %v12330_v20 = vpop.f32.mrf.mxu3  ;;  %v5156_v34 = vld [vmem:[#allocation2 + $0x100] sm:$0xff]  ;;  %v5033_v19 = vpop.f32.mrf.mxu2 }
 0x7b3   : > { %v5284_v61 = vrot.slane %v5156_v34, 7  ;;  %v5985_v34 = vld [vmem:[%s13312_s7 + $0x228] sm:$0xff] }
 0x7b4   : > { %v5081_v30 = vmul.f32 %v5028_v37, %v5028_v37  ;;  %6114 = vmatmul.f32.gmra.mxu3 %v5830_v54  ;;  %6441 = vmatmul.f32.gmra.mxu2 %v5830_v54 }
 0x7b5   : > { %v4804_v55 = vpop.f32.mrf.mxu0  ;;  %v12318_v12 = vld [vmem:[#allocation2 + $0x168] sm:$0xff]  ;;  %v5547_v13 = vpop.permute.xlu1 %5546  ;;  %v12347_v37 = vsel %vm591_vm1, %v5284_v61, %v5285_v36  ;;  %6518 = vmatpush.msra.mxu3 %v5985_v34 }
 0x7b6   : > { %5113 = vst.msk [vmem:[#allocation2 + $0x170] sm:$0xff] %vm333_vm0, %v5081_v30  ;;  %v4805_v6 = vadd.f32 %v4804_v55, %v4692_v31  ;;  %5560 = vrot.lane.b32.xlu2 %v12318_v12, %s7733_s11  ;;  %v5831_v15 = vsel %vm333_vm0, %v12327_v10, %v5547_v13  ;;  %v5832_v30 = vsel %vm333_vm0, %v12347_v37, %v5549_v17  ;;  %v5287_v55 = vrot.slane %v12142_v35, 7 }
 0x7b8   : > { %v4918_v21 = vadd.f32 %v4917_v49, %v4805_v6  ;;  %v12360_v1 = vsel %vm591_vm1, %v5285_v36, %v5287_v55  ;;  %v4923_v61 = vpop.f32.mrf.mxu1 }
 0x7ba   : > { %v5031_v2 = vadd.f32 %v5030_v29, %v4918_v21  ;;  %v12353_v49 = vpop.f32.mrf.mxu3  ;;  %v5160_v21 = vld [vmem:[#allocation2 + $0x120] sm:$0xff] }
 0x7bc   : > { %v5082_v44 = vmul.f32 %v5031_v2, %v5031_v2  ;;  %6117 = vmatmul.f32.gmra.mxu3 %v5831_v15  ;;  %6444 = vmatmul.f32.gmra.mxu2 %v5831_v15  ;;  %v5290_v2 = vrot.slane %v12159_v62, 7  ;;  %v5943_v15 = vld [vmem:[%s13312_s7 + $0xd8] sm:$0xff] }
 0x7bd   : > { %v4807_v39 = vpop.f32.mrf.mxu0  ;;  %v12334_v3 = vld [vmem:[#allocation2 + $0x170] sm:$0xff]  ;;  %6173 = vmatpush.msra.mxu0 %v5943_v15 }
 0x7be   : > { %5114 = vst.msk [vmem:[#allocation2 + $0x188] sm:$0xff] %vm333_vm0, %v5082_v44  ;;  %v4808_v16 = vadd.f32 %v4807_v39, %v4695_v38  ;;  %5562 = vrot.lane.b32.xlu0 %v12334_v3, %s7733_s11  ;;  %v5289_v38 = vrot.slane %v5160_v21, 7  ;;  %v5959_v39 = vld [vmem:[%s13312_s7 + $0x158] sm:$0xff]  ;;  %v5555_v8 = vpop.permute.xlu2 %5554 }
 0x7bf   : > { %6286 = vmatpush.msra.mxu1 %v5959_v39 }
 0x7c0   : > { %v4921_v23 = vadd.f32 %v4920_v43, %v4808_v16  ;;  %v5036_v16 = vpop.f32.mrf.mxu2  ;;  %v12381_v43 = vsel %vm591_vm1, %v5289_v38, %v5290_v2  ;;  %v4926_v38 = vpop.f32.mrf.mxu1 }
 0x7c2   : > { %v5034_v53 = vadd.f32 %v5033_v19, %v4921_v23  ;;  %v12366_v33 = vpop.f32.mrf.mxu3  ;;  %v4585_v23 = vadd.f32 %v12254_v32, %v11670_v25  ;;  %v5292_v19 = vrot.slane %v12174_v18, 7  ;;  %v4588_v25 = vadd.f32 %v12254_v32, %v11683_v22  ;;  %v5958_v22 = vld [vmem:[%s13312_s7 + $0x150] sm:$0xff] }
 0x7c3   : > { %13515 = vst [vmem:[#allocation18_spill] sm:$0xff] %v12366_v33  ;;  %6287 = vmatpush.msra.mxu1 %v5958_v22  ;;  %v5418_v33 = vrot.slane %v12174_v18, 1  ;;  %v5952_v18 = vld [vmem:[%s13312_s7 + $0x120] sm:$0xff] }
 0x7c4   : > { %v5083_v31 = vmul.f32 %v5034_v53, %v5034_v53  ;;  %6120 = vmatmul.f32.gmra.mxu3 %v5832_v30  ;;  %6447 = vmatmul.f32.gmra.mxu2 %v5832_v30  ;;  %v4698_v17 = vadd.f32 %v12237_v24, %v4585_v23  ;;  %v12392_v30 = vsel %vm591_vm1, %v5290_v2, %v5292_v19  ;;  %v5942_v23 = vld [vmem:[%s13312_s7 + $0xd0] sm:$0xff] }
 0x7c5   : > { %v12351_v54 = vld [vmem:[#allocation2 + $0x188] sm:$0xff]  ;;  %v5551_v6 = vpop.permute.xlu0 %5550  ;;  %v4701_v34 = vadd.f32 %v12264_v58, %v4588_v25  ;;  %6174 = vmatpush.msra.mxu0 %v5942_v23 }
 0x7c6   : > { %5115 = vst.msk [vmem:[#allocation2 + $0x190] sm:$0xff] %vm333_vm0, %v5083_v31  ;;  %5564 = vrot.lane.b32.xlu1 %v12351_v54, %s7733_s11  ;;  %v5833_v29 = vsel %vm333_vm0, %v12360_v1, %v5551_v6  ;;  %v5835_v6 = vsel %vm333_vm0, %v12392_v30, %v5555_v8  ;;  %v4591_v8 = vadd.f32 %v12254_v32, %v11701_v9  ;;  %v5941_v9 = vld [vmem:[%s13312_s7 + $0xc8] sm:$0xff] }
 0x7c7   : > { %6175 = vmatpush.msra.mxu0 %v5941_v9 }
 0x7c8   : > { %v5039_v21 = vpop.f32.mrf.mxu2 }
 0x7ca   : > { %v12389_v53 = vpop.f32.mrf.mxu3 }
 0x7cb   : > { %13516 = vst [vmem:[#allocation19_spill] sm:$0xff] %v12389_v53  ;;  %v13529_v53 = vrot.slane %v12187_v59, 7 }
 0x7cc   : > { %6123 = vmatmul.f32.gmra.mxu3 %v5833_v29  ;;  %6450 = vmatmul.f32.gmra.mxu2 %v5833_v29  ;;  %v5164_v29 = vld [vmem:[#allocation2 + $0x140] sm:$0xff] }
 0x7cd   : > { %v12364_v13 = vld [vmem:[#allocation2 + $0x190] sm:$0xff]  ;;  %v5294_v15 = vrot.slane %v5164_v29, 7  ;;  %v4929_v29 = vpop.f32.mrf.mxu1 }
 0x7ce   : > { %5566 = vrot.lane.b32.xlu2 %v12364_v13, %s7733_s11  ;;  %v5553_v44 = vpop.permute.xlu1 %5552 }
 0x7cf   : > { %v5834_v36 = vsel %vm333_vm0, %v12381_v43, %v5553_v44  ;;  %v13356_v44 = vrot.slane %v12187_v59, 7 }
 0x7d1   : > { %v12412_v58 = vsel %vm591_vm1, %v5294_v15, %v13356_v44  ;;  %v12532_v44 = vld [vmem:[#allocation2 + $0x48] sm:$0xff] }
 0x7d4   : > { %6126 = vmatmul.f32.gmra.mxu3 %v5834_v36  ;;  %6453 = vmatmul.f32.gmra.mxu2 %v5834_v36 }
 0x7d8   : > { %v4810_v0 = vpop.f32.mrf.mxu0 }
 0x7d9   : > { %v4811_v31 = vadd.f32 %v4810_v0, %v4698_v17 }
 0x7db   : > { %v4924_v55 = vadd.f32 %v4923_v61, %v4811_v31  ;;  %v5042_v31 = vpop.f32.mrf.mxu2 }
 0x7dc   : > { %6129 = vmatmul.f32.gmra.mxu3 %v5835_v6  ;;  %6456 = vmatmul.f32.gmra.mxu2 %v5835_v6 }
 0x7dd   : > { %v5037_v24 = vadd.f32 %v5036_v16, %v4924_v55  ;;  %v12407_v16 = vpop.f32.mrf.mxu3  ;;  %v4704_v55 = vadd.f32 %v12283_v56, %v4591_v8  ;;  %v5984_v56 = vld [vmem:[%s13312_s7 + $0x220] sm:$0xff] }
 0x7de   : > { %v5557_v39 = vpop.permute.xlu0 %5556  ;;  %13517 = vst [vmem:[#allocation20_spill] sm:$0xff] %v12407_v16  ;;  %6519 = vmatpush.msra.mxu3 %v5984_v56  ;;  %v5408_v16 = vrot.slane %v12118_v27, 1 }
 0x7df   : > { %v5084_v2 = vmul.f32 %v5037_v24, %v5037_v24  ;;  %v5836_v17 = vsel %vm333_vm0, %v12412_v58, %v5557_v39 }
 0x7e0   : > { %v4813_v36 = vpop.f32.mrf.mxu0 }
 0x7e1   : > { %5116 = vst.msk [vmem:[#allocation2 + $0x1a8] sm:$0xff] %vm333_vm0, %v5084_v2  ;;  %v4814_v61 = vadd.f32 %v4813_v36, %v4701_v34  ;;  %v13519_v34 = vld [vmem:[#allocation9_spill] sm:$0xff] }
 0x7e2   : > { %v4594_v2 = vadd.f32 %v12254_v32, %v13519_v34 }
 0x7e3   : > { %v4927_v19 = vadd.f32 %v4926_v38, %v4814_v61  ;;  %v5045_v23 = vpop.f32.mrf.mxu2 }
 0x7e4   : > { %6132 = vmatmul.f32.gmra.mxu3 %v5836_v17  ;;  %6459 = vmatmul.f32.gmra.mxu2 %v5836_v17  ;;  %v4707_v36 = vadd.f32 %v12310_v45, %v4594_v2  ;;  %v5957_v17 = vld [vmem:[%s13312_s7 + $0x148] sm:$0xff] }
 0x7e5   : > { %v5040_v0 = vadd.f32 %v5039_v21, %v4927_v19  ;;  %v12430_v21 = vpop.f32.mrf.mxu3  ;;  %6288 = vmatpush.msra.mxu1 %v5957_v17 }
 0x7e6   : > { %13518 = vst [vmem:[#allocation21_spill] sm:$0xff] %v12430_v21 }
 0x7e7   : > { %v5085_v6 = vmul.f32 %v5040_v0, %v5040_v0  ;;  %v4932_v0 = vpop.f32.mrf.mxu1 }
 0x7e8   : > { %v4816_v25 = vpop.f32.mrf.mxu0  ;;  %v12419_v24 = vld [vmem:[#allocation2 + $0x1a8] sm:$0xff] }
 0x7e9   : > { %5117 = vst.msk [vmem:[#allocation2 + $0x1b0] sm:$0xff] %vm333_vm0, %v5085_v6  ;;  %v4817_v38 = vadd.f32 %v4816_v25, %v4704_v55  ;;  %5568 = vrot.lane.b32.xlu0 %v12419_v24, %s7733_s11  ;;  %v13520_v55 = vld [vmem:[#allocation11_spill] sm:$0xff] }
 0x7ea   : > { %v4597_v45 = vadd.f32 %v12254_v32, %v13520_v55  ;;  %v12463_v55 = vld [vmem:[#allocation2 + $0x30] sm:$0xff] }
 0x7eb   : > { %v4930_v15 = vadd.f32 %v4929_v29, %v4817_v38  ;;  %v5048_v34 = vpop.f32.mrf.mxu2 }
 0x7ec   : > { %v4710_v25 = vadd.f32 %v12330_v20, %v4597_v45  ;;  %v5378_v45 = vrot.slane %v12463_v55, 1 }
 0x7ed   : > { %v5043_v39 = vadd.f32 %v5042_v31, %v4930_v15  ;;  %v12445_v29 = vpop.f32.mrf.mxu3 }
 0x7ee   : > { %13521 = vst [vmem:[#allocation22_spill] sm:$0xff] %v12445_v29  ;;  %v5147_v29 = vld [vmem:[#allocation2 + $0xb8] sm:$0xff] }
 0x7ef   : > { %v5086_v61 = vmul.f32 %v5043_v39, %v5043_v39  ;;  %v4935_v2 = vpop.f32.mrf.mxu1 }
 0x7f0   : > { %v4819_v22 = vpop.f32.mrf.mxu0  ;;  %v12435_v19 = vld [vmem:[#allocation2 + $0x1b0] sm:$0xff] }
 0x7f1   : > { %5118 = vst.msk [vmem:[#allocation2 + $0x1c8] sm:$0xff] %vm333_vm0, %v5086_v61  ;;  %v4820_v8 = vadd.f32 %v4819_v22, %v4707_v36  ;;  %5570 = vrot.lane.b32.xlu1 %v12435_v19, %s7733_s11  ;;  %v5940_v36 = vld [vmem:[%s13312_s7 + $0xc0] sm:$0xff]  ;;  %v13522_v61 = vld [vmem:[#allocation10_spill] sm:$0xff] }
 0x7f2   : > { %6176 = vmatpush.msra.mxu0 %v5940_v36  ;;  %v4600_v20 = vadd.f32 %v12254_v32, %v13522_v61  ;;  %v5956_v32 = vld [vmem:[%s13312_s7 + $0x140] sm:$0xff]  ;;  %v12480_v36 = vld [vmem:[#allocation2 + $0x70] sm:$0xff] }
 0x7f3   : > { %v4933_v31 = vadd.f32 %v4932_v0, %v4820_v8  ;;  %v7394_v8 = vpack.i.bf16 %v12053_v42, %v12058_v46  ;;  %6289 = vmatpush.msra.mxu1 %v5956_v32  ;;  %v5388_v61 = vrot.slane %v12480_v36, 1 }
 0x7f4   : > { %v4713_v0 = vadd.f32 %v12353_v49, %v4600_v20 }
 0x7f5   : > { %v5046_v6 = vadd.f32 %v5045_v23, %v4933_v31  ;;  %v5131_v23 = vld [vmem:[#allocation2 + $0x38] sm:$0xff]  ;;  %v12458_v17 = vpop.f32.mrf.mxu3 }
 0x7f6   : > { %13523 = vst [vmem:[#allocation23_spill] sm:$0xff] %v12458_v17 }
 0x7f7   : > { %v5087_v38 = vmul.f32 %v5046_v6, %v5046_v6  ;;  %v5380_v6 = vrot.slane %v5131_v23, 1 }
 0x7f8   : > { %v4822_v15 = vpop.f32.mrf.mxu0  ;;  %v12448_v9 = vld [vmem:[#allocation2 + $0x1c8] sm:$0xff]  ;;  %v4938_v42 = vpop.f32.mrf.mxu1 }
 0x7f9   : > { %5119 = vst.msk [vmem:[#allocation2 + $0x1d0] sm:$0xff] %vm333_vm0, %v5087_v38  ;;  %v4823_v56 = vadd.f32 %v4822_v15, %v4710_v25  ;;  %5572 = vrot.lane.b32.xlu2 %v12448_v9, %s7733_s11  ;;  %v12476_v49 = vsel %vm720_vm2, %v5378_v45, %v5380_v6  ;;  %v5983_v6 = vld [vmem:[%s13312_s7 + $0x218] sm:$0xff] }
 0x7fa   : > { %6520 = vmatpush.msra.mxu3 %v5983_v6 }
 0x7fb   : > { %v4936_v39 = vadd.f32 %v4935_v2, %v4823_v56  ;;  %v5051_v56 = vpop.f32.mrf.mxu2  ;;  %v7409_v2 = vpack.i.bf16 %v12476_v49, %v12153_v48 }
 0x7fd   : > { %v5049_v22 = vadd.f32 %v5048_v34, %v4936_v39  ;;  %v12483_v20 = vpop.f32.mrf.mxu3 }
 0x7fe   : > { %13524 = vst [vmem:[#allocation24_spill] sm:$0xff] %v12483_v20 }
 0x7ff   : > { %v5088_v31 = vmul.f32 %v5049_v22, %v5049_v22  ;;  %v13525_v22 = vld [vmem:[#allocation17_spill] sm:$0xff] }
 0x800   : > { %v4825_v25 = vpop.f32.mrf.mxu0  ;;  %v12466_v38 = vld [vmem:[#allocation2 + $0x1d0] sm:$0xff] }
 0x801   : > { %5120 = vst.msk [vmem:[#allocation2 + $0x1e8] sm:$0xff] %vm333_vm0, %v5088_v31  ;;  %v4826_v15 = vadd.f32 %v4825_v25, %v4713_v0  ;;  %5574 = vrot.lane.b32.xlu0 %v12466_v38, %s7733_s11  ;;  %7395 = vrot.lane.b32.xlu2 %v7394_v8, %s7733_s11  ;;  %v12491_v0 = vld [vmem:[#allocation2 + $0x68] sm:$0xff]  ;;  %v5939_v31 = vld [vmem:[%s13312_s7 + $0xb8] sm:$0xff] }
 0x802   : > { %v5387_v48 = vrot.slane %v12491_v0, 1  ;;  %v12501_v25 = vld [vmem:[#allocation2 + $0x28] sm:$0xff]  ;;  %6177 = vmatpush.msra.mxu0 %v5939_v31 }
 0x803   : > { %v4939_v46 = vadd.f32 %v4938_v42, %v4826_v15  ;;  %v5377_v32 = vrot.slane %v12501_v25, 1  ;;  %v5143_v42 = vld [vmem:[#allocation2 + $0x98] sm:$0xff] }
 0x804   : > { %v12505_v15 = vsel %vm720_vm2, %v5387_v48, %v5388_v61  ;;  %v5955_v48 = vld [vmem:[%s13312_s7 + $0x138] sm:$0xff] }
 0x805   : > { %v5052_v34 = vadd.f32 %v5051_v56, %v4939_v46  ;;  %v12508_v46 = vsel %vm720_vm2, %v5377_v32, %v5378_v45  ;;  %v5135_v56 = vld [vmem:[#allocation2 + $0x58] sm:$0xff]  ;;  %6290 = vmatpush.msra.mxu1 %v5955_v48 }
 0x806   : > { %v7404_v31 = vpack.i.bf16 %v12508_v46, %v12105_v28  ;;  %v5385_v32 = vrot.slane %v5135_v56, 1  ;;  %v5382_v28 = vrot.slane %v12532_v44, 1  ;;  %v5139_v56 = vld [vmem:[#allocation2 + $0x78] sm:$0xff] }
 0x807   : > { %v5089_v39 = vmul.f32 %v5052_v34, %v5052_v34  ;;  %v7424_v34 = vpack.i.bf16 %v12505_v15, %v12197_v7  ;;  %v12525_v7 = vld [vmem:[#allocation2 + $0x50] sm:$0xff] }
 0x808   : > { %v12485_v23 = vld [vmem:[#allocation2 + $0x1e8] sm:$0xff]  ;;  %v5383_v6 = vrot.slane %v12525_v7, 1 }
 0x809   : > { %5121 = vst.msk [vmem:[#allocation2 + $0x1f0] sm:$0xff] %vm333_vm0, %v5089_v39  ;;  %7410 = vrot.lane.b32.xlu2 %v7409_v2, %s7733_s11  ;;  %v7389_v8 = vpack.i.bf16 %v12485_v23, %v13525_v22  ;;  %v12512_v2 = vld [vmem:[#allocation2 + $0x90] sm:$0xff]  ;;  %v5395_v22 = vrot.slane %v5143_v42, 1  ;;  %v12528_v42 = vpop.f32.mrf.mxu3 }
 0x80a   : > { %v5393_v39 = vrot.slane %v12512_v2, 1  ;;  %13526 = vst [vmem:[#allocation5_spill] sm:$0xff] %v12528_v42  ;;  %v12542_v48 = vsel %vm720_vm2, %v5383_v6, %v5385_v32  ;;  %v12560_v32 = vld [vmem:[#allocation2 + $0x88] sm:$0xff] }
 0x80b   : > { %7390 = vrot.lane.b32.xlu1 %v7389_v8, %s7733_s11  ;;  %v7419_v20 = vpack.i.bf16 %v12542_v48, %v12181_v41 }
 0x810   : > { %v12515_v8 = vld [vmem:[#allocation2 + $0x1f0] sm:$0xff] }
 0x811   : > { %7425 = vrot.lane.b32.xlu2 %v7424_v34, %s7733_s11  ;;  %v7399_v45 = vpack.i.bf16 %v12071_v40, %v12515_v8  ;;  %v12536_v34 = vsel %vm720_vm2, %v5393_v39, %v5395_v22  ;;  %v12539_v40 = vsel %vm720_vm2, %v5382_v28, %v5383_v6  ;;  %v12552_v22 = vld [vmem:[#allocation2 + $0xc8] sm:$0xff]  ;;  %v5390_v6 = vrot.slane %v5139_v56, 1  ;;  %v12569_v56 = vpop.f32.mrf.mxu3 }
 0x812   : > { %v7439_v42 = vpack.i.bf16 %v12536_v34, %v12229_v5  ;;  %13527 = vst [vmem:[#allocation3_spill] sm:$0xff] %v12552_v22  ;;  %v5402_v28 = vrot.slane %v12552_v22, 1  ;;  %v5938_v5 = vld [vmem:[%s13312_s7 + $0xb0] sm:$0xff] }
 0x813   : > { %7400 = vrot.lane.b32.xlu0 %v7399_v45, %s7733_s11  ;;  %7405 = vrot.lane.b32.xlu1 %v7404_v31, %s7733_s11  ;;  %v13357_v45 = vrot.slane %v12055_v60, 1  ;;  %v7414_v31 = vpack.i.bf16 %v12539_v40, %v12168_v51  ;;  %v5392_v51 = vrot.slane %v12560_v32, 1  ;;  %13528 = vst [vmem:[#allocation12_spill] sm:$0xff] %v12569_v56 }
 0x814   : > { %6178 = vmatpush.msra.mxu0 %v5938_v5  ;;  %v12595_v5 = vld [vmem:[#allocation2 + $0xb0] sm:$0xff] }
 0x815   : > { %v12566_v41 = vsel %vm720_vm2, %v5402_v28, %v13357_v45  ;;  %v12575_v17 = vsel %vm720_vm2, %v5392_v51, %v5393_v39  ;;  %v5400_v51 = vrot.slane %v5147_v29, 1 }
 0x816   : > { %v7454_v21 = vpack.i.bf16 %v12566_v41, %v12270_v14  ;;  %v5168_v14 = vld [vmem:[#allocation2 + $0x160] sm:$0xff] }
 0x819   : > { %7440 = vrot.lane.b32.xlu2 %v7439_v42, %s7733_s11  ;;  %v5297_v42 = vrot.slane %v12293_v52, 7 }
 0x81b   : > { %7415 = vrot.lane.b32.xlu0 %v7414_v31, %s7733_s11  ;;  %7420 = vrot.lane.b32.xlu1 %v7419_v20, %s7733_s11  ;;  %v5155_v31 = vld [vmem:[#allocation2 + $0xf8] sm:$0xff]  ;;  %v12572_v20 = vsel %vm720_vm2, %v5388_v61, %v5390_v6  ;;  %v12583_v56 = vsel %vm591_vm1, %v13529_v53, %v5297_v42  ;;  %v5954_v61 = vld [vmem:[%s13312_s7 + $0x130] sm:$0xff]  ;;  %v7434_v6 = vpack.i.bf16 %v12575_v17, %v12221_v4  ;;  %v5398_v53 = vrot.slane %v12595_v5, 1 }
 0x81c   : > { %v5410_v28 = vrot.slane %v5155_v31, 1  ;;  %v7429_v39 = vpack.i.bf16 %v12572_v20, %v12207_v63  ;;  %6291 = vmatpush.msra.mxu1 %v5954_v61  ;;  %v12600_v63 = vld [vmem:[#allocation2 + $0xa8] sm:$0xff]  ;;  %v5299_v42 = vrot.slane %v5168_v14, 7  ;;  %v12613_v61 = vpop.f32.mrf.mxu3 }
 0x81d   : > { %v5397_v4 = vrot.slane %v12600_v63, 1  ;;  %v12611_v29 = vsel %vm720_vm2, %v5398_v53, %v5400_v51  ;;  %13531 = vst [vmem:[#allocation4_spill] sm:$0xff] %v12613_v61  ;;  %v5417_v51 = vrot.slane %v12159_v62, 1  ;;  %v5302_v62 = vrot.slane %v12334_v3, 7 }
 0x81e   : > { %v7449_v14 = vpack.i.bf16 %v12611_v29, %v12259_v11  ;;  %v5982_v11 = vld [vmem:[%s13312_s7 + $0x210] sm:$0xff] }
 0x81f   : > { %v12608_v31 = vsel %vm720_vm2, %v5397_v4, %v5398_v53  ;;  %6521 = vmatpush.msra.mxu3 %v5982_v11 }
 0x820   : > { %v5559_v45 = vpop.permute.xlu1 %5558 }
 0x821   : > { %7455 = vrot.lane.b32.xlu2 %v7454_v21, %s7733_s11  ;;  %v5837_v27 = vsel %vm333_vm0, %v12583_v56, %v5559_v45  ;;  %v5300_v21 = vrot.slane %v12318_v12, 7  ;;  %v12605_v45 = vsel %vm720_vm2, %v5408_v16, %v5410_v28  ;;  %v7444_v28 = vpack.i.bf16 %v12608_v31, %v12235_v50  ;;  %v5937_v50 = vld [vmem:[%s13312_s7 + $0xa8] sm:$0xff] }
 0x822   : > { %6135 = vmatmul.f32.gmra.mxu3 %v5837_v27  ;;  %6462 = vmatmul.f32.gmra.mxu2 %v5837_v27  ;;  %13530 = vst [vmem:[#allocation16_spill] sm:$0xff] %v12605_v45  ;;  %v7469_v27 = vpack.i.bf16 %v12605_v45, %v12327_v10  ;;  %v12637_v10 = vld [vmem:[#allocation2 + $0xe8] sm:$0xff] }
 0x823   : > { %7430 = vrot.lane.b32.xlu0 %v7429_v39, %s7733_s11  ;;  %7435 = vrot.lane.b32.xlu1 %v7434_v6, %s7733_s11  ;;  %v5561_v39 = vpop.permute.xlu2 %5560  ;;  %v5151_v6 = vld [vmem:[#allocation2 + $0xd8] sm:$0xff]  ;;  %v12619_v22 = vsel %vm591_vm1, %v5299_v42, %v5300_v21  ;;  %13532 = vst [vmem:[#allocation14_spill] sm:$0xff] %v12637_v10  ;;  %v5407_v42 = vrot.slane %v12637_v10, 1  ;;  %v5423_v10 = vrot.slane %v12293_v52, 1  ;;  %v12660_v11 = vsel %vm591_vm1, %v5300_v21, %v5302_v62 }
 0x824   : > { %v5838_v53 = vsel %vm333_vm0, %v12619_v22, %v5561_v39  ;;  %v5405_v4 = vrot.slane %v5151_v6, 1  ;;  %v12644_v39 = vsel %vm720_vm2, %v5417_v51, %v5418_v33  ;;  %6179 = vmatpush.msra.mxu0 %v5937_v50  ;;  %v5167_v6 = vld [vmem:[#allocation2 + $0x158] sm:$0xff]  ;;  %v12657_v45 = vpop.f32.mrf.mxu3  ;;  %v5413_v21 = vrot.slane %v12142_v35, 1 }
 0x825   : > { %v7484_v61 = vpack.i.bf16 %v12644_v39, %v12381_v43  ;;  %v5425_v51 = vrot.slane %v5167_v6, 1  ;;  %v5172_v43 = vld [vmem:[#allocation2 + $0x180] sm:$0xff] }
 0x826   : > { %v5304_v62 = vrot.slane %v5172_v43, 7 }
 0x829   : > { %7470 = vrot.lane.b32.xlu2 %v7469_v27, %s7733_s11  ;;  %v13533_v27 = vrot.slane %v12055_v60, 1  ;;  %v5953_v60 = vld [vmem:[%s13312_s7 + $0x128] sm:$0xff] }
 0x82a   : > { %6138 = vmatmul.f32.gmra.mxu3 %v5838_v53  ;;  %6465 = vmatmul.f32.gmra.mxu2 %v5838_v53  ;;  %v5159_v53 = vld [vmem:[#allocation2 + $0x118] sm:$0xff] }
 0x82b   : > { %7445 = vrot.lane.b32.xlu0 %v7444_v28, %s7733_s11  ;;  %7450 = vrot.lane.b32.xlu1 %v7449_v14, %s7733_s11  ;;  %v12649_v28 = vsel %vm720_vm2, %v13533_v27, %v5405_v4  ;;  %v12652_v14 = vsel %vm720_vm2, %v5407_v42, %v5408_v16  ;;  %v5415_v42 = vrot.slane %v5159_v53, 1  ;;  %v5163_v27 = vld [vmem:[#allocation2 + $0x138] sm:$0xff] }
 0x82c   : > { %v7459_v16 = vpack.i.bf16 %v12649_v28, %v12288_v57  ;;  %v7464_v4 = vpack.i.bf16 %v12652_v14, %v12313_v26  ;;  %6292 = vmatpush.msra.mxu1 %v5953_v60  ;;  %v5412_v57 = vrot.slane %v12135_v47, 1  ;;  %v5305_v26 = vrot.slane %v12351_v54, 7 }
 0x82d   : > { %v12684_v35 = vsel %vm720_vm2, %v5413_v21, %v5415_v42  ;;  %v5420_v43 = vrot.slane %v5163_v27, 1  ;;  %v5179_v42 = vld [vmem:[#allocation2 + $0x1b8] sm:$0xff] }
 0x82e   : > { %v12681_v6 = vsel %vm720_vm2, %v5412_v57, %v5413_v21  ;;  %v5306_v47 = vsel %vm591_vm1, %v5304_v62, %v5305_v26  ;;  %v12697_v21 = vpop.f32.mrf.mxu3  ;;  %v5171_v27 = vld [vmem:[#allocation2 + $0x178] sm:$0xff]  ;;  %6293 = vmatpush.msra.mxu1 %v5952_v18 }
 0x82f   : > { %v12714_v57 = vsel %vm720_vm2, %v5418_v33, %v5420_v43  ;;  %v5935_v18 = vld [vmem:[%s13312_s7 + $0x98] sm:$0xff] }
 0x830   : > { %v5563_v50 = vpop.permute.xlu0 %5562  ;;  %v7489_v33 = vpack.i.bf16 %v12714_v57, %v12392_v30  ;;  %v5427_v30 = vrot.slane %v12318_v12, 1 }
 0x831   : > { %7485 = vrot.lane.b32.xlu2 %v7484_v61, %s7733_s11  ;;  %v5839_v52 = vsel %vm333_vm0, %v12660_v11, %v5563_v50  ;;  %v12678_v61 = vsel %vm720_vm2, %v5423_v10, %v5425_v51  ;;  %v5433_v50 = vrot.slane %v12364_v13, 1  ;;  %v7474_v51 = vpack.i.bf16 %v12681_v6, %v12347_v37 }
 0x832   : > { %6141 = vmatmul.f32.gmra.mxu3 %v5839_v52  ;;  %6468 = vmatmul.f32.gmra.mxu2 %v5839_v52  ;;  %v7499_v53 = vpack.i.bf16 %v12678_v61, %v12583_v56  ;;  %v5432_v52 = vrot.slane %v12351_v54, 1  ;;  %v5422_v37 = vrot.slane %v12187_v59, 1  ;;  %v5307_v56 = vrot.slane %v12364_v13, 7  ;;  %v5936_v54 = vld [vmem:[%s13312_s7 + $0xa0] sm:$0xff]  ;;  %v5567_v59 = vpop.permute.xlu2 %5566 }
 0x833   : > { %7460 = vrot.lane.b32.xlu0 %v7459_v16, %s7733_s11  ;;  %7465 = vrot.lane.b32.xlu1 %v7464_v4, %s7733_s11  ;;  %v7479_v16 = vpack.i.bf16 %v12684_v35, %v12360_v1  ;;  %v5443_v13 = vrot.slane %v12466_v38, 1 }
 0x834   : > { %v12706_v1 = vsel %vm720_vm2, %v5432_v52, %v5433_v50  ;;  %v12717_v62 = vsel %vm720_vm2, %v5422_v37, %v5423_v10  ;;  %6180 = vmatpush.msra.mxu0 %v5936_v54  ;;  %v5430_v52 = vrot.slane %v5171_v27, 1  ;;  %v5176_v27 = vld [vmem:[#allocation2 + $0x1a0] sm:$0xff] }
 0x835   : > { %v7494_v10 = vpack.i.bf16 %v12717_v62, %v12412_v58 }
 0x836   : > { %v12737_v43 = vpop.f32.mrf.mxu3  ;;  %6181 = vmatpush.msra.mxu0 %v5935_v18  ;;  %v12798_v18 = vld [vmem:[#allocation2 + $0x228] sm:$0xff] }
 0x837   : > { %13534 = vst [vmem:[#allocation6_spill] sm:$0xff] %v12737_v43  ;;  %v7702_v43 = vld [vmem:[#allocation2 + $0x210] sm:$0xff] }
 0x838   : > { %v5565_v60 = vpop.permute.xlu1 %5564 }
 0x839   : > { %7500 = vrot.lane.b32.xlu2 %v7499_v53, %s7733_s11  ;;  %v5840_v4 = vsel %vm333_vm0, %v5306_v47, %v5565_v60  ;;  %v7514_v53 = vpack.i.bf16 %v12706_v1, %v5306_v47  ;;  %v5312_v60 = vrot.slane %v12435_v19, 7 }
 0x83a   : > { %6144 = vmatmul.f32.gmra.mxu3 %v5840_v4  ;;  %6471 = vmatmul.f32.gmra.mxu2 %v5840_v4  ;;  %v5440_v4 = vrot.slane %v5179_v42, 1  ;;  %v5175_v42 = vld [vmem:[#allocation2 + $0x198] sm:$0xff] }
 0x83b   : > { %7475 = vrot.lane.b32.xlu0 %v7474_v51, %s7733_s11  ;;  %7480 = vrot.lane.b32.xlu1 %v7479_v16, %s7733_s11  ;;  %v5438_v51 = vrot.slane %v12435_v19, 1  ;;  %v5308_v16 = vsel %vm591_vm1, %v5305_v26, %v5307_v56  ;;  %v5428_v19 = vrot.slane %v12334_v3, 1  ;;  %v5310_v26 = vrot.slane %v12419_v24, 7 }
 0x83c   : > { %v5841_v47 = vsel %vm333_vm0, %v5308_v16, %v5567_v59 }
 0x83d   : > { %v12740_v58 = vsel %vm591_vm1, %v5310_v26, %v5312_v60  ;;  %v12743_v37 = vsel %vm720_vm2, %v5438_v51, %v5440_v4  ;;  %v12746_v3 = vsel %vm720_vm2, %v5427_v30, %v5428_v19  ;;  %v12749_v56 = vsel %vm720_vm2, %v5428_v19, %v5430_v52 }
 0x83e   : > { %v7529_v54 = vpack.i.bf16 %v12743_v37, %v12740_v58  ;;  %v7504_v12 = vpack.i.bf16 %v12746_v3, %v12619_v22  ;;  %v7509_v59 = vpack.i.bf16 %v12749_v56, %v12660_v11  ;;  %v5437_v60 = vrot.slane %v12419_v24, 1  ;;  %v5981_v22 = vld [vmem:[%s13312_s7 + $0x208] sm:$0xff]  ;;  %v5951_v11 = vld [vmem:[%s13312_s7 + $0x118] sm:$0xff] }
 0x83f   : > { %v5309_v4 = vrot.slane %v5176_v27, 7  ;;  %6522 = vmatpush.msra.mxu3 %v5981_v22  ;;  %6294 = vmatpush.msra.mxu1 %v5951_v11  ;;  %v3631_v27 = vld [vmem:[#allocation2 + $0x220] sm:$0xff]  ;;  %v13362_v22 = vrot.slane %v12798_v18, 7  ;;  %v5187_v11 = vld [vmem:[#allocation2 + $0x1f8] sm:$0xff] }
 0x840   : > { %v12778_v24 = vsel %vm720_vm2, %v5437_v60, %v5438_v51  ;;  %v5315_v51 = vrot.slane %v12448_v9, 7 }
 0x841   : > { %7515 = vrot.lane.b32.xlu2 %v7514_v53, %s7733_s11  ;;  %v5435_v53 = vrot.slane %v5175_v42, 1  ;;  %v5311_v19 = vsel %vm591_vm1, %v5309_v4, %v5310_v26  ;;  %v5180_v42 = vld [vmem:[#allocation2 + $0x1c0] sm:$0xff]  ;;  %v3940_v4 = vrot.slane %v3631_v27, 7 }
 0x842   : > { %6147 = vmatmul.f32.gmra.mxu3 %v5841_v47  ;;  %6474 = vmatmul.f32.gmra.mxu2 %v5841_v47  ;;  %v5183_v47 = vld [vmem:[#allocation2 + $0x1d8] sm:$0xff]  ;;  %v7524_v30 = vpack.i.bf16 %v12778_v24, %v5311_v19  ;;  %v5314_v26 = vrot.slane %v5180_v42, 7  ;;  %v5322_v42 = vrot.slane %v12515_v8, 7 }
 0x843   : > { %7490 = vrot.lane.b32.xlu0 %v7489_v33, %s7733_s11  ;;  %7495 = vrot.lane.b32.xlu1 %v7494_v10, %s7733_s11  ;;  %v12770_v33 = vpop.f32.mrf.mxu3  ;;  %v12775_v10 = vsel %vm720_vm2, %v5433_v50, %v5435_v53  ;;  %v5445_v50 = vrot.slane %v5183_v47, 1 }
 0x844   : > { %13535 = vst [vmem:[#allocation8_spill] sm:$0xff] %v12770_v33  ;;  %v7519_v52 = vpack.i.bf16 %v12775_v10, %v5308_v16 }
 0x845   : > { %v12794_v60 = vsel %vm720_vm2, %v5443_v13, %v5445_v50 }
 0x846   : > { %13536 = vst [vmem:[#allocation7_spill] sm:$0xff] %v12794_v60 }
 0x849   : > { %7530 = vrot.lane.b32.xlu2 %v7529_v54, %s7733_s11  ;;  %v5317_v54 = vrot.slane %v12466_v38, 7  ;;  %v12796_v38 = vpop.f32.mrf.mxu2 }
 0x84b   : > { %7505 = vrot.lane.b32.xlu0 %v7504_v12, %s7733_s11  ;;  %7510 = vrot.lane.b32.xlu1 %v7509_v59, %s7733_s11  ;;  %v5442_v59 = vrot.slane %v12448_v9, 1  ;;  %v5318_v53 = vsel %vm591_vm1, %v5315_v51, %v5317_v54  ;;  %v12801_v47 = vpop.f32.mrf.mxu3  ;;  %v5316_v9 = vsel %vm591_vm1, %v5314_v26, %v5315_v51  ;;  %v13363_v54 = vrot.slane %v12515_v8, 1 }
 0x84c   : > { %13537 = vst [vmem:[#allocation9_spill] sm:$0xff] %v12801_v47  ;;  %v3942_v51 = vsel %vm591_vm1, %v3940_v4, %v13362_v22  ;;  %v5320_v47 = vrot.slane %v12485_v23, 7 }
 0x84d   : > { %v12790_v16 = vsel %vm720_vm2, %v5442_v59, %v5443_v13  ;;  %v5450_v13 = vrot.slane %v5187_v11, 1  ;;  %v5934_v11 = vld [vmem:[%s13312_s7 + $0x90] sm:$0xff] }
 0x84e   : > { %6182 = vmatpush.msra.mxu0 %v5934_v11 }
 0x84f   : > { %v12826_v4 = vsel %vm720_vm2, %v13363_v54, %v5450_v13 }
 0x850   : > { %13538 = vst [vmem:[#allocation11_spill] sm:$0xff] %v12826_v4 }
 0x853   : > { %v5573_v12 = vpop.permute.xlu2 %5572  ;;  %7520 = vrot.lane.b32.xlu0 %v7519_v52, %s7733_s11  ;;  %7525 = vrot.lane.b32.xlu1 %v7524_v30, %s7733_s11  ;;  %v7534_v52 = vpack.i.bf16 %v12790_v16, %v5316_v9  ;;  %v7539_v30 = vpack.i.bf16 %v12794_v60, %v5318_v53  ;;  %v12834_v22 = vpop.f32.mrf.mxu3 }
 0x854   : > { %13539 = vst [vmem:[#allocation10_spill] sm:$0xff] %v12834_v22  ;;  %v5844_v11 = vsel %vm333_vm0, %v5316_v9, %v5573_v12  ;;  %v5932_v12 = vld [vmem:[%s13312_s7 + $0x80] sm:$0xff] }
 0x855   : > { %v5948_v9 = vld [vmem:[%s13312_s7 + $0x100] sm:$0xff] }
 0x85b   : > { %v5569_v50 = vpop.permute.xlu0 %5568  ;;  %v12808_v59 = vpop.permute.xlu2 %7395  ;;  %7535 = vrot.lane.b32.xlu0 %v7534_v52, %s7733_s11  ;;  %7540 = vrot.lane.b32.xlu1 %v7539_v30, %s7733_s11  ;;  %v5323_v30 = vsel %vm591_vm1, %v5320_v47, %v5322_v42 }
 0x85c   : > { %v7397_v26 = vunpack.i.l.bf16 %v12808_v59  ;;  %v5842_v27 = vsel %vm333_vm0, %v5311_v19, %v5569_v50  ;;  %v5950_v19 = vld [vmem:[%s13312_s7 + $0x110] sm:$0xff]  ;;  %v12831_v50 = vpop.f32.mrf.mxu2 }
 0x85d   : > { %6150 = vmatmul.f32.gmra.mxu3 %v5842_v27  ;;  %6477 = vmatmul.f32.gmra.mxu2 %v5842_v27  ;;  %v7554_v27 = vpack.i.bf16 %v12826_v4, %v5323_v30 }
 0x85e   : > { %v4353_v52 = vsel %vm333_vm0, %v3942_v51, %v7397_v26  ;;  %6295 = vmatpush.msra.mxu1 %v5950_v19  ;;  %v12841_v26 = vpop.f32.mrf.mxu3  ;;  %v5980_v19 = vld [vmem:[%s13312_s7 + $0x200] sm:$0xff] }
 0x85f   : > { %4940 = vmatmul.f32.gmra.mxu1 %v4353_v52  ;;  %13540 = vst [vmem:[#allocation17_spill] sm:$0xff] %v12841_v26  ;;  %v5933_v52 = vld [vmem:[%s13312_s7 + $0x88] sm:$0xff]  ;;  %6523 = vmatpush.msra.mxu3 %v5980_v19 }
 0x860   : > { %6183 = vmatpush.msra.mxu0 %v5933_v52  ;;  %v5184_v52 = vld [vmem:[#allocation2 + $0x1e0] sm:$0xff] }
 0x861   : > { %v5319_v19 = vrot.slane %v5184_v52, 7 }
 0x862   : > { %6184 = vmatpush.msra.mxu0 %v5932_v12 }
 0x863   : > { %v5571_v51 = vpop.permute.xlu1 %5570  ;;  %7555 = vrot.lane.b32.xlu1 %v7554_v27, %s7733_s11  ;;  %v12865_v4 = vsel %vm591_vm1, %v5319_v19, %v5320_v47  ;;  %v13543_v47 = vrot.slane %v12798_v18, 7  ;;  %v7704_v18 = vld [vmem:[#allocation2 + $0x10] sm:$0xff] }
 0x864   : > { %v5843_v42 = vsel %vm333_vm0, %v12740_v58, %v5571_v51  ;;  %v12839_v13 = vpop.f32.mrf.mxu2  ;;  %v5949_v58 = vld [vmem:[%s13312_s7 + $0x108] sm:$0xff] }
 0x865   : > { %6153 = vmatmul.f32.gmra.mxu3 %v5843_v42  ;;  %6480 = vmatmul.f32.gmra.mxu2 %v5843_v42 }
 0x866   : > { %6296 = vmatpush.msra.mxu1 %v5949_v58 }
 0x868   : > { %6297 = vmatpush.msra.mxu1 %v5948_v9  ;;  %v7700_v9 = vld [vmem:[#allocation2 + $0x208] sm:$0xff] }
 0x86c   : > { %v12860_v42 = vpop.f32.mrf.mxu2 }
 0x86d   : > { %6156 = vmatmul.f32.gmra.mxu3 %v5844_v11  ;;  %6483 = vmatmul.f32.gmra.mxu2 %v5844_v11  ;;  %v12862_v11 = vpop.f32.mrf.mxu3 }
 0x86e   : > { %13541 = vst [vmem:[#allocation25_spill] sm:$0xff] %v12862_v11 }
 0x873   : > { %v5575_v27 = vpop.permute.xlu0 %5574 }
 0x874   : > { %v5845_v51 = vsel %vm333_vm0, %v5318_v53, %v5575_v27  ;;  %v12867_v58 = vpop.f32.mrf.mxu2 }
 0x875   : > { %6159 = vmatmul.f32.gmra.mxu3 %v5845_v51  ;;  %6486 = vmatmul.f32.gmra.mxu2 %v5845_v51  ;;  %v12869_v12 = vpop.f32.mrf.mxu3  ;;  %v7701_v51 = vld [vmem:[#allocation2 + $0x230] sm:$0xff] }
 0x876   : > { %13542 = vst [vmem:[#allocation26_spill] sm:$0xff] %v12869_v12  ;;  %v3943_v52 = vrot.slane %v7701_v51, 7 }
 0x878   : > { %v3944_v19 = vsel %vm591_vm1, %v13543_v47, %v3943_v52 }
 0x87d   : > { %v7391_v54 = vpop.permute.xlu1 %7390 }
 0x87e   : > { %v7393_v26 = vunpack.i.h.bf16 %v7391_v54  ;;  %v7392_v22 = vunpack.i.l.bf16 %v7391_v54  ;;  %v7398_v54 = vunpack.i.h.bf16 %v12808_v59  ;;  %v12881_v59 = vpop.f32.mrf.mxu2 }
 0x880   : > { %v4349_v53 = vsel %vm333_vm0, %v7700_v9, %v7392_v22  ;;  %v5846_v27 = vsel %vm333_vm0, %v12865_v4, %v7393_v26  ;;  %v4350_v22 = vsel %vm333_vm0, %v7702_v43, %v7398_v54  ;;  %v7411_v54 = vpop.permute.xlu2 %7410 }
 0x881   : > { %4827 = vmatmul.f32.gmra.mxu0 %v4349_v53  ;;  %6162 = vmatmul.f32.gmra.mxu3 %v5846_v27  ;;  %v7703_v53 = vld [vmem:[#allocation2 + $0x8] sm:$0xff] }
 0x882   : > { %6489 = vmatmul.f32.gmra.mxu2 %v5846_v27  ;;  %v5372_v60 = vrot.slane %v7703_v53, 1  ;;  %v12883_v27 = vpop.f32.mrf.mxu3 }
 0x885   : > { %v7401_v11 = vpop.permute.xlu0 %7400  ;;  %v7406_v51 = vpop.permute.xlu1 %7405 }
 0x886   : > { %v7403_v33 = vunpack.i.h.bf16 %v7401_v11  ;;  %v7402_v12 = vunpack.i.l.bf16 %v7401_v11  ;;  %v5373_v11 = vrot.slane %v7704_v18, 1  ;;  %v7408_v52 = vunpack.i.h.bf16 %v7406_v51 }
 0x887   : > { %v7407_v47 = vunpack.i.l.bf16 %v7406_v51 }
 0x888   : > { %v4354_v9 = vsel %vm333_vm0, %v3944_v19, %v7403_v33  ;;  %v5847_v26 = vsel %vm333_vm0, %v5323_v30, %v7402_v12  ;;  %v5374_v43 = vsel %vm720_vm2, %v5372_v60, %v5373_v11  ;;  %v5127_v33 = vld [vmem:[#allocation2 + $0x18] sm:$0xff]  ;;  %v5880_v12 = vsel %vm333_vm0, %v12501_v25, %v7408_v52 }
 0x889   : > { %4830 = vmatmul.f32.gmra.mxu0 %v4350_v22  ;;  %4943 = vmatmul.f32.gmra.mxu1 %v4354_v9  ;;  %v5848_v30 = vsel %vm333_vm0, %v5374_v43, %v7407_v47  ;;  %v5375_v19 = vrot.slane %v5127_v33, 1  ;;  %v7413_v9 = vunpack.i.h.bf16 %v7411_v54 }
 0x88a   : > { %6165 = vmatmul.f32.gmra.mxu3 %v5847_v26  ;;  %6492 = vmatmul.f32.gmra.mxu2 %v5847_v26  ;;  %v12891_v22 = vpop.f32.mrf.mxu3  ;;  %v7412_v26 = vunpack.i.l.bf16 %v7411_v54 }
 0x88b   : > { %v5376_v53 = vsel %vm720_vm2, %v5373_v11, %v5375_v19  ;;  %v5881_v51 = vsel %vm333_vm0, %v12463_v55, %v7413_v9 }
 0x88c   : > { %v5849_v60 = vsel %vm333_vm0, %v5376_v53, %v7412_v26 }
 0x88d   : > { %v7416_v18 = vpop.permute.xlu0 %7415  ;;  %v7421_v33 = vpop.permute.xlu1 %7420 }
 0x88e   : > { %v7418_v25 = vunpack.i.h.bf16 %v7416_v18  ;;  %v7417_v52 = vunpack.i.l.bf16 %v7416_v18  ;;  %v7423_v55 = vunpack.i.h.bf16 %v7421_v33 }
 0x890   : > { %v5850_v43 = vsel %vm333_vm0, %v12508_v46, %v7417_v52  ;;  %v5882_v11 = vsel %vm333_vm0, %v12532_v44, %v7418_v25  ;;  %v5883_v19 = vsel %vm333_vm0, %v12525_v7, %v7423_v55  ;;  %v7426_v46 = vpop.permute.xlu2 %7425 }
 0x891   : > { %6185 = vmatmul.f32.vlgmr.msra.gmra.mxu0 %v5848_v30  ;;  %6298 = vmatmul.f32.vlgmr.msra.gmra.mxu1 %v5880_v12  ;;  %v7422_v30 = vunpack.i.l.bf16 %v7421_v33  ;;  %v7428_v44 = vunpack.i.h.bf16 %v7426_v46  ;;  %v7427_v9 = vunpack.i.l.bf16 %v7426_v46 }
 0x892   : > { %6813 = vmatmul.msk.f32.vlgmr.msra.gmra.mxu3 %vm333_vm0, %v12539_v40  ;;  %v12899_v47 = vpop.f32.mrf.mxu3 }
 0x893   : > { %v5851_v54 = vsel %vm333_vm0, %v12476_v49, %v7422_v30  ;;  %v5852_v53 = vsel %vm333_vm0, %v12539_v40, %v7427_v9 }
 0x895   : > { %v7431_v49 = vpop.permute.xlu0 %7430  ;;  %v7436_v52 = vpop.permute.xlu1 %7435 }
 0x896   : > { %v7433_v7 = vunpack.i.h.bf16 %v7431_v49 }
 0x898   : > { %v5885_v25 = vsel %vm333_vm0, %v12480_v36, %v7433_v7 }
 0x899   : > { %6188 = vmatmul.f32.gmra.mxu0 %v5849_v60  ;;  %6301 = vmatmul.f32.gmra.mxu1 %v5881_v51  ;;  %v5884_v60 = vsel %vm333_vm0, %v12491_v0, %v7428_v44  ;;  %v7432_v51 = vunpack.i.l.bf16 %v7431_v49  ;;  %v7438_v0 = vunpack.i.h.bf16 %v7436_v52 }
 0x89a   : > { %6814 = vmatmul.msk.f32.gmra.mxu3 %vm333_vm0, %v12542_v48  ;;  %v12907_v12 = vpop.f32.mrf.mxu3 }
 0x89b   : > { %v5853_v18 = vsel %vm333_vm0, %v12542_v48, %v7432_v51  ;;  %v5886_v33 = vsel %vm333_vm0, %v12560_v32, %v7438_v0  ;;  %v7441_v48 = vpop.permute.xlu2 %7440  ;;  %v13544_v0 = vld [vmem:[#allocation3_spill] sm:$0xff] }
 0x89c   : > { %v7443_v36 = vunpack.i.h.bf16 %v7441_v48  ;;  %v7442_v55 = vunpack.i.l.bf16 %v7441_v48 }
 0x8a1   : > { %6191 = vmatmul.f32.gmra.mxu0 %v5850_v43  ;;  %6304 = vmatmul.f32.gmra.mxu1 %v5882_v11  ;;  %v7437_v43 = vunpack.i.l.bf16 %v7436_v52 }
 0x8a2   : > { %6815 = vmatmul.msk.f32.gmra.mxu3 %vm333_vm0, %v12505_v15 }
 0x8a3   : > { %v5854_v11 = vsel %vm333_vm0, %v12505_v15, %v7437_v43  ;;  %v7446_v15 = vpop.permute.xlu0 %7445 }
 0x8a4   : > { %v7448_v32 = vunpack.i.h.bf16 %v7446_v15  ;;  %v7447_v46 = vunpack.i.l.bf16 %v7446_v15 }
 0x8a5   : > { %v12915_v26 = vpop.f32.mrf.mxu3 }
 0x8a6   : > { %v5856_v9 = vsel %vm333_vm0, %v12575_v17, %v7447_v46  ;;  %v13546_v46 = vld [vmem:[#allocation14_spill] sm:$0xff] }
 0x8a9   : > { %6194 = vmatmul.f32.gmra.mxu0 %v5851_v54  ;;  %6307 = vmatmul.f32.gmra.mxu1 %v5883_v19  ;;  %v5855_v54 = vsel %vm333_vm0, %v12572_v20, %v7442_v55  ;;  %v5887_v19 = vsel %vm333_vm0, %v12512_v2, %v7443_v36  ;;  %v7705_v36 = vld [vmem:[#allocation2 + $0xd0] sm:$0xff] }
 0x8aa   : > { %6816 = vmatmul.msk.f32.gmra.mxu3 %vm333_vm0, %v12572_v20  ;;  %v7451_v20 = vpop.permute.xlu1 %7450 }
 0x8ab   : > { %v7453_v2 = vunpack.i.h.bf16 %v7451_v20 }
 0x8ad   : > { %v12927_v40 = vpop.f32.mrf.mxu3  ;;  %v5889_v51 = vsel %vm333_vm0, %v12595_v5, %v7453_v2 }
 0x8b1   : > { %6197 = vmatmul.f32.gmra.mxu0 %v5852_v53  ;;  %6310 = vmatmul.f32.gmra.mxu1 %v5884_v60  ;;  %v5888_v53 = vsel %vm333_vm0, %v12600_v63, %v7448_v32  ;;  %v7452_v60 = vunpack.i.l.bf16 %v7451_v20 }
 0x8b2   : > { %6817 = vmatmul.msk.f32.gmra.mxu3 %vm333_vm0, %v12575_v17  ;;  %v7456_v17 = vpop.permute.xlu2 %7455 }
 0x8b3   : > { %v5857_v7 = vsel %vm333_vm0, %v12536_v34, %v7452_v60  ;;  %v7458_v63 = vunpack.i.h.bf16 %v7456_v17 }
 0x8b5   : > { %v12937_v30 = vpop.f32.mrf.mxu3  ;;  %v5890_v43 = vsel %vm333_vm0, %v13544_v0, %v7458_v63  ;;  %v13547_v63 = vld [vmem:[#allocation15_spill] sm:$0xff] }
 0x8b9   : > { %6200 = vmatmul.f32.gmra.mxu0 %v5853_v18  ;;  %6313 = vmatmul.f32.gmra.mxu1 %v5885_v25  ;;  %v7457_v18 = vunpack.i.l.bf16 %v7456_v17  ;;  %v7707_v17 = vld [vmem:[%s13311_s6] ss:$0 sm:$0xff] }
 0x8ba   : > { %6818 = vmatmul.msk.f32.gmra.mxu3 %vm333_vm0, %v12536_v34  ;;  %v7461_v34 = vpop.permute.xlu0 %7460 }
 0x8bb   : > { %v5858_v52 = vsel %vm333_vm0, %v12608_v31, %v7457_v18  ;;  %v7463_v5 = vunpack.i.h.bf16 %v7461_v34  ;;  %v4603_v18 = vadd.f32 %v7707_v17, %v13547_v63 }
 0x8bd   : > { %v12945_v44 = vpop.f32.mrf.mxu3  ;;  %v5891_v55 = vsel %vm333_vm0, %v7705_v36, %v7463_v5 }
 0x8c1   : > { %6203 = vmatmul.f32.gmra.mxu0 %v5854_v11  ;;  %6316 = vmatmul.f32.gmra.mxu1 %v5886_v33  ;;  %v7462_v11 = vunpack.i.l.bf16 %v7461_v34 }
 0x8c2   : > { %6819 = vmatmul.msk.f32.gmra.mxu3 %vm333_vm0, %v12608_v31  ;;  %v7466_v31 = vpop.permute.xlu1 %7465 }
 0x8c3   : > { %v5859_v48 = vsel %vm333_vm0, %v12611_v29, %v7462_v11  ;;  %v7467_v15 = vunpack.i.l.bf16 %v7466_v31 }
 0x8c5   : > { %v12953_v49 = vpop.f32.mrf.mxu3  ;;  %v5860_v32 = vsel %vm333_vm0, %v12566_v41, %v7467_v15 }
 0x8c9   : > { %6206 = vmatmul.f32.gmra.mxu0 %v5855_v54  ;;  %6319 = vmatmul.f32.gmra.mxu1 %v5887_v19  ;;  %v13545_v54 = vld [vmem:[#allocation16_spill] sm:$0xff]  ;;  %v7468_v19 = vunpack.i.h.bf16 %v7466_v31 }
 0x8ca   : > { %6820 = vmatmul.msk.f32.gmra.mxu3 %vm333_vm0, %v12611_v29 }
 0x8d1   : > { %6209 = vmatmul.f32.gmra.mxu0 %v5856_v9  ;;  %6322 = vmatmul.f32.gmra.mxu1 %v5888_v53  ;;  %v5892_v9 = vsel %vm333_vm0, %v13546_v46, %v7468_v19  ;;  %v7471_v53 = vpop.permute.xlu2 %7470  ;;  %v7481_v19 = vpop.permute.xlu1 %7480 }
 0x8d2   : > { %6821 = vmatmul.msk.f32.gmra.mxu3 %vm333_vm0, %v12566_v41  ;;  %v7473_v20 = vunpack.i.h.bf16 %v7471_v53  ;;  %v7472_v2 = vunpack.i.l.bf16 %v7471_v53  ;;  %v7476_v41 = vpop.permute.xlu0 %7475  ;;  %v7483_v53 = vunpack.i.h.bf16 %v7481_v19 }
 0x8d3   : > { %v7477_v0 = vunpack.i.l.bf16 %v7476_v41 }
 0x8d4   : > { %v5861_v60 = vsel %vm333_vm0, %v12649_v28, %v7472_v2 }
 0x8d5   : > { %v5862_v36 = vsel %vm333_vm0, %v12652_v14, %v7477_v0  ;;  %v13015_v0 = vpop.f32.mrf.mxu2 }
 0x8d9   : > { %6212 = vmatmul.f32.gmra.mxu0 %v5857_v7  ;;  %6325 = vmatmul.f32.gmra.mxu1 %v5889_v51  ;;  %v7706_v7 = vld [vmem:[#allocation2 + $0xf0] sm:$0xff] }
 0x8da   : > { %6822 = vmatmul.msk.f32.gmra.mxu3 %vm333_vm0, %v12649_v28  ;;  %v5893_v51 = vsel %vm333_vm0, %v7706_v7, %v7473_v20  ;;  %v13548_v28 = vld [vmem:[#allocation18_spill] sm:$0xff]  ;;  %v7482_v20 = vunpack.i.l.bf16 %v7481_v19 }
 0x8db   : > { %v4716_v34 = vadd.f32 %v13548_v28, %v4603_v18  ;;  %v7486_v28 = vpop.permute.xlu2 %7485 }
 0x8dc   : > { %v4941_v5 = vpop.f32.mrf.mxu1  ;;  %v5863_v18 = vsel %vm333_vm0, %v13545_v54, %v7482_v20 }
 0x8e0   : > { %v12961_v25 = vpop.f32.mrf.mxu3 }
 0x8e1   : > { %6215 = vmatmul.f32.gmra.mxu0 %v5858_v52  ;;  %6328 = vmatmul.f32.gmra.mxu1 %v5890_v43  ;;  %v7478_v52 = vunpack.i.h.bf16 %v7476_v41 }
 0x8e2   : > { %6823 = vmatmul.msk.f32.gmra.mxu3 %vm333_vm0, %v12652_v14 }
 0x8e8   : > { %v12969_v33 = vpop.f32.mrf.mxu3 }
 0x8e9   : > { %6218 = vmatmul.f32.gmra.mxu0 %v5859_v48  ;;  %6331 = vmatmul.f32.gmra.mxu1 %v5891_v55  ;;  %v7708_v55 = vld [vmem:[#allocation2 + $0x108] sm:$0xff] }
 0x8ea   : > { %6824 = vmatmul.msk.f32.gmra.mxu3 %vm333_vm0, %v13545_v54  ;;  %v5894_v31 = vsel %vm333_vm0, %v7708_v55, %v7478_v52  ;;  %v7709_v52 = vld [vmem:[#allocation2 + $0x110] sm:$0xff]  ;;  %v7487_v54 = vunpack.i.l.bf16 %v7486_v28  ;;  %v7488_v55 = vunpack.i.h.bf16 %v7486_v28 }
 0x8f0   : > { %v12980_v29 = vpop.f32.mrf.mxu3 }
 0x8f1   : > { %6221 = vmatmul.f32.gmra.mxu0 %v5860_v32  ;;  %6334 = vmatmul.f32.gmra.mxu1 %v5892_v9  ;;  %v13549_v32 = vld [vmem:[#allocation13_spill] sm:$0xff] }
 0x8f2   : > { %6825 = vmatmul.msk.f32.gmra.mxu3 %vm333_vm0, %v12681_v6  ;;  %v4606_v46 = vadd.f32 %v7707_v17, %v13549_v32  ;;  %v5895_v17 = vsel %vm333_vm0, %v7709_v52, %v7483_v53  ;;  %v13039_v52 = vld [vmem:[#allocation2 + $0x228] sm:$0xff] }
 0x8f8   : > { %v12993_v43 = vpop.f32.mrf.mxu3 }
 0x8f9   : > { %6224 = vmatmul.f32.gmra.mxu0 %v5861_v60  ;;  %6337 = vmatmul.f32.gmra.mxu1 %v5893_v51  ;;  %v13550_v60 = vld [vmem:[#allocation19_spill] sm:$0xff] }
 0x8fa   : > { %6826 = vmatmul.msk.f32.gmra.mxu3 %vm333_vm0, %v12684_v35  ;;  %v4719_v14 = vadd.f32 %v13550_v60, %v4606_v46  ;;  %v5864_v60 = vsel %vm333_vm0, %v12681_v6, %v7487_v54 }
 0x8fe   : > { %v4828_v11 = vpop.f32.mrf.mxu0 }
 0x8ff   : > { %v4829_v48 = vadd.f32 %v4828_v11, %v4716_v34  ;;  %v5188_v11 = vld [vmem:[#allocation2 + $0x200] sm:$0xff] }
 0x901   : > { %v4942_v15 = vadd.f32 %v4941_v5, %v4829_v48  ;;  %6227 = vmatmul.f32.gmra.mxu0 %v5862_v36  ;;  %6340 = vmatmul.f32.gmra.mxu1 %v5894_v31  ;;  %v13551_v48 = vld [vmem:[#allocation20_spill] sm:$0xff] }
 0x902   : > { %6827 = vmatmul.msk.f32.gmra.mxu3 %vm333_vm0, %v12644_v39 }
 0x903   : > { %v5055_v9 = vadd.f32 %v12796_v38, %v4942_v15  ;;  %v13013_v38 = vld [vmem:[%s13313_s8] ss:$0 sm:$0xff] }
 0x904   : > { %v13003_v2 = vpop.f32.mrf.mxu3  ;;  %v6074_v36 = vadd.f32 %v13013_v38, %v13551_v48 }
 0x905   : > { %v5090_v7 = vmul.f32 %v5055_v9, %v5055_v9 }
 0x906   : > { %v4831_v51 = vpop.f32.mrf.mxu0  ;;  %v4944_v41 = vpop.f32.mrf.mxu1 }
 0x907   : > { %5122 = vst.msk [vmem:[#allocation2 + $0x208] sm:$0xff] %vm333_vm0, %v5090_v7  ;;  %v4832_v63 = vadd.f32 %v4831_v51, %v4719_v14  ;;  %v7491_v14 = vpop.permute.xlu0 %7490  ;;  %v7710_v51 = vld [vmem:[#allocation2 + $0x128] sm:$0xff] }
 0x908   : > { %v7492_v28 = vunpack.i.l.bf16 %v7491_v14 }
 0x909   : > { %v4945_v34 = vadd.f32 %v4944_v41, %v4832_v63  ;;  %6230 = vmatmul.f32.gmra.mxu0 %v5863_v18  ;;  %6343 = vmatmul.f32.gmra.mxu1 %v5895_v17  ;;  %v5896_v41 = vsel %vm333_vm0, %v7710_v51, %v7488_v55  ;;  %v13036_v63 = vpop.f32.mrf.mxu2  ;;  %v7493_v17 = vunpack.i.h.bf16 %v7491_v14 }
 0x90a   : > { %6828 = vmatmul.msk.f32.gmra.mxu3 %vm333_vm0, %v12714_v57  ;;  %v5865_v14 = vsel %vm333_vm0, %v12684_v35, %v7492_v28 }
 0x90b   : > { %v5058_v5 = vadd.f32 %v12831_v50, %v4945_v34  ;;  %v5487_v50 = vrot.slane %v5188_v11, 7  ;;  %v5447_v34 = vrot.slane %v12485_v23, 1 }
 0x90d   : > { %v5091_v31 = vmul.f32 %v5058_v5, %v5058_v5  ;;  %v13022_v19 = vpop.f32.mrf.mxu3  ;;  %v13552_v5 = vld [vmem:[#allocation21_spill] sm:$0xff] }
 0x90e   : > { %v6186_v15 = vpop.f32.mrf.mxu0  ;;  %v6299_v32 = vpop.f32.mrf.mxu1  ;;  %v13024_v46 = vld [vmem:[#allocation2 + $0x208] sm:$0xff]  ;;  %v6077_v54 = vadd.f32 %v13013_v38, %v13552_v5  ;;  %v13554_v5 = vld [vmem:[#allocation22_spill] sm:$0xff] }
 0x90f   : > { %5123 = vst.msk [vmem:[#allocation2 + $0x210] sm:$0xff] %vm333_vm0, %v5091_v31  ;;  %v6187_v9 = vadd.f32 %v6186_v15, %v6074_v36  ;;  %v7544_v53 = vpack.i.bf16 %v12865_v4, %v13024_v46  ;;  %v5488_v20 = vrot.slane %v13024_v46, 7  ;;  %v5191_v4 = vld [vmem:[#allocation2 + $0x218] sm:$0xff]  ;;  %v13553_v15 = vrot.slane %v12515_v8, 1 }
 0x910   : > { %v5496_v11 = vrot.slane %v5191_v4, 1  ;;  %v5493_v28 = vrot.slane %v13024_v46, 1 }
 0x911   : > { %v6300_v7 = vadd.f32 %v6299_v32, %v6187_v9  ;;  %7545 = vrot.lane.b32.xlu2 %v7544_v53, %s7733_s11  ;;  %6233 = vmatmul.f32.gmra.mxu0 %v5864_v60  ;;  %v13042_v6 = vsel %vm591_vm1, %v5487_v50, %v5488_v20  ;;  %v13059_v23 = vsel %vm720_vm2, %v5447_v34, %v13553_v15 }
 0x912   : > { %6346 = vmatmul.f32.gmra.mxu1 %v5896_v41  ;;  %6829 = vmatmul.msk.f32.gmra.mxu3 %vm333_vm0, %v12717_v62  ;;  %v7559_v32 = vpack.i.bf16 %v13042_v6, %v13039_v52 }
 0x913   : > { %v6413_v18 = vadd.f32 %v12839_v13, %v6300_v7  ;;  %v7711_v7 = vld [vmem:[#allocation2 + $0x130] sm:$0xff] }
 0x914   : > { %v5897_v8 = vsel %vm333_vm0, %v7711_v7, %v7493_v17  ;;  %v7501_v7 = vpop.permute.xlu2 %7500 }
 0x915   : > { %v6525_v13 = vpop.f32.mrf.mxu3 }
 0x916   : > { %v6526_v48 = vadd.f32 %v6525_v13, %v6413_v18  ;;  %v6189_v36 = vpop.f32.mrf.mxu0  ;;  %v6302_v55 = vpop.f32.mrf.mxu1  ;;  %v13054_v31 = vld [vmem:[#allocation2 + $0x210] sm:$0xff] }
 0x917   : > { %v6190_v9 = vadd.f32 %v6189_v36, %v6077_v54  ;;  %v7549_v53 = vpack.i.bf16 %v13054_v31, %v13059_v23  ;;  %v5490_v50 = vrot.slane %v13054_v31, 7  ;;  %v5494_v60 = vrot.slane %v13054_v31, 1  ;;  %v7496_v18 = vpop.permute.xlu1 %7495  ;;  %v13093_v13 = vpop.f32.mrf.mxu2 }
 0x918   : > { %6621 = vst [vmem:[%s13052_s25] sm:$0xff] %v6526_v48  ;;  %v6080_v54 = vadd.f32 %v13013_v38, %v13554_v5  ;;  %v7497_v48 = vunpack.i.l.bf16 %v7496_v18 }
 0x919   : > { %v6303_v51 = vadd.f32 %v6302_v55, %v6190_v9  ;;  %7550 = vrot.lane.b32.xlu0 %v7549_v53, %s7733_s11  ;;  %7560 = vrot.lane.b32.xlu2 %v7559_v32, %s7733_s11  ;;  %v13074_v41 = vsel %vm591_vm1, %v5488_v20, %v5490_v50  ;;  %v13077_v4 = vsel %vm720_vm2, %v5494_v60, %v5496_v11  ;;  %v13086_v20 = vld [vmem:[#allocation2 + $0x230] sm:$0xff]  ;;  %v7498_v11 = vunpack.i.h.bf16 %v7496_v18 }
 0x91a   : > { %6236 = vmatmul.f32.gmra.mxu0 %v5865_v14  ;;  %6349 = vmatmul.f32.gmra.mxu1 %v5897_v8  ;;  %v7569_v35 = vpack.i.bf16 %v13077_v4, %v13074_v41  ;;  %v13089_v34 = vsel %vm720_vm2, %v5493_v28, %v5494_v60  ;;  %v5866_v50 = vsel %vm333_vm0, %v12644_v39, %v7497_v48  ;;  %v7712_v60 = vld [vmem:[#allocation2 + $0x148] sm:$0xff]  ;;  %v7502_v28 = vunpack.i.l.bf16 %v7501_v7 }
 0x91b   : > { %6830 = vmatmul.msk.f32.gmra.mxu3 %vm333_vm0, %v12678_v61  ;;  %v6416_v17 = vadd.f32 %v12860_v42, %v6303_v51  ;;  %v7564_v42 = vpack.i.bf16 %v13086_v20, %v13089_v34  ;;  %v5898_v14 = vsel %vm333_vm0, %v7712_v60, %v7498_v11  ;;  %v13555_v51 = vld [vmem:[#allocation23_spill] sm:$0xff] }
 0x91c   : > { %7570 = vrot.lane.b32.xlu1 %v7569_v35, %s7733_s11  ;;  %v6083_v18 = vadd.f32 %v13013_v38, %v13555_v51  ;;  %v7503_v35 = vunpack.i.h.bf16 %v7501_v7 }
 0x91d   : > { %v6528_v36 = vpop.f32.mrf.mxu3 }
 0x91e   : > { %v6529_v55 = vadd.f32 %v6528_v36, %v6416_v17  ;;  %v6192_v15 = vpop.f32.mrf.mxu0  ;;  %v6305_v32 = vpop.f32.mrf.mxu1 }
 0x91f   : > { %v6193_v9 = vadd.f32 %v6192_v15, %v6080_v54  ;;  %v13107_v48 = vpop.f32.mrf.mxu2  ;;  %v7713_v15 = vld [vmem:[#allocation2 + $0x150] sm:$0xff] }
 0x920   : > { %6622 = vst [vmem:[%s13052_s25 + $0x8] sm:$0xff] %v6529_v55  ;;  %v5867_v55 = vsel %vm333_vm0, %v12714_v57, %v7502_v28 }
 0x921   : > { %v6306_v53 = vadd.f32 %v6305_v32, %v6193_v9  ;;  %7565 = vrot.lane.b32.xlu0 %v7564_v42, %s7733_s11  ;;  %v7506_v32 = vpop.permute.xlu0 %7505  ;;  %v13556_v42 = vld [vmem:[#allocation24_spill] sm:$0xff] }
 0x922   : > { %6239 = vmatmul.f32.gmra.mxu0 %v5866_v50  ;;  %6352 = vmatmul.f32.gmra.mxu1 %v5898_v14  ;;  %v7508_v50 = vunpack.i.h.bf16 %v7506_v32  ;;  %v7507_v60 = vunpack.i.l.bf16 %v7506_v32 }
 0x923   : > { %6831 = vmatmul.msk.f32.gmra.mxu3 %vm333_vm0, %v12746_v3  ;;  %v6419_v8 = vadd.f32 %v12867_v58, %v6306_v53  ;;  %v5899_v58 = vsel %vm333_vm0, %v7713_v15, %v7503_v35  ;;  %v6086_v53 = vadd.f32 %v13013_v38, %v13556_v42 }
 0x924   : > { %v5868_v28 = vsel %vm333_vm0, %v12717_v62, %v7507_v60 }
 0x925   : > { %v6531_v17 = vpop.f32.mrf.mxu3 }
 0x926   : > { %v6532_v5 = vadd.f32 %v6531_v17, %v6419_v8  ;;  %v6195_v39 = vpop.f32.mrf.mxu0  ;;  %v6308_v54 = vpop.f32.mrf.mxu1  ;;  %v7714_v17 = vld [vmem:[#allocation2 + $0x168] sm:$0xff] }
 0x927   : > { %v6196_v11 = vadd.f32 %v6195_v39, %v6083_v18  ;;  %v13119_v18 = vpop.f32.mrf.mxu2 }
 0x928   : > { %6623 = vst [vmem:[%s13052_s25 + $0x10] sm:$0xff] %v6532_v5  ;;  %v7511_v5 = vpop.permute.xlu1 %7510 }
 0x929   : > { %v6309_v36 = vadd.f32 %v6308_v54, %v6196_v11  ;;  %v13557_v54 = vld [vmem:[#allocation5_spill] sm:$0xff] }
 0x92a   : > { %6242 = vmatmul.f32.gmra.mxu0 %v5867_v55  ;;  %6355 = vmatmul.f32.gmra.mxu1 %v5899_v58  ;;  %v6089_v11 = vadd.f32 %v13013_v38, %v13557_v54  ;;  %v7512_v55 = vunpack.i.l.bf16 %v7511_v5 }
 0x92b   : > { %6832 = vmatmul.msk.f32.gmra.mxu3 %vm333_vm0, %v12749_v56  ;;  %v6422_v9 = vadd.f32 %v12881_v59, %v6309_v36  ;;  %v5900_v59 = vsel %vm333_vm0, %v7714_v17, %v7508_v50  ;;  %v7513_v36 = vunpack.i.h.bf16 %v7511_v5  ;;  %v7715_v50 = vld [vmem:[#allocation2 + $0x170] sm:$0xff] }
 0x92d   : > { %v6534_v14 = vpop.f32.mrf.mxu3  ;;  %v5901_v60 = vsel %vm333_vm0, %v7715_v50, %v7513_v36 }
 0x92e   : > { %v6535_v7 = vadd.f32 %v6534_v14, %v6422_v9  ;;  %v6198_v57 = vpop.f32.mrf.mxu0  ;;  %v6311_v8 = vpop.f32.mrf.mxu1 }
 0x92f   : > { %v6199_v51 = vadd.f32 %v6198_v57, %v6086_v53  ;;  %v5869_v53 = vsel %vm333_vm0, %v12678_v61, %v7512_v55  ;;  %v13133_v14 = vpop.f32.mrf.mxu2  ;;  %v13558_v57 = vld [vmem:[#allocation12_spill] sm:$0xff] }
 0x930   : > { %6624 = vst [vmem:[%s13052_s25 + $0x18] sm:$0xff] %v6535_v7 }
 0x931   : > { %v6312_v35 = vadd.f32 %v6311_v8, %v6199_v51  ;;  %v6092_v8 = vadd.f32 %v13013_v38, %v13558_v57  ;;  %v7717_v57 = vld [vmem:[#allocation2 + $0x190] sm:$0xff] }
 0x932   : > { %6245 = vmatmul.f32.gmra.mxu0 %v5868_v28  ;;  %6358 = vmatmul.f32.gmra.mxu1 %v5900_v59 }
 0x933   : > { %6833 = vmatmul.msk.f32.gmra.mxu3 %vm333_vm0, %v12706_v1  ;;  %v6425_v39 = vadd.f32 %v13015_v0, %v6312_v35  ;;  %v7516_v0 = vpop.permute.xlu2 %7515 }
 0x934   : > { %v7518_v51 = vunpack.i.h.bf16 %v7516_v0  ;;  %v7517_v35 = vunpack.i.l.bf16 %v7516_v0 }
 0x935   : > { %v6537_v15 = vpop.f32.mrf.mxu3 }
 0x936   : > { %v6538_v58 = vadd.f32 %v6537_v15, %v6425_v39  ;;  %v6201_v62 = vpop.f32.mrf.mxu0  ;;  %v6314_v32 = vpop.f32.mrf.mxu1  ;;  %v5870_v54 = vsel %vm333_vm0, %v12746_v3, %v7517_v35  ;;  %v13559_v15 = vld [vmem:[#allocation4_spill] sm:$0xff]  ;;  %v6098_v35 = vadd.f32 %v13013_v38, %v12657_v45 }
 0x937   : > { %v6202_v9 = vadd.f32 %v6201_v62, %v6089_v11  ;;  %v7716_v11 = vld [vmem:[#allocation2 + $0x188] sm:$0xff]  ;;  %v13149_v62 = vpop.f32.mrf.mxu2 }
 0x938   : > { %6625 = vst [vmem:[%s13052_s25 + $0x20] sm:$0xff] %v6538_v58  ;;  %v5902_v36 = vsel %vm333_vm0, %v7716_v11, %v7518_v51  ;;  %v6095_v58 = vadd.f32 %v13013_v38, %v13559_v15  ;;  %v6101_v15 = vadd.f32 %v13013_v38, %v12697_v21  ;;  %v13560_v21 = vld [vmem:[#allocation7_spill] sm:$0xff] }
 0x939   : > { %v6315_v42 = vadd.f32 %v6314_v32, %v6202_v9 }
 0x93a   : > { %6248 = vmatmul.f32.gmra.mxu0 %v5869_v53  ;;  %6361 = vmatmul.f32.gmra.mxu1 %v5901_v60 }
 0x93b   : > { %6834 = vmatmul.msk.f32.gmra.mxu3 %vm333_vm0, %v12775_v10  ;;  %v6428_v7 = vadd.f32 %v13036_v63, %v6315_v42  ;;  %v7521_v63 = vpop.permute.xlu0 %7520 }
 0x93c   : > { %v7523_v32 = vunpack.i.h.bf16 %v7521_v63  ;;  %v7522_v9 = vunpack.i.l.bf16 %v7521_v63  ;;  %v7718_v63 = vld [vmem:[#allocation2 + $0x1a8] sm:$0xff] }
 0x93d   : > { %v6540_v61 = vpop.f32.mrf.mxu3 }
 0x93e   : > { %v6541_v28 = vadd.f32 %v6540_v61, %v6428_v7  ;;  %v6204_v17 = vpop.f32.mrf.mxu0  ;;  %v6317_v59 = vpop.f32.mrf.mxu1  ;;  %v5871_v7 = vsel %vm333_vm0, %v12749_v56, %v7522_v9 }
 0x93f   : > { %v6205_v5 = vadd.f32 %v6204_v17, %v6092_v8  ;;  %v7526_v8 = vpop.permute.xlu1 %7525 }
 0x940   : > { %6626 = vst [vmem:[%s13052_s25 + $0x28] sm:$0xff] %v6541_v28  ;;  %v7528_v61 = vunpack.i.h.bf16 %v7526_v8  ;;  %v7527_v28 = vunpack.i.l.bf16 %v7526_v8  ;;  %v13561_v8 = vld [vmem:[#allocation6_spill] sm:$0xff] }
 0x941   : > { %v6318_v39 = vadd.f32 %v6317_v59, %v6205_v5 }
 0x942   : > { %6251 = vmatmul.f32.gmra.mxu0 %v5870_v54  ;;  %6364 = vmatmul.f32.gmra.mxu1 %v5902_v36  ;;  %v5872_v36 = vsel %vm333_vm0, %v12706_v1, %v7527_v28 }
 0x943   : > { %6835 = vmatmul.msk.f32.gmra.mxu3 %vm333_vm0, %v12778_v24  ;;  %v6431_v55 = vadd.f32 %v13093_v13, %v6318_v39  ;;  %v5903_v13 = vsel %vm333_vm0, %v7717_v57, %v7523_v32  ;;  %v13160_v39 = vpop.f32.mrf.mxu2  ;;  %v7536_v57 = vpop.permute.xlu0 %7535 }
 0x945   : > { %v6543_v3 = vpop.f32.mrf.mxu3 }
 0x946   : > { %v6544_v42 = vadd.f32 %v6543_v3, %v6431_v55  ;;  %v6207_v53 = vpop.f32.mrf.mxu0  ;;  %v6320_v50 = vpop.f32.mrf.mxu1 }
 0x947   : > { %v6208_v60 = vadd.f32 %v6207_v53, %v6095_v58  ;;  %v7531_v55 = vpop.permute.xlu2 %7530 }
 0x948   : > { %6627 = vst [vmem:[%s13052_s25 + $0x30] sm:$0xff] %v6544_v42  ;;  %v7533_v58 = vunpack.i.h.bf16 %v7531_v55  ;;  %v7532_v32 = vunpack.i.l.bf16 %v7531_v55  ;;  %v13562_v55 = vld [vmem:[#allocation8_spill] sm:$0xff] }
 0x949   : > { %v6321_v0 = vadd.f32 %v6320_v50, %v6208_v60 }
 0x94a   : > { %6254 = vmatmul.f32.gmra.mxu0 %v5871_v7  ;;  %6367 = vmatmul.f32.gmra.mxu1 %v5903_v13  ;;  %v7719_v7 = vld [vmem:[#allocation2 + $0x1b0] sm:$0xff] }
 0x94b   : > { %6836 = vmatmul.msk.f32.gmra.mxu3 %vm333_vm0, %v12743_v37  ;;  %v6434_v51 = vadd.f32 %v13107_v48, %v6321_v0  ;;  %v5904_v48 = vsel %vm333_vm0, %v7718_v63, %v7528_v61  ;;  %v13172_v50 = vpop.f32.mrf.mxu2  ;;  %v5873_v0 = vsel %vm333_vm0, %v12775_v10, %v7532_v32  ;;  %v7537_v61 = vunpack.i.l.bf16 %v7536_v57 }
 0x94d   : > { %v6546_v17 = vpop.f32.mrf.mxu3 }
 0x94e   : > { %v6547_v59 = vadd.f32 %v6546_v17, %v6434_v51  ;;  %v6210_v56 = vpop.f32.mrf.mxu0  ;;  %v6323_v5 = vpop.f32.mrf.mxu1  ;;  %v6104_v51 = vadd.f32 %v13013_v38, %v13561_v8 }
 0x94f   : > { %v6211_v54 = vadd.f32 %v6210_v56, %v6098_v35  ;;  %v7538_v35 = vunpack.i.h.bf16 %v7536_v57 }
 0x950   : > { %6628 = vst [vmem:[%s13052_s25 + $0x38] sm:$0xff] %v6547_v59 }
 0x951   : > { %v6324_v11 = vadd.f32 %v6323_v5, %v6211_v54  ;;  %v5874_v54 = vsel %vm333_vm0, %v12778_v24, %v7537_v61 }
 0x952   : > { %6257 = vmatmul.f32.gmra.mxu0 %v5872_v36  ;;  %6370 = vmatmul.f32.gmra.mxu1 %v5904_v48 }
 0x953   : > { %6837 = vmatmul.msk.f32.gmra.mxu3 %vm333_vm0, %v12790_v16  ;;  %v6437_v45 = vadd.f32 %v13119_v18, %v6324_v11  ;;  %v5905_v18 = vsel %vm333_vm0, %v7719_v7, %v7533_v58  ;;  %v7720_v11 = vld [vmem:[#allocation2 + $0x1c8] sm:$0xff]  ;;  %v6451_v63 = vpop.f32.mrf.mxu2 }
 0x954   : > { %v5906_v36 = vsel %vm333_vm0, %v7720_v11, %v7538_v35  ;;  %v13565_v11 = vld [vmem:[#allocation10_spill] sm:$0xff] }
 0x955   : > { %v6549_v9 = vpop.f32.mrf.mxu3 }
 0x956   : > { %v6550_v3 = vadd.f32 %v6549_v9, %v6437_v45  ;;  %v6213_v1 = vpop.f32.mrf.mxu0  ;;  %v6326_v42 = vpop.f32.mrf.mxu1  ;;  %v6107_v45 = vadd.f32 %v13013_v38, %v13562_v55 }
 0x957   : > { %v6214_v53 = vadd.f32 %v6213_v1, %v6101_v15 }
 0x958   : > { %6629 = vst [vmem:[%s13052_s25 + $0x40] sm:$0xff] %v6550_v3 }
 0x959   : > { %v6327_v60 = vadd.f32 %v6326_v42, %v6214_v53 }
 0x95a   : > { %6260 = vmatmul.f32.gmra.mxu0 %v5873_v0  ;;  %6373 = vmatmul.f32.gmra.mxu1 %v5905_v18 }
 0x95b   : > { %6838 = vmatmul.msk.f32.gmra.mxu3 %vm333_vm0, %v13560_v21  ;;  %v6440_v13 = vadd.f32 %v13133_v14, %v6327_v60  ;;  %v7541_v14 = vpop.permute.xlu1 %7540  ;;  %v7721_v60 = vld [vmem:[#allocation2 + $0x1d0] sm:$0xff] }
 0x95c   : > { %v7543_v15 = vunpack.i.h.bf16 %v7541_v14  ;;  %v7542_v58 = vunpack.i.l.bf16 %v7541_v14 }
 0x95d   : > { %v6552_v28 = vpop.f32.mrf.mxu3 }
 0x95e   : > { %v6553_v17 = vadd.f32 %v6552_v28, %v6440_v13  ;;  %v6216_v10 = vpop.f32.mrf.mxu0  ;;  %v6329_v59 = vpop.f32.mrf.mxu1  ;;  %v5875_v53 = vsel %vm333_vm0, %v12743_v37, %v7542_v58  ;;  %v5907_v0 = vsel %vm333_vm0, %v7721_v60, %v7543_v15  ;;  %v13564_v13 = vld [vmem:[#allocation9_spill] sm:$0xff] }
 0x95f   : > { %v6217_v56 = vadd.f32 %v6216_v10, %v6104_v51  ;;  %v6110_v8 = vadd.f32 %v13013_v38, %v13564_v13  ;;  %v6454_v51 = vpop.f32.mrf.mxu2 }
 0x960   : > { %6630 = vst [vmem:[%s13052_s25 + $0x48] sm:$0xff] %v6553_v17 }
 0x961   : > { %v6330_v5 = vadd.f32 %v6329_v59, %v6217_v56 }
 0x962   : > { %6263 = vmatmul.f32.gmra.mxu0 %v5874_v54  ;;  %6376 = vmatmul.f32.gmra.mxu1 %v5906_v36  ;;  %v6113_v36 = vadd.f32 %v13013_v38, %v13565_v11 }
 0x963   : > { %6839 = vmatmul.msk.f32.gmra.mxu3 %vm333_vm0, %v13059_v23  ;;  %v6443_v48 = vadd.f32 %v13149_v62, %v6330_v5  ;;  %v13563_v62 = vld [vmem:[#allocation11_spill] sm:$0xff]  ;;  %v13205_v5 = vpop.permute.xlu1 %7555 }
 0x965   : > { %v6555_v32 = vpop.f32.mrf.mxu3 }
 0x966   : > { %v6556_v24 = vadd.f32 %v6555_v32, %v6443_v48  ;;  %v6219_v9 = vpop.f32.mrf.mxu0  ;;  %v6332_v3 = vpop.f32.mrf.mxu1 }
 0x967   : > { %v6220_v1 = vadd.f32 %v6219_v9, %v6107_v45 }
 0x968   : > { %6631 = vst [vmem:[%s13052_s25 + $0x50] sm:$0xff] %v6556_v24  ;;  %v13566_v24 = vld [vmem:[#allocation17_spill] sm:$0xff] }
 0x969   : > { %v6333_v42 = vadd.f32 %v6332_v3, %v6220_v1  ;;  %v6116_v9 = vadd.f32 %v13013_v38, %v13566_v24 }
 0x96a   : > { %6266 = vmatmul.f32.gmra.mxu0 %v5875_v53  ;;  %6379 = vmatmul.f32.gmra.mxu1 %v5907_v0 }
 0x96b   : > { %6840 = vmatmul.msk.f32.gmra.mxu3 %vm333_vm0, %v13563_v62  ;;  %v7546_v7 = vpop.permute.xlu2 %7545  ;;  %v6446_v18 = vadd.f32 %v13160_v39, %v6333_v42 }
 0x96c   : > { %v7547_v57 = vunpack.i.l.bf16 %v7546_v7  ;;  %v7548_v35 = vunpack.i.h.bf16 %v7546_v7 }
 0x96d   : > { %v6558_v61 = vpop.f32.mrf.mxu3 }
 0x96e   : > { %v6559_v37 = vadd.f32 %v6558_v61, %v6446_v18  ;;  %v6222_v28 = vpop.f32.mrf.mxu0  ;;  %v6335_v17 = vpop.f32.mrf.mxu1  ;;  %v5912_v10 = vsel %vm333_vm0, %v13042_v6, %v7547_v57  ;;  %v5876_v39 = vsel %vm333_vm0, %v12790_v16, %v7548_v35  ;;  %v7557_v6 = vunpack.i.l.bf16 %v13205_v5 }
 0x96f   : > { %v6223_v59 = vadd.f32 %v6222_v28, %v6110_v8  ;;  %6495 = vmatmul.f32.gmra.mxu2 %v5912_v10  ;;  %v6457_v16 = vpop.f32.mrf.mxu2  ;;  %v5511_v18 = vrot.slane %v13039_v52, 1  ;;  %v13567_v8 = vld [vmem:[#allocation25_spill] sm:$0xff] }
 0x970   : > { %6632 = vst [vmem:[%s13052_s25 + $0x58] sm:$0xff] %v6559_v37  ;;  %v5877_v32 = vsel %vm333_vm0, %v13560_v21, %v7557_v6  ;;  %v6119_v35 = vadd.f32 %v13013_v38, %v13567_v8  ;;  %v5192_v6 = vld [vmem:[#allocation2 + $0x220] sm:$0xff] }
 0x971   : > { %v6336_v56 = vadd.f32 %v6335_v17, %v6223_v59  ;;  %v5195_v59 = vld [vmem:[#allocation2 + $0x238] sm:$0xff] }
 0x972   : > { %6269 = vmatmul.f32.gmra.mxu0 %v5876_v39  ;;  %v5514_v39 = vrot.slane %v5195_v59, 1  ;;  %v6128_v59 = vadd.f32 %v13013_v38, %v12891_v22  ;;  %v6131_v22 = vadd.f32 %v13013_v38, %v12899_v47 }
 0x973   : > { %6841 = vmatmul.msk.f32.gmra.mxu3 %vm333_vm0, %v13089_v34  ;;  %v6449_v54 = vadd.f32 %v13172_v50, %v6336_v56  ;;  %v13216_v34 = vpop.permute.xlu2 %7560 }
 0x974   : > { %v7563_v3 = vunpack.i.h.bf16 %v13216_v34 }
 0x975   : > { %v6561_v14 = vpop.f32.mrf.mxu3 }
 0x976   : > { %v6562_v48 = vadd.f32 %v6561_v14, %v6449_v54  ;;  %v6225_v55 = vpop.f32.mrf.mxu0  ;;  %v6338_v45 = vpop.f32.mrf.mxu1  ;;  %v5878_v7 = vsel %vm333_vm0, %v13059_v23, %v7563_v3 }
 0x977   : > { %v6226_v15 = vadd.f32 %v6225_v55, %v6113_v36 }
 0x978   : > { %6633 = vst [vmem:[%s13052_s25 + $0x60] sm:$0xff] %v6562_v48  ;;  %v13568_v48 = vld [vmem:[#allocation26_spill] sm:$0xff] }
 0x979   : > { %v6339_v58 = vadd.f32 %v6338_v45, %v6226_v15  ;;  %v6122_v55 = vadd.f32 %v13013_v38, %v13568_v48 }
 0x97a   : > { %6272 = vmatmul.f32.gmra.mxu0 %v5877_v32 }
 0x97b   : > { %6842 = vmatmul.msk.f32.gmra.mxu3 %vm333_vm0, %v13077_v4  ;;  %v6452_v50 = vadd.f32 %v6451_v63, %v6339_v58  ;;  %v5512_v4 = vrot.slane %v13086_v20, 1  ;;  %v6460_v63 = vpop.f32.mrf.mxu2 }
 0x97d   : > { %v6564_v1 = vpop.f32.mrf.mxu3  ;;  %v5513_v13 = vsel %vm720_vm2, %v5511_v18, %v5512_v4  ;;  %v5515_v14 = vsel %vm720_vm2, %v5512_v4, %v5514_v39 }
 0x97e   : > { %v6565_v42 = vadd.f32 %v6564_v1, %v6452_v50  ;;  %v6228_v53 = vpop.f32.mrf.mxu0  ;;  %v6341_v60 = vpop.f32.mrf.mxu1  ;;  %v7722_v50 = vld [vmem:[#allocation2 + $0x1e8] sm:$0xff] }
 0x97f   : > { %v6229_v0 = vadd.f32 %v6228_v53, %v6116_v9  ;;  %v5502_v53 = vrot.slane %v13039_v52, 7 }
 0x980   : > { %6634 = vst [vmem:[%s13052_s25 + $0x68] sm:$0xff] %v6565_v42  ;;  %v5501_v42 = vrot.slane %v5192_v6, 7 }
 0x981   : > { %v6342_v21 = vadd.f32 %v6341_v60, %v6229_v0 }
 0x982   : > { %6275 = vmatmul.f32.gmra.mxu0 %v5878_v7  ;;  %v7562_v7 = vunpack.i.l.bf16 %v13216_v34  ;;  %v5503_v18 = vsel %vm591_vm1, %v5501_v42, %v5502_v53  ;;  %v5504_v34 = vrot.slane %v13086_v20, 7 }
 0x983   : > { %v6455_v57 = vadd.f32 %v6454_v51, %v6342_v21  ;;  %6843 = vmatmul.msk.f32.gmra.mxu3 %vm333_vm0, %v5513_v13  ;;  %v6463_v56 = vpop.f32.mrf.mxu2  ;;  %v7558_v21 = vunpack.i.h.bf16 %v13205_v5  ;;  %v6125_v13 = vadd.f32 %v13013_v38, %v12883_v27 }
 0x984   : > { %v5505_v27 = vsel %vm591_vm1, %v5502_v53, %v5504_v34 }
 0x985   : > { %v6567_v61 = vpop.f32.mrf.mxu3 }
 0x986   : > { %v6568_v37 = vadd.f32 %v6567_v61, %v6455_v57  ;;  %v6231_v28 = vpop.f32.mrf.mxu0  ;;  %v6344_v17 = vpop.f32.mrf.mxu1 }
 0x987   : > { %v6232_v10 = vadd.f32 %v6231_v28, %v6119_v35  ;;  %v7723_v35 = vld [vmem:[#allocation2 + $0x1f0] sm:$0xff] }
 0x988   : > { %6635 = vst [vmem:[%s13052_s25 + $0x70] sm:$0xff] %v6568_v37  ;;  %v5909_v61 = vsel %vm333_vm0, %v7723_v35, %v7558_v21  ;;  %v6140_v35 = vadd.f32 %v13013_v38, %v12927_v40 }
 0x989   : > { %v6345_v23 = vadd.f32 %v6344_v17, %v6232_v10 }
 0x98b   : > { %v7551_v54 = vpop.permute.xlu0 %7550  ;;  %v6458_v11 = vadd.f32 %v6457_v16, %v6345_v23  ;;  %6844 = vmatmul.msk.f32.gmra.mxu3 %vm333_vm0, %v5515_v14  ;;  %v6466_v4 = vpop.f32.mrf.mxu2 }
 0x98c   : > { %v7553_v51 = vunpack.i.h.bf16 %v7551_v54  ;;  %v7552_v36 = vunpack.i.l.bf16 %v7551_v54 }
 0x98d   : > { %v6570_v45 = vpop.f32.mrf.mxu3 }
 0x98e   : > { %v6571_v15 = vadd.f32 %v6570_v45, %v6458_v11  ;;  %v7571_v58 = vpop.permute.xlu1 %7570  ;;  %v6234_v32 = vpop.f32.mrf.mxu0  ;;  %v5908_v24 = vsel %vm333_vm0, %v7722_v50, %v7552_v36  ;;  %v5913_v16 = vsel %vm333_vm0, %v13074_v41, %v7553_v51 }
 0x98f   : > { %v7572_v9 = vunpack.i.l.bf16 %v7571_v58  ;;  %v6235_v3 = vadd.f32 %v6234_v32, %v6122_v55  ;;  %v6347_v1 = vpop.f32.mrf.mxu1  ;;  %6382 = vmatmul.f32.gmra.mxu1 %v5908_v24  ;;  %6498 = vmatmul.f32.gmra.mxu2 %v5913_v16  ;;  %v7573_v48 = vunpack.i.h.bf16 %v7571_v58  ;;  %v6134_v58 = vadd.f32 %v13013_v38, %v12907_v12 }
 0x990   : > { %6636 = vst [vmem:[%s13052_s25 + $0x78] sm:$0xff] %v6571_v15 }
 0x991   : > { %v6348_v60 = vadd.f32 %v6347_v1, %v6235_v3  ;;  %v5879_v0 = vsel %vm333_vm0, %v13563_v62, %v7572_v9  ;;  %v5914_v62 = vsel %vm333_vm0, %v5503_v18, %v7562_v7  ;;  %v6137_v7 = vadd.f32 %v13013_v38, %v12915_v26 }
 0x992   : > { %6278 = vmatmul.f32.gmra.mxu0 %v5879_v0 }
 0x993   : > { %v6461_v41 = vadd.f32 %v6460_v63, %v6348_v60  ;;  %v7566_v52 = vpop.permute.xlu0 %7565  ;;  %v6469_v39 = vpop.f32.mrf.mxu2 }
 0x994   : > { %v7568_v28 = vunpack.i.h.bf16 %v7566_v52  ;;  %v7567_v17 = vunpack.i.l.bf16 %v7566_v52 }
 0x995   : > { %v6573_v57 = vpop.f32.mrf.mxu3 }
 0x996   : > { %v6574_v8 = vadd.f32 %v6573_v57, %v6461_v41  ;;  %v5910_v11 = vsel %vm333_vm0, %v13024_v46, %v7567_v17  ;;  %v5915_v51 = vsel %vm333_vm0, %v5505_v27, %v7568_v28  ;;  %v5911_v46 = vsel %vm333_vm0, %v13054_v31, %v7573_v48 }
 0x997   : > { %v6237_v5 = vpop.f32.mrf.mxu0  ;;  %v6350_v37 = vpop.f32.mrf.mxu1  ;;  %6385 = vmatmul.f32.gmra.mxu1 %v5909_v61  ;;  %6501 = vmatmul.f32.gmra.mxu2 %v5914_v62  ;;  %v6143_v17 = vadd.f32 %v13013_v38, %v12937_v30 }
 0x998   : > { %6637 = vst [vmem:[%s13052_s25 + $0x80] sm:$0xff] %v6574_v8  ;;  %v6238_v63 = vadd.f32 %v6237_v5, %v6125_v13 }
 0x99a   : > { %v6351_v10 = vadd.f32 %v6350_v37, %v6238_v63 }
 0x99b   : > { %v6472_v24 = vpop.f32.mrf.mxu2 }
 0x99c   : > { %v6464_v23 = vadd.f32 %v6463_v56, %v6351_v10 }
 0x99e   : > { %v6576_v54 = vpop.f32.mrf.mxu3 }
 0x99f   : > { %v6577_v20 = vadd.f32 %v6576_v54, %v6464_v23  ;;  %v6240_v36 = vpop.f32.mrf.mxu0  ;;  %v6353_v6 = vpop.f32.mrf.mxu1  ;;  %6388 = vmatmul.f32.gmra.mxu1 %v5910_v11  ;;  %6504 = vmatmul.f32.gmra.mxu2 %v5915_v51  ;;  %v6146_v11 = vadd.f32 %v13013_v38, %v12945_v44 }
 0x9a0   : > { %v6241_v14 = vadd.f32 %v6240_v36, %v6128_v59 }
 0x9a1   : > { %6638 = vst [vmem:[%s13052_s25 + $0x88] sm:$0xff] %v6577_v20 }
 0x9a2   : > { %v6354_v56 = vadd.f32 %v6353_v6, %v6241_v14 }
 0x9a3   : > { %v6475_v31 = vpop.f32.mrf.mxu2 }
 0x9a4   : > { %v6467_v55 = vadd.f32 %v6466_v4, %v6354_v56 }
 0x9a6   : > { %v6579_v45 = vpop.f32.mrf.mxu3 }
 0x9a7   : > { %v6580_v15 = vadd.f32 %v6579_v45, %v6467_v55  ;;  %v6243_v32 = vpop.f32.mrf.mxu0  ;;  %v6356_v50 = vpop.f32.mrf.mxu1  ;;  %6391 = vmatmul.f32.gmra.mxu1 %v5911_v46  ;;  %v6149_v55 = vadd.f32 %v13013_v38, %v12953_v49 }
 0x9a8   : > { %v6244_v16 = vadd.f32 %v6243_v32, %v6131_v22 }
 0x9a9   : > { %6639 = vst [vmem:[%s13052_s25 + $0x90] sm:$0xff] %v6580_v15 }
 0x9aa   : > { %v6357_v9 = vadd.f32 %v6356_v50, %v6244_v16  ;;  %v6152_v16 = vadd.f32 %v13013_v38, %v12961_v25 }
 0x9ab   : > { %v6478_v12 = vpop.f32.mrf.mxu2 }
 0x9ac   : > { %v6470_v3 = vadd.f32 %v6469_v39, %v6357_v9 }
 0x9ae   : > { %v6582_v1 = vpop.f32.mrf.mxu3 }
 0x9af   : > { %v6583_v47 = vadd.f32 %v6582_v1, %v6470_v3  ;;  %v6246_v42 = vpop.f32.mrf.mxu0  ;;  %v6359_v53 = vpop.f32.mrf.mxu1 }
 0x9b0   : > { %v6247_v60 = vadd.f32 %v6246_v42, %v6134_v58 }
 0x9b1   : > { %6640 = vst [vmem:[%s13052_s25 + $0x98] sm:$0xff] %v6583_v47 }
 0x9b2   : > { %v6360_v0 = vadd.f32 %v6359_v53, %v6247_v60  ;;  %v6155_v60 = vadd.f32 %v13013_v38, %v12969_v33 }
 0x9b3   : > { %v6481_v63 = vpop.f32.mrf.mxu2 }
 0x9b4   : > { %v6473_v21 = vadd.f32 %v6472_v24, %v6360_v0 }
 0x9b6   : > { %v6585_v41 = vpop.f32.mrf.mxu3 }
 0x9b7   : > { %v6586_v18 = vadd.f32 %v6585_v41, %v6473_v21  ;;  %v6249_v4 = vpop.f32.mrf.mxu0  ;;  %v6362_v57 = vpop.f32.mrf.mxu1 }
 0x9b8   : > { %v6250_v13 = vadd.f32 %v6249_v4, %v6137_v7 }
 0x9b9   : > { %6641 = vst [vmem:[%s13052_s25 + $0xa0] sm:$0xff] %v6586_v18 }
 0x9ba   : > { %v6363_v52 = vadd.f32 %v6362_v57, %v6250_v13 }
 0x9bb   : > { %v6484_v51 = vpop.f32.mrf.mxu2 }
 0x9bc   : > { %v6476_v8 = vadd.f32 %v6475_v31, %v6363_v52  ;;  %v6158_v52 = vadd.f32 %v13013_v38, %v12980_v29 }
 0x9be   : > { %v6588_v61 = vpop.f32.mrf.mxu3 }
 0x9bf   : > { %v6589_v62 = vadd.f32 %v6588_v61, %v6476_v8  ;;  %v6252_v5 = vpop.f32.mrf.mxu0  ;;  %v6365_v37 = vpop.f32.mrf.mxu1 }
 0x9c0   : > { %v6253_v34 = vadd.f32 %v6252_v5, %v6140_v35 }
 0x9c1   : > { %6642 = vst [vmem:[%s13052_s25 + $0xa8] sm:$0xff] %v6589_v62 }
 0x9c2   : > { %v6366_v26 = vadd.f32 %v6365_v37, %v6253_v34  ;;  %v6161_v34 = vadd.f32 %v13013_v38, %v12993_v43 }
 0x9c3   : > { %v6487_v44 = vpop.f32.mrf.mxu2 }
 0x9c4   : > { %v6479_v28 = vadd.f32 %v6478_v12, %v6366_v26 }
 0x9c6   : > { %v6591_v10 = vpop.f32.mrf.mxu3 }
 0x9c7   : > { %v6592_v27 = vadd.f32 %v6591_v10, %v6479_v28  ;;  %v6255_v23 = vpop.f32.mrf.mxu0  ;;  %v6368_v59 = vpop.f32.mrf.mxu1 }
 0x9c8   : > { %v6256_v39 = vadd.f32 %v6255_v23, %v6143_v17 }
 0x9c9   : > { %6643 = vst [vmem:[%s13052_s25 + $0xb0] sm:$0xff] %v6592_v27 }
 0x9ca   : > { %v6369_v40 = vadd.f32 %v6368_v59, %v6256_v39  ;;  %v6164_v59 = vadd.f32 %v13013_v38, %v13003_v2 }
 0x9cb   : > { %v6490_v49 = vpop.f32.mrf.mxu2 }
 0x9cc   : > { %v6482_v54 = vadd.f32 %v6481_v63, %v6369_v40 }
 0x9ce   : > { %v6594_v20 = vpop.f32.mrf.mxu3 }
 0x9cf   : > { %v6595_v36 = vadd.f32 %v6594_v20, %v6482_v54  ;;  %v6258_v6 = vpop.f32.mrf.mxu0  ;;  %v6371_v14 = vpop.f32.mrf.mxu1 }
 0x9d0   : > { %v6259_v48 = vadd.f32 %v6258_v6, %v6146_v11  ;;  %v6167_v6 = vadd.f32 %v13013_v38, %v13022_v19 }
 0x9d1   : > { %6644 = vst [vmem:[%s13052_s25 + $0xb8] sm:$0xff] %v6595_v36 }
 0x9d2   : > { %v6372_v30 = vadd.f32 %v6371_v14, %v6259_v48 }
 0x9d3   : > { %v6493_v18 = vpop.f32.mrf.mxu2 }
 0x9d4   : > { %v6485_v56 = vadd.f32 %v6484_v51, %v6372_v30 }
 0x9d6   : > { %v6597_v22 = vpop.f32.mrf.mxu3 }
 0x9d7   : > { %v6598_v45 = vadd.f32 %v6597_v22, %v6485_v56  ;;  %v6261_v46 = vpop.f32.mrf.mxu0  ;;  %v6374_v15 = vpop.f32.mrf.mxu1 }
 0x9d8   : > { %v6262_v32 = vadd.f32 %v6261_v46, %v6149_v55 }
 0x9d9   : > { %6645 = vst [vmem:[%s13052_s25 + $0xc0] sm:$0xff] %v6598_v45 }
 0x9da   : > { %v6375_v50 = vadd.f32 %v6374_v15, %v6262_v32 }
 0x9dc   : > { %v6488_v24 = vadd.f32 %v6487_v44, %v6375_v50 }
 0x9de   : > { %v6600_v9 = vpop.f32.mrf.mxu3 }
 0x9df   : > { %v6601_v3 = vadd.f32 %v6600_v9, %v6488_v24  ;;  %v6264_v58 = vpop.f32.mrf.mxu0  ;;  %v6377_v1 = vpop.f32.mrf.mxu1 }
 0x9e0   : > { %v6265_v47 = vadd.f32 %v6264_v58, %v6152_v16 }
 0x9e1   : > { %6646 = vst [vmem:[%s13052_s25 + $0xc8] sm:$0xff] %v6601_v3 }
 0x9e2   : > { %v6378_v42 = vadd.f32 %v6377_v1, %v6265_v47 }
 0x9e4   : > { %v6491_v53 = vadd.f32 %v6490_v49, %v6378_v42 }
 0x9e6   : > { %v6603_v31 = vpop.f32.mrf.mxu3 }
 0x9e7   : > { %v6604_v0 = vadd.f32 %v6603_v31, %v6491_v53  ;;  %v6267_v21 = vpop.f32.mrf.mxu0  ;;  %v6380_v41 = vpop.f32.mrf.mxu1 }
 0x9e8   : > { %v6268_v7 = vadd.f32 %v6267_v21, %v6155_v60 }
 0x9e9   : > { %6647 = vst [vmem:[%s13052_s25 + $0xd0] sm:$0xff] %v6604_v0 }
 0x9ea   : > { %v6381_v25 = vadd.f32 %v6380_v41, %v6268_v7 }
 0x9ec   : > { %v6494_v4 = vadd.f32 %v6493_v18, %v6381_v25 }
 0x9ee   : > { %v6606_v57 = vpop.f32.mrf.mxu3 }
 0x9ef   : > { %v6607_v13 = vadd.f32 %v6606_v57, %v6494_v4  ;;  %v6270_v12 = vpop.f32.mrf.mxu0 }
 0x9f0   : > { %v6271_v33 = vadd.f32 %v6270_v12, %v6158_v52 }
 0x9f1   : > { %6648 = vst [vmem:[%s13052_s25 + $0xd8] sm:$0xff] %v6607_v13 }
 0x9f2   : > { %v6496_v35 = vpop.f32.mrf.mxu2 }
 0x9f6   : > { %v6609_v8 = vpop.f32.mrf.mxu3 }
 0x9f7   : > { %v6273_v5 = vpop.f32.mrf.mxu0 }
 0x9f8   : > { %v6274_v28 = vadd.f32 %v6273_v5, %v6161_v34 }
 0x9fe   : > { %v6612_v17 = vpop.f32.mrf.mxu3 }
 0x9ff   : > { %v6276_v23 = vpop.f32.mrf.mxu0 }
 0xa00   : > { %v6277_v40 = vadd.f32 %v6276_v23, %v6164_v59 }
 0xa06   : > { %v6615_v54 = vpop.f32.mrf.mxu3 }
 0xa0c   : > { %v6383_v61 = vpop.f32.mrf.mxu1 }
 0xa0d   : > { %v6384_v62 = vadd.f32 %v6383_v61, %v6271_v33 }
 0xa0e   : > { %v6618_v2 = vpop.f32.mrf.mxu3 }
 0xa0f   : > { %v6497_v37 = vadd.f32 %v6496_v35, %v6384_v62  ;;  %v6279_v36 = vpop.f32.mrf.mxu0 }
 0xa10   : > { %v6280_v48 = vadd.f32 %v6279_v36, %v6167_v6 }
 0xa11   : > { %v6610_v26 = vadd.f32 %v6609_v8, %v6497_v37 }
 0xa12   : > { %v6499_v63 = vpop.f32.mrf.mxu2 }
 0xa13   : > { %6649 = vst [vmem:[%s13052_s25 + $0xe0] sm:$0xff] %v6610_v26 }
 0xa14   : > { %v6386_v10 = vpop.f32.mrf.mxu1 }
 0xa15   : > { %v6387_v27 = vadd.f32 %v6386_v10, %v6274_v28 }
 0xa17   : > { %v6500_v29 = vadd.f32 %v6499_v63, %v6387_v27 }
 0xa19   : > { %v6613_v39 = vadd.f32 %v6612_v17, %v6500_v29 }
 0xa1a   : > { %v6502_v11 = vpop.f32.mrf.mxu2 }
 0xa1b   : > { %6650 = vst [vmem:[%s13052_s25 + $0xe8] sm:$0xff] %v6613_v39 }
 0xa1c   : > { %v6389_v43 = vpop.f32.mrf.mxu1 }
 0xa1d   : > { %v6390_v51 = vadd.f32 %v6389_v43, %v6277_v40 }
 0xa1f   : > { %v6503_v20 = vadd.f32 %v6502_v11, %v6390_v51 }
 0xa21   : > { %v6616_v14 = vadd.f32 %v6615_v54, %v6503_v20 }
 0xa22   : > { %v6505_v55 = vpop.f32.mrf.mxu2 }
 0xa23   : > { %6651 = vst [vmem:[%s13052_s25 + $0xf0] sm:$0xff] %v6616_v14 }
 0xa24   : > { %v6392_v30 = vpop.f32.mrf.mxu1 }
 0xa25   : > { %v6393_v56 = vadd.f32 %v6392_v30, %v6280_v48 }
 0xa27   : > { %v6506_v22 = vadd.f32 %v6505_v55, %v6393_v56 }
 0xa29   : > { %v6619_v45 = vadd.f32 %v6618_v2, %v6506_v22 }
 0xa2b   : > { %6652 = vst [vmem:[%s13052_s25 + $0xf8] sm:$0xff] %v6619_v45 }
 0xa2c PF: > { %s19_s30 = sadd.s32 1, %s7730_s30  }
 0xa2d   : > { %p16_p4 = scmp.ge.s32.totalorder %s19_s30, 4  }
 0xa2f   :  { %18 = sbr.rel (!%p16_p4) target bundleno = 1 (0x1), region = 87 }

</bundles_post_ra>
